<compile_context>
chip_gen: v7x
topology: tpu7x:2x2x1
jax: 0.10.0
libtpu: 0.0.40
codegen_flags: <defaults>
</compile_context>

<pallas_src>
import functools

import jax
import jax.numpy as jnp
from jax import lax
from jax.experimental import pallas as pl
from jax.experimental.pallas import tpu as pltpu

HIDDEN = 4096  # fixed by the module: nn.Linear(4096, 4096)


def _round_up(v, m):
    return (v + m - 1) // m * m


def _linear_add_add_kernel(a_ref, w_ref, b_ref, o_ref, *, tn):
    """One (tm, tn) output tile; the full K dimension is resident (no K axis).

    Grid is (N//tn, M//tm) with the N (weight-block) axis OUTER, so w_ref is
    re-fetched only N//tn times total regardless of M.

    a_ref : (tm, K)  activation block (full hidden dim, input dtype, e.g. f32)
    w_ref : (tn, K)  weight block in PyTorch (out, in) layout (bf16)
    b_ref : (1,  tn) bias block
    o_ref : (tm, tn) output block
    """
    j = pl.program_id(0)  # output-feature tile index (outer axis)

    # y = x @ W^T : contract the last (K) dim of both operands -> no transpose
    # of the weight is ever materialized (MXU handles the transposed-RHS form).
    acc = lax.dot_general(
        a_ref[...].astype(w_ref.dtype), w_ref[...],
        dimension_numbers=(((1,), (1,)), ((), ())),
        preferred_element_type=jnp.float32)

    # Residual (+ x + x): valid because out_features == in_features, so the
    # residual columns of output tile j are columns [j*tn, (j+1)*tn) of the
    # resident activation block -- saves a second x input stream entirely.
    col = pl.multiple_of(j * tn, tn)
    resid = a_ref[:, pl.ds(col, tn)].astype(jnp.float32)

    out = acc + b_ref[...].astype(jnp.float32) + 2.0 * resid
    o_ref[...] = out.astype(o_ref.dtype)


@functools.partial(jax.jit, static_argnames=("tn",))
def linear_add_add(x, weight, bias, *, tn=1024):
    """y = x @ weight.T + bias + x + x

    x      : (..., 4096)
    weight : (4096, 4096)  (out_features, in_features) -- PyTorch layout,
             ideally pre-cast to bf16 once by the caller.
    bias   : (4096,)
    """
    orig_shape = x.shape
    K = orig_shape[-1]
    N = weight.shape[0]
    assert K == HIDDEN and weight.shape == (N, K)
    # The fused residual relies on out_features == in_features (true for this
    # module). If that ever changes, a separate residual stream is required.
    assert N == K, "Linear_add_add fusion requires a square weight"
    assert N % tn == 0 and tn % 128 == 0

    x2d = x.reshape(-1, K)
    M = x2d.shape[0]

    # Pad M so the MXU always sees full tiles (no hard divisibility assert).
    M_pad = _round_up(M, 8)
    tm = min(128, M_pad)
    M_pad = _round_up(M_pad, tm)
    if M_pad != M:
        x2d = jnp.pad(x2d, ((0, M_pad - M), (0, 0)))

    b2d = bias.reshape(1, N)

    # Outer axis = output-feature tiles (weight blocks), inner axis = M tiles.
    # The weight block index only changes on the outer axis -> weight streamed
    # from HBM exactly once per call; the cheap activation block is what gets
    # re-streamed N//tn times.
    grid = (N // tn, M_pad // tm)

    bytes_accessed = (x2d.size * x2d.dtype.itemsize * (N // tn)
                      + weight.size * weight.dtype.itemsize
                      + b2d.size * b2d.dtype.itemsize
                      + M_pad * N * x.dtype.itemsize)
    cost = pl.CostEstimate(flops=2 * M_pad * N * K, transcendentals=0,
                           bytes_accessed=bytes_accessed)

    out2d = pl.pallas_call(
        functools.partial(_linear_add_add_kernel, tn=tn),
        out_shape=jax.ShapeDtypeStruct((M_pad, N), x.dtype),
        grid_spec=pltpu.PrefetchScalarGridSpec(
            num_scalar_prefetch=0,
            grid=grid,
            in_specs=[
                pl.BlockSpec((tm, K), lambda j, i: (i, 0)),   # activations, full K
                pl.BlockSpec((tn, K), lambda j, i: (j, 0)),   # weight (out, in) layout
                pl.BlockSpec((1, tn), lambda j, i: (0, j)),   # bias
            ],
            out_specs=pl.BlockSpec((tm, tn), lambda j, i: (i, j)),
        ),
        compiler_params=pltpu.CompilerParams(
            dimension_semantics=("parallel", "parallel"),
            vmem_limit_bytes=48 * 1024 * 1024),
        cost_estimate=cost,
    )(x2d, weight, b2d)

    return out2d[:M].reshape(orig_shape)


if __name__ == "__main__":
    key = jax.random.PRNGKey(0)
    kx, kw, kb = jax.random.split(key, 3)

    # Small batch/seq; hidden is fixed at 4096 by the module definition.
    batch, seq = 2, 4
    x = jax.random.normal(kx, (batch, seq, HIDDEN), dtype=jnp.float32)

    # Deterministic params mimicking nn.Linear's uniform(-1/sqrt(in), 1/sqrt(in)).
    bound = 1.0 / (HIDDEN ** 0.5)
    weight = jax.random.uniform(kw, (HIDDEN, HIDDEN), jnp.float32, -bound, bound)
    bias = jax.random.uniform(kb, (HIDDEN,), jnp.float32, -bound, bound)

    # Pre-cast the weight ONCE outside the hot path; the kernel streams bf16.
    weight_bf16 = weight.astype(jnp.bfloat16)

    y = linear_add_add(x, weight_bf16, bias)
    y = jax.block_until_ready(y)

    # Reference with matching bf16 quantization (f32 accumulate).
    x2d = x.reshape(-1, HIDDEN)
    y_ref = (jnp.dot(x2d.astype(jnp.bfloat16), weight_bf16.T,
                     preferred_element_type=jnp.float32)
             + bias + 2.0 * x2d).reshape(x.shape)
    assert jnp.allclose(y, y_ref, rtol=1e-2, atol=1e-2), "mismatch vs bf16 reference"

    # Looser sanity check against full-f32 math (bf16 weight quantization noise).
    y_f32 = x @ weight.T + bias + x + x
    assert jnp.allclose(y, y_f32, rtol=5e-2, atol=5e-2), "mismatch vs f32 reference"

    print("KERNEL_OK")
</pallas_src>

<mosaic_0001>
module attributes {stable_mosaic.version = 11 : i64} {
  func.func @_linear_add_add_kernel(%arg0: i32, %arg1: i32, %arg2: memref<8x4096xf32, #tpu.memory_space<vmem>>, %arg3: memref<1024x4096xbf16, #tpu.memory_space<vmem>>, %arg4: memref<1x1024xf32, #tpu.memory_space<vmem>>, %arg5: memref<8x1024xf32, #tpu.memory_space<vmem>>) attributes {dimension_semantics = [#tpu.dimension_semantics<parallel>, #tpu.dimension_semantics<parallel>], iteration_bounds = array<i64: 4, 1>, scalar_prefetch = 0 : i64, scratch_operands = 0 : i64, tpu.core_type = #tpu.core_type<tc>, window_params = [{transform_indices = @transform_0, window_bounds = array<i64: 8, 4096>}, {transform_indices = @transform_1, window_bounds = array<i64: 1024, 4096>}, {transform_indices = @transform_2, window_bounds = array<i64: 1, 1024>}, {transform_indices = @transform_3, window_bounds = array<i64: 8, 1024>}]} {
    %c0 = arith.constant 0 : index
    %c0_0 = arith.constant 0 : index
    %0 = vector.load %arg2[%c0, %c0_0] : memref<8x4096xf32, #tpu.memory_space<vmem>>, vector<8x4096xf32>
    %1 = arith.truncf %0 : vector<8x4096xf32> to vector<8x4096xbf16>
    %c0_1 = arith.constant 0 : index
    %c0_2 = arith.constant 0 : index
    %2 = vector.load %arg3[%c0_1, %c0_2] : memref<1024x4096xbf16, #tpu.memory_space<vmem>>, vector<1024x4096xbf16>
    %cst = arith.constant dense<0.000000e+00> : vector<8x1024xf32>
    %3 = tpu.matmul %1, %2, %cst {dimension_numbers = #tpu.dot_dimension_numbers<[1], [1], [0], [0], [0, 0, 1, 0], [], []>} : vector<8x4096xbf16>, vector<1024x4096xbf16>, vector<8x1024xf32> -> vector<8x1024xf32>
    %c1024_i32 = arith.constant 1024 : i32
    %4 = arith.muli %arg0, %c1024_i32 : i32
    %5 = tpu.assume_multiple %4, 1024 : i32
    %c0_3 = arith.constant 0 : index
    %6 = arith.index_cast %5 : i32 to index
    %7 = vector.load %arg2[%c0_3, %6] : memref<8x4096xf32, #tpu.memory_space<vmem>>, vector<8x1024xf32>
    %c0_4 = arith.constant 0 : index
    %c0_5 = arith.constant 0 : index
    %8 = vector.load %arg4[%c0_4, %c0_5] : memref<1x1024xf32, #tpu.memory_space<vmem>>, vector<1x1024xf32>
    %9 = vector.broadcast %8 : vector<1x1024xf32> to vector<8x1024xf32>
    %10 = arith.addf %3, %9 : vector<8x1024xf32>
    %cst_6 = arith.constant 2.000000e+00 : f32
    %11 = vector.broadcast %cst_6 : f32 to vector<8x1024xf32>
    %12 = arith.mulf %11, %7 : vector<8x1024xf32>
    %13 = arith.addf %10, %12 : vector<8x1024xf32>
    %c0_7 = arith.constant 0 : index
    %c0_8 = arith.constant 0 : index
    %14 = vector.load %arg5[%c0_7, %c0_8] : memref<8x1024xf32, #tpu.memory_space<vmem>>, vector<8x1024xf32>
    tpu.vector_store %arg5[%c0_7, %c0_8], %13 {strides = array<i32>} : memref<8x1024xf32, #tpu.memory_space<vmem>>, vector<8x1024xf32>,
    return
  }
  func.func @transform_0(%arg0: i32, %arg1: i32) -> (i32, i32) {
    %c0_i32 = arith.constant 0 : i32
    %c0_i32_0 = arith.constant 0 : i32
    return %arg1, %c0_i32 : i32, i32
  }
  func.func @transform_1(%arg0: i32, %arg1: i32) -> (i32, i32) {
    %c0_i32 = arith.constant 0 : i32
    %c0_i32_0 = arith.constant 0 : i32
    return %arg0, %c0_i32 : i32, i32
  }
  func.func @transform_2(%arg0: i32, %arg1: i32) -> (i32, i32) {
    %c0_i32 = arith.constant 0 : i32
    %c0_i32_0 = arith.constant 0 : i32
    return %c0_i32, %arg0 : i32, i32
  }
  func.func @transform_3(%arg0: i32, %arg1: i32) -> (i32, i32) {
    %c0_i32 = arith.constant 0 : i32
    return %arg1, %arg0 : i32, i32
  }
}

</mosaic_0001>

<bundles_post_ra>
// kernel: linear_add_add.1
= control target key start
LH: loop header
LB: loop body
LE: loop exit
PB: predicated region body
PF: predicated region fallthrough
CT: control target
= control target key end

     0   :  { %8 = vsyncpa [#allocation3], 0  ;;  %s20436_s0 = inlined_call_operand.vmem [shape: f32[8,4096], index: 0, kind: input, shape index: {}]   ;;  %s20437_s1 = inlined_call_operand.hbm [shape: bf16[4096,4096], index: 1, kind: input, shape index: {}]   ;;  %s20438_s2 = inlined_call_operand.hbm [shape: f32[1,4096], index: 2, kind: input, shape index: {}]   ;;  %s20439_s3 = inlined_call_operand.vmem [shape: f32[8,4096], index: 3, kind: output, shape index: {}]  }
   0x1   :  { %10 = vsyncpa [#allocation3 + $0x1], 0 }
   0x2   :  { %11 = vsyncpa [#allocation5], 0 }
   0x3   :  { %13 = vsyncpa [#allocation5 + $0x1], 0  ;;  %s17739_s12 = smov 0   ;;  %s17741_s13 = smov 0  }
   0x4   :  { %s17743_s14 = smov 0   ;;  %s17745_s15 = smov 0  }
   0x5   :  { %s17747_s16 = smov 0   ;;  %s17749_s17 = smov 0  }
   0x6 LB: > { %s15462_s18 = sadd.s32 4294967295, %s17713_s17   ;;  %s31_s19 = sadd.s32 1, %s17709_s16  ;;  %s17713_s17 = sphi %s17749_s17, %s19_s17   ;;  %s17709_s16 = sphi %s17747_s16, %s20451_s16   ;;  %s17705_s15 = sphi %s17745_s15, %s20450_s15   ;;  %s17701_s14 = sphi %s17743_s14, %s20449_s14   ;;  %s17697_s13 = sphi %s17741_s13, %s20448_s13   ;;  %s17693_s12 = sphi %s17739_s12, %s20447_s12  }
   0x7   : > { %p33_p0 = scmp.ge.s32.totalorder %s31_s19, 4  ;;  %s64_s20 = sadd.s32 1, %s17701_s14 }
   0x8   : > { %p71_p1 = scmp.ne.s32.totalorder %s17701_s14, %s17697_s13  ;;  %p72_p2 = scmp.eq.s32.totalorder %s17713_s17, 0 }
   0x9   : > { %s20453_s19 = smov (%p33_p0, %s31_s19), 0  ;;  %p77_p4 = scmp.ne.s32.totalorder %s17697_s13, %s17693_s12 }
   0xa   : > { %p17775_p3 = por %p72_p2, %p71_p1  ;;  %s61_s22 = ssub.s32 %s17709_s16, %s20453_s19 }
   0xb   : > { %p78_p5 = scmp.eq.s32.totalorder %s15462_s18, 0  ;;  %p62_p6 = scmp.eq.s32.totalorder %s61_s22, 0 }
   0xc   : > { %p17545_p8 = scmp.lt.s32.totalorder %s17713_s17, 4  ;;  %s17791_s25 = sand.u32 1, %s17701_s14  }
   0xd   : > { %p17782_p7 = por %p78_p5, %p77_p4  ;;  %s17532_s26 = sshll.u32 %s17709_s16, 18 }
   0xe   : > { %s17788_s24 = scalar_select %p62_p6, %s17701_s14, %s64_s20  }
   0xf   : > { %s20442_s23 = scalar_select %p17782_p7, 1, 0 }
  0x10   : > { %s15467_s27 = sshll.u32 %s17791_s25, 14  ;;  %s17798_s30 = scalar_lea.hbm %s20437_s1, %s17532_s26 }
  0x11   : > { %s167_s4 = scalar_lea.vmem [#allocation2], %s15467_s27  ;;  %p17802_p9 = pnand %p17545_p8, %p17775_p3 }
  0x12   : > { %s175_s5 = sshll.u32 %s167_s4, 4  ;;  %s164_s7 = scalar_lea.sflag [#allocation3], %s17791_s25  ;;  %s17806_s5 = int_to_ptr.vmem [resolvable:$true] %s175_s5 }
  0x13   : > { %s17599_s8 = scalar_lea.hbm %s17798_s30, 262144  ;;  %p17601_p11 = pneg %p17802_p9 }
  0x14   : > { %p17600_p10 = scmp.ne.s32.totalorder %s17798_s30, %s17599_s8  ;;  %s17604_s11 = scalar_lea.hbm %s20437_s1, 1048576 }
  0x15   : > { %p17605_p0 = scmp.lt.u32.totalorder %s17798_s30, %s20437_s1  ;;  %p17606_p1 = scmp.lt.u32.totalorder %s17604_s11, %s17599_s8 }
  0x16   : > { %p17602_p12 = pnand %p17601_p11, %p17600_p10  ;;  %p17608_p3 = scmp.lt.u32.totalorder %s17599_s8, %s17798_s30 }
  0x17   : > { %p17607_p2 = por %p17606_p1, %p17605_p0 }
  0x18   : > { %p17603_p13 = pneg %p17602_p12 }
  0x19   : > { %p17609_p4 = por %p17608_p3, %p17607_p2 }
  0x1b   : > { %p17610_p5 = pnand %p17609_p4, %p17603_p13 }
  0x1d   : > { %17613 = shalt.err (!%p17610_p5)
}
  0x1e   : > { %s17614_s20 = scalar_lea.vmem %s17806_s5, 262144  ;;  %s17715_s21 = smov [#allocation2]  }
  0x1f   : > { %p17615_p6 = scmp.ne.s32.totalorder %s17806_s5, %s17614_s20  ;;  %s17619_s22 = sshll.u32 %s17715_s21, 4  ;;  %s17620_s22 = int_to_ptr.vmem [resolvable:$false] %s17619_s22 }
  0x20   : > { %s17621_s26 = scalar_lea.vmem %s17620_s22, 524288  ;;  %p17622_p12 = scmp.lt.s32.totalorder %s17806_s5, %s17620_s22 }
  0x21   : > { %p17617_p8 = pnand %p17615_p6, %p17601_p11  ;;  %p17623_p0 = scmp.lt.s32.totalorder %s17621_s26, %s17614_s20 }
  0x23   : > { %p17618_p10 = pneg %p17617_p8  ;;  %p17624_p1 = por %p17623_p0, %p17622_p12 }
  0x25   : > { %p17625_p2 = pnand %p17624_p1, %p17618_p10 }
  0x27   : > { %17628 = shalt.err (!%p17625_p2)
}
  0x28   : > { %s17716_s27 = smov 2048   ;;  %s17717_s28 = smov 128  }
  0x29   : > { %17541 = dma.hbm_to_vmem [thread:$0]  (!%p17802_p9), %s17798_s30, 262144, %s17806_s5, %s164_s7, %s17716_s27, %s17716_s27, %s17717_s28  }
  0x2a   : > { %p15474_p13 = scmp.ge.s32.totalorder %s17713_s17, 1  ;;  %p202_p3 = scmp.lt.s32.totalorder %s17713_s17, 5 }
  0x2b   : > { %s15471_s29 = sshll.u32 %s17791_s25, 3  ;;  %s17533_s8 = sshll.u32 %s17709_s16, 7 }
  0x2c   : > { %p17839_p4 = pnand %p15474_p13, %p202_p3  ;;  %s189_s9 = scalar_lea.vmem [#allocation4], %s15471_s29 }
  0x2d   : > { %s197_s10 = sshll.u32 %s189_s9, 4  ;;  %s17847_s18 = scalar_lea.hbm %s20438_s2, %s17533_s8  ;;  %s198_s10 = int_to_ptr.vmem [resolvable:$true] %s197_s10 }
  0x2e   : > { %s20444_s4 = scalar_select %p17839_p4, 1, 0 }
  0x2f   : > { %s186_s30 = scalar_lea.sflag [#allocation5], %s17791_s25  ;;  %s17629_s5 = scalar_lea.hbm %s17847_s18, 128 }
  0x30   : > { %p17630_p5 = scmp.ne.s32.totalorder %s17847_s18, %s17629_s5  ;;  %s17634_s21 = scalar_lea.hbm %s20438_s2, 512 }
  0x31   : > { %p17635_p10 = scmp.lt.u32.totalorder %s17847_s18, %s20438_s2  ;;  %p17636_p12 = scmp.lt.u32.totalorder %s17634_s21, %s17629_s5 }
  0x32   : > { %p17632_p6 = pnand %p17630_p5, %p17601_p11  ;;  %p17638_p1 = scmp.lt.u32.totalorder %s17629_s5, %s17847_s18 }
  0x33   : > { %p17637_p0 = por %p17636_p12, %p17635_p10 }
  0x34   : > { %p17633_p8 = pneg %p17632_p6 }
  0x35   : > { %p17639_p2 = por %p17638_p1, %p17637_p0 }
  0x37   : > { %p17640_p13 = pnand %p17639_p2, %p17633_p8 }
  0x39   : > { %17643 = shalt.err (!%p17640_p13)
}
  0x3a   : > { %s17644_s25 = scalar_lea.vmem %s198_s10, 128  ;;  %s17718_s27 = smov [#allocation4]  }
  0x3b   : > { %p17645_p3 = scmp.ne.s32.totalorder %s198_s10, %s17644_s25  ;;  %s17649_s28 = sshll.u32 %s17718_s27, 4  ;;  %s17650_s28 = int_to_ptr.vmem [resolvable:$false] %s17649_s28 }
  0x3c   : > { %s17651_s29 = scalar_lea.vmem %s17650_s28, 256  ;;  %p17652_p7 = scmp.lt.s32.totalorder %s198_s10, %s17650_s28 }
  0x3d   : > { %p17647_p5 = pnand %p17645_p3, %p17601_p11  ;;  %p17653_p4 = scmp.lt.s32.totalorder %s17651_s29, %s17644_s25 }
  0x3f   : > { %p17648_p6 = pneg %p17647_p5  ;;  %p17654_p10 = por %p17653_p4, %p17652_p7 }
  0x41   : > { %p17655_p12 = pnand %p17654_p10, %p17648_p6 }
  0x43   : > { %17658 = shalt.err (!%p17655_p12)
}
  0x44   : > { %17544 = dma.hbm_to_vmem [thread:$0]  (!%p17802_p9), %s17847_s18, 128, %s198_s10, %s186_s30  }
  0x45   : > { %p20445_p8 = scmp.ne.s32.totalorder %s20444_s4, 0 }
  0x46   : > { %s208_s8 = sand.u32 (!%p20445_p8), 1, %s17697_s13   ;;  %p20446_p11 = scmp.ne.s32.totalorder (!%p20445_p8), %s20442_s23, 0 }
  0x47   : > { %206 = sbr.rel (%p20445_p8) target bundleno = 4402 (0x1132), region = 32  ;;  %s15475_s9 = sshll.u32 (!%p20445_p8), %s208_s8, 14 }
  0x48   : > { %s209_s11 = scalar_lea.sflag (!%p20445_p8), [#allocation3], %s208_s8  ;;  %s17872_s12 = scalar_lea.vmem (!%p20445_p8), [#allocation2], %s15475_s9 }
  0x4e   : > { %17684 = dma.done.wait (%p20446_p11), %s209_s11, 262144  }
  0x4f   : > { %17686 = vsyncadd (%p20446_p11), %s209_s11, 4294705152  ;;  %s15476_s5 = sshll.u32 %s208_s8, 3  ;;  %s218_s6 = scalar_lea.sflag [#allocation5], %s208_s8 }
  0x50   : > { %s17878_s7 = scalar_lea.vmem [#allocation4], %s15476_s5 }
  0x51   : > { %17688 = dma.done.wait (%p20446_p11), %s218_s6, 128  }
  0x52   : > { %17690 = vsyncadd (%p20446_p11), %s218_s6, 4294967168  ;;  %v339_v0 = vld [vmem:[%s17872_s12] sm:$0xff]  ;;  %v340_v2 = vld [vmem:[%s17872_s12 + $0x8] sm:$0xff]  ;;  %s15479_s27 = sshll.u32 %s17705_s15, 10  ;;  %s15477_s29 = sshll.u32 %s17705_s15, 3 }
  0x53   : > { %v355_v1 = vld [vmem:[%s17872_s12 + $0x80] sm:$0xff]  ;;  %v356_v4 = vld [vmem:[%s17872_s12 + $0x88] sm:$0xff]  ;;  %v278_v31 = vld [vmem:[%s20436_s0 + $0x18] sm:$0xff]  ;;  %s2388_s28 = sshra.s32 %s15479_s27, 7  ;;  %p268_p7 = scmp.lt.s32.totalorder %s15477_s29, 31 }
  0x54   : > { %v15482_v3 = vcombine.high %v339_v0, %v355_v1  ;;  %v15481_v5 = vcombine.low %v339_v0, %v355_v1  ;;  %v371_v6 = vld [vmem:[%s17872_s12 + $0x100] sm:$0xff]  ;;  %v15484_v8 = vcombine.high %v340_v2, %v356_v4  ;;  %v15483_v9 = vcombine.low %v340_v2, %v356_v4  ;;  %v372_v11 = vld [vmem:[%s17872_s12 + $0x108] sm:$0xff]  ;;  %s15480_s8 = sshll.u32 %s2388_s28, 3 }
  0x55   : > { %v387_v7 = vld [vmem:[%s17872_s12 + $0x180] sm:$0xff]  ;;  %v388_v12 = vld [vmem:[%s17872_s12 + $0x188] sm:$0xff]  ;;  %v17910_v35 = vpack.c.bf16 %v278_v31, %v278_v31  ;;  %s18756_s5 = scalar_lea.vmem %s20436_s0, %s15480_s8  ;;  %s20455_s29 = smov (!%p268_p7, %s15477_s29), 31 }
  0x56   : > { %v15514_v10 = vcombine.high %v371_v6, %v387_v7  ;;  %12682 = vmatprep.subr.bf16.mxu0 %v15482_v3  ;;  %v15516_v13 = vcombine.high %v372_v11, %v388_v12  ;;  %12723 = vmatprep.subr.bf16.mxu1 %v15484_v8  ;;  %v403_v14 = vld [vmem:[%s17872_s12 + $0x200] sm:$0xff]  ;;  %v404_v16 = vld [vmem:[%s17872_s12 + $0x208] sm:$0xff]  ;;  %v15513_v18 = vcombine.low %v371_v6, %v387_v7  ;;  %s15478_s15 = sshll.u32 %s20455_s29, 3 }
  0x57   : > { %12683 = vmatpush1.bf16.xpose.msra.mxu0 %v15481_v5  ;;  %12724 = vmatpush1.bf16.xpose.msra.mxu1 %v15483_v9  ;;  %v419_v15 = vld [vmem:[%s17872_s12 + $0x280] sm:$0xff]  ;;  %v420_v17 = vld [vmem:[%s17872_s12 + $0x288] sm:$0xff]  ;;  %v15515_v19 = vcombine.low %v372_v11, %v388_v12  ;;  %s18769_s4 = scalar_lea.vmem %s20439_s3, %s15478_s15 }
  0x58   : > { %12684 = vmatprep.subr.bf16.mxu0 %v15514_v10  ;;  %12725 = vmatprep.subr.bf16.mxu1 %v15516_v13  ;;  %v15546_v20 = vcombine.high %v403_v14, %v419_v15  ;;  %v15548_v21 = vcombine.high %v404_v16, %v420_v17  ;;  %v435_v22 = vld [vmem:[%s17872_s12 + $0x300] sm:$0xff]  ;;  %v436_v24 = vld [vmem:[%s17872_s12 + $0x308] sm:$0xff]  ;;  %v15545_v26 = vcombine.low %v403_v14, %v419_v15 }
  0x59   : > { %v451_v23 = vld [vmem:[%s17872_s12 + $0x380] sm:$0xff]  ;;  %v452_v25 = vld [vmem:[%s17872_s12 + $0x388] sm:$0xff]  ;;  %v15547_v27 = vcombine.low %v404_v16, %v420_v17  ;;  %12755 = vmatprep.mubr.bf16.mxu1 %v17910_v35 }
  0x5a   : > { %v15578_v28 = vcombine.high %v435_v22, %v451_v23  ;;  %v15580_v29 = vcombine.high %v436_v24, %v452_v25  ;;  %v276_v30 = vld [vmem:[%s20436_s0 + $0x8] sm:$0xff]  ;;  %v467_v32 = vld [vmem:[%s17872_s12 + $0x400] sm:$0xff]  ;;  %v15577_v38 = vcombine.low %v435_v22, %v451_v23  ;;  %v15579_v39 = vcombine.low %v436_v24, %v452_v25 }
  0x5b   : > { %v483_v33 = vld [vmem:[%s17872_s12 + $0x480] sm:$0xff]  ;;  %v17908_v34 = vpack.c.bf16 %v276_v30, %v276_v30  ;;  %v468_v36 = vld [vmem:[%s17872_s12 + $0x408] sm:$0xff] }
  0x5c   : > { %v484_v37 = vld [vmem:[%s17872_s12 + $0x488] sm:$0xff]  ;;  %v15610_v40 = vcombine.high %v467_v32, %v483_v33  ;;  %v499_v42 = vld [vmem:[%s17872_s12 + $0x500] sm:$0xff]  ;;  %v15609_v46 = vcombine.low %v467_v32, %v483_v33 }
  0x5d   : > { %12714 = vmatprep.mubr.bf16.mxu0 %v17908_v34  ;;  %v15612_v41 = vcombine.high %v468_v36, %v484_v37  ;;  %v515_v43 = vld [vmem:[%s17872_s12 + $0x580] sm:$0xff]  ;;  %v500_v44 = vld [vmem:[%s17872_s12 + $0x508] sm:$0xff]  ;;  %v15611_v47 = vcombine.low %v468_v36, %v484_v37 }
  0x5e   : > { %v516_v45 = vld [vmem:[%s17872_s12 + $0x588] sm:$0xff]  ;;  %v15642_v48 = vcombine.high %v499_v42, %v515_v43  ;;  %v531_v50 = vld [vmem:[%s17872_s12 + $0x600] sm:$0xff]  ;;  %v15641_v54 = vcombine.low %v499_v42, %v515_v43 }
  0x5f   : > { %12685 = vmatpush1.bf16.xpose.msra.mxu0 %v15513_v18  ;;  %12726 = vmatpush1.bf16.xpose.msra.mxu1 %v15515_v19  ;;  %v15644_v49 = vcombine.high %v500_v44, %v516_v45  ;;  %v547_v51 = vld [vmem:[%s17872_s12 + $0x680] sm:$0xff]  ;;  %v532_v52 = vld [vmem:[%s17872_s12 + $0x608] sm:$0xff]  ;;  %v15643_v55 = vcombine.low %v500_v44, %v516_v45 }
  0x60   : > { %12686 = vmatprep.subr.bf16.mxu0 %v15546_v20  ;;  %12727 = vmatprep.subr.bf16.mxu1 %v15548_v21  ;;  %v548_v53 = vld [vmem:[%s17872_s12 + $0x688] sm:$0xff]  ;;  %v15674_v56 = vcombine.high %v531_v50, %v547_v51  ;;  %v563_v58 = vld [vmem:[%s17872_s12 + $0x700] sm:$0xff]  ;;  %v15673_v62 = vcombine.low %v531_v50, %v547_v51 }
  0x61   : > { %v15676_v57 = vcombine.high %v532_v52, %v548_v53  ;;  %v579_v59 = vld [vmem:[%s17872_s12 + $0x780] sm:$0xff]  ;;  %v564_v60 = vld [vmem:[%s17872_s12 + $0x708] sm:$0xff]  ;;  %v15675_v63 = vcombine.low %v532_v52, %v548_v53 }
  0x62   : > { %v580_v61 = vld [vmem:[%s17872_s12 + $0x788] sm:$0xff]  ;;  %v15706_v0 = vcombine.high %v563_v58, %v579_v59  ;;  %v595_v2 = vld [vmem:[%s17872_s12 + $0x800] sm:$0xff]  ;;  %v15705_v6 = vcombine.low %v563_v58, %v579_v59 }
  0x63   : > { %v15708_v1 = vcombine.high %v564_v60, %v580_v61  ;;  %v611_v3 = vld [vmem:[%s17872_s12 + $0x880] sm:$0xff]  ;;  %v596_v4 = vld [vmem:[%s17872_s12 + $0x808] sm:$0xff]  ;;  %v15707_v7 = vcombine.low %v564_v60, %v580_v61 }
  0x64   : > { %v612_v5 = vld [vmem:[%s17872_s12 + $0x888] sm:$0xff]  ;;  %v15738_v8 = vcombine.high %v595_v2, %v611_v3  ;;  %v627_v10 = vld [vmem:[%s17872_s12 + $0x900] sm:$0xff]  ;;  %v15737_v14 = vcombine.low %v595_v2, %v611_v3 }
  0x65   : > { %v15740_v9 = vcombine.high %v596_v4, %v612_v5  ;;  %v643_v11 = vld [vmem:[%s17872_s12 + $0x980] sm:$0xff]  ;;  %v628_v12 = vld [vmem:[%s17872_s12 + $0x908] sm:$0xff]  ;;  %v15739_v15 = vcombine.low %v596_v4, %v612_v5  ;;  %v341_v4 = vld [vmem:[%s17872_s12 + $0x10] sm:$0xff] }
  0x66   : > { %v644_v13 = vld [vmem:[%s17872_s12 + $0x988] sm:$0xff]  ;;  %v15770_v16 = vcombine.high %v627_v10, %v643_v11  ;;  %v659_v18 = vld [vmem:[%s17872_s12 + $0xa00] sm:$0xff]  ;;  %v15769_v22 = vcombine.low %v627_v10, %v643_v11  ;;  %v357_v5 = vld [vmem:[%s17872_s12 + $0x90] sm:$0xff] }
  0x67   : > { %12687 = vmatpush1.bf16.xpose.msra.mxu0 %v15545_v26  ;;  %12728 = vmatpush1.bf16.xpose.msra.mxu1 %v15547_v27  ;;  %v15772_v17 = vcombine.high %v628_v12, %v644_v13  ;;  %v675_v19 = vld [vmem:[%s17872_s12 + $0xa80] sm:$0xff]  ;;  %v660_v20 = vld [vmem:[%s17872_s12 + $0xa08] sm:$0xff]  ;;  %v15771_v23 = vcombine.low %v628_v12, %v644_v13  ;;  %v15486_v10 = vcombine.high %v341_v4, %v357_v5  ;;  %v277_v13 = vld [vmem:[%s20436_s0 + $0x10] sm:$0xff] }
  0x68   : > { %12688 = vmatprep.subr.bf16.mxu0 %v15578_v28  ;;  %12729 = vmatprep.subr.bf16.mxu1 %v15580_v29  ;;  %v676_v21 = vld [vmem:[%s17872_s12 + $0xa88] sm:$0xff]  ;;  %v15802_v24 = vcombine.high %v659_v18, %v675_v19  ;;  %v691_v26 = vld [vmem:[%s17872_s12 + $0xb00] sm:$0xff]  ;;  %v15801_v30 = vcombine.low %v659_v18, %v675_v19  ;;  %v390_v18 = vld [vmem:[%s17872_s12 + $0x198] sm:$0xff] }
  0x69   : > { %v15804_v25 = vcombine.high %v660_v20, %v676_v21  ;;  %v707_v27 = vld [vmem:[%s17872_s12 + $0xb80] sm:$0xff]  ;;  %v692_v28 = vld [vmem:[%s17872_s12 + $0xb08] sm:$0xff]  ;;  %v15803_v31 = vcombine.low %v660_v20, %v676_v21  ;;  %v17979_v20 = vpack.c.bf16 %v277_v13, %v277_v13  ;;  %v15485_v21 = vcombine.low %v341_v4, %v357_v5 }
  0x6a   : > { %v708_v29 = vld [vmem:[%s17872_s12 + $0xb88] sm:$0xff]  ;;  %v15834_v32 = vcombine.high %v691_v26, %v707_v27  ;;  %v723_v36 = vld [vmem:[%s17872_s12 + $0xc00] sm:$0xff] }
  0x6b   : > { %v15836_v33 = vcombine.high %v692_v28, %v708_v29  ;;  %v739_v37 = vld [vmem:[%s17872_s12 + $0xc80] sm:$0xff]  ;;  %v280_v19 = vld [vmem:[%s20436_s0 + $0x28] sm:$0xff] }
  0x6c   : > { %v15866_v42 = vcombine.high %v723_v36, %v739_v37  ;;  %v755_v44 = vld [vmem:[%s17872_s12 + $0xd00] sm:$0xff] }
  0x6d   : > { %v771_v45 = vld [vmem:[%s17872_s12 + $0xd80] sm:$0xff] }
  0x6e   : > { %v15898_v50 = vcombine.high %v755_v44, %v771_v45  ;;  %v787_v52 = vld [vmem:[%s17872_s12 + $0xe00] sm:$0xff] }
  0x6f   : > { %12689 = vmatpush1.bf16.xpose.msra.mxu0 %v15577_v38  ;;  %12730 = vmatpush1.bf16.xpose.msra.mxu1 %v15579_v39  ;;  %v724_v38 = vld [vmem:[%s17872_s12 + $0xc08] sm:$0xff]  ;;  %v803_v53 = vld [vmem:[%s17872_s12 + $0xe80] sm:$0xff] }
  0x70   : > { %12690 = vmatprep.subr.bf16.mxu0 %v15610_v40  ;;  %12731 = vmatprep.subr.bf16.mxu1 %v15612_v41  ;;  %v740_v39 = vld [vmem:[%s17872_s12 + $0xc88] sm:$0xff]  ;;  %v15833_v40 = vcombine.low %v691_v26, %v707_v27  ;;  %v15835_v41 = vcombine.low %v692_v28, %v708_v29  ;;  %v15930_v58 = vcombine.high %v787_v52, %v803_v53  ;;  %v819_v60 = vld [vmem:[%s17872_s12 + $0xf00] sm:$0xff]  ;;  %v405_v28 = vld [vmem:[%s17872_s12 + $0x210] sm:$0xff] }
  0x71   : > { %v15868_v43 = vcombine.high %v724_v38, %v740_v39  ;;  %v835_v61 = vld [vmem:[%s17872_s12 + $0xf80] sm:$0xff]  ;;  %v17984_v26 = vpack.c.bf16 %v280_v19, %v280_v19  ;;  %v421_v29 = vld [vmem:[%s17872_s12 + $0x290] sm:$0xff] }
  0x72   : > { %v15962_v2 = vcombine.high %v819_v60, %v835_v61  ;;  %v275_v12 = vld [vmem:[%s20436_s0] sm:$0xff] }
  0x77   : > { %12691 = vmatpush1.bf16.xpose.msra.mxu0 %v15609_v46  ;;  %12732 = vmatpush1.bf16.xpose.msra.mxu1 %v15611_v47  ;;  %v756_v46 = vld [vmem:[%s17872_s12 + $0xd08] sm:$0xff] }
  0x78   : > { %12692 = vmatprep.subr.bf16.mxu0 %v15642_v48  ;;  %12733 = vmatprep.subr.bf16.mxu1 %v15644_v49  ;;  %v772_v47 = vld [vmem:[%s17872_s12 + $0xd88] sm:$0xff]  ;;  %v15865_v48 = vcombine.low %v723_v36, %v739_v37  ;;  %v15867_v49 = vcombine.low %v724_v38, %v740_v39  ;;  %v15550_v36 = vcombine.high %v405_v28, %v421_v29  ;;  %v437_v38 = vld [vmem:[%s17872_s12 + $0x310] sm:$0xff] }
  0x79   : > { %v15900_v51 = vcombine.high %v756_v46, %v772_v47  ;;  %v453_v39 = vld [vmem:[%s17872_s12 + $0x390] sm:$0xff] }
  0x7f   : > { %12693 = vmatpush1.bf16.xpose.msra.mxu0 %v15641_v54  ;;  %12734 = vmatpush1.bf16.xpose.msra.mxu1 %v15643_v55  ;;  %v788_v54 = vld [vmem:[%s17872_s12 + $0xe08] sm:$0xff] }
  0x80   : > { %12694 = vmatprep.subr.bf16.mxu0 %v15674_v56  ;;  %12735 = vmatprep.subr.bf16.mxu1 %v15676_v57  ;;  %v804_v55 = vld [vmem:[%s17872_s12 + $0xe88] sm:$0xff]  ;;  %v15897_v56 = vcombine.low %v755_v44, %v771_v45  ;;  %v15899_v57 = vcombine.low %v756_v46, %v772_v47  ;;  %v15582_v44 = vcombine.high %v437_v38, %v453_v39  ;;  %v469_v46 = vld [vmem:[%s17872_s12 + $0x410] sm:$0xff] }
  0x81   : > { %v15932_v59 = vcombine.high %v788_v54, %v804_v55  ;;  %v485_v47 = vld [vmem:[%s17872_s12 + $0x490] sm:$0xff] }
  0x87   : > { %12695 = vmatpush1.bf16.xpose.msra.mxu0 %v15673_v62  ;;  %12736 = vmatpush1.bf16.xpose.msra.mxu1 %v15675_v63  ;;  %v820_v62 = vld [vmem:[%s17872_s12 + $0xf08] sm:$0xff] }
  0x88   : > { %12696 = vmatprep.subr.bf16.mxu0 %v15706_v0  ;;  %12737 = vmatprep.subr.bf16.mxu1 %v15708_v1  ;;  %v836_v63 = vld [vmem:[%s17872_s12 + $0xf88] sm:$0xff]  ;;  %v15929_v0 = vcombine.low %v787_v52, %v803_v53  ;;  %v15931_v1 = vcombine.low %v788_v54, %v804_v55  ;;  %v15614_v52 = vcombine.high %v469_v46, %v485_v47  ;;  %v501_v54 = vld [vmem:[%s17872_s12 + $0x510] sm:$0xff] }
  0x89   : > { %v15964_v3 = vcombine.high %v820_v62, %v836_v63  ;;  %v517_v55 = vld [vmem:[%s17872_s12 + $0x590] sm:$0xff] }
  0x8f   : > { %12697 = vmatpush1.bf16.xpose.msra.mxu0 %v15705_v6  ;;  %12738 = vmatpush1.bf16.xpose.msra.mxu1 %v15707_v7  ;;  %v342_v6 = vld [vmem:[%s17872_s12 + $0x18] sm:$0xff] }
  0x90   : > { %12698 = vmatprep.subr.bf16.mxu0 %v15738_v8  ;;  %12739 = vmatprep.subr.bf16.mxu1 %v15740_v9  ;;  %v358_v7 = vld [vmem:[%s17872_s12 + $0x98] sm:$0xff]  ;;  %v15961_v8 = vcombine.low %v819_v60, %v835_v61  ;;  %v15963_v9 = vcombine.low %v820_v62, %v836_v63  ;;  %v15646_v60 = vcombine.high %v501_v54, %v517_v55  ;;  %v533_v62 = vld [vmem:[%s17872_s12 + $0x610] sm:$0xff] }
  0x91   : > { %v15488_v11 = vcombine.high %v342_v6, %v358_v7  ;;  %v549_v63 = vld [vmem:[%s17872_s12 + $0x690] sm:$0xff] }
  0x92   : > { %v15678_v4 = vcombine.high %v533_v62, %v549_v63 }
  0x97   : > { %12699 = vmatpush1.bf16.xpose.msra.mxu0 %v15737_v14  ;;  %12740 = vmatpush1.bf16.xpose.msra.mxu1 %v15739_v15  ;;  %v373_v14 = vld [vmem:[%s17872_s12 + $0x110] sm:$0xff] }
  0x98   : > { %12700 = vmatprep.subr.bf16.mxu0 %v15770_v16  ;;  %12741 = vmatprep.subr.bf16.mxu1 %v15772_v17  ;;  %v389_v15 = vld [vmem:[%s17872_s12 + $0x190] sm:$0xff]  ;;  %v17972_v16 = vpack.c.bf16 %v275_v12, %v275_v12  ;;  %v374_v17 = vld [vmem:[%s17872_s12 + $0x118] sm:$0xff] }
  0x9f   : > { %12701 = vmatpush1.bf16.xpose.msra.mxu0 %v15769_v22  ;;  %12742 = vmatpush1.bf16.xpose.msra.mxu1 %v15771_v23  ;;  %v282_v22 = vld [vmem:[%s20436_s0 + $0x38] sm:$0xff]  ;;  %v15487_v23 = vcombine.low %v342_v6, %v358_v7  ;;  %v565_v6 = vld [vmem:[%s17872_s12 + $0x710] sm:$0xff] }
  0xa0   : > { %12702 = vmatprep.subr.bf16.mxu0 %v15802_v24  ;;  %12743 = vmatprep.subr.bf16.mxu1 %v15804_v25  ;;  %v15518_v24 = vcombine.high %v373_v14, %v389_v15  ;;  %v15520_v25 = vcombine.high %v374_v17, %v390_v18  ;;  %v17987_v27 = vpack.c.bf16 %v282_v22, %v282_v22  ;;  %v581_v7 = vld [vmem:[%s17872_s12 + $0x790] sm:$0xff] }
  0xa1   : > { %v15710_v12 = vcombine.high %v565_v6, %v581_v7  ;;  %v15709_v19 = vcombine.low %v565_v6, %v581_v7  ;;  %v790_v6 = vld [vmem:[%s17872_s12 + $0xe18] sm:$0xff] }
  0xa2   : > { %v806_v7 = vld [vmem:[%s17872_s12 + $0xe98] sm:$0xff] }
  0xa7   : > { %12703 = vmatpush1.bf16.xpose.msra.mxu0 %v15801_v30  ;;  %12744 = vmatpush1.bf16.xpose.msra.mxu1 %v15803_v31  ;;  %v406_v30 = vld [vmem:[%s17872_s12 + $0x218] sm:$0xff] }
  0xa8   : > { %12704 = vmatprep.subr.bf16.mxu0 %v15834_v32  ;;  %12745 = vmatprep.subr.bf16.mxu1 %v15836_v33  ;;  %v422_v31 = vld [vmem:[%s17872_s12 + $0x298] sm:$0xff]  ;;  %v15517_v32 = vcombine.low %v373_v14, %v389_v15  ;;  %v15519_v33 = vcombine.low %v374_v17, %v390_v18  ;;  %v597_v14 = vld [vmem:[%s17872_s12 + $0x810] sm:$0xff] }
  0xa9   : > { %v15552_v37 = vcombine.high %v406_v30, %v422_v31  ;;  %v613_v15 = vld [vmem:[%s17872_s12 + $0x890] sm:$0xff]  ;;  %v598_v17 = vld [vmem:[%s17872_s12 + $0x818] sm:$0xff] }
  0xaa   : > { %v614_v18 = vld [vmem:[%s17872_s12 + $0x898] sm:$0xff]  ;;  %v15742_v22 = vcombine.high %v597_v14, %v613_v15 }
  0xaf   : > { %12705 = vmatpush1.bf16.xpose.msra.mxu0 %v15833_v40  ;;  %12746 = vmatpush1.bf16.xpose.msra.mxu1 %v15835_v41  ;;  %v438_v40 = vld [vmem:[%s17872_s12 + $0x318] sm:$0xff] }
  0xb0   : > { %12706 = vmatprep.subr.bf16.mxu0 %v15866_v42  ;;  %12747 = vmatprep.subr.bf16.mxu1 %v15868_v43  ;;  %v454_v41 = vld [vmem:[%s17872_s12 + $0x398] sm:$0xff]  ;;  %v15549_v42 = vcombine.low %v405_v28, %v421_v29  ;;  %v15551_v43 = vcombine.low %v406_v30, %v422_v31  ;;  %v15741_v30 = vcombine.low %v597_v14, %v613_v15 }
  0xb1   : > { %v15584_v45 = vcombine.high %v438_v40, %v454_v41  ;;  %v630_v28 = vld [vmem:[%s17872_s12 + $0x918] sm:$0xff]  ;;  %v15743_v31 = vcombine.low %v598_v17, %v614_v18 }
  0xb2   : > { %v646_v29 = vld [vmem:[%s17872_s12 + $0x998] sm:$0xff] }
  0xb3   : > { %v822_v14 = vld [vmem:[%s17872_s12 + $0xf18] sm:$0xff] }
  0xb4   : > { %v838_v15 = vld [vmem:[%s17872_s12 + $0xf98] sm:$0xff] }
  0xb7   : > { %12707 = vmatpush1.bf16.xpose.msra.mxu0 %v15865_v48  ;;  %12748 = vmatpush1.bf16.xpose.msra.mxu1 %v15867_v49  ;;  %v470_v48 = vld [vmem:[%s17872_s12 + $0x418] sm:$0xff] }
  0xb8   : > { %12708 = vmatprep.subr.bf16.mxu0 %v15898_v50  ;;  %12749 = vmatprep.subr.bf16.mxu1 %v15900_v51  ;;  %v486_v49 = vld [vmem:[%s17872_s12 + $0x498] sm:$0xff]  ;;  %v15581_v50 = vcombine.low %v437_v38, %v453_v39  ;;  %v15583_v51 = vcombine.low %v438_v40, %v454_v41  ;;  %v15775_v41 = vcombine.low %v630_v28, %v646_v29 }
  0xb9   : > { %v15616_v53 = vcombine.high %v470_v48, %v486_v49  ;;  %v662_v38 = vld [vmem:[%s17872_s12 + $0xa18] sm:$0xff] }
  0xba   : > { %v678_v39 = vld [vmem:[%s17872_s12 + $0xa98] sm:$0xff] }
  0xbf   : > { %12709 = vmatpush1.bf16.xpose.msra.mxu0 %v15897_v56  ;;  %12750 = vmatpush1.bf16.xpose.msra.mxu1 %v15899_v57  ;;  %v502_v56 = vld [vmem:[%s17872_s12 + $0x518] sm:$0xff] }
  0xc0   : > { %12710 = vmatprep.subr.bf16.mxu0 %v15930_v58  ;;  %12751 = vmatprep.subr.bf16.mxu1 %v15932_v59  ;;  %v518_v57 = vld [vmem:[%s17872_s12 + $0x598] sm:$0xff]  ;;  %v15613_v58 = vcombine.low %v469_v46, %v485_v47  ;;  %v15615_v59 = vcombine.low %v470_v48, %v486_v49  ;;  %v15807_v49 = vcombine.low %v662_v38, %v678_v39 }
  0xc1   : > { %v15648_v61 = vcombine.high %v502_v56, %v518_v57  ;;  %v694_v46 = vld [vmem:[%s17872_s12 + $0xb18] sm:$0xff] }
  0xc2   : > { %v710_v47 = vld [vmem:[%s17872_s12 + $0xb98] sm:$0xff] }
  0xc7   : > { %12711 = vmatpush1.bf16.xpose.msra.mxu0 %v15929_v0  ;;  %12752 = vmatpush1.bf16.xpose.msra.mxu1 %v15931_v1  ;;  %v534_v0 = vld [vmem:[%s17872_s12 + $0x618] sm:$0xff] }
  0xc8   : > { %12712 = vmatprep.subr.bf16.mxu0 %v15962_v2  ;;  %12753 = vmatprep.subr.bf16.mxu1 %v15964_v3  ;;  %v550_v1 = vld [vmem:[%s17872_s12 + $0x698] sm:$0xff]  ;;  %v15645_v2 = vcombine.low %v501_v54, %v517_v55  ;;  %v15647_v3 = vcombine.low %v502_v56, %v518_v57  ;;  %v15839_v57 = vcombine.low %v694_v46, %v710_v47 }
  0xc9   : > { %v15680_v5 = vcombine.high %v534_v0, %v550_v1  ;;  %v726_v54 = vld [vmem:[%s17872_s12 + $0xc18] sm:$0xff] }
  0xca   : > { %v742_v55 = vld [vmem:[%s17872_s12 + $0xc98] sm:$0xff] }
  0xcf   : > { %12713 = vmatpush1.bf16.xpose.msra.mxu0 %v15961_v8  ;;  %12754 = vmatpush1.bf16.xpose.msra.mxu1 %v15963_v9  ;;  %v566_v8 = vld [vmem:[%s17872_s12 + $0x718] sm:$0xff] }
  0xd0   : > { %12764 = vmatprep.subr.bf16.mxu0 %v15486_v10  ;;  %12805 = vmatprep.subr.bf16.mxu1 %v15488_v11  ;;  %v582_v9 = vld [vmem:[%s17872_s12 + $0x798] sm:$0xff]  ;;  %v15677_v10 = vcombine.low %v533_v62, %v549_v63  ;;  %v15679_v11 = vcombine.low %v534_v0, %v550_v1  ;;  %v15871_v1 = vcombine.low %v726_v54, %v742_v55 }
  0xd1   : > { %v15712_v13 = vcombine.high %v566_v8, %v582_v9  ;;  %v758_v62 = vld [vmem:[%s17872_s12 + $0xd18] sm:$0xff] }
  0xd2   : > { %v774_v63 = vld [vmem:[%s17872_s12 + $0xd98] sm:$0xff] }
  0xd6   : > { %12715 = vmatmul.mubr.bf16.vlgmr.msra.gmra.mrb[0].mxu0 %v17972_v16  ;;  %12756 = vmatmul.mubr.bf16.vlgmr.msra.gmra.mrb[0].mxu1 %v17979_v20 }
  0xd7   : > { %12765 = vmatpush1.bf16.xpose.msra.mxu0 %v15485_v21  ;;  %12806 = vmatpush1.bf16.xpose.msra.mxu1 %v15487_v23  ;;  %v15711_v21 = vcombine.low %v566_v8, %v582_v9  ;;  %v15744_v23 = vcombine.high %v598_v17, %v614_v18  ;;  %v15903_v9 = vcombine.low %v758_v62, %v774_v63 }
  0xd8   : > { %12766 = vmatprep.subr.bf16.mxu0 %v15518_v24  ;;  %12807 = vmatprep.subr.bf16.mxu1 %v15520_v25  ;;  %v629_v24 = vld [vmem:[%s17872_s12 + $0x910] sm:$0xff]  ;;  %v15935_v18 = vcombine.low %v790_v6, %v806_v7 }
  0xd9   : > { %12796 = vmatprep.mubr.bf16.mxu0 %v17984_v26  ;;  %12837 = vmatprep.mubr.bf16.mxu1 %v17987_v27  ;;  %v645_v25 = vld [vmem:[%s17872_s12 + $0x990] sm:$0xff] }
  0xda   : > { %v15773_v40 = vcombine.low %v629_v24, %v645_v25 }
  0xdf   : > { %12767 = vmatpush1.bf16.xpose.msra.mxu0 %v15517_v32  ;;  %12808 = vmatpush1.bf16.xpose.msra.mxu1 %v15519_v33  ;;  %v15774_v32 = vcombine.high %v629_v24, %v645_v25  ;;  %v15776_v33 = vcombine.high %v630_v28, %v646_v29  ;;  %v344_v24 = vld [vmem:[%s17872_s12 + $0x28] sm:$0xff]  ;;  %v15967_v29 = vcombine.low %v822_v14, %v838_v15 }
  0xe0   : > { %12768 = vmatprep.subr.bf16.mxu0 %v15550_v36  ;;  %12809 = vmatprep.subr.bf16.mxu1 %v15552_v37  ;;  %v661_v36 = vld [vmem:[%s17872_s12 + $0xa10] sm:$0xff]  ;;  %v360_v25 = vld [vmem:[%s17872_s12 + $0xa8] sm:$0xff] }
  0xe1   : > { %v677_v37 = vld [vmem:[%s17872_s12 + $0xa90] sm:$0xff] }
  0xe2   : > { %v15805_v48 = vcombine.low %v661_v36, %v677_v37 }
  0xe7   : > { %12769 = vmatpush1.bf16.xpose.msra.mxu0 %v15549_v42  ;;  %12810 = vmatpush1.bf16.xpose.msra.mxu1 %v15551_v43  ;;  %v15806_v42 = vcombine.high %v661_v36, %v677_v37  ;;  %v15808_v43 = vcombine.high %v662_v38, %v678_v39  ;;  %v375_v36 = vld [vmem:[%s17872_s12 + $0x120] sm:$0xff]  ;;  %v376_v39 = vld [vmem:[%s17872_s12 + $0x128] sm:$0xff] }
  0xe8   : > { %12770 = vmatprep.subr.bf16.mxu0 %v15582_v44  ;;  %12811 = vmatprep.subr.bf16.mxu1 %v15584_v45  ;;  %v693_v44 = vld [vmem:[%s17872_s12 + $0xb10] sm:$0xff]  ;;  %v391_v37 = vld [vmem:[%s17872_s12 + $0x1a0] sm:$0xff] }
  0xe9   : > { %v709_v45 = vld [vmem:[%s17872_s12 + $0xb90] sm:$0xff] }
  0xea   : > { %v15837_v56 = vcombine.low %v693_v44, %v709_v45 }
  0xef   : > { %12771 = vmatpush1.bf16.xpose.msra.mxu0 %v15581_v50  ;;  %12812 = vmatpush1.bf16.xpose.msra.mxu1 %v15583_v51  ;;  %v15838_v50 = vcombine.high %v693_v44, %v709_v45  ;;  %v15840_v51 = vcombine.high %v694_v46, %v710_v47  ;;  %v286_v44 = vld [vmem:[%s20436_s0 + $0x58] sm:$0xff]  ;;  %v15491_v45 = vcombine.low %v344_v24, %v360_v25 }
  0xf0   : > { %12772 = vmatprep.subr.bf16.mxu0 %v15614_v52  ;;  %12813 = vmatprep.subr.bf16.mxu1 %v15616_v53  ;;  %v725_v52 = vld [vmem:[%s17872_s12 + $0xc10] sm:$0xff]  ;;  %v15522_v46 = vcombine.high %v375_v36, %v391_v37 }
  0xf1   : > { %v741_v53 = vld [vmem:[%s17872_s12 + $0xc90] sm:$0xff] }
  0xf2   : > { %v15869_v0 = vcombine.low %v725_v52, %v741_v53 }
  0xf7   : > { %12773 = vmatpush1.bf16.xpose.msra.mxu0 %v15613_v58  ;;  %12814 = vmatpush1.bf16.xpose.msra.mxu1 %v15615_v59  ;;  %v15870_v58 = vcombine.high %v725_v52, %v741_v53  ;;  %v15872_v59 = vcombine.high %v726_v54, %v742_v55  ;;  %v408_v52 = vld [vmem:[%s17872_s12 + $0x228] sm:$0xff]  ;;  %v15521_v54 = vcombine.low %v375_v36, %v391_v37 }
  0xf8   : > { %12774 = vmatprep.subr.bf16.mxu0 %v15646_v60  ;;  %12815 = vmatprep.subr.bf16.mxu1 %v15648_v61  ;;  %v757_v60 = vld [vmem:[%s17872_s12 + $0xd10] sm:$0xff]  ;;  %v424_v53 = vld [vmem:[%s17872_s12 + $0x2a8] sm:$0xff] }
  0xf9   : > { %v773_v61 = vld [vmem:[%s17872_s12 + $0xd90] sm:$0xff] }
  0xfa   : > { %v15901_v8 = vcombine.low %v757_v60, %v773_v61 }
  0xff   : > { %12775 = vmatpush1.bf16.xpose.msra.mxu0 %v15645_v2  ;;  %12816 = vmatpush1.bf16.xpose.msra.mxu1 %v15647_v3  ;;  %v15902_v2 = vcombine.high %v757_v60, %v773_v61  ;;  %v15904_v3 = vcombine.high %v758_v62, %v774_v63  ;;  %v440_v60 = vld [vmem:[%s17872_s12 + $0x328] sm:$0xff]  ;;  %v15555_v63 = vcombine.low %v408_v52, %v424_v53 }
 0x100   : > { %12776 = vmatprep.subr.bf16.mxu0 %v15678_v4  ;;  %12817 = vmatprep.subr.bf16.mxu1 %v15680_v5  ;;  %v789_v4 = vld [vmem:[%s17872_s12 + $0xe10] sm:$0xff]  ;;  %v456_v61 = vld [vmem:[%s17872_s12 + $0x3a8] sm:$0xff] }
 0x101   : > { %v805_v5 = vld [vmem:[%s17872_s12 + $0xe90] sm:$0xff] }
 0x102   : > { %v15933_v17 = vcombine.low %v789_v4, %v805_v5 }
 0x107   : > { %12777 = vmatpush1.bf16.xpose.msra.mxu0 %v15677_v10  ;;  %12818 = vmatpush1.bf16.xpose.msra.mxu1 %v15679_v11  ;;  %v15934_v10 = vcombine.high %v789_v4, %v805_v5  ;;  %v15936_v11 = vcombine.high %v790_v6, %v806_v7  ;;  %v472_v4 = vld [vmem:[%s17872_s12 + $0x428] sm:$0xff]  ;;  %v15587_v7 = vcombine.low %v440_v60, %v456_v61 }
 0x108   : > { %12778 = vmatprep.subr.bf16.mxu0 %v15710_v12  ;;  %12819 = vmatprep.subr.bf16.mxu1 %v15712_v13  ;;  %v821_v12 = vld [vmem:[%s17872_s12 + $0xf10] sm:$0xff]  ;;  %v488_v5 = vld [vmem:[%s17872_s12 + $0x4a8] sm:$0xff] }
 0x109   : > { %v837_v13 = vld [vmem:[%s17872_s12 + $0xf90] sm:$0xff] }
 0x10a   : > { %v15965_v28 = vcombine.low %v821_v12, %v837_v13 }
 0x10f   : > { %12779 = vmatpush1.bf16.xpose.msra.mxu0 %v15709_v19  ;;  %12820 = vmatpush1.bf16.xpose.msra.mxu1 %v15711_v21  ;;  %v15966_v19 = vcombine.high %v821_v12, %v837_v13  ;;  %v15968_v21 = vcombine.high %v822_v14, %v838_v15  ;;  %v504_v12 = vld [vmem:[%s17872_s12 + $0x528] sm:$0xff]  ;;  %v15619_v15 = vcombine.low %v472_v4, %v488_v5 }
 0x110   : > { %12780 = vmatprep.subr.bf16.mxu0 %v15742_v22  ;;  %12821 = vmatprep.subr.bf16.mxu1 %v15744_v23  ;;  %v343_v22 = vld [vmem:[%s17872_s12 + $0x20] sm:$0xff]  ;;  %v520_v13 = vld [vmem:[%s17872_s12 + $0x5a8] sm:$0xff] }
 0x111   : > { %v359_v23 = vld [vmem:[%s17872_s12 + $0xa0] sm:$0xff] }
 0x117   : > { %12781 = vmatpush1.bf16.xpose.msra.mxu0 %v15741_v30  ;;  %12822 = vmatpush1.bf16.xpose.msra.mxu1 %v15743_v31  ;;  %v15490_v30 = vcombine.high %v343_v22, %v359_v23  ;;  %v15492_v31 = vcombine.high %v344_v24, %v360_v25  ;;  %v15651_v25 = vcombine.low %v504_v12, %v520_v13 }
 0x118   : > { %12782 = vmatprep.subr.bf16.mxu0 %v15774_v32  ;;  %12823 = vmatprep.subr.bf16.mxu1 %v15776_v33  ;;  %v279_v32 = vld [vmem:[%s20436_s0 + $0x20] sm:$0xff]  ;;  %v281_v33 = vld [vmem:[%s20436_s0 + $0x30] sm:$0xff] }
 0x119   : > { %v18060_v38 = vpack.c.bf16 %v279_v32, %v279_v32  ;;  %v568_v32 = vld [vmem:[%s17872_s12 + $0x728] sm:$0xff] }
 0x11f   : > { %12783 = vmatpush1.bf16.xpose.msra.mxu0 %v15773_v40  ;;  %12824 = vmatpush1.bf16.xpose.msra.mxu1 %v15775_v41  ;;  %v392_v40 = vld [vmem:[%s17872_s12 + $0x1a8] sm:$0xff] }
 0x120   : > { %12784 = vmatprep.subr.bf16.mxu0 %v15806_v42  ;;  %12825 = vmatprep.subr.bf16.mxu1 %v15808_v43  ;;  %v284_v41 = vld [vmem:[%s20436_s0 + $0x48] sm:$0xff]  ;;  %v18067_v42 = vpack.c.bf16 %v281_v33, %v281_v33  ;;  %v15489_v43 = vcombine.low %v343_v22, %v359_v23  ;;  %v15524_v47 = vcombine.high %v376_v39, %v392_v40 }
 0x121   : > { %v15523_v55 = vcombine.low %v376_v39, %v392_v40  ;;  %v536_v22 = vld [vmem:[%s17872_s12 + $0x628] sm:$0xff] }
 0x122   : > { %v552_v23 = vld [vmem:[%s17872_s12 + $0x6a8] sm:$0xff] }
 0x123   : > { %v584_v33 = vld [vmem:[%s17872_s12 + $0x7a8] sm:$0xff]  ;;  %v15683_v37 = vcombine.low %v536_v22, %v552_v23 }
 0x124   : > { %v15716_v40 = vcombine.high %v568_v32, %v584_v33 }
 0x127   : > { %12785 = vmatpush1.bf16.xpose.msra.mxu0 %v15805_v48  ;;  %12826 = vmatpush1.bf16.xpose.msra.mxu1 %v15807_v49  ;;  %v18072_v48 = vpack.c.bf16 %v284_v41, %v284_v41  ;;  %v18075_v49 = vpack.c.bf16 %v286_v44, %v286_v44  ;;  %v599_v41 = vld [vmem:[%s17872_s12 + $0x820] sm:$0xff]  ;;  %v600_v44 = vld [vmem:[%s17872_s12 + $0x828] sm:$0xff] }
 0x128   : > { %12786 = vmatprep.subr.bf16.mxu0 %v15838_v50  ;;  %12827 = vmatprep.subr.bf16.mxu1 %v15840_v51  ;;  %v407_v50 = vld [vmem:[%s17872_s12 + $0x220] sm:$0xff] }
 0x129   : > { %v423_v51 = vld [vmem:[%s17872_s12 + $0x2a0] sm:$0xff] }
 0x12a   : > { %v15553_v62 = vcombine.low %v407_v50, %v423_v51 }
 0x12f   : > { %12787 = vmatpush1.bf16.xpose.msra.mxu0 %v15837_v56  ;;  %12828 = vmatpush1.bf16.xpose.msra.mxu1 %v15839_v57  ;;  %v15554_v56 = vcombine.high %v407_v50, %v423_v51  ;;  %v15556_v57 = vcombine.high %v408_v52, %v424_v53  ;;  %v631_v52 = vld [vmem:[%s17872_s12 + $0x920] sm:$0xff] }
 0x130   : > { %12788 = vmatprep.subr.bf16.mxu0 %v15870_v58  ;;  %12829 = vmatprep.subr.bf16.mxu1 %v15872_v59  ;;  %v439_v58 = vld [vmem:[%s17872_s12 + $0x320] sm:$0xff] }
 0x131   : > { %v455_v59 = vld [vmem:[%s17872_s12 + $0x3a0] sm:$0xff] }
 0x132   : > { %v15585_v6 = vcombine.low %v439_v58, %v455_v59  ;;  %v647_v53 = vld [vmem:[%s17872_s12 + $0x9a0] sm:$0xff] }
 0x137   : > { %12789 = vmatpush1.bf16.xpose.msra.mxu0 %v15869_v0  ;;  %12830 = vmatpush1.bf16.xpose.msra.mxu1 %v15871_v1  ;;  %v15586_v0 = vcombine.high %v439_v58, %v455_v59  ;;  %v15588_v1 = vcombine.high %v440_v60, %v456_v61  ;;  %v15778_v58 = vcombine.high %v631_v52, %v647_v53  ;;  %v663_v60 = vld [vmem:[%s17872_s12 + $0xa20] sm:$0xff] }
 0x138   : > { %12790 = vmatprep.subr.bf16.mxu0 %v15902_v2  ;;  %12831 = vmatprep.subr.bf16.mxu1 %v15904_v3  ;;  %v471_v2 = vld [vmem:[%s17872_s12 + $0x420] sm:$0xff] }
 0x139   : > { %v487_v3 = vld [vmem:[%s17872_s12 + $0x4a0] sm:$0xff] }
 0x13a   : > { %v15617_v14 = vcombine.low %v471_v2, %v487_v3  ;;  %v679_v61 = vld [vmem:[%s17872_s12 + $0xaa0] sm:$0xff] }
 0x13f   : > { %12791 = vmatpush1.bf16.xpose.msra.mxu0 %v15901_v8  ;;  %12832 = vmatpush1.bf16.xpose.msra.mxu1 %v15903_v9  ;;  %v15618_v8 = vcombine.high %v471_v2, %v487_v3  ;;  %v15620_v9 = vcombine.high %v472_v4, %v488_v5  ;;  %v15810_v3 = vcombine.high %v663_v60, %v679_v61 }
 0x140   : > { %12792 = vmatprep.subr.bf16.mxu0 %v15934_v10  ;;  %12833 = vmatprep.subr.bf16.mxu1 %v15936_v11  ;;  %v503_v10 = vld [vmem:[%s17872_s12 + $0x520] sm:$0xff] }
 0x141   : > { %v519_v11 = vld [vmem:[%s17872_s12 + $0x5a0] sm:$0xff] }
 0x142   : > { %v15649_v24 = vcombine.low %v503_v10, %v519_v11 }
 0x147   : > { %12793 = vmatpush1.bf16.xpose.msra.mxu0 %v15933_v17  ;;  %12834 = vmatpush1.bf16.xpose.msra.mxu1 %v15935_v18  ;;  %v15650_v17 = vcombine.high %v503_v10, %v519_v11  ;;  %v15652_v18 = vcombine.high %v504_v12, %v520_v13  ;;  %v712_v10 = vld [vmem:[%s17872_s12 + $0xba8] sm:$0xff]  ;;  %v15809_v11 = vcombine.low %v663_v60, %v679_v61 }
 0x148   : > { %12794 = vmatprep.subr.bf16.mxu0 %v15966_v19  ;;  %12835 = vmatprep.subr.bf16.mxu1 %v15968_v21  ;;  %v535_v19 = vld [vmem:[%s17872_s12 + $0x620] sm:$0xff]  ;;  %v808_v60 = vld [vmem:[%s17872_s12 + $0xea8] sm:$0xff] }
 0x149   : > { %v551_v21 = vld [vmem:[%s17872_s12 + $0x6a0] sm:$0xff] }
 0x14a   : > { %v15681_v36 = vcombine.low %v535_v19, %v551_v21  ;;  %v2400_v12 = vld [vmem:[%s17878_s7] sm:$0xff] }
 0x14f   : > { %12795 = vmatpush1.bf16.xpose.msra.mxu0 %v15965_v28  ;;  %12836 = vmatpush1.bf16.xpose.msra.mxu1 %v15967_v29  ;;  %v15682_v28 = vcombine.high %v535_v19, %v551_v21  ;;  %v15684_v29 = vcombine.high %v536_v22, %v552_v23  ;;  %v727_v22 = vld [vmem:[%s17872_s12 + $0xc20] sm:$0xff] }
 0x150   : > { %12846 = vmatprep.subr.bf16.mxu0 %v15490_v30  ;;  %12887 = vmatprep.subr.bf16.mxu1 %v15492_v31  ;;  %v567_v30 = vld [vmem:[%s17872_s12 + $0x720] sm:$0xff] }
 0x151   : > { %v583_v31 = vld [vmem:[%s17872_s12 + $0x7a0] sm:$0xff] }
 0x152   : > { %v15714_v39 = vcombine.high %v567_v30, %v583_v31  ;;  %v743_v23 = vld [vmem:[%s17872_s12 + $0xca0] sm:$0xff] }
 0x156   : > { %12797 = vmatmul.mubr.bf16.vlgmr.msra.gmra.mrb[4].mxu0 %v18060_v38  ;;  %12838 = vmatmul.mubr.bf16.vlgmr.msra.gmra.mrb[4].mxu1 %v18067_v42 }
 0x157   : > { %12847 = vmatpush1.bf16.xpose.msra.mxu0 %v15489_v43  ;;  %12888 = vmatpush1.bf16.xpose.msra.mxu1 %v15491_v45  ;;  %v615_v43 = vld [vmem:[%s17872_s12 + $0x8a0] sm:$0xff]  ;;  %v616_v45 = vld [vmem:[%s17872_s12 + $0x8a8] sm:$0xff] }
 0x158   : > { %12848 = vmatprep.subr.bf16.mxu0 %v15522_v46  ;;  %12889 = vmatprep.subr.bf16.mxu1 %v15524_v47  ;;  %v15713_v46 = vcombine.low %v567_v30, %v583_v31  ;;  %v15715_v47 = vcombine.low %v568_v32, %v584_v33  ;;  %v15746_v50 = vcombine.high %v599_v41, %v615_v43  ;;  %v744_v30 = vld [vmem:[%s17872_s12 + $0xca8] sm:$0xff] }
 0x159   : > { %12878 = vmatprep.mubr.bf16.mxu0 %v18072_v48  ;;  %12919 = vmatprep.mubr.bf16.mxu1 %v18075_v49  ;;  %v15748_v51 = vcombine.high %v600_v44, %v616_v45 }
 0x15f   : > { %12849 = vmatpush1.bf16.xpose.msra.mxu0 %v15521_v54  ;;  %12890 = vmatpush1.bf16.xpose.msra.mxu1 %v15523_v55  ;;  %v632_v54 = vld [vmem:[%s17872_s12 + $0x928] sm:$0xff] }
 0x160   : > { %12850 = vmatprep.subr.bf16.mxu0 %v15554_v56  ;;  %12891 = vmatprep.subr.bf16.mxu1 %v15556_v57  ;;  %v648_v55 = vld [vmem:[%s17872_s12 + $0x9a8] sm:$0xff]  ;;  %v15745_v56 = vcombine.low %v599_v41, %v615_v43  ;;  %v15747_v57 = vcombine.low %v600_v44, %v616_v45  ;;  %v15874_v43 = vcombine.high %v727_v22, %v743_v23 }
 0x161   : > { %v15780_v59 = vcombine.high %v632_v54, %v648_v55  ;;  %v15779_v2 = vcombine.low %v632_v54, %v648_v55 }
 0x167   : > { %12851 = vmatpush1.bf16.xpose.msra.mxu0 %v15553_v62  ;;  %12892 = vmatpush1.bf16.xpose.msra.mxu1 %v15555_v63  ;;  %v664_v62 = vld [vmem:[%s17872_s12 + $0xa28] sm:$0xff] }
 0x168   : > { %12852 = vmatprep.subr.bf16.mxu0 %v15586_v0  ;;  %12893 = vmatprep.subr.bf16.mxu1 %v15588_v1  ;;  %v680_v63 = vld [vmem:[%s17872_s12 + $0xaa8] sm:$0xff]  ;;  %v2402_v0 = vlaneseq  ;;  %v15777_v1 = vcombine.low %v631_v52, %v647_v53  ;;  %v15873_v53 = vcombine.low %v727_v22, %v743_v23  ;;  %v377_v22 = vld [vmem:[%s17872_s12 + $0x130] sm:$0xff] }
 0x169   : > { %v15812_v4 = vcombine.high %v664_v62, %v680_v63  ;;  %v776_v52 = vld [vmem:[%s17872_s12 + $0xda8] sm:$0xff]  ;;  %v393_v23 = vld [vmem:[%s17872_s12 + $0x1b0] sm:$0xff] }
 0x16a   : > { %v18116_v5 = vshrl.u32 %v2402_v0, 7 }
 0x16c   : > { %v2408_v13 = vsub.s32 1, %v18116_v5 }
 0x16e   : > { %v2409_v19 = vrot.slane %v2400_v12, %v2408_v13  ;;  %v362_v13 = vld [vmem:[%s17872_s12 + $0xb8] sm:$0xff] }
 0x16f   : > { %12853 = vmatpush1.bf16.xpose.msra.mxu0 %v15585_v6  ;;  %12894 = vmatpush1.bf16.xpose.msra.mxu1 %v15587_v7  ;;  %v695_v6 = vld [vmem:[%s17872_s12 + $0xb20] sm:$0xff] }
 0x170   : > { %12854 = vmatprep.subr.bf16.mxu0 %v15618_v8  ;;  %12895 = vmatprep.subr.bf16.mxu1 %v15620_v9  ;;  %v711_v7 = vld [vmem:[%s17872_s12 + $0xba0] sm:$0xff]  ;;  %v2404_v8 = vsub.s32 0, %v18116_v5  ;;  %v696_v9 = vld [vmem:[%s17872_s12 + $0xb28] sm:$0xff] }
 0x171   : > { %v15843_v41 = vcombine.low %v696_v9, %v712_v10 }
 0x177   : > { %12855 = vmatpush1.bf16.xpose.msra.mxu0 %v15617_v14  ;;  %12896 = vmatpush1.bf16.xpose.msra.mxu1 %v15619_v15  ;;  %v15811_v14 = vcombine.low %v664_v62, %v680_v63  ;;  %v15842_v15 = vcombine.high %v695_v6, %v711_v7 }
 0x178   : > { %12856 = vmatprep.subr.bf16.mxu0 %v15650_v17  ;;  %12897 = vmatprep.subr.bf16.mxu1 %v15652_v18  ;;  %v15844_v17 = vcombine.high %v696_v9, %v712_v10  ;;  %v2405_v18 = vrot.slane %v2400_v12, %v2404_v8  ;;  %v345_v10 = vld [vmem:[%s17872_s12 + $0x30] sm:$0xff]  ;;  %v346_v12 = vld [vmem:[%s17872_s12 + $0x38] sm:$0xff] }
 0x17f   : > { %12857 = vmatpush1.bf16.xpose.msra.mxu0 %v15649_v24  ;;  %12898 = vmatpush1.bf16.xpose.msra.mxu1 %v15651_v25 }
 0x180   : > { %12858 = vmatprep.subr.bf16.mxu0 %v15682_v28  ;;  %12899 = vmatprep.subr.bf16.mxu1 %v15684_v29  ;;  %v728_v29 = vld [vmem:[%s17872_s12 + $0xc28] sm:$0xff] }
 0x181   : > { %v15875_v54 = vcombine.low %v728_v29, %v744_v30 }
 0x187   : > { %12859 = vmatpush1.bf16.xpose.msra.mxu0 %v15681_v36  ;;  %12900 = vmatpush1.bf16.xpose.msra.mxu1 %v15683_v37  ;;  %v15841_v36 = vcombine.low %v695_v6, %v711_v7 }
 0x188   : > { %12860 = vmatprep.subr.bf16.mxu0 %v15714_v39  ;;  %12901 = vmatprep.subr.bf16.mxu1 %v15716_v40 }
 0x18f   : > { %12861 = vmatpush1.bf16.xpose.msra.mxu0 %v15713_v46  ;;  %12902 = vmatpush1.bf16.xpose.msra.mxu1 %v15715_v47  ;;  %v15876_v46 = vcombine.high %v728_v29, %v744_v30  ;;  %v759_v47 = vld [vmem:[%s17872_s12 + $0xd20] sm:$0xff]  ;;  %v288_v29 = vld [vmem:[%s20436_s0 + $0x68] sm:$0xff] }
 0x190   : > { %12862 = vmatprep.subr.bf16.mxu0 %v15746_v50  ;;  %12903 = vmatprep.subr.bf16.mxu1 %v15748_v51  ;;  %v775_v50 = vld [vmem:[%s17872_s12 + $0xda0] sm:$0xff]  ;;  %v760_v51 = vld [vmem:[%s17872_s12 + $0xd28] sm:$0xff] }
 0x191   : > { %v15906_v55 = vcombine.high %v759_v47, %v775_v50  ;;  %v15905_v61 = vcombine.low %v759_v47, %v775_v50  ;;  %v15907_v62 = vcombine.low %v760_v51, %v776_v52  ;;  %v426_v47 = vld [vmem:[%s17872_s12 + $0x2b8] sm:$0xff]  ;;  %v15525_v50 = vcombine.low %v377_v22, %v393_v23 }
 0x197   : > { %12863 = vmatpush1.bf16.xpose.msra.mxu0 %v15745_v56  ;;  %12904 = vmatpush1.bf16.xpose.msra.mxu1 %v15747_v57  ;;  %v15908_v56 = vcombine.high %v760_v51, %v776_v52  ;;  %v791_v57 = vld [vmem:[%s17872_s12 + $0xe20] sm:$0xff] }
 0x198   : > { %12864 = vmatprep.subr.bf16.mxu0 %v15778_v58  ;;  %12905 = vmatprep.subr.bf16.mxu1 %v15780_v59  ;;  %v807_v58 = vld [vmem:[%s17872_s12 + $0xea0] sm:$0xff]  ;;  %v792_v59 = vld [vmem:[%s17872_s12 + $0xe28] sm:$0xff] }
 0x199   : > { %v15938_v63 = vcombine.high %v791_v57, %v807_v58  ;;  %v15940_v0 = vcombine.high %v792_v59, %v808_v60  ;;  %v15937_v6 = vcombine.low %v791_v57, %v807_v58  ;;  %v15939_v7 = vcombine.low %v792_v59, %v808_v60  ;;  %v458_v57 = vld [vmem:[%s17872_s12 + $0x3b8] sm:$0xff] }
 0x19f   : > { %12865 = vmatpush1.bf16.xpose.msra.mxu0 %v15777_v1  ;;  %12906 = vmatpush1.bf16.xpose.msra.mxu1 %v15779_v2  ;;  %v823_v1 = vld [vmem:[%s17872_s12 + $0xf20] sm:$0xff] }
 0x1a0   : > { %12866 = vmatprep.subr.bf16.mxu0 %v15810_v3  ;;  %12907 = vmatprep.subr.bf16.mxu1 %v15812_v4  ;;  %v839_v2 = vld [vmem:[%s17872_s12 + $0xfa0] sm:$0xff]  ;;  %v824_v3 = vld [vmem:[%s17872_s12 + $0xf28] sm:$0xff] }
 0x1a1   : > { %v840_v4 = vld [vmem:[%s17872_s12 + $0xfa8] sm:$0xff]  ;;  %v15970_v8 = vcombine.high %v823_v1, %v839_v2 }
 0x1a2   : > { %v15972_v9 = vcombine.high %v824_v3, %v840_v4 }
 0x1a7   : > { %12867 = vmatpush1.bf16.xpose.msra.mxu0 %v15809_v11  ;;  %12908 = vmatpush1.bf16.xpose.msra.mxu1 %v15811_v14  ;;  %v361_v11 = vld [vmem:[%s17872_s12 + $0xb0] sm:$0xff]  ;;  %v15969_v14 = vcombine.low %v823_v1, %v839_v2  ;;  %v490_v1 = vld [vmem:[%s17872_s12 + $0x4b8] sm:$0xff] }
 0x1a8   : > { %12868 = vmatprep.subr.bf16.mxu0 %v15842_v15  ;;  %12909 = vmatprep.subr.bf16.mxu1 %v15844_v17  ;;  %v15971_v15 = vcombine.low %v824_v3, %v840_v4  ;;  %v15494_v17 = vcombine.high %v345_v10, %v361_v11 }
 0x1a9   : > { %v12716_v21 = vpop.f32.mrb[0].mxu0  ;;  %v12757_v25 = vpop.f32.mrb[0].mxu1 }
 0x1aa   : > { %v12717_v24 = vadd.f32 %v12716_v21, %v2405_v18  ;;  %v12718_v28 = vpop.f32.mrb[1].mxu0  ;;  %v12759_v32 = vpop.f32.mrb[1].mxu1  ;;  %v15496_v18 = vcombine.high %v346_v12, %v362_v13  ;;  %v285_v21 = vld [vmem:[%s20436_s0 + $0x50] sm:$0xff] }
 0x1ab   : > { %v12719_v31 = vadd.f32 %v12718_v28, %v2409_v19  ;;  %v12720_v33 = vpop.f32.mrb[2].mxu0  ;;  %v12761_v39 = vpop.f32.mrb[2].mxu1  ;;  %v283_v19 = vld [vmem:[%s20436_s0 + $0x40] sm:$0xff]  ;;  %v394_v28 = vld [vmem:[%s17872_s12 + $0x1b8] sm:$0xff]  ;;  %v18164_v30 = vpack.c.bf16 %v285_v21, %v285_v21 }
 0x1ac   : > { %v18129_v37 = vadd.f32 %v12757_v25, %v12717_v24  ;;  %v12721_v40 = vpop.f32.mrb[3].mxu0  ;;  %v12762_v45 = vpop.f32.mrb[3].mxu1  ;;  %v18157_v24 = vpack.c.bf16 %v283_v19, %v283_v19  ;;  %v378_v25 = vld [vmem:[%s17872_s12 + $0x138] sm:$0xff]  ;;  %v15495_v33 = vcombine.low %v346_v12, %v362_v13 }
 0x1ad   : > { %v18131_v44 = vadd.f32 %v12759_v32, %v12719_v31  ;;  %v15493_v31 = vcombine.low %v345_v10, %v361_v11  ;;  %v290_v32 = vld [vmem:[%s20436_s0 + $0x78] sm:$0xff]  ;;  %v15528_v39 = vcombine.high %v378_v25, %v394_v28  ;;  %v18169_v40 = vpack.c.bf16 %v288_v29, %v288_v29  ;;  %v425_v45 = vld [vmem:[%s17872_s12 + $0x2b0] sm:$0xff] }
 0x1ae   : > { %v15527_v51 = vcombine.low %v378_v25, %v394_v28  ;;  %v522_v10 = vld [vmem:[%s17872_s12 + $0x5b8] sm:$0xff]  ;;  %v569_v28 = vld [vmem:[%s17872_s12 + $0x730] sm:$0xff] }
 0x1af   : > { %12869 = vmatpush1.bf16.xpose.msra.mxu0 %v15841_v36  ;;  %12910 = vmatpush1.bf16.xpose.msra.mxu1 %v15843_v41  ;;  %v15526_v36 = vcombine.high %v377_v22, %v393_v23  ;;  %v18172_v41 = vpack.c.bf16 %v290_v32, %v290_v32  ;;  %v554_v19 = vld [vmem:[%s17872_s12 + $0x6b8] sm:$0xff]  ;;  %v585_v29 = vld [vmem:[%s17872_s12 + $0x7b0] sm:$0xff] }
 0x1b0   : > { %12870 = vmatprep.subr.bf16.mxu0 %v15874_v43  ;;  %12911 = vmatprep.subr.bf16.mxu1 %v15876_v46  ;;  %v409_v43 = vld [vmem:[%s17872_s12 + $0x230] sm:$0xff]  ;;  %v410_v46 = vld [vmem:[%s17872_s12 + $0x238] sm:$0xff] }
 0x1b1   : > { %v15558_v52 = vcombine.high %v409_v43, %v425_v45  ;;  %v15557_v58 = vcombine.low %v409_v43, %v425_v45  ;;  %v15559_v59 = vcombine.low %v410_v46, %v426_v47  ;;  %v586_v32 = vld [vmem:[%s17872_s12 + $0x7b8] sm:$0xff]  ;;  %v601_v45 = vld [vmem:[%s17872_s12 + $0x830] sm:$0xff] }
 0x1b7   : > { %12871 = vmatpush1.bf16.xpose.msra.mxu0 %v15873_v53  ;;  %12912 = vmatpush1.bf16.xpose.msra.mxu1 %v15875_v54  ;;  %v15560_v53 = vcombine.high %v410_v46, %v426_v47  ;;  %v441_v54 = vld [vmem:[%s17872_s12 + $0x330] sm:$0xff]  ;;  %v602_v47 = vld [vmem:[%s17872_s12 + $0x838] sm:$0xff] }
 0x1b8   : > { %12872 = vmatprep.subr.bf16.mxu0 %v15906_v55  ;;  %12913 = vmatprep.subr.bf16.mxu1 %v15908_v56  ;;  %v457_v55 = vld [vmem:[%s17872_s12 + $0x3b0] sm:$0xff]  ;;  %v442_v56 = vld [vmem:[%s17872_s12 + $0x338] sm:$0xff] }
 0x1b9   : > { %v15590_v60 = vcombine.high %v441_v54, %v457_v55  ;;  %v15589_v2 = vcombine.low %v441_v54, %v457_v55  ;;  %v15591_v3 = vcombine.low %v442_v56, %v458_v57  ;;  %v617_v46 = vld [vmem:[%s17872_s12 + $0x8b0] sm:$0xff] }
 0x1ba   : > { %v633_v55 = vld [vmem:[%s17872_s12 + $0x930] sm:$0xff] }
 0x1bf   : > { %12873 = vmatpush1.bf16.xpose.msra.mxu0 %v15905_v61  ;;  %12914 = vmatpush1.bf16.xpose.msra.mxu1 %v15907_v62  ;;  %v15592_v61 = vcombine.high %v442_v56, %v458_v57  ;;  %v473_v62 = vld [vmem:[%s17872_s12 + $0x430] sm:$0xff]  ;;  %v634_v57 = vld [vmem:[%s17872_s12 + $0x938] sm:$0xff] }
 0x1c0   : > { %12874 = vmatprep.subr.bf16.mxu0 %v15938_v63  ;;  %12915 = vmatprep.subr.bf16.mxu1 %v15940_v0  ;;  %v489_v63 = vld [vmem:[%s17872_s12 + $0x4b0] sm:$0xff]  ;;  %v474_v0 = vld [vmem:[%s17872_s12 + $0x438] sm:$0xff] }
 0x1c1   : > { %v15622_v4 = vcombine.high %v473_v62, %v489_v63  ;;  %v15621_v11 = vcombine.low %v473_v62, %v489_v63  ;;  %v15623_v12 = vcombine.low %v474_v0, %v490_v1  ;;  %v649_v56 = vld [vmem:[%s17872_s12 + $0x9b0] sm:$0xff] }
 0x1c2   : > { %v665_v63 = vld [vmem:[%s17872_s12 + $0xa30] sm:$0xff] }
 0x1c7   : > { %12875 = vmatpush1.bf16.xpose.msra.mxu0 %v15937_v6  ;;  %12916 = vmatpush1.bf16.xpose.msra.mxu1 %v15939_v7  ;;  %v15624_v6 = vcombine.high %v474_v0, %v490_v1  ;;  %v505_v7 = vld [vmem:[%s17872_s12 + $0x530] sm:$0xff]  ;;  %v666_v1 = vld [vmem:[%s17872_s12 + $0xa38] sm:$0xff] }
 0x1c8   : > { %12876 = vmatprep.subr.bf16.mxu0 %v15970_v8  ;;  %12917 = vmatprep.subr.bf16.mxu1 %v15972_v9  ;;  %v521_v8 = vld [vmem:[%s17872_s12 + $0x5b0] sm:$0xff]  ;;  %v506_v9 = vld [vmem:[%s17872_s12 + $0x538] sm:$0xff] }
 0x1c9   : > { %v15654_v13 = vcombine.high %v505_v7, %v521_v8  ;;  %v15653_v21 = vcombine.low %v505_v7, %v521_v8  ;;  %v15655_v22 = vcombine.low %v506_v9, %v522_v10  ;;  %v681_v0 = vld [vmem:[%s17872_s12 + $0xab0] sm:$0xff] }
 0x1ca   : > { %v697_v8 = vld [vmem:[%s17872_s12 + $0xb30] sm:$0xff] }
 0x1cf   : > { %12877 = vmatpush1.bf16.xpose.msra.mxu0 %v15969_v14  ;;  %12918 = vmatpush1.bf16.xpose.msra.mxu1 %v15971_v15  ;;  %v15656_v14 = vcombine.high %v506_v9, %v522_v10  ;;  %v537_v15 = vld [vmem:[%s17872_s12 + $0x630] sm:$0xff]  ;;  %v698_v10 = vld [vmem:[%s17872_s12 + $0xb38] sm:$0xff] }
 0x1d0   : > { %12928 = vmatprep.subr.bf16.mxu0 %v15494_v17  ;;  %12969 = vmatprep.subr.bf16.mxu1 %v15496_v18  ;;  %v553_v17 = vld [vmem:[%s17872_s12 + $0x6b0] sm:$0xff]  ;;  %v538_v18 = vld [vmem:[%s17872_s12 + $0x638] sm:$0xff] }
 0x1d1   : > { %v15686_v23 = vcombine.high %v537_v15, %v553_v17  ;;  %v15688_v25 = vcombine.high %v538_v18, %v554_v19  ;;  %v713_v9 = vld [vmem:[%s17872_s12 + $0xbb0] sm:$0xff] }
 0x1d6   : > { %12879 = vmatmul.mubr.bf16.vlgmr.msra.gmra.mrb[8].mxu0 %v18157_v24  ;;  %12920 = vmatmul.mubr.bf16.vlgmr.msra.gmra.mrb[8].mxu1 %v18164_v30 }
 0x1d7   : > { %12929 = vmatpush1.bf16.xpose.msra.mxu0 %v15493_v31  ;;  %12970 = vmatpush1.bf16.xpose.msra.mxu1 %v15495_v33  ;;  %v570_v31 = vld [vmem:[%s17872_s12 + $0x738] sm:$0xff]  ;;  %v15685_v33 = vcombine.low %v537_v15, %v553_v17 }
 0x1d8   : > { %12930 = vmatprep.subr.bf16.mxu0 %v15526_v36  ;;  %12971 = vmatprep.subr.bf16.mxu1 %v15528_v39  ;;  %v15687_v36 = vcombine.low %v538_v18, %v554_v19  ;;  %v15718_v39 = vcombine.high %v569_v28, %v585_v29  ;;  %v15720_v43 = vcombine.high %v570_v31, %v586_v32  ;;  %v729_v18 = vld [vmem:[%s17872_s12 + $0xc30] sm:$0xff] }
 0x1d9   : > { %12960 = vmatprep.mubr.bf16.mxu0 %v18169_v40  ;;  %13001 = vmatprep.mubr.bf16.mxu1 %v18172_v41  ;;  %v745_v19 = vld [vmem:[%s17872_s12 + $0xcb0] sm:$0xff] }
 0x1df   : > { %12931 = vmatpush1.bf16.xpose.msra.mxu0 %v15525_v50  ;;  %12972 = vmatpush1.bf16.xpose.msra.mxu1 %v15527_v51  ;;  %v618_v50 = vld [vmem:[%s17872_s12 + $0x8b8] sm:$0xff]  ;;  %v15717_v51 = vcombine.low %v569_v28, %v585_v29 }
 0x1e0   : > { %12932 = vmatprep.subr.bf16.mxu0 %v15558_v52  ;;  %12973 = vmatprep.subr.bf16.mxu1 %v15560_v53  ;;  %v15719_v52 = vcombine.low %v570_v31, %v586_v32  ;;  %v15750_v53 = vcombine.high %v601_v45, %v617_v46  ;;  %v15752_v54 = vcombine.high %v602_v47, %v618_v50  ;;  %v746_v28 = vld [vmem:[%s17872_s12 + $0xcb8] sm:$0xff] }
 0x1e7   : > { %12933 = vmatpush1.bf16.xpose.msra.mxu0 %v15557_v58  ;;  %12974 = vmatpush1.bf16.xpose.msra.mxu1 %v15559_v59  ;;  %v650_v58 = vld [vmem:[%s17872_s12 + $0x9b8] sm:$0xff]  ;;  %v15749_v59 = vcombine.low %v601_v45, %v617_v46  ;;  %v15878_v46 = vcombine.high %v729_v18, %v745_v19 }
 0x1e8   : > { %12934 = vmatprep.subr.bf16.mxu0 %v15590_v60  ;;  %12975 = vmatprep.subr.bf16.mxu1 %v15592_v61  ;;  %v15751_v60 = vcombine.low %v602_v47, %v618_v50  ;;  %v15782_v61 = vcombine.high %v633_v55, %v649_v56  ;;  %v15784_v62 = vcombine.high %v634_v57, %v650_v58 }
 0x1ef   : > { %12935 = vmatpush1.bf16.xpose.msra.mxu0 %v15589_v2  ;;  %12976 = vmatpush1.bf16.xpose.msra.mxu1 %v15591_v3  ;;  %v682_v2 = vld [vmem:[%s17872_s12 + $0xab8] sm:$0xff]  ;;  %v15781_v3 = vcombine.low %v633_v55, %v649_v56 }
 0x1f0   : > { %12936 = vmatprep.subr.bf16.mxu0 %v15622_v4  ;;  %12977 = vmatprep.subr.bf16.mxu1 %v15624_v6  ;;  %v15783_v4 = vcombine.low %v634_v57, %v650_v58  ;;  %v15814_v6 = vcombine.high %v665_v63, %v681_v0  ;;  %v15816_v7 = vcombine.high %v666_v1, %v682_v2  ;;  %v793_v58 = vld [vmem:[%s17872_s12 + $0xe30] sm:$0xff] }
 0x1f7   : > { %12937 = vmatpush1.bf16.xpose.msra.mxu0 %v15621_v11  ;;  %12978 = vmatpush1.bf16.xpose.msra.mxu1 %v15623_v12  ;;  %v714_v11 = vld [vmem:[%s17872_s12 + $0xbb8] sm:$0xff]  ;;  %v15813_v12 = vcombine.low %v665_v63, %v681_v0 }
 0x1f8   : > { %12938 = vmatprep.subr.bf16.mxu0 %v15654_v13  ;;  %12979 = vmatprep.subr.bf16.mxu1 %v15656_v14  ;;  %v15815_v13 = vcombine.low %v666_v1, %v682_v2  ;;  %v15846_v14 = vcombine.high %v697_v8, %v713_v9  ;;  %v15848_v15 = vcombine.high %v698_v10, %v714_v11  ;;  %v825_v2 = vld [vmem:[%s17872_s12 + $0xf30] sm:$0xff] }
 0x1f9   : > { %v15847_v45 = vcombine.low %v698_v10, %v714_v11  ;;  %v347_v11 = vld [vmem:[%s17872_s12 + $0x40] sm:$0xff] }
 0x1ff   : > { %12939 = vmatpush1.bf16.xpose.msra.mxu0 %v15653_v21  ;;  %12980 = vmatpush1.bf16.xpose.msra.mxu1 %v15655_v22 }
 0x200   : > { %12940 = vmatprep.subr.bf16.mxu0 %v15686_v23  ;;  %12981 = vmatprep.subr.bf16.mxu1 %v15688_v25  ;;  %v730_v25 = vld [vmem:[%s17872_s12 + $0xc38] sm:$0xff] }
 0x201   : > { %v15880_v50 = vcombine.high %v730_v25, %v746_v28  ;;  %v15879_v55 = vcombine.low %v730_v25, %v746_v28  ;;  %v395_v25 = vld [vmem:[%s17872_s12 + $0x1c0] sm:$0xff] }
 0x207   : > { %12941 = vmatpush1.bf16.xpose.msra.mxu0 %v15685_v33  ;;  %12982 = vmatpush1.bf16.xpose.msra.mxu1 %v15687_v36  ;;  %v15845_v33 = vcombine.low %v697_v8, %v713_v9 }
 0x208   : > { %12942 = vmatprep.subr.bf16.mxu0 %v15718_v39  ;;  %12983 = vmatprep.subr.bf16.mxu1 %v15720_v43 }
 0x20f   : > { %12943 = vmatpush1.bf16.xpose.msra.mxu0 %v15717_v51  ;;  %12984 = vmatpush1.bf16.xpose.msra.mxu1 %v15719_v52  ;;  %v777_v51 = vld [vmem:[%s17872_s12 + $0xdb0] sm:$0xff]  ;;  %v762_v52 = vld [vmem:[%s17872_s12 + $0xd38] sm:$0xff] }
 0x210   : > { %12944 = vmatprep.subr.bf16.mxu0 %v15750_v53  ;;  %12985 = vmatprep.subr.bf16.mxu1 %v15752_v54  ;;  %v778_v53 = vld [vmem:[%s17872_s12 + $0xdb8] sm:$0xff]  ;;  %v15877_v54 = vcombine.low %v729_v18, %v745_v19 }
 0x211   : > { %v15912_v57 = vcombine.high %v762_v52, %v778_v53  ;;  %v15911_v63 = vcombine.low %v762_v52, %v778_v53  ;;  %v427_v52 = vld [vmem:[%s17872_s12 + $0x2c0] sm:$0xff]  ;;  %v412_v53 = vld [vmem:[%s17872_s12 + $0x248] sm:$0xff] }
 0x217   : > { %12945 = vmatpush1.bf16.xpose.msra.mxu0 %v15749_v59  ;;  %12986 = vmatpush1.bf16.xpose.msra.mxu1 %v15751_v60  ;;  %v809_v59 = vld [vmem:[%s17872_s12 + $0xeb0] sm:$0xff]  ;;  %v794_v60 = vld [vmem:[%s17872_s12 + $0xe38] sm:$0xff] }
 0x218   : > { %12946 = vmatprep.subr.bf16.mxu0 %v15782_v61  ;;  %12987 = vmatprep.subr.bf16.mxu1 %v15784_v62  ;;  %v810_v61 = vld [vmem:[%s17872_s12 + $0xeb8] sm:$0xff]  ;;  %v15942_v0 = vcombine.high %v793_v58, %v809_v59 }
 0x219   : > { %v15944_v1 = vcombine.high %v794_v60, %v810_v61  ;;  %v15943_v8 = vcombine.low %v794_v60, %v810_v61  ;;  %v459_v60 = vld [vmem:[%s17872_s12 + $0x3c0] sm:$0xff]  ;;  %v444_v61 = vld [vmem:[%s17872_s12 + $0x348] sm:$0xff] }
 0x21f   : > { %12947 = vmatpush1.bf16.xpose.msra.mxu0 %v15781_v3  ;;  %12988 = vmatpush1.bf16.xpose.msra.mxu1 %v15783_v4  ;;  %v841_v3 = vld [vmem:[%s17872_s12 + $0xfb0] sm:$0xff]  ;;  %v826_v4 = vld [vmem:[%s17872_s12 + $0xf38] sm:$0xff] }
 0x220   : > { %12948 = vmatprep.subr.bf16.mxu0 %v15814_v6  ;;  %12989 = vmatprep.subr.bf16.mxu1 %v15816_v7  ;;  %v842_v6 = vld [vmem:[%s17872_s12 + $0xfb8] sm:$0xff]  ;;  %v15941_v7 = vcombine.low %v793_v58, %v809_v59  ;;  %v15974_v9 = vcombine.high %v825_v2, %v841_v3  ;;  %v443_v59 = vld [vmem:[%s17872_s12 + $0x340] sm:$0xff] }
 0x221   : > { %v15976_v10 = vcombine.high %v826_v4, %v842_v6 }
 0x227   : > { %12949 = vmatpush1.bf16.xpose.msra.mxu0 %v15813_v12  ;;  %12990 = vmatpush1.bf16.xpose.msra.mxu1 %v15815_v13  ;;  %v363_v12 = vld [vmem:[%s17872_s12 + $0xc0] sm:$0xff]  ;;  %v348_v13 = vld [vmem:[%s17872_s12 + $0x48] sm:$0xff] }
 0x228   : > { %12950 = vmatprep.subr.bf16.mxu0 %v15846_v14  ;;  %12991 = vmatprep.subr.bf16.mxu1 %v15848_v15  ;;  %v364_v14 = vld [vmem:[%s17872_s12 + $0xc8] sm:$0xff]  ;;  %v15973_v15 = vcombine.low %v825_v2, %v841_v3  ;;  %v15498_v18 = vcombine.high %v347_v11, %v363_v12  ;;  %v475_v3 = vld [vmem:[%s17872_s12 + $0x440] sm:$0xff] }
 0x229   : > { %v12798_v17 = vpop.f32.mrb[4].mxu0  ;;  %v12839_v22 = vpop.f32.mrb[4].mxu1  ;;  %v15500_v19 = vcombine.high %v348_v13, %v364_v14 }
 0x22a   : > { %v12799_v21 = vadd.f32 %v12798_v17, %v18129_v37  ;;  %v12800_v23 = vpop.f32.mrb[5].mxu0  ;;  %v12841_v31 = vpop.f32.mrb[5].mxu1  ;;  %v15975_v17 = vcombine.low %v826_v4, %v842_v6  ;;  %v491_v4 = vld [vmem:[%s17872_s12 + $0x4c0] sm:$0xff]  ;;  %v476_v6 = vld [vmem:[%s17872_s12 + $0x448] sm:$0xff] }
 0x22b   : > { %v12801_v29 = vadd.f32 %v12800_v23, %v18131_v44  ;;  %v12802_v32 = vpop.f32.mrb[6].mxu0  ;;  %v12843_v39 = vpop.f32.mrb[6].mxu1  ;;  %v761_v44 = vld [vmem:[%s17872_s12 + $0xd30] sm:$0xff]  ;;  %v379_v23 = vld [vmem:[%s17872_s12 + $0x140] sm:$0xff] }
 0x22c   : > { %v18223_v36 = vadd.f32 %v12839_v22, %v12799_v21  ;;  %v12803_v43 = vpop.f32.mrb[7].mxu0  ;;  %v12844_v47 = vpop.f32.mrb[7].mxu1  ;;  %v15910_v56 = vcombine.high %v761_v44, %v777_v51  ;;  %v15909_v62 = vcombine.low %v761_v44, %v777_v51  ;;  %v287_v21 = vld [vmem:[%s20436_s0 + $0x60] sm:$0xff]  ;;  %v289_v22 = vld [vmem:[%s20436_s0 + $0x70] sm:$0xff]  ;;  %v292_v32 = vld [vmem:[%s20436_s0 + $0x88] sm:$0xff]  ;;  %v15497_v39 = vcombine.low %v347_v11, %v363_v12 }
 0x22d   : > { %v18225_v37 = vadd.f32 %v12841_v31, %v12801_v29  ;;  %v18251_v28 = vpack.c.bf16 %v287_v21, %v287_v21  ;;  %v380_v29 = vld [vmem:[%s17872_s12 + $0x148] sm:$0xff]  ;;  %v294_v43 = vld [vmem:[%s20436_s0 + $0x98] sm:$0xff]  ;;  %v411_v51 = vld [vmem:[%s17872_s12 + $0x240] sm:$0xff] }
 0x22e   : > { %v396_v31 = vld [vmem:[%s17872_s12 + $0x1c8] sm:$0xff]  ;;  %v18266_v44 = vpack.c.bf16 %v294_v43, %v294_v43  ;;  %v507_v12 = vld [vmem:[%s17872_s12 + $0x540] sm:$0xff] }
 0x22f   : > { %12951 = vmatpush1.bf16.xpose.msra.mxu0 %v15845_v33  ;;  %12992 = vmatpush1.bf16.xpose.msra.mxu1 %v15847_v45  ;;  %v18258_v33 = vpack.c.bf16 %v289_v22, %v289_v22  ;;  %v15499_v45 = vcombine.low %v348_v13, %v364_v14  ;;  %v15532_v47 = vcombine.high %v380_v29, %v396_v31  ;;  %v523_v13 = vld [vmem:[%s17872_s12 + $0x5c0] sm:$0xff]  ;;  %v508_v14 = vld [vmem:[%s17872_s12 + $0x548] sm:$0xff] }
 0x230   : > { %12952 = vmatprep.subr.bf16.mxu0 %v15878_v46  ;;  %12993 = vmatprep.subr.bf16.mxu1 %v15880_v50  ;;  %v15530_v46 = vcombine.high %v379_v23, %v395_v25  ;;  %v18263_v50 = vpack.c.bf16 %v292_v32, %v292_v32  ;;  %v539_v22 = vld [vmem:[%s17872_s12 + $0x640] sm:$0xff] }
 0x237   : > { %12953 = vmatpush1.bf16.xpose.msra.mxu0 %v15877_v54  ;;  %12994 = vmatpush1.bf16.xpose.msra.mxu1 %v15879_v55  ;;  %v428_v54 = vld [vmem:[%s17872_s12 + $0x2c8] sm:$0xff]  ;;  %v15529_v55 = vcombine.low %v379_v23, %v395_v25  ;;  %v555_v23 = vld [vmem:[%s17872_s12 + $0x6c0] sm:$0xff] }
 0x238   : > { %12954 = vmatprep.subr.bf16.mxu0 %v15910_v56  ;;  %12995 = vmatprep.subr.bf16.mxu1 %v15912_v57  ;;  %v15531_v56 = vcombine.low %v380_v29, %v396_v31  ;;  %v15562_v57 = vcombine.high %v411_v51, %v427_v52  ;;  %v15564_v58 = vcombine.high %v412_v53, %v428_v54  ;;  %v540_v25 = vld [vmem:[%s17872_s12 + $0x648] sm:$0xff] }
 0x239   : > { %v556_v29 = vld [vmem:[%s17872_s12 + $0x6c8] sm:$0xff]  ;;  %v15657_v31 = vcombine.low %v507_v12, %v523_v13 }
 0x23a   : > { %v15692_v43 = vcombine.high %v540_v25, %v556_v29 }
 0x23f   : > { %12955 = vmatpush1.bf16.xpose.msra.mxu0 %v15909_v62  ;;  %12996 = vmatpush1.bf16.xpose.msra.mxu1 %v15911_v63  ;;  %v460_v62 = vld [vmem:[%s17872_s12 + $0x3c8] sm:$0xff]  ;;  %v15561_v63 = vcombine.low %v411_v51, %v427_v52  ;;  %v15689_v52 = vcombine.low %v539_v22, %v555_v23 }
 0x240   : > { %12956 = vmatprep.subr.bf16.mxu0 %v15942_v0  ;;  %12997 = vmatprep.subr.bf16.mxu1 %v15944_v1  ;;  %v15563_v0 = vcombine.low %v412_v53, %v428_v54  ;;  %v15594_v1 = vcombine.high %v443_v59, %v459_v60  ;;  %v15596_v2 = vcombine.high %v444_v61, %v460_v62  ;;  %v588_v51 = vld [vmem:[%s17872_s12 + $0x7c8] sm:$0xff] }
 0x241   : > { %v15691_v53 = vcombine.low %v540_v25, %v556_v29 }
 0x247   : > { %12957 = vmatpush1.bf16.xpose.msra.mxu0 %v15941_v7  ;;  %12998 = vmatpush1.bf16.xpose.msra.mxu1 %v15943_v8  ;;  %v492_v7 = vld [vmem:[%s17872_s12 + $0x4c8] sm:$0xff]  ;;  %v15593_v8 = vcombine.low %v443_v59, %v459_v60 }
 0x248   : > { %12958 = vmatprep.subr.bf16.mxu0 %v15974_v9  ;;  %12999 = vmatprep.subr.bf16.mxu1 %v15976_v10  ;;  %v15595_v9 = vcombine.low %v444_v61, %v460_v62  ;;  %v15626_v10 = vcombine.high %v475_v3, %v491_v4  ;;  %v15628_v11 = vcombine.high %v476_v6, %v492_v7  ;;  %v620_v59 = vld [vmem:[%s17872_s12 + $0x8c8] sm:$0xff] }
 0x24f   : > { %12959 = vmatpush1.bf16.xpose.msra.mxu0 %v15973_v15  ;;  %13000 = vmatpush1.bf16.xpose.msra.mxu1 %v15975_v17  ;;  %v524_v15 = vld [vmem:[%s17872_s12 + $0x5c8] sm:$0xff]  ;;  %v15625_v17 = vcombine.low %v475_v3, %v491_v4 }
 0x250   : > { %13010 = vmatprep.subr.bf16.mxu0 %v15498_v18  ;;  %13051 = vmatprep.subr.bf16.mxu1 %v15500_v19  ;;  %v15627_v18 = vcombine.low %v476_v6, %v492_v7  ;;  %v15658_v19 = vcombine.high %v507_v12, %v523_v13  ;;  %v15660_v21 = vcombine.high %v508_v14, %v524_v15  ;;  %v652_v3 = vld [vmem:[%s17872_s12 + $0x9c8] sm:$0xff] }
 0x251   : > { %v15659_v32 = vcombine.low %v508_v14, %v524_v15  ;;  %v684_v12 = vld [vmem:[%s17872_s12 + $0xac8] sm:$0xff] }
 0x256   : > { %12961 = vmatmul.mubr.bf16.vlgmr.msra.gmra.mrb[12].mxu0 %v18251_v28  ;;  %13002 = vmatmul.mubr.bf16.vlgmr.msra.gmra.mrb[12].mxu1 %v18258_v33 }
 0x257   : > { %13011 = vmatpush1.bf16.xpose.msra.mxu0 %v15497_v39  ;;  %13052 = vmatpush1.bf16.xpose.msra.mxu1 %v15499_v45  ;;  %v15690_v39 = vcombine.high %v539_v22, %v555_v23  ;;  %v571_v45 = vld [vmem:[%s17872_s12 + $0x740] sm:$0xff]  ;;  %v716_v22 = vld [vmem:[%s17872_s12 + $0xbc8] sm:$0xff] }
 0x258   : > { %13012 = vmatprep.subr.bf16.mxu0 %v15530_v46  ;;  %13053 = vmatprep.subr.bf16.mxu1 %v15532_v47  ;;  %v587_v46 = vld [vmem:[%s17872_s12 + $0x7c0] sm:$0xff]  ;;  %v572_v47 = vld [vmem:[%s17872_s12 + $0x748] sm:$0xff] }
 0x259   : > { %13042 = vmatprep.mubr.bf16.mxu0 %v18263_v50  ;;  %13083 = vmatprep.mubr.bf16.mxu1 %v18266_v44  ;;  %v15722_v54 = vcombine.high %v571_v45, %v587_v46  ;;  %v15721_v60 = vcombine.low %v571_v45, %v587_v46  ;;  %v15723_v61 = vcombine.low %v572_v47, %v588_v51 }
 0x25f   : > { %13013 = vmatpush1.bf16.xpose.msra.mxu0 %v15529_v55  ;;  %13054 = vmatpush1.bf16.xpose.msra.mxu1 %v15531_v56  ;;  %v15724_v55 = vcombine.high %v572_v47, %v588_v51  ;;  %v603_v56 = vld [vmem:[%s17872_s12 + $0x840] sm:$0xff]  ;;  %v732_v51 = vld [vmem:[%s17872_s12 + $0xc48] sm:$0xff] }
 0x260   : > { %13014 = vmatprep.subr.bf16.mxu0 %v15562_v57  ;;  %13055 = vmatprep.subr.bf16.mxu1 %v15564_v58  ;;  %v619_v57 = vld [vmem:[%s17872_s12 + $0x8c0] sm:$0xff]  ;;  %v604_v58 = vld [vmem:[%s17872_s12 + $0x848] sm:$0xff] }
 0x261   : > { %v15754_v62 = vcombine.high %v603_v56, %v619_v57  ;;  %v15753_v4 = vcombine.low %v603_v56, %v619_v57  ;;  %v15755_v6 = vcombine.low %v604_v58, %v620_v59 }
 0x267   : > { %13015 = vmatpush1.bf16.xpose.msra.mxu0 %v15561_v63  ;;  %13056 = vmatpush1.bf16.xpose.msra.mxu1 %v15563_v0  ;;  %v15756_v63 = vcombine.high %v604_v58, %v620_v59  ;;  %v635_v0 = vld [vmem:[%s17872_s12 + $0x940] sm:$0xff] }
 0x268   : > { %13016 = vmatprep.subr.bf16.mxu0 %v15594_v1  ;;  %13057 = vmatprep.subr.bf16.mxu1 %v15596_v2  ;;  %v651_v1 = vld [vmem:[%s17872_s12 + $0x9c0] sm:$0xff]  ;;  %v636_v2 = vld [vmem:[%s17872_s12 + $0x948] sm:$0xff] }
 0x269   : > { %v15786_v7 = vcombine.high %v635_v0, %v651_v1  ;;  %v15785_v13 = vcombine.low %v635_v0, %v651_v1  ;;  %v15787_v14 = vcombine.low %v636_v2, %v652_v3  ;;  %v779_v0 = vld [vmem:[%s17872_s12 + $0xdc0] sm:$0xff]  ;;  %v764_v1 = vld [vmem:[%s17872_s12 + $0xd48] sm:$0xff] }
 0x26f   : > { %13017 = vmatpush1.bf16.xpose.msra.mxu0 %v15593_v8  ;;  %13058 = vmatpush1.bf16.xpose.msra.mxu1 %v15595_v9  ;;  %v15788_v8 = vcombine.high %v636_v2, %v652_v3  ;;  %v667_v9 = vld [vmem:[%s17872_s12 + $0xa40] sm:$0xff]  ;;  %v780_v2 = vld [vmem:[%s17872_s12 + $0xdc8] sm:$0xff] }
 0x270   : > { %13018 = vmatprep.subr.bf16.mxu0 %v15626_v10  ;;  %13059 = vmatprep.subr.bf16.mxu1 %v15628_v11  ;;  %v683_v10 = vld [vmem:[%s17872_s12 + $0xac0] sm:$0xff]  ;;  %v668_v11 = vld [vmem:[%s17872_s12 + $0xa48] sm:$0xff] }
 0x271   : > { %v15818_v15 = vcombine.high %v667_v9, %v683_v10  ;;  %v15817_v23 = vcombine.low %v667_v9, %v683_v10  ;;  %v15819_v25 = vcombine.low %v668_v11, %v684_v12  ;;  %v811_v9 = vld [vmem:[%s17872_s12 + $0xec0] sm:$0xff]  ;;  %v796_v10 = vld [vmem:[%s17872_s12 + $0xe48] sm:$0xff] }
 0x277   : > { %13019 = vmatpush1.bf16.xpose.msra.mxu0 %v15625_v17  ;;  %13060 = vmatpush1.bf16.xpose.msra.mxu1 %v15627_v18  ;;  %v15820_v17 = vcombine.high %v668_v11, %v684_v12  ;;  %v699_v18 = vld [vmem:[%s17872_s12 + $0xb40] sm:$0xff]  ;;  %v812_v11 = vld [vmem:[%s17872_s12 + $0xec8] sm:$0xff] }
 0x278   : > { %13020 = vmatprep.subr.bf16.mxu0 %v15658_v19  ;;  %13061 = vmatprep.subr.bf16.mxu1 %v15660_v21  ;;  %v715_v19 = vld [vmem:[%s17872_s12 + $0xbc0] sm:$0xff]  ;;  %v700_v21 = vld [vmem:[%s17872_s12 + $0xb48] sm:$0xff] }
 0x279   : > { %v15850_v29 = vcombine.high %v699_v18, %v715_v19  ;;  %v15849_v56 = vcombine.low %v699_v18, %v715_v19  ;;  %v843_v18 = vld [vmem:[%s17872_s12 + $0xfc0] sm:$0xff]  ;;  %v828_v19 = vld [vmem:[%s17872_s12 + $0xf48] sm:$0xff] }
 0x27f   : > { %13021 = vmatpush1.bf16.xpose.msra.mxu0 %v15657_v31  ;;  %13062 = vmatpush1.bf16.xpose.msra.mxu1 %v15659_v32  ;;  %v15852_v31 = vcombine.high %v700_v21, %v716_v22 }
 0x280   : > { %13022 = vmatprep.subr.bf16.mxu0 %v15690_v39  ;;  %13063 = vmatprep.subr.bf16.mxu1 %v15692_v43  ;;  %v731_v39 = vld [vmem:[%s17872_s12 + $0xc40] sm:$0xff] }
 0x281   : > { %v747_v43 = vld [vmem:[%s17872_s12 + $0xcc0] sm:$0xff] }
 0x282   : > { %v15881_v3 = vcombine.low %v731_v39, %v747_v43 }
 0x287   : > { %13023 = vmatpush1.bf16.xpose.msra.mxu0 %v15689_v52  ;;  %13064 = vmatpush1.bf16.xpose.msra.mxu1 %v15691_v53  ;;  %v748_v52 = vld [vmem:[%s17872_s12 + $0xcc8] sm:$0xff] }
 0x288   : > { %13024 = vmatprep.subr.bf16.mxu0 %v15722_v54  ;;  %13065 = vmatprep.subr.bf16.mxu1 %v15724_v55 }
 0x28f   : > { %13025 = vmatpush1.bf16.xpose.msra.mxu0 %v15721_v60  ;;  %13066 = vmatpush1.bf16.xpose.msra.mxu1 %v15723_v61  ;;  %v15851_v60 = vcombine.low %v700_v21, %v716_v22  ;;  %v15882_v61 = vcombine.high %v731_v39, %v747_v43  ;;  %v844_v21 = vld [vmem:[%s17872_s12 + $0xfc8] sm:$0xff]  ;;  %v350_v39 = vld [vmem:[%s17872_s12 + $0x58] sm:$0xff] }
 0x290   : > { %13026 = vmatprep.subr.bf16.mxu0 %v15754_v62  ;;  %13067 = vmatprep.subr.bf16.mxu1 %v15756_v63  ;;  %v15884_v63 = vcombine.high %v732_v51, %v748_v52  ;;  %v366_v43 = vld [vmem:[%s17872_s12 + $0xd8] sm:$0xff] }
 0x297   : > { %13027 = vmatpush1.bf16.xpose.msra.mxu0 %v15753_v4  ;;  %13068 = vmatpush1.bf16.xpose.msra.mxu1 %v15755_v6  ;;  %v15883_v4 = vcombine.low %v732_v51, %v748_v52  ;;  %v15504_v51 = vcombine.high %v350_v39, %v366_v43  ;;  %v291_v52 = vld [vmem:[%s20436_s0 + $0x80] sm:$0xff] }
 0x298   : > { %13028 = vmatprep.subr.bf16.mxu0 %v15786_v7  ;;  %13069 = vmatprep.subr.bf16.mxu1 %v15788_v8  ;;  %v15916_v7 = vcombine.high %v764_v1, %v780_v2  ;;  %v795_v8 = vld [vmem:[%s17872_s12 + $0xe40] sm:$0xff] }
 0x299   : > { %v15945_v22 = vcombine.low %v795_v8, %v811_v9 }
 0x29f   : > { %13029 = vmatpush1.bf16.xpose.msra.mxu0 %v15785_v13  ;;  %13070 = vmatpush1.bf16.xpose.msra.mxu1 %v15787_v14  ;;  %v15915_v13 = vcombine.low %v764_v1, %v780_v2  ;;  %v15946_v14 = vcombine.high %v795_v8, %v811_v9  ;;  %v430_v8 = vld [vmem:[%s17872_s12 + $0x2d8] sm:$0xff] }
 0x2a0   : > { %13030 = vmatprep.subr.bf16.mxu0 %v15818_v15  ;;  %13071 = vmatprep.subr.bf16.mxu1 %v15820_v17  ;;  %v15948_v15 = vcombine.high %v796_v10, %v812_v11  ;;  %v827_v17 = vld [vmem:[%s17872_s12 + $0xf40] sm:$0xff] }
 0x2a7   : > { %13031 = vmatpush1.bf16.xpose.msra.mxu0 %v15817_v23  ;;  %13072 = vmatpush1.bf16.xpose.msra.mxu1 %v15819_v25  ;;  %v15947_v23 = vcombine.low %v796_v10, %v812_v11  ;;  %v15978_v25 = vcombine.high %v827_v17, %v843_v18 }
 0x2a8   : > { %13032 = vmatprep.subr.bf16.mxu0 %v15850_v29  ;;  %13073 = vmatprep.subr.bf16.mxu1 %v15852_v31  ;;  %v15980_v29 = vcombine.high %v828_v19, %v844_v21  ;;  %v349_v31 = vld [vmem:[%s17872_s12 + $0x50] sm:$0xff] }
 0x2a9   : > { %v12880_v32 = vpop.f32.mrb[8].mxu0  ;;  %v12921_v46 = vpop.f32.mrb[8].mxu1 }
 0x2aa   : > { %v12881_v45 = vadd.f32 %v12880_v32, %v18223_v36  ;;  %v12882_v47 = vpop.f32.mrb[9].mxu0  ;;  %v12923_v54 = vpop.f32.mrb[9].mxu1  ;;  %v365_v32 = vld [vmem:[%s17872_s12 + $0xd0] sm:$0xff] }
 0x2ab   : > { %v12883_v53 = vadd.f32 %v12882_v47, %v18225_v37  ;;  %v12884_v55 = vpop.f32.mrb[10].mxu0  ;;  %v12925_v58 = vpop.f32.mrb[10].mxu1  ;;  %v763_v37 = vld [vmem:[%s17872_s12 + $0xd40] sm:$0xff]  ;;  %v15502_v47 = vcombine.high %v349_v31, %v365_v32 }
 0x2ac   : > { %v18317_v57 = vadd.f32 %v12921_v46, %v12881_v45  ;;  %v12885_v59 = vpop.f32.mrb[11].mxu0  ;;  %v12926_v62 = vpop.f32.mrb[11].mxu1  ;;  %v15914_v6 = vcombine.high %v763_v37, %v779_v0  ;;  %v15913_v12 = vcombine.low %v763_v37, %v779_v0  ;;  %v15977_v45 = vcombine.low %v827_v17, %v843_v18  ;;  %v397_v55 = vld [vmem:[%s17872_s12 + $0x1d0] sm:$0xff]  ;;  %v382_v58 = vld [vmem:[%s17872_s12 + $0x158] sm:$0xff] }
 0x2ad   : > { %v18319_v36 = vadd.f32 %v12923_v54, %v12883_v53  ;;  %v15979_v46 = vcombine.low %v828_v19, %v844_v21  ;;  %v293_v53 = vld [vmem:[%s20436_s0 + $0x90] sm:$0xff]  ;;  %v398_v59 = vld [vmem:[%s17872_s12 + $0x1d8] sm:$0xff]  ;;  %v15501_v62 = vcombine.low %v349_v31, %v365_v32  ;;  %v15503_v37 = vcombine.low %v350_v39, %v366_v43 }
 0x2ae   : > { %v381_v54 = vld [vmem:[%s17872_s12 + $0x150] sm:$0xff]  ;;  %v15536_v1 = vcombine.high %v382_v58, %v398_v59  ;;  %v15535_v10 = vcombine.low %v382_v58, %v398_v59  ;;  %v462_v17 = vld [vmem:[%s17872_s12 + $0x3d8] sm:$0xff] }
 0x2af   : > { %13033 = vmatpush1.bf16.xpose.msra.mxu0 %v15849_v56  ;;  %13074 = vmatpush1.bf16.xpose.msra.mxu1 %v15851_v60  ;;  %v18345_v56 = vpack.c.bf16 %v291_v52, %v291_v52  ;;  %v296_v60 = vld [vmem:[%s20436_s0 + $0xa8] sm:$0xff]  ;;  %v15534_v0 = vcombine.high %v381_v54, %v397_v55  ;;  %v15533_v9 = vcombine.low %v381_v54, %v397_v55  ;;  %v494_v31 = vld [vmem:[%s17872_s12 + $0x4d8] sm:$0xff]  ;;  %v541_v59 = vld [vmem:[%s17872_s12 + $0x650] sm:$0xff] }
 0x2b0   : > { %13034 = vmatprep.subr.bf16.mxu0 %v15882_v61  ;;  %13075 = vmatprep.subr.bf16.mxu1 %v15884_v63  ;;  %v18352_v61 = vpack.c.bf16 %v293_v53, %v293_v53  ;;  %v298_v63 = vld [vmem:[%s20436_s0 + $0xb8] sm:$0xff]  ;;  %v18357_v2 = vpack.c.bf16 %v296_v60, %v296_v60  ;;  %v557_v60 = vld [vmem:[%s17872_s12 + $0x6d0] sm:$0xff] }
 0x2b1   : > { %v526_v52 = vld [vmem:[%s17872_s12 + $0x5d8] sm:$0xff] }
 0x2b7   : > { %13035 = vmatpush1.bf16.xpose.msra.mxu0 %v15881_v3  ;;  %13076 = vmatpush1.bf16.xpose.msra.mxu1 %v15883_v4  ;;  %v18360_v3 = vpack.c.bf16 %v298_v63, %v298_v63  ;;  %v413_v4 = vld [vmem:[%s17872_s12 + $0x250] sm:$0xff]  ;;  %v558_v63 = vld [vmem:[%s17872_s12 + $0x6d8] sm:$0xff] }
 0x2b8   : > { %13036 = vmatprep.subr.bf16.mxu0 %v15914_v6  ;;  %13077 = vmatprep.subr.bf16.mxu1 %v15916_v7  ;;  %v429_v6 = vld [vmem:[%s17872_s12 + $0x2d0] sm:$0xff]  ;;  %v414_v7 = vld [vmem:[%s17872_s12 + $0x258] sm:$0xff] }
 0x2b9   : > { %v15566_v11 = vcombine.high %v413_v4, %v429_v6  ;;  %v15565_v18 = vcombine.low %v413_v4, %v429_v6  ;;  %v15567_v19 = vcombine.low %v414_v7, %v430_v8  ;;  %v573_v6 = vld [vmem:[%s17872_s12 + $0x750] sm:$0xff] }
 0x2bf   : > { %13037 = vmatpush1.bf16.xpose.msra.mxu0 %v15913_v12  ;;  %13078 = vmatpush1.bf16.xpose.msra.mxu1 %v15915_v13  ;;  %v15568_v12 = vcombine.high %v414_v7, %v430_v8  ;;  %v445_v13 = vld [vmem:[%s17872_s12 + $0x350] sm:$0xff]  ;;  %v574_v8 = vld [vmem:[%s17872_s12 + $0x758] sm:$0xff] }
 0x2c0   : > { %13038 = vmatprep.subr.bf16.mxu0 %v15946_v14  ;;  %13079 = vmatprep.subr.bf16.mxu1 %v15948_v15  ;;  %v461_v14 = vld [vmem:[%s17872_s12 + $0x3d0] sm:$0xff]  ;;  %v446_v15 = vld [vmem:[%s17872_s12 + $0x358] sm:$0xff] }
 0x2c1   : > { %v15598_v21 = vcombine.high %v445_v13, %v461_v14  ;;  %v15597_v32 = vcombine.low %v445_v13, %v461_v14  ;;  %v15599_v39 = vcombine.low %v446_v15, %v462_v17  ;;  %v589_v7 = vld [vmem:[%s17872_s12 + $0x7d0] sm:$0xff] }
 0x2c2   : > { %v605_v14 = vld [vmem:[%s17872_s12 + $0x850] sm:$0xff] }
 0x2c7   : > { %13039 = vmatpush1.bf16.xpose.msra.mxu0 %v15945_v22  ;;  %13080 = vmatpush1.bf16.xpose.msra.mxu1 %v15947_v23  ;;  %v15600_v22 = vcombine.high %v446_v15, %v462_v17  ;;  %v477_v23 = vld [vmem:[%s17872_s12 + $0x450] sm:$0xff]  ;;  %v606_v17 = vld [vmem:[%s17872_s12 + $0x858] sm:$0xff] }
 0x2c8   : > { %13040 = vmatprep.subr.bf16.mxu0 %v15978_v25  ;;  %13081 = vmatprep.subr.bf16.mxu1 %v15980_v29  ;;  %v493_v25 = vld [vmem:[%s17872_s12 + $0x4d0] sm:$0xff]  ;;  %v478_v29 = vld [vmem:[%s17872_s12 + $0x458] sm:$0xff] }
 0x2c9   : > { %v15630_v43 = vcombine.high %v477_v23, %v493_v25  ;;  %v15629_v53 = vcombine.low %v477_v23, %v493_v25  ;;  %v15631_v54 = vcombine.low %v478_v29, %v494_v31  ;;  %v621_v15 = vld [vmem:[%s17872_s12 + $0x8d0] sm:$0xff] }
 0x2ca   : > { %v637_v25 = vld [vmem:[%s17872_s12 + $0x950] sm:$0xff] }
 0x2cf   : > { %13041 = vmatpush1.bf16.xpose.msra.mxu0 %v15977_v45  ;;  %13082 = vmatpush1.bf16.xpose.msra.mxu1 %v15979_v46  ;;  %v15632_v45 = vcombine.high %v478_v29, %v494_v31  ;;  %v509_v46 = vld [vmem:[%s17872_s12 + $0x550] sm:$0xff]  ;;  %v638_v31 = vld [vmem:[%s17872_s12 + $0x958] sm:$0xff] }
 0x2d0   : > { %13092 = vmatprep.subr.bf16.mxu0 %v15502_v47  ;;  %13133 = vmatprep.subr.bf16.mxu1 %v15504_v51  ;;  %v525_v47 = vld [vmem:[%s17872_s12 + $0x5d0] sm:$0xff]  ;;  %v510_v51 = vld [vmem:[%s17872_s12 + $0x558] sm:$0xff] }
 0x2d1   : > { %v15662_v55 = vcombine.high %v509_v46, %v525_v47  ;;  %v15664_v58 = vcombine.high %v510_v51, %v526_v52  ;;  %v653_v29 = vld [vmem:[%s17872_s12 + $0x9d0] sm:$0xff] }
 0x2d6   : > { %13043 = vmatmul.mubr.bf16.vlgmr.msra.gmra.mrb[16].mxu0 %v18345_v56  ;;  %13084 = vmatmul.mubr.bf16.vlgmr.msra.gmra.mrb[16].mxu1 %v18352_v61 }
 0x2d7   : > { %13093 = vmatpush1.bf16.xpose.msra.mxu0 %v15501_v62  ;;  %13134 = vmatpush1.bf16.xpose.msra.mxu1 %v15503_v37  ;;  %v542_v62 = vld [vmem:[%s17872_s12 + $0x658] sm:$0xff]  ;;  %v15661_v37 = vcombine.low %v509_v46, %v525_v47  ;;  %v669_v47 = vld [vmem:[%s17872_s12 + $0xa50] sm:$0xff] }
 0x2d8   : > { %13094 = vmatprep.subr.bf16.mxu0 %v15534_v0  ;;  %13135 = vmatprep.subr.bf16.mxu1 %v15536_v1  ;;  %v15663_v0 = vcombine.low %v510_v51, %v526_v52  ;;  %v15694_v1 = vcombine.high %v541_v59, %v557_v60  ;;  %v15696_v4 = vcombine.high %v542_v62, %v558_v63  ;;  %v685_v51 = vld [vmem:[%s17872_s12 + $0xad0] sm:$0xff]  ;;  %v670_v52 = vld [vmem:[%s17872_s12 + $0xa58] sm:$0xff] }
 0x2d9   : > { %13124 = vmatprep.mubr.bf16.mxu0 %v18357_v2  ;;  %13165 = vmatprep.mubr.bf16.mxu1 %v18360_v3 }
 0x2df   : > { %13095 = vmatpush1.bf16.xpose.msra.mxu0 %v15533_v9  ;;  %13136 = vmatpush1.bf16.xpose.msra.mxu1 %v15535_v10  ;;  %v590_v9 = vld [vmem:[%s17872_s12 + $0x7d8] sm:$0xff]  ;;  %v15693_v10 = vcombine.low %v541_v59, %v557_v60  ;;  %v701_v60 = vld [vmem:[%s17872_s12 + $0xb50] sm:$0xff] }
 0x2e0   : > { %13096 = vmatprep.subr.bf16.mxu0 %v15566_v11  ;;  %13137 = vmatprep.subr.bf16.mxu1 %v15568_v12  ;;  %v15695_v11 = vcombine.low %v542_v62, %v558_v63  ;;  %v15726_v12 = vcombine.high %v573_v6, %v589_v7  ;;  %v15728_v13 = vcombine.high %v574_v8, %v590_v9  ;;  %v717_v62 = vld [vmem:[%s17872_s12 + $0xbd0] sm:$0xff]  ;;  %v702_v63 = vld [vmem:[%s17872_s12 + $0xb58] sm:$0xff] }
 0x2e7   : > { %13097 = vmatpush1.bf16.xpose.msra.mxu0 %v15565_v18  ;;  %13138 = vmatpush1.bf16.xpose.msra.mxu1 %v15567_v19  ;;  %v622_v18 = vld [vmem:[%s17872_s12 + $0x8d8] sm:$0xff]  ;;  %v15725_v19 = vcombine.low %v573_v6, %v589_v7 }
 0x2e8   : > { %13098 = vmatprep.subr.bf16.mxu0 %v15598_v21  ;;  %13139 = vmatprep.subr.bf16.mxu1 %v15600_v22  ;;  %v15727_v21 = vcombine.low %v574_v8, %v590_v9  ;;  %v15758_v22 = vcombine.high %v605_v14, %v621_v15  ;;  %v15760_v23 = vcombine.high %v606_v17, %v622_v18  ;;  %v733_v8 = vld [vmem:[%s17872_s12 + $0xc50] sm:$0xff] }
 0x2e9   : > { %v749_v9 = vld [vmem:[%s17872_s12 + $0xcd0] sm:$0xff] }
 0x2ef   : > { %13099 = vmatpush1.bf16.xpose.msra.mxu0 %v15597_v32  ;;  %13140 = vmatpush1.bf16.xpose.msra.mxu1 %v15599_v39  ;;  %v654_v32 = vld [vmem:[%s17872_s12 + $0x9d8] sm:$0xff]  ;;  %v15757_v39 = vcombine.low %v605_v14, %v621_v15 }
 0x2f0   : > { %13100 = vmatprep.subr.bf16.mxu0 %v15630_v43  ;;  %13141 = vmatprep.subr.bf16.mxu1 %v15632_v45  ;;  %v15759_v43 = vcombine.low %v606_v17, %v622_v18  ;;  %v15790_v45 = vcombine.high %v637_v25, %v653_v29  ;;  %v15792_v46 = vcombine.high %v638_v31, %v654_v32  ;;  %v750_v14 = vld [vmem:[%s17872_s12 + $0xcd8] sm:$0xff] }
 0x2f7   : > { %13101 = vmatpush1.bf16.xpose.msra.mxu0 %v15629_v53  ;;  %13142 = vmatpush1.bf16.xpose.msra.mxu1 %v15631_v54  ;;  %v686_v53 = vld [vmem:[%s17872_s12 + $0xad8] sm:$0xff]  ;;  %v15789_v54 = vcombine.low %v637_v25, %v653_v29  ;;  %v15886_v29 = vcombine.high %v733_v8, %v749_v9 }
 0x2f8   : > { %13102 = vmatprep.subr.bf16.mxu0 %v15662_v55  ;;  %13143 = vmatprep.subr.bf16.mxu1 %v15664_v58  ;;  %v15791_v55 = vcombine.low %v638_v31, %v654_v32  ;;  %v15822_v58 = vcombine.high %v669_v47, %v685_v51  ;;  %v15824_v59 = vcombine.high %v670_v52, %v686_v53 }
 0x2ff   : > { %13103 = vmatpush1.bf16.xpose.msra.mxu0 %v15661_v37  ;;  %13144 = vmatpush1.bf16.xpose.msra.mxu1 %v15663_v0  ;;  %v718_v37 = vld [vmem:[%s17872_s12 + $0xbd8] sm:$0xff]  ;;  %v15821_v0 = vcombine.low %v669_v47, %v685_v51 }
 0x300   : > { %13104 = vmatprep.subr.bf16.mxu0 %v15694_v1  ;;  %13145 = vmatprep.subr.bf16.mxu1 %v15696_v4  ;;  %v15823_v1 = vcombine.low %v670_v52, %v686_v53  ;;  %v15854_v4 = vcombine.high %v701_v60, %v717_v62  ;;  %v15856_v6 = vcombine.high %v702_v63, %v718_v37  ;;  %v797_v53 = vld [vmem:[%s17872_s12 + $0xe50] sm:$0xff] }
 0x301   : > { %v15855_v25 = vcombine.low %v702_v63, %v718_v37  ;;  %v829_v37 = vld [vmem:[%s17872_s12 + $0xf50] sm:$0xff] }
 0x307   : > { %13105 = vmatpush1.bf16.xpose.msra.mxu0 %v15693_v10  ;;  %13146 = vmatpush1.bf16.xpose.msra.mxu1 %v15695_v11 }
 0x308   : > { %13106 = vmatprep.subr.bf16.mxu0 %v15726_v12  ;;  %13147 = vmatprep.subr.bf16.mxu1 %v15728_v13  ;;  %v734_v13 = vld [vmem:[%s17872_s12 + $0xc58] sm:$0xff] }
 0x309   : > { %v15888_v32 = vcombine.high %v734_v13, %v750_v14  ;;  %v15887_v47 = vcombine.low %v734_v13, %v750_v14  ;;  %v368_v13 = vld [vmem:[%s17872_s12 + $0xe8] sm:$0xff] }
 0x30f   : > { %13107 = vmatpush1.bf16.xpose.msra.mxu0 %v15725_v19  ;;  %13148 = vmatpush1.bf16.xpose.msra.mxu1 %v15727_v21  ;;  %v15853_v19 = vcombine.low %v701_v60, %v717_v62 }
 0x310   : > { %13108 = vmatprep.subr.bf16.mxu0 %v15758_v22  ;;  %13149 = vmatprep.subr.bf16.mxu1 %v15760_v23 }
 0x317   : > { %13109 = vmatpush1.bf16.xpose.msra.mxu0 %v15757_v39  ;;  %13150 = vmatpush1.bf16.xpose.msra.mxu1 %v15759_v43  ;;  %v781_v39 = vld [vmem:[%s17872_s12 + $0xdd0] sm:$0xff]  ;;  %v766_v43 = vld [vmem:[%s17872_s12 + $0xd58] sm:$0xff] }
 0x318   : > { %13110 = vmatprep.subr.bf16.mxu0 %v15790_v45  ;;  %13151 = vmatprep.subr.bf16.mxu1 %v15792_v46  ;;  %v782_v45 = vld [vmem:[%s17872_s12 + $0xdd8] sm:$0xff]  ;;  %v15885_v46 = vcombine.low %v733_v8, %v749_v9 }
 0x319   : > { %v15920_v52 = vcombine.high %v766_v43, %v782_v45  ;;  %v15919_v60 = vcombine.low %v766_v43, %v782_v45  ;;  %v302_v45 = vld [vmem:[%s20436_s0 + $0xd8] sm:$0xff] }
 0x31f   : > { %13111 = vmatpush1.bf16.xpose.msra.mxu0 %v15789_v54  ;;  %13152 = vmatpush1.bf16.xpose.msra.mxu1 %v15791_v55  ;;  %v813_v54 = vld [vmem:[%s17872_s12 + $0xed0] sm:$0xff]  ;;  %v798_v55 = vld [vmem:[%s17872_s12 + $0xe58] sm:$0xff] }
 0x320   : > { %13112 = vmatprep.subr.bf16.mxu0 %v15822_v58  ;;  %13153 = vmatprep.subr.bf16.mxu1 %v15824_v59  ;;  %v814_v58 = vld [vmem:[%s17872_s12 + $0xed8] sm:$0xff]  ;;  %v15950_v62 = vcombine.high %v797_v53, %v813_v54 }
 0x321   : > { %v15952_v63 = vcombine.high %v798_v55, %v814_v58 }
 0x327   : > { %13113 = vmatpush1.bf16.xpose.msra.mxu0 %v15821_v0  ;;  %13154 = vmatpush1.bf16.xpose.msra.mxu1 %v15823_v1  ;;  %v845_v0 = vld [vmem:[%s17872_s12 + $0xfd0] sm:$0xff]  ;;  %v830_v1 = vld [vmem:[%s17872_s12 + $0xf58] sm:$0xff] }
 0x328   : > { %13114 = vmatprep.subr.bf16.mxu0 %v15854_v4  ;;  %13155 = vmatprep.subr.bf16.mxu1 %v15856_v6  ;;  %v846_v4 = vld [vmem:[%s17872_s12 + $0xfd8] sm:$0xff]  ;;  %v15949_v6 = vcombine.low %v797_v53, %v813_v54  ;;  %v15982_v8 = vcombine.high %v829_v37, %v845_v0  ;;  %v15981_v14 = vcombine.low %v829_v37, %v845_v0  ;;  %v415_v54 = vld [vmem:[%s17872_s12 + $0x260] sm:$0xff] }
 0x329   : > { %v12962_v7 = vpop.f32.mrb[12].mxu0  ;;  %v13003_v11 = vpop.f32.mrb[12].mxu1  ;;  %v15984_v9 = vcombine.high %v830_v1, %v846_v4  ;;  %v18454_v53 = vpack.c.bf16 %v302_v45, %v302_v45  ;;  %v447_v0 = vld [vmem:[%s17872_s12 + $0x360] sm:$0xff] }
 0x32a   : > { %v12963_v10 = vadd.f32 %v12962_v7, %v18317_v57  ;;  %v12964_v12 = vpop.f32.mrb[13].mxu0  ;;  %v13005_v17 = vpop.f32.mrb[13].mxu1  ;;  %v15951_v7 = vcombine.low %v798_v55, %v814_v58  ;;  %v431_v55 = vld [vmem:[%s17872_s12 + $0x2e0] sm:$0xff]  ;;  %v416_v58 = vld [vmem:[%s17872_s12 + $0x268] sm:$0xff] }
 0x32b   : > { %v12965_v15 = vadd.f32 %v12964_v12, %v18319_v36  ;;  %v12966_v18 = vpop.f32.mrb[14].mxu0  ;;  %v13007_v22 = vpop.f32.mrb[14].mxu1  ;;  %v765_v36 = vld [vmem:[%s17872_s12 + $0xd50] sm:$0xff]  ;;  %v352_v12 = vld [vmem:[%s17872_s12 + $0x68] sm:$0xff] }
 0x32c   : > { %v18411_v21 = vadd.f32 %v13003_v11, %v12963_v10  ;;  %v12967_v23 = vpop.f32.mrb[15].mxu0  ;;  %v13008_v31 = vpop.f32.mrb[15].mxu1  ;;  %v15918_v51 = vcombine.high %v765_v36, %v781_v39  ;;  %v15917_v59 = vcombine.low %v765_v36, %v781_v39  ;;  %v351_v10 = vld [vmem:[%s17872_s12 + $0x60] sm:$0xff]  ;;  %v15508_v18 = vcombine.high %v352_v12, %v368_v13  ;;  %v297_v22 = vld [vmem:[%s20436_s0 + $0xb0] sm:$0xff]  ;;  %v300_v36 = vld [vmem:[%s20436_s0 + $0xc8] sm:$0xff] }
 0x32d   : > { %v18413_v57 = vadd.f32 %v13005_v17, %v12965_v15  ;;  %v367_v11 = vld [vmem:[%s17872_s12 + $0xe0] sm:$0xff]  ;;  %v15983_v15 = vcombine.low %v830_v1, %v846_v4  ;;  %v384_v31 = vld [vmem:[%s17872_s12 + $0x168] sm:$0xff]  ;;  %v18446_v39 = vpack.c.bf16 %v297_v22, %v297_v22 }
 0x32e   : > { %v15506_v17 = vcombine.high %v351_v10, %v367_v11  ;;  %v383_v23 = vld [vmem:[%s17872_s12 + $0x160] sm:$0xff]  ;;  %v15505_v43 = vcombine.low %v351_v10, %v367_v11  ;;  %v448_v4 = vld [vmem:[%s17872_s12 + $0x368] sm:$0xff] }
 0x32f   : > { %13115 = vmatpush1.bf16.xpose.msra.mxu0 %v15853_v19  ;;  %13156 = vmatpush1.bf16.xpose.msra.mxu1 %v15855_v25  ;;  %v295_v19 = vld [vmem:[%s20436_s0 + $0xa0] sm:$0xff] }
 0x330   : > { %13116 = vmatprep.subr.bf16.mxu0 %v15886_v29  ;;  %13157 = vmatprep.subr.bf16.mxu1 %v15888_v32  ;;  %v399_v25 = vld [vmem:[%s17872_s12 + $0x1e0] sm:$0xff]  ;;  %v18439_v29 = vpack.c.bf16 %v295_v19, %v295_v19  ;;  %v400_v32 = vld [vmem:[%s17872_s12 + $0x1e8] sm:$0xff] }
 0x331   : > { %v463_v1 = vld [vmem:[%s17872_s12 + $0x3e0] sm:$0xff] }
 0x332   : > { %v479_v11 = vld [vmem:[%s17872_s12 + $0x460] sm:$0xff] }
 0x333   : > { %v511_v22 = vld [vmem:[%s17872_s12 + $0x560] sm:$0xff] }
 0x337   : > { %13117 = vmatpush1.bf16.xpose.msra.mxu0 %v15885_v46  ;;  %13158 = vmatpush1.bf16.xpose.msra.mxu1 %v15887_v47  ;;  %v15507_v46 = vcombine.low %v352_v12, %v368_v13  ;;  %v15538_v47 = vcombine.high %v383_v23, %v399_v25  ;;  %v495_v12 = vld [vmem:[%s17872_s12 + $0x4e0] sm:$0xff]  ;;  %v480_v13 = vld [vmem:[%s17872_s12 + $0x468] sm:$0xff] }
 0x338   : > { %13118 = vmatprep.subr.bf16.mxu0 %v15918_v51  ;;  %13159 = vmatprep.subr.bf16.mxu1 %v15920_v52  ;;  %v15540_v51 = vcombine.high %v384_v31, %v400_v32  ;;  %v18451_v52 = vpack.c.bf16 %v300_v36, %v300_v36 }
 0x33f   : > { %13119 = vmatpush1.bf16.xpose.msra.mxu0 %v15917_v59  ;;  %13160 = vmatpush1.bf16.xpose.msra.mxu1 %v15919_v60  ;;  %v432_v59 = vld [vmem:[%s17872_s12 + $0x2e8] sm:$0xff]  ;;  %v15537_v60 = vcombine.low %v383_v23, %v399_v25  ;;  %v527_v23 = vld [vmem:[%s17872_s12 + $0x5e0] sm:$0xff] }
 0x340   : > { %13120 = vmatprep.subr.bf16.mxu0 %v15950_v62  ;;  %13161 = vmatprep.subr.bf16.mxu1 %v15952_v63  ;;  %v15539_v62 = vcombine.low %v384_v31, %v400_v32  ;;  %v15570_v63 = vcombine.high %v415_v54, %v431_v55  ;;  %v15572_v37 = vcombine.high %v416_v58, %v432_v59  ;;  %v512_v25 = vld [vmem:[%s17872_s12 + $0x568] sm:$0xff] }
 0x341   : > { %v528_v31 = vld [vmem:[%s17872_s12 + $0x5e8] sm:$0xff]  ;;  %v15633_v32 = vcombine.low %v479_v11, %v495_v12 }
 0x342   : > { %v15668_v45 = vcombine.high %v512_v25, %v528_v31 }
 0x347   : > { %13121 = vmatpush1.bf16.xpose.msra.mxu0 %v15949_v6  ;;  %13162 = vmatpush1.bf16.xpose.msra.mxu1 %v15951_v7  ;;  %v464_v6 = vld [vmem:[%s17872_s12 + $0x3e8] sm:$0xff]  ;;  %v15569_v7 = vcombine.low %v415_v54, %v431_v55  ;;  %v15665_v55 = vcombine.low %v511_v22, %v527_v23 }
 0x348   : > { %13122 = vmatprep.subr.bf16.mxu0 %v15982_v8  ;;  %13163 = vmatprep.subr.bf16.mxu1 %v15984_v9  ;;  %v15571_v8 = vcombine.low %v416_v58, %v432_v59  ;;  %v15602_v9 = vcombine.high %v447_v0, %v463_v1  ;;  %v15604_v10 = vcombine.high %v448_v4, %v464_v6  ;;  %v560_v54 = vld [vmem:[%s17872_s12 + $0x6e8] sm:$0xff] }
 0x349   : > { %v15667_v58 = vcombine.low %v512_v25, %v528_v31 }
 0x34f   : > { %13123 = vmatpush1.bf16.xpose.msra.mxu0 %v15981_v14  ;;  %13164 = vmatpush1.bf16.xpose.msra.mxu1 %v15983_v15  ;;  %v496_v14 = vld [vmem:[%s17872_s12 + $0x4e8] sm:$0xff]  ;;  %v15601_v15 = vcombine.low %v447_v0, %v463_v1 }
 0x350   : > { %13174 = vmatprep.subr.bf16.mxu0 %v15506_v17  ;;  %13215 = vmatprep.subr.bf16.mxu1 %v15508_v18  ;;  %v15603_v17 = vcombine.low %v448_v4, %v464_v6  ;;  %v15634_v18 = vcombine.high %v479_v11, %v495_v12  ;;  %v15636_v19 = vcombine.high %v480_v13, %v496_v14  ;;  %v592_v0 = vld [vmem:[%s17872_s12 + $0x7e8] sm:$0xff] }
 0x351   : > { %v15635_v36 = vcombine.low %v480_v13, %v496_v14  ;;  %v624_v11 = vld [vmem:[%s17872_s12 + $0x8e8] sm:$0xff] }
 0x356   : > { %13125 = vmatmul.mubr.bf16.vlgmr.msra.gmra.mrb[20].mxu0 %v18439_v29  ;;  %13166 = vmatmul.mubr.bf16.vlgmr.msra.gmra.mrb[20].mxu1 %v18446_v39 }
 0x357   : > { %13175 = vmatpush1.bf16.xpose.msra.mxu0 %v15505_v43  ;;  %13216 = vmatpush1.bf16.xpose.msra.mxu1 %v15507_v46  ;;  %v15666_v43 = vcombine.high %v511_v22, %v527_v23  ;;  %v543_v46 = vld [vmem:[%s17872_s12 + $0x660] sm:$0xff]  ;;  %v656_v22 = vld [vmem:[%s17872_s12 + $0x9e8] sm:$0xff] }
 0x358   : > { %13176 = vmatprep.subr.bf16.mxu0 %v15538_v47  ;;  %13217 = vmatprep.subr.bf16.mxu1 %v15540_v51  ;;  %v559_v47 = vld [vmem:[%s17872_s12 + $0x6e0] sm:$0xff]  ;;  %v544_v51 = vld [vmem:[%s17872_s12 + $0x668] sm:$0xff] }
 0x359   : > { %13206 = vmatprep.mubr.bf16.mxu0 %v18451_v52  ;;  %13247 = vmatprep.mubr.bf16.mxu1 %v18454_v53  ;;  %v15698_v59 = vcombine.high %v543_v46, %v559_v47  ;;  %v15697_v1 = vcombine.low %v543_v46, %v559_v47  ;;  %v15699_v4 = vcombine.low %v544_v51, %v560_v54  ;;  %v688_v46 = vld [vmem:[%s17872_s12 + $0xae8] sm:$0xff] }
 0x35f   : > { %13177 = vmatpush1.bf16.xpose.msra.mxu0 %v15537_v60  ;;  %13218 = vmatpush1.bf16.xpose.msra.mxu1 %v15539_v62  ;;  %v15700_v60 = vcombine.high %v544_v51, %v560_v54  ;;  %v575_v62 = vld [vmem:[%s17872_s12 + $0x760] sm:$0xff] }
 0x360   : > { %13178 = vmatprep.subr.bf16.mxu0 %v15570_v63  ;;  %13219 = vmatprep.subr.bf16.mxu1 %v15572_v37  ;;  %v591_v63 = vld [vmem:[%s17872_s12 + $0x7e0] sm:$0xff]  ;;  %v576_v37 = vld [vmem:[%s17872_s12 + $0x768] sm:$0xff] }
 0x361   : > { %v15730_v6 = vcombine.high %v575_v62, %v591_v63  ;;  %v15729_v12 = vcombine.low %v575_v62, %v591_v63  ;;  %v15731_v13 = vcombine.low %v576_v37, %v592_v0  ;;  %v720_v62 = vld [vmem:[%s17872_s12 + $0xbe8] sm:$0xff] }
 0x367   : > { %13179 = vmatpush1.bf16.xpose.msra.mxu0 %v15569_v7  ;;  %13220 = vmatpush1.bf16.xpose.msra.mxu1 %v15571_v8  ;;  %v15732_v7 = vcombine.high %v576_v37, %v592_v0  ;;  %v607_v8 = vld [vmem:[%s17872_s12 + $0x860] sm:$0xff] }
 0x368   : > { %13180 = vmatprep.subr.bf16.mxu0 %v15602_v9  ;;  %13221 = vmatprep.subr.bf16.mxu1 %v15604_v10  ;;  %v623_v9 = vld [vmem:[%s17872_s12 + $0x8e0] sm:$0xff]  ;;  %v608_v10 = vld [vmem:[%s17872_s12 + $0x868] sm:$0xff] }
 0x369   : > { %v15762_v14 = vcombine.high %v607_v8, %v623_v9  ;;  %v15761_v23 = vcombine.low %v607_v8, %v623_v9  ;;  %v15763_v25 = vcombine.low %v608_v10, %v624_v11 }
 0x36f   : > { %13181 = vmatpush1.bf16.xpose.msra.mxu0 %v15601_v15  ;;  %13222 = vmatpush1.bf16.xpose.msra.mxu1 %v15603_v17  ;;  %v15764_v15 = vcombine.high %v608_v10, %v624_v11  ;;  %v639_v17 = vld [vmem:[%s17872_s12 + $0x960] sm:$0xff]  ;;  %v736_v11 = vld [vmem:[%s17872_s12 + $0xc68] sm:$0xff] }
 0x370   : > { %13182 = vmatprep.subr.bf16.mxu0 %v15634_v18  ;;  %13223 = vmatprep.subr.bf16.mxu1 %v15636_v19  ;;  %v655_v18 = vld [vmem:[%s17872_s12 + $0x9e0] sm:$0xff]  ;;  %v640_v19 = vld [vmem:[%s17872_s12 + $0x968] sm:$0xff] }
 0x371   : > { %v15794_v31 = vcombine.high %v639_v17, %v655_v18  ;;  %v15793_v47 = vcombine.low %v639_v17, %v655_v18  ;;  %v15795_v51 = vcombine.low %v640_v19, %v656_v22 }
 0x377   : > { %13183 = vmatpush1.bf16.xpose.msra.mxu0 %v15633_v32  ;;  %13224 = vmatpush1.bf16.xpose.msra.mxu1 %v15635_v36  ;;  %v15796_v32 = vcombine.high %v640_v19, %v656_v22  ;;  %v671_v36 = vld [vmem:[%s17872_s12 + $0xa60] sm:$0xff] }
 0x378   : > { %13184 = vmatprep.subr.bf16.mxu0 %v15666_v43  ;;  %13225 = vmatprep.subr.bf16.mxu1 %v15668_v45  ;;  %v687_v43 = vld [vmem:[%s17872_s12 + $0xae0] sm:$0xff]  ;;  %v672_v45 = vld [vmem:[%s17872_s12 + $0xa68] sm:$0xff] }
 0x379   : > { %v15826_v54 = vcombine.high %v671_v36, %v687_v43  ;;  %v15825_v63 = vcombine.low %v671_v36, %v687_v43  ;;  %v15827_v37 = vcombine.low %v672_v45, %v688_v46  ;;  %v783_v36 = vld [vmem:[%s17872_s12 + $0xde0] sm:$0xff]  ;;  %v768_v43 = vld [vmem:[%s17872_s12 + $0xd68] sm:$0xff] }
 0x37f   : > { %13185 = vmatpush1.bf16.xpose.msra.mxu0 %v15665_v55  ;;  %13226 = vmatpush1.bf16.xpose.msra.mxu1 %v15667_v58  ;;  %v15828_v55 = vcombine.high %v672_v45, %v688_v46  ;;  %v703_v58 = vld [vmem:[%s17872_s12 + $0xb60] sm:$0xff]  ;;  %v784_v45 = vld [vmem:[%s17872_s12 + $0xde8] sm:$0xff] }
 0x380   : > { %13186 = vmatprep.subr.bf16.mxu0 %v15698_v59  ;;  %13227 = vmatprep.subr.bf16.mxu1 %v15700_v60  ;;  %v719_v59 = vld [vmem:[%s17872_s12 + $0xbe0] sm:$0xff]  ;;  %v704_v60 = vld [vmem:[%s17872_s12 + $0xb68] sm:$0xff] }
 0x381   : > { %v15858_v0 = vcombine.high %v703_v58, %v719_v59  ;;  %v15857_v17 = vcombine.low %v703_v58, %v719_v59  ;;  %v815_v58 = vld [vmem:[%s17872_s12 + $0xee0] sm:$0xff]  ;;  %v800_v59 = vld [vmem:[%s17872_s12 + $0xe68] sm:$0xff] }
 0x387   : > { %13187 = vmatpush1.bf16.xpose.msra.mxu0 %v15697_v1  ;;  %13228 = vmatpush1.bf16.xpose.msra.mxu1 %v15699_v4  ;;  %v15860_v1 = vcombine.high %v704_v60, %v720_v62 }
 0x388   : > { %13188 = vmatprep.subr.bf16.mxu0 %v15730_v6  ;;  %13229 = vmatprep.subr.bf16.mxu1 %v15732_v7  ;;  %v735_v6 = vld [vmem:[%s17872_s12 + $0xc60] sm:$0xff] }
 0x389   : > { %v751_v7 = vld [vmem:[%s17872_s12 + $0xce0] sm:$0xff] }
 0x38a   : > { %v15889_v46 = vcombine.low %v735_v6, %v751_v7 }
 0x38f   : > { %13189 = vmatpush1.bf16.xpose.msra.mxu0 %v15729_v12  ;;  %13230 = vmatpush1.bf16.xpose.msra.mxu1 %v15731_v13  ;;  %v752_v12 = vld [vmem:[%s17872_s12 + $0xce8] sm:$0xff] }
 0x390   : > { %13190 = vmatprep.subr.bf16.mxu0 %v15762_v14  ;;  %13231 = vmatprep.subr.bf16.mxu1 %v15764_v15 }
 0x397   : > { %13191 = vmatpush1.bf16.xpose.msra.mxu0 %v15761_v23  ;;  %13232 = vmatpush1.bf16.xpose.msra.mxu1 %v15763_v25  ;;  %v15859_v23 = vcombine.low %v704_v60, %v720_v62  ;;  %v15890_v25 = vcombine.high %v735_v6, %v751_v7  ;;  %v816_v60 = vld [vmem:[%s17872_s12 + $0xee8] sm:$0xff] }
 0x398   : > { %13192 = vmatprep.subr.bf16.mxu0 %v15794_v31  ;;  %13233 = vmatprep.subr.bf16.mxu1 %v15796_v32  ;;  %v15892_v32 = vcombine.high %v736_v11, %v752_v12  ;;  %v832_v6 = vld [vmem:[%s17872_s12 + $0xf68] sm:$0xff] }
 0x399   : > { %v848_v7 = vld [vmem:[%s17872_s12 + $0xfe8] sm:$0xff] }
 0x39f   : > { %13193 = vmatpush1.bf16.xpose.msra.mxu0 %v15793_v47  ;;  %13234 = vmatpush1.bf16.xpose.msra.mxu1 %v15795_v51  ;;  %v15891_v47 = vcombine.low %v736_v11, %v752_v12  ;;  %v15988_v11 = vcombine.high %v832_v6, %v848_v7  ;;  %v353_v12 = vld [vmem:[%s17872_s12 + $0x70] sm:$0xff] }
 0x3a0   : > { %13194 = vmatprep.subr.bf16.mxu0 %v15826_v54  ;;  %13235 = vmatprep.subr.bf16.mxu1 %v15828_v55  ;;  %v15924_v54 = vcombine.high %v768_v43, %v784_v45  ;;  %v799_v55 = vld [vmem:[%s17872_s12 + $0xe60] sm:$0xff] }
 0x3a7   : > { %13195 = vmatpush1.bf16.xpose.msra.mxu0 %v15825_v63  ;;  %13236 = vmatpush1.bf16.xpose.msra.mxu1 %v15827_v37  ;;  %v15923_v63 = vcombine.low %v768_v43, %v784_v45  ;;  %v15954_v37 = vcombine.high %v799_v55, %v815_v58  ;;  %v386_v43 = vld [vmem:[%s17872_s12 + $0x178] sm:$0xff] }
 0x3a8   : > { %13196 = vmatprep.subr.bf16.mxu0 %v15858_v0  ;;  %13237 = vmatprep.subr.bf16.mxu1 %v15860_v1  ;;  %v15956_v0 = vcombine.high %v800_v59, %v816_v60  ;;  %v831_v1 = vld [vmem:[%s17872_s12 + $0xf60] sm:$0xff]  ;;  %v402_v45 = vld [vmem:[%s17872_s12 + $0x1f8] sm:$0xff] }
 0x3a9   : > { %v13044_v4 = vpop.f32.mrb[16].mxu0  ;;  %v13085_v9 = vpop.f32.mrb[16].mxu1 }
 0x3aa   : > { %v13045_v8 = vadd.f32 %v13044_v4, %v18411_v21  ;;  %v13046_v10 = vpop.f32.mrb[17].mxu0  ;;  %v13087_v14 = vpop.f32.mrb[17].mxu1  ;;  %v847_v4 = vld [vmem:[%s17872_s12 + $0xfe0] sm:$0xff] }
 0x3ab   : > { %v13047_v13 = vadd.f32 %v13046_v10, %v18413_v57  ;;  %v13048_v15 = vpop.f32.mrb[18].mxu0  ;;  %v13089_v19 = vpop.f32.mrb[18].mxu1  ;;  %v767_v57 = vld [vmem:[%s17872_s12 + $0xd60] sm:$0xff]  ;;  %v15986_v10 = vcombine.high %v831_v1, %v847_v4 }
 0x3ac   : > { %v18505_v18 = vadd.f32 %v13085_v9, %v13045_v8  ;;  %v13049_v22 = vpop.f32.mrb[19].mxu0  ;;  %v13090_v31 = vpop.f32.mrb[19].mxu1  ;;  %v15922_v51 = vcombine.high %v767_v57, %v783_v36  ;;  %v15921_v62 = vcombine.low %v767_v57, %v783_v36  ;;  %v15953_v8 = vcombine.low %v799_v55, %v815_v58  ;;  %v370_v15 = vld [vmem:[%s17872_s12 + $0xf8] sm:$0xff]  ;;  %v401_v57 = vld [vmem:[%s17872_s12 + $0x1f0] sm:$0xff] }
 0x3ad   : > { %v18507_v21 = vadd.f32 %v13087_v14, %v13047_v13  ;;  %v15955_v9 = vcombine.low %v800_v59, %v816_v60  ;;  %v369_v13 = vld [vmem:[%s17872_s12 + $0xf0] sm:$0xff]  ;;  %v354_v14 = vld [vmem:[%s17872_s12 + $0x78] sm:$0xff]  ;;  %v15987_v19 = vcombine.low %v832_v6, %v848_v7  ;;  %v15544_v59 = vcombine.high %v386_v43, %v402_v45 }
 0x3ae   : > { %v15510_v22 = vcombine.high %v353_v12, %v369_v13  ;;  %v301_v31 = vld [vmem:[%s20436_s0 + $0xd0] sm:$0xff]  ;;  %v15511_v55 = vcombine.low %v354_v14, %v370_v15  ;;  %v15543_v6 = vcombine.low %v386_v43, %v402_v45 }
 0x3af   : > { %13197 = vmatpush1.bf16.xpose.msra.mxu0 %v15857_v17  ;;  %13238 = vmatpush1.bf16.xpose.msra.mxu1 %v15859_v23  ;;  %v15985_v17 = vcombine.low %v831_v1, %v847_v4  ;;  %v15512_v23 = vcombine.high %v354_v14, %v370_v15  ;;  %v434_v1 = vld [vmem:[%s17872_s12 + $0x2f8] sm:$0xff]  ;;  %v513_v45 = vld [vmem:[%s17872_s12 + $0x570] sm:$0xff] }
 0x3b0   : > { %13198 = vmatprep.subr.bf16.mxu0 %v15890_v25  ;;  %13239 = vmatprep.subr.bf16.mxu1 %v15892_v32  ;;  %v299_v25 = vld [vmem:[%s20436_s0 + $0xc0] sm:$0xff]  ;;  %v385_v32 = vld [vmem:[%s17872_s12 + $0x170] sm:$0xff] }
 0x3b1   : > { %v18533_v36 = vpack.c.bf16 %v299_v25, %v299_v25  ;;  %v15542_v58 = vcombine.high %v385_v32, %v401_v57  ;;  %v15541_v4 = vcombine.low %v385_v32, %v401_v57  ;;  %v498_v25 = vld [vmem:[%s17872_s12 + $0x4f8] sm:$0xff] }
 0x3b7   : > { %13199 = vmatpush1.bf16.xpose.msra.mxu0 %v15889_v46  ;;  %13240 = vmatpush1.bf16.xpose.msra.mxu1 %v15891_v47  ;;  %v304_v46 = vld [vmem:[%s20436_s0 + $0xe8] sm:$0xff]  ;;  %v18540_v47 = vpack.c.bf16 %v301_v31, %v301_v31 }
 0x3b8   : > { %13200 = vmatprep.subr.bf16.mxu0 %v15922_v51  ;;  %13241 = vmatprep.subr.bf16.mxu1 %v15924_v54  ;;  %v15509_v51 = vcombine.low %v353_v12, %v369_v13  ;;  %v306_v54 = vld [vmem:[%s20436_s0 + $0xf8] sm:$0xff]  ;;  %v18545_v60 = vpack.c.bf16 %v304_v46, %v304_v46  ;;  %v529_v46 = vld [vmem:[%s17872_s12 + $0x5f0] sm:$0xff] }
 0x3b9   : > { %v466_v12 = vld [vmem:[%s17872_s12 + $0x3f8] sm:$0xff] }
 0x3bf   : > { %13201 = vmatpush1.bf16.xpose.msra.mxu0 %v15921_v62  ;;  %13242 = vmatpush1.bf16.xpose.msra.mxu1 %v15923_v63  ;;  %v18548_v62 = vpack.c.bf16 %v306_v54, %v306_v54  ;;  %v417_v63 = vld [vmem:[%s17872_s12 + $0x270] sm:$0xff]  ;;  %v530_v54 = vld [vmem:[%s17872_s12 + $0x5f8] sm:$0xff] }
 0x3c0   : > { %13202 = vmatprep.subr.bf16.mxu0 %v15954_v37  ;;  %13243 = vmatprep.subr.bf16.mxu1 %v15956_v0  ;;  %v433_v37 = vld [vmem:[%s17872_s12 + $0x2f0] sm:$0xff]  ;;  %v418_v0 = vld [vmem:[%s17872_s12 + $0x278] sm:$0xff] }
 0x3c1   : > { %v15574_v7 = vcombine.high %v417_v63, %v433_v37  ;;  %v15573_v13 = vcombine.low %v417_v63, %v433_v37  ;;  %v15575_v14 = vcombine.low %v418_v0, %v434_v1  ;;  %v545_v37 = vld [vmem:[%s17872_s12 + $0x670] sm:$0xff] }
 0x3c7   : > { %13203 = vmatpush1.bf16.xpose.msra.mxu0 %v15953_v8  ;;  %13244 = vmatpush1.bf16.xpose.msra.mxu1 %v15955_v9  ;;  %v15576_v8 = vcombine.high %v418_v0, %v434_v1  ;;  %v449_v9 = vld [vmem:[%s17872_s12 + $0x370] sm:$0xff]  ;;  %v546_v1 = vld [vmem:[%s17872_s12 + $0x678] sm:$0xff] }
 0x3c8   : > { %13204 = vmatprep.subr.bf16.mxu0 %v15986_v10  ;;  %13245 = vmatprep.subr.bf16.mxu1 %v15988_v11  ;;  %v465_v10 = vld [vmem:[%s17872_s12 + $0x3f0] sm:$0xff]  ;;  %v450_v11 = vld [vmem:[%s17872_s12 + $0x378] sm:$0xff] }
 0x3c9   : > { %v15606_v15 = vcombine.high %v449_v9, %v465_v10  ;;  %v15605_v31 = vcombine.low %v449_v9, %v465_v10  ;;  %v15607_v32 = vcombine.low %v450_v11, %v466_v12  ;;  %v561_v0 = vld [vmem:[%s17872_s12 + $0x6f0] sm:$0xff] }
 0x3ca   : > { %v577_v10 = vld [vmem:[%s17872_s12 + $0x770] sm:$0xff] }
 0x3cf   : > { %13205 = vmatpush1.bf16.xpose.msra.mxu0 %v15985_v17  ;;  %13246 = vmatpush1.bf16.xpose.msra.mxu1 %v15987_v19  ;;  %v15608_v17 = vcombine.high %v450_v11, %v466_v12  ;;  %v481_v19 = vld [vmem:[%s17872_s12 + $0x470] sm:$0xff]  ;;  %v578_v12 = vld [vmem:[%s17872_s12 + $0x778] sm:$0xff] }
 0x3d0   : > { %13256 = vmatprep.subr.bf16.mxu0 %v15510_v22  ;;  %13297 = vmatprep.subr.bf16.mxu1 %v15512_v23  ;;  %v497_v22 = vld [vmem:[%s17872_s12 + $0x4f0] sm:$0xff]  ;;  %v482_v23 = vld [vmem:[%s17872_s12 + $0x478] sm:$0xff] }
 0x3d1   : > { %v15638_v57 = vcombine.high %v481_v19, %v497_v22  ;;  %v15640_v43 = vcombine.high %v482_v23, %v498_v25  ;;  %v593_v11 = vld [vmem:[%s17872_s12 + $0x7f0] sm:$0xff] }
 0x3d6   : > { %13207 = vmatmul.mubr.bf16.vlgmr.msra.gmra.mrb[24].mxu0 %v18533_v36  ;;  %13248 = vmatmul.mubr.bf16.vlgmr.msra.gmra.mrb[24].mxu1 %v18540_v47 }
 0x3d7   : > { %13257 = vmatpush1.bf16.xpose.msra.mxu0 %v15509_v51  ;;  %13298 = vmatpush1.bf16.xpose.msra.mxu1 %v15511_v55  ;;  %v514_v51 = vld [vmem:[%s17872_s12 + $0x578] sm:$0xff]  ;;  %v15637_v55 = vcombine.low %v481_v19, %v497_v22  ;;  %v609_v22 = vld [vmem:[%s17872_s12 + $0x870] sm:$0xff] }
 0x3d8   : > { %13258 = vmatprep.subr.bf16.mxu0 %v15542_v58  ;;  %13299 = vmatprep.subr.bf16.mxu1 %v15544_v59  ;;  %v15639_v58 = vcombine.low %v482_v23, %v498_v25  ;;  %v15670_v59 = vcombine.high %v513_v45, %v529_v46  ;;  %v15672_v63 = vcombine.high %v514_v51, %v530_v54  ;;  %v625_v23 = vld [vmem:[%s17872_s12 + $0x8f0] sm:$0xff]  ;;  %v610_v25 = vld [vmem:[%s17872_s12 + $0x878] sm:$0xff] }
 0x3d9   : > { %13288 = vmatprep.mubr.bf16.mxu0 %v18545_v60  ;;  %13329 = vmatprep.mubr.bf16.mxu1 %v18548_v62 }
 0x3df   : > { %13259 = vmatpush1.bf16.xpose.msra.mxu0 %v15541_v4  ;;  %13300 = vmatpush1.bf16.xpose.msra.mxu1 %v15543_v6  ;;  %v562_v4 = vld [vmem:[%s17872_s12 + $0x6f8] sm:$0xff]  ;;  %v15669_v6 = vcombine.low %v513_v45, %v529_v46  ;;  %v641_v46 = vld [vmem:[%s17872_s12 + $0x970] sm:$0xff] }
 0x3e0   : > { %13260 = vmatprep.subr.bf16.mxu0 %v15574_v7  ;;  %13301 = vmatprep.subr.bf16.mxu1 %v15576_v8  ;;  %v15671_v7 = vcombine.low %v514_v51, %v530_v54  ;;  %v15702_v8 = vcombine.high %v545_v37, %v561_v0  ;;  %v15704_v9 = vcombine.high %v546_v1, %v562_v4  ;;  %v657_v51 = vld [vmem:[%s17872_s12 + $0x9f0] sm:$0xff]  ;;  %v642_v54 = vld [vmem:[%s17872_s12 + $0x978] sm:$0xff] }
 0x3e7   : > { %13261 = vmatpush1.bf16.xpose.msra.mxu0 %v15573_v13  ;;  %13302 = vmatpush1.bf16.xpose.msra.mxu1 %v15575_v14  ;;  %v594_v13 = vld [vmem:[%s17872_s12 + $0x7f8] sm:$0xff]  ;;  %v15701_v14 = vcombine.low %v545_v37, %v561_v0  ;;  %v673_v0 = vld [vmem:[%s17872_s12 + $0xa70] sm:$0xff] }
 0x3e8   : > { %13262 = vmatprep.subr.bf16.mxu0 %v15606_v15  ;;  %13303 = vmatprep.subr.bf16.mxu1 %v15608_v17  ;;  %v15703_v15 = vcombine.low %v546_v1, %v562_v4  ;;  %v15734_v17 = vcombine.high %v577_v10, %v593_v11  ;;  %v15736_v19 = vcombine.high %v578_v12, %v594_v13  ;;  %v689_v1 = vld [vmem:[%s17872_s12 + $0xaf0] sm:$0xff]  ;;  %v674_v4 = vld [vmem:[%s17872_s12 + $0xa78] sm:$0xff] }
 0x3ef   : > { %13263 = vmatpush1.bf16.xpose.msra.mxu0 %v15605_v31  ;;  %13304 = vmatpush1.bf16.xpose.msra.mxu1 %v15607_v32  ;;  %v626_v31 = vld [vmem:[%s17872_s12 + $0x8f8] sm:$0xff]  ;;  %v15733_v32 = vcombine.low %v577_v10, %v593_v11  ;;  %v705_v11 = vld [vmem:[%s17872_s12 + $0xb70] sm:$0xff] }
 0x3f0   : > { %13264 = vmatprep.subr.bf16.mxu0 %v15638_v57  ;;  %13305 = vmatprep.subr.bf16.mxu1 %v15640_v43  ;;  %v15735_v57 = vcombine.low %v578_v12, %v594_v13  ;;  %v15766_v43 = vcombine.high %v609_v22, %v625_v23  ;;  %v15768_v45 = vcombine.high %v610_v25, %v626_v31  ;;  %v721_v12 = vld [vmem:[%s17872_s12 + $0xbf0] sm:$0xff]  ;;  %v706_v13 = vld [vmem:[%s17872_s12 + $0xb78] sm:$0xff] }
 0x3f7   : > { %13265 = vmatpush1.bf16.xpose.msra.mxu0 %v15637_v55  ;;  %13306 = vmatpush1.bf16.xpose.msra.mxu1 %v15639_v58  ;;  %v658_v55 = vld [vmem:[%s17872_s12 + $0x9f8] sm:$0xff]  ;;  %v15765_v58 = vcombine.low %v609_v22, %v625_v23 }
 0x3f8   : > { %13266 = vmatprep.subr.bf16.mxu0 %v15670_v59  ;;  %13307 = vmatprep.subr.bf16.mxu1 %v15672_v63  ;;  %v15767_v59 = vcombine.low %v610_v25, %v626_v31  ;;  %v15798_v63 = vcombine.high %v641_v46, %v657_v51  ;;  %v15800_v37 = vcombine.high %v642_v54, %v658_v55  ;;  %v737_v25 = vld [vmem:[%s17872_s12 + $0xc70] sm:$0xff] }
 0x3f9   : > { %v753_v31 = vld [vmem:[%s17872_s12 + $0xcf0] sm:$0xff] }
 0x3ff   : > { %13267 = vmatpush1.bf16.xpose.msra.mxu0 %v15669_v6  ;;  %13308 = vmatpush1.bf16.xpose.msra.mxu1 %v15671_v7  ;;  %v690_v6 = vld [vmem:[%s17872_s12 + $0xaf8] sm:$0xff]  ;;  %v15797_v7 = vcombine.low %v641_v46, %v657_v51 }
 0x400   : > { %13268 = vmatprep.subr.bf16.mxu0 %v15702_v8  ;;  %13309 = vmatprep.subr.bf16.mxu1 %v15704_v9  ;;  %v15799_v8 = vcombine.low %v642_v54, %v658_v55  ;;  %v15830_v9 = vcombine.high %v673_v0, %v689_v1  ;;  %v15832_v10 = vcombine.high %v674_v4, %v690_v6  ;;  %v754_v46 = vld [vmem:[%s17872_s12 + $0xcf8] sm:$0xff] }
 0x407   : > { %13269 = vmatpush1.bf16.xpose.msra.mxu0 %v15701_v14  ;;  %13310 = vmatpush1.bf16.xpose.msra.mxu1 %v15703_v15  ;;  %v722_v14 = vld [vmem:[%s17872_s12 + $0xbf8] sm:$0xff]  ;;  %v15829_v15 = vcombine.low %v673_v0, %v689_v1  ;;  %v15894_v1 = vcombine.high %v737_v25, %v753_v31 }
 0x408   : > { %13270 = vmatprep.subr.bf16.mxu0 %v15734_v17  ;;  %13311 = vmatprep.subr.bf16.mxu1 %v15736_v19  ;;  %v15831_v17 = vcombine.low %v674_v4, %v690_v6  ;;  %v15862_v19 = vcombine.high %v705_v11, %v721_v12  ;;  %v15864_v22 = vcombine.high %v706_v13, %v722_v14 }
 0x409   : > { %v15863_v0 = vcombine.low %v706_v13, %v722_v14  ;;  %v801_v14 = vld [vmem:[%s17872_s12 + $0xe70] sm:$0xff] }
 0x40f   : > { %13271 = vmatpush1.bf16.xpose.msra.mxu0 %v15733_v32  ;;  %13312 = vmatpush1.bf16.xpose.msra.mxu1 %v15735_v57 }
 0x410   : > { %13272 = vmatprep.subr.bf16.mxu0 %v15766_v43  ;;  %13313 = vmatprep.subr.bf16.mxu1 %v15768_v45  ;;  %v738_v45 = vld [vmem:[%s17872_s12 + $0xc78] sm:$0xff] }
 0x411   : > { %v15896_v6 = vcombine.high %v738_v45, %v754_v46 }
 0x417   : > { %13273 = vmatpush1.bf16.xpose.msra.mxu0 %v15765_v58  ;;  %13314 = vmatpush1.bf16.xpose.msra.mxu1 %v15767_v59  ;;  %v15861_v58 = vcombine.low %v705_v11, %v721_v12  ;;  %v15895_v11 = vcombine.low %v738_v45, %v754_v46  ;;  %v850_v45 = vld [vmem:[%s17872_s12 + $0xff8] sm:$0xff] }
 0x418   : > { %13274 = vmatprep.subr.bf16.mxu0 %v15798_v63  ;;  %13315 = vmatprep.subr.bf16.mxu1 %v15800_v37 }
 0x41f   : > { %13275 = vmatpush1.bf16.xpose.msra.mxu0 %v15797_v7  ;;  %13316 = vmatpush1.bf16.xpose.msra.mxu1 %v15799_v8  ;;  %v785_v7 = vld [vmem:[%s17872_s12 + $0xdf0] sm:$0xff]  ;;  %v770_v8 = vld [vmem:[%s17872_s12 + $0xd78] sm:$0xff] }
 0x420   : > { %13276 = vmatprep.subr.bf16.mxu0 %v15830_v9  ;;  %13317 = vmatprep.subr.bf16.mxu1 %v15832_v10  ;;  %v786_v9 = vld [vmem:[%s17872_s12 + $0xdf8] sm:$0xff]  ;;  %v15893_v10 = vcombine.low %v737_v25, %v753_v31  ;;  %v833_v25 = vld [vmem:[%s17872_s12 + $0xf70] sm:$0xff] }
 0x421   : > { %v15928_v13 = vcombine.high %v770_v8, %v786_v9  ;;  %v849_v31 = vld [vmem:[%s17872_s12 + $0xff0] sm:$0xff] }
 0x427   : > { %13277 = vmatpush1.bf16.xpose.msra.mxu0 %v15829_v15  ;;  %13318 = vmatpush1.bf16.xpose.msra.mxu1 %v15831_v17  ;;  %v817_v15 = vld [vmem:[%s17872_s12 + $0xef0] sm:$0xff]  ;;  %v802_v17 = vld [vmem:[%s17872_s12 + $0xe78] sm:$0xff] }
 0x428   : > { %13278 = vmatprep.subr.bf16.mxu0 %v15862_v19  ;;  %13319 = vmatprep.subr.bf16.mxu1 %v15864_v22  ;;  %v818_v19 = vld [vmem:[%s17872_s12 + $0xef8] sm:$0xff]  ;;  %v15957_v46 = vcombine.low %v801_v14, %v817_v15 }
 0x429   : > { %v13126_v23 = vpop.f32.mrb[20].mxu0  ;;  %v13167_v57 = vpop.f32.mrb[20].mxu1 }
 0x42a   : > { %v13127_v32 = vadd.f32 %v13126_v23, %v18505_v18  ;;  %v13128_v43 = vpop.f32.mrb[21].mxu0  ;;  %v13169_v54 = vpop.f32.mrb[21].mxu1  ;;  %v15927_v23 = vcombine.low %v770_v8, %v786_v9  ;;  %v305_v8 = vld [vmem:[%s20436_s0 + $0xf0] sm:$0xff]  ;;  %v883_v9 = vld [vmem:[%s17872_s12 + $0x1100] sm:$0xff] }
 0x42b   : > { %v13129_v51 = vadd.f32 %v13128_v43, %v18507_v21  ;;  %v13130_v55 = vpop.f32.mrb[22].mxu0  ;;  %v13171_v63 = vpop.f32.mrb[22].mxu1  ;;  %v769_v21 = vld [vmem:[%s17872_s12 + $0xd70] sm:$0xff]  ;;  %v834_v43 = vld [vmem:[%s17872_s12 + $0xf78] sm:$0xff] }
 0x42c   : > { %v18599_v59 = vadd.f32 %v13167_v57, %v13127_v32  ;;  %v13131_v37 = vpop.f32.mrb[23].mxu0  ;;  %v13172_v4 = vpop.f32.mrb[23].mxu1  ;;  %v15926_v12 = vcombine.high %v769_v21, %v785_v7  ;;  %v15925_v22 = vcombine.low %v769_v21, %v785_v7  ;;  %v15958_v32 = vcombine.high %v801_v14, %v817_v15  ;;  %v867_v63 = vld [vmem:[%s17872_s12 + $0x1080] sm:$0xff] }
 0x42d   : > { %v18601_v18 = vadd.f32 %v13169_v54, %v13129_v51  ;;  %v15960_v57 = vcombine.high %v802_v17, %v818_v19  ;;  %v15959_v51 = vcombine.low %v802_v17, %v818_v19  ;;  %v15990_v54 = vcombine.high %v833_v25, %v849_v31  ;;  %v852_v37 = vld [vmem:[%s17872_s12 + $0x1008] sm:$0xff]  ;;  %v303_v7 = vld [vmem:[%s20436_s0 + $0xe0] sm:$0xff] }
 0x42e   : > { %v15992_v55 = vcombine.high %v834_v43, %v850_v45  ;;  %v15991_v4 = vcombine.low %v834_v43, %v850_v45  ;;  %v18631_v14 = vpack.c.bf16 %v305_v8, %v305_v8 }
 0x42f   : > { %13279 = vmatpush1.bf16.xpose.msra.mxu0 %v15861_v58  ;;  %13320 = vmatpush1.bf16.xpose.msra.mxu1 %v15863_v0  ;;  %v851_v58 = vld [vmem:[%s17872_s12 + $0x1000] sm:$0xff]  ;;  %v868_v0 = vld [vmem:[%s17872_s12 + $0x1088] sm:$0xff] }
 0x430   : > { %13280 = vmatprep.subr.bf16.mxu0 %v15894_v1  ;;  %13321 = vmatprep.subr.bf16.mxu1 %v15896_v6  ;;  %v15989_v1 = vcombine.low %v833_v25, %v849_v31  ;;  %v15994_v6 = vcombine.high %v851_v58, %v867_v63  ;;  %v15996_v21 = vcombine.high %v852_v37, %v868_v0  ;;  %v932_v25 = vld [vmem:[%s17872_s12 + $0x1288] sm:$0xff] }
 0x431   : > { %v15993_v15 = vcombine.low %v851_v58, %v867_v63  ;;  %v15995_v17 = vcombine.low %v852_v37, %v868_v0  ;;  %v964_v58 = vld [vmem:[%s17872_s12 + $0x1388] sm:$0xff] }
 0x437   : > { %13281 = vmatpush1.bf16.xpose.msra.mxu0 %v15893_v10  ;;  %13322 = vmatpush1.bf16.xpose.msra.mxu1 %v15895_v11  ;;  %v899_v10 = vld [vmem:[%s17872_s12 + $0x1180] sm:$0xff]  ;;  %v18627_v11 = vpack.c.bf16 %v303_v7, %v303_v7  ;;  %v996_v7 = vld [vmem:[%s17872_s12 + $0x1488] sm:$0xff] }
 0x438   : > { %13282 = vmatprep.subr.bf16.mxu0 %v15926_v12  ;;  %13323 = vmatprep.subr.bf16.mxu1 %v15928_v13  ;;  %v884_v12 = vld [vmem:[%s17872_s12 + $0x1108] sm:$0xff]  ;;  %v16026_v19 = vcombine.high %v883_v9, %v899_v10  ;;  %v16025_v31 = vcombine.low %v883_v9, %v899_v10 }
 0x439   : > { %v900_v13 = vld [vmem:[%s17872_s12 + $0x1188] sm:$0xff] }
 0x43a   : > { %v16027_v43 = vcombine.low %v884_v12, %v900_v13 }
 0x43f   : > { %13283 = vmatpush1.bf16.xpose.msra.mxu0 %v15925_v22  ;;  %13324 = vmatpush1.bf16.xpose.msra.mxu1 %v15927_v23  ;;  %v16028_v22 = vcombine.high %v884_v12, %v900_v13  ;;  %v915_v23 = vld [vmem:[%s17872_s12 + $0x1200] sm:$0xff] }
 0x440   : > { %13284 = vmatprep.subr.bf16.mxu0 %v15958_v32  ;;  %13325 = vmatprep.subr.bf16.mxu1 %v15960_v57  ;;  %v931_v32 = vld [vmem:[%s17872_s12 + $0x1280] sm:$0xff]  ;;  %v916_v57 = vld [vmem:[%s17872_s12 + $0x1208] sm:$0xff] }
 0x441   : > { %v16058_v45 = vcombine.high %v915_v23, %v931_v32  ;;  %v16057_v63 = vcombine.low %v915_v23, %v931_v32  ;;  %v16059_v37 = vcombine.low %v916_v57, %v932_v25  ;;  %v1011_v13 = vld [vmem:[%s17872_s12 + $0x1500] sm:$0xff] }
 0x447   : > { %13285 = vmatpush1.bf16.xpose.msra.mxu0 %v15957_v46  ;;  %13326 = vmatpush1.bf16.xpose.msra.mxu1 %v15959_v51  ;;  %v16060_v46 = vcombine.high %v916_v57, %v932_v25  ;;  %v947_v51 = vld [vmem:[%s17872_s12 + $0x1300] sm:$0xff] }
 0x448   : > { %13286 = vmatprep.subr.bf16.mxu0 %v15990_v54  ;;  %13327 = vmatprep.subr.bf16.mxu1 %v15992_v55  ;;  %v963_v54 = vld [vmem:[%s17872_s12 + $0x1380] sm:$0xff]  ;;  %v948_v55 = vld [vmem:[%s17872_s12 + $0x1308] sm:$0xff] }
 0x449   : > { %v16090_v0 = vcombine.high %v947_v51, %v963_v54  ;;  %v16089_v8 = vcombine.low %v947_v51, %v963_v54  ;;  %v16091_v9 = vcombine.low %v948_v55, %v964_v58  ;;  %v1043_v25 = vld [vmem:[%s17872_s12 + $0x1600] sm:$0xff] }
 0x44f   : > { %13287 = vmatpush1.bf16.xpose.msra.mxu0 %v15989_v1  ;;  %13328 = vmatpush1.bf16.xpose.msra.mxu1 %v15991_v4  ;;  %v16092_v1 = vcombine.high %v948_v55, %v964_v58  ;;  %v979_v4 = vld [vmem:[%s17872_s12 + $0x1400] sm:$0xff] }
 0x450   : > { %13338 = vmatprep.subr.bf16.mxu0 %v15994_v6  ;;  %13379 = vmatprep.subr.bf16.mxu1 %v15996_v21  ;;  %v995_v6 = vld [vmem:[%s17872_s12 + $0x1480] sm:$0xff]  ;;  %v980_v21 = vld [vmem:[%s17872_s12 + $0x1408] sm:$0xff] }
 0x451   : > { %v16122_v10 = vcombine.high %v979_v4, %v995_v6  ;;  %v16124_v12 = vcombine.high %v980_v21, %v996_v7  ;;  %v16123_v23 = vcombine.low %v980_v21, %v996_v7  ;;  %v1075_v58 = vld [vmem:[%s17872_s12 + $0x1700] sm:$0xff] }
 0x452   : > { %v1107_v7 = vld [vmem:[%s17872_s12 + $0x1800] sm:$0xff] }
 0x456   : > { %13289 = vmatmul.mubr.bf16.vlgmr.msra.gmra.mrb[28].mxu0 %v18627_v11  ;;  %13330 = vmatmul.mubr.bf16.vlgmr.msra.gmra.mrb[28].mxu1 %v18631_v14 }
 0x457   : > { %13339 = vmatpush1.bf16.xpose.msra.mxu0 %v15993_v15  ;;  %13380 = vmatpush1.bf16.xpose.msra.mxu1 %v15995_v17  ;;  %v1027_v15 = vld [vmem:[%s17872_s12 + $0x1580] sm:$0xff]  ;;  %v1012_v17 = vld [vmem:[%s17872_s12 + $0x1508] sm:$0xff] }
 0x458   : > { %13340 = vmatprep.subr.bf16.mxu0 %v16026_v19  ;;  %13381 = vmatprep.subr.bf16.mxu1 %v16028_v22  ;;  %v1028_v19 = vld [vmem:[%s17872_s12 + $0x1588] sm:$0xff]  ;;  %v16121_v22 = vcombine.low %v979_v4, %v995_v6  ;;  %v16154_v32 = vcombine.high %v1011_v13, %v1027_v15 }
 0x459   : > { %13370 = vmatprep.mubr.bf16.mxu0 %v17908_v34  ;;  %13411 = vmatprep.mubr.bf16.mxu1 %v17910_v35  ;;  %v16156_v57 = vcombine.high %v1012_v17, %v1028_v19  ;;  %v16155_v51 = vcombine.low %v1012_v17, %v1028_v19  ;;  %v1139_v19 = vld [vmem:[%s17872_s12 + $0x1900] sm:$0xff] }
 0x45f   : > { %13341 = vmatpush1.bf16.xpose.msra.mxu0 %v16025_v31  ;;  %13382 = vmatpush1.bf16.xpose.msra.mxu1 %v16027_v43  ;;  %v1059_v31 = vld [vmem:[%s17872_s12 + $0x1680] sm:$0xff]  ;;  %v1044_v43 = vld [vmem:[%s17872_s12 + $0x1608] sm:$0xff] }
 0x460   : > { %13342 = vmatprep.subr.bf16.mxu0 %v16058_v45  ;;  %13383 = vmatprep.subr.bf16.mxu1 %v16060_v46  ;;  %v1060_v45 = vld [vmem:[%s17872_s12 + $0x1688] sm:$0xff]  ;;  %v16153_v46 = vcombine.low %v1011_v13, %v1027_v15  ;;  %v16186_v54 = vcombine.high %v1043_v25, %v1059_v31 }
 0x461   : > { %v16188_v55 = vcombine.high %v1044_v43, %v1060_v45  ;;  %v16187_v4 = vcombine.low %v1044_v43, %v1060_v45  ;;  %v1171_v45 = vld [vmem:[%s17872_s12 + $0x1a00] sm:$0xff] }
 0x467   : > { %13343 = vmatpush1.bf16.xpose.msra.mxu0 %v16057_v63  ;;  %13384 = vmatpush1.bf16.xpose.msra.mxu1 %v16059_v37  ;;  %v1091_v63 = vld [vmem:[%s17872_s12 + $0x1780] sm:$0xff]  ;;  %v1076_v37 = vld [vmem:[%s17872_s12 + $0x1708] sm:$0xff] }
 0x468   : > { %13344 = vmatprep.subr.bf16.mxu0 %v16090_v0  ;;  %13385 = vmatprep.subr.bf16.mxu1 %v16092_v1  ;;  %v1092_v0 = vld [vmem:[%s17872_s12 + $0x1788] sm:$0xff]  ;;  %v16185_v1 = vcombine.low %v1043_v25, %v1059_v31  ;;  %v16218_v6 = vcombine.high %v1075_v58, %v1091_v63 }
 0x469   : > { %v16220_v21 = vcombine.high %v1076_v37, %v1092_v0  ;;  %v16219_v13 = vcombine.low %v1076_v37, %v1092_v0  ;;  %v1203_v0 = vld [vmem:[%s17872_s12 + $0x1b00] sm:$0xff] }
 0x46f   : > { %13345 = vmatpush1.bf16.xpose.msra.mxu0 %v16089_v8  ;;  %13386 = vmatpush1.bf16.xpose.msra.mxu1 %v16091_v9  ;;  %v1123_v8 = vld [vmem:[%s17872_s12 + $0x1880] sm:$0xff]  ;;  %v1108_v9 = vld [vmem:[%s17872_s12 + $0x1808] sm:$0xff] }
 0x470   : > { %13346 = vmatprep.subr.bf16.mxu0 %v16122_v10  ;;  %13387 = vmatprep.subr.bf16.mxu1 %v16124_v12  ;;  %v1124_v10 = vld [vmem:[%s17872_s12 + $0x1888] sm:$0xff]  ;;  %v16217_v12 = vcombine.low %v1075_v58, %v1091_v63  ;;  %v16250_v15 = vcombine.high %v1107_v7, %v1123_v8 }
 0x471   : > { %v16252_v17 = vcombine.high %v1108_v9, %v1124_v10  ;;  %v16251_v25 = vcombine.low %v1108_v9, %v1124_v10 }
 0x477   : > { %13347 = vmatpush1.bf16.xpose.msra.mxu0 %v16121_v22  ;;  %13388 = vmatpush1.bf16.xpose.msra.mxu1 %v16123_v23  ;;  %v1155_v22 = vld [vmem:[%s17872_s12 + $0x1980] sm:$0xff]  ;;  %v1140_v23 = vld [vmem:[%s17872_s12 + $0x1908] sm:$0xff] }
 0x478   : > { %13348 = vmatprep.subr.bf16.mxu0 %v16154_v32  ;;  %13389 = vmatprep.subr.bf16.mxu1 %v16156_v57  ;;  %v1156_v32 = vld [vmem:[%s17872_s12 + $0x1988] sm:$0xff]  ;;  %v16249_v57 = vcombine.low %v1107_v7, %v1123_v8  ;;  %v16282_v31 = vcombine.high %v1139_v19, %v1155_v22 }
 0x479   : > { %v16284_v43 = vcombine.high %v1140_v23, %v1156_v32  ;;  %v16283_v58 = vcombine.low %v1140_v23, %v1156_v32  ;;  %v1252_v23 = vld [vmem:[%s17872_s12 + $0x1c88] sm:$0xff] }
 0x47f   : > { %13349 = vmatpush1.bf16.xpose.msra.mxu0 %v16153_v46  ;;  %13390 = vmatpush1.bf16.xpose.msra.mxu1 %v16155_v51  ;;  %v1187_v46 = vld [vmem:[%s17872_s12 + $0x1a80] sm:$0xff]  ;;  %v1172_v51 = vld [vmem:[%s17872_s12 + $0x1a08] sm:$0xff] }
 0x480   : > { %13350 = vmatprep.subr.bf16.mxu0 %v16186_v54  ;;  %13391 = vmatprep.subr.bf16.mxu1 %v16188_v55  ;;  %v1188_v54 = vld [vmem:[%s17872_s12 + $0x1a88] sm:$0xff]  ;;  %v16281_v55 = vcombine.low %v1139_v19, %v1155_v22  ;;  %v16314_v63 = vcombine.high %v1171_v45, %v1187_v46 }
 0x481   : > { %v16316_v37 = vcombine.high %v1172_v51, %v1188_v54  ;;  %v16315_v7 = vcombine.low %v1172_v51, %v1188_v54  ;;  %v1236_v22 = vld [vmem:[%s17872_s12 + $0x1c08] sm:$0xff] }
 0x487   : > { %13351 = vmatpush1.bf16.xpose.msra.mxu0 %v16185_v1  ;;  %13392 = vmatpush1.bf16.xpose.msra.mxu1 %v16187_v4  ;;  %v1219_v1 = vld [vmem:[%s17872_s12 + $0x1b80] sm:$0xff]  ;;  %v1204_v4 = vld [vmem:[%s17872_s12 + $0x1b08] sm:$0xff] }
 0x488   : > { %13352 = vmatprep.subr.bf16.mxu0 %v16218_v6  ;;  %13393 = vmatprep.subr.bf16.mxu1 %v16220_v21  ;;  %v1220_v6 = vld [vmem:[%s17872_s12 + $0x1b88] sm:$0xff]  ;;  %v16313_v21 = vcombine.low %v1171_v45, %v1187_v46  ;;  %v16346_v8 = vcombine.high %v1203_v0, %v1219_v1 }
 0x489   : > { %v16348_v9 = vcombine.high %v1204_v4, %v1220_v6  ;;  %v16347_v51 = vcombine.low %v1204_v4, %v1220_v6 }
 0x48f   : > { %13353 = vmatpush1.bf16.xpose.msra.mxu0 %v16217_v12  ;;  %13394 = vmatpush1.bf16.xpose.msra.mxu1 %v16219_v13  ;;  %v1235_v12 = vld [vmem:[%s17872_s12 + $0x1c00] sm:$0xff] }
 0x490   : > { %13354 = vmatprep.subr.bf16.mxu0 %v16250_v15  ;;  %13395 = vmatprep.subr.bf16.mxu1 %v16252_v17  ;;  %v1251_v13 = vld [vmem:[%s17872_s12 + $0x1c80] sm:$0xff] }
 0x491   : > { %v16378_v54 = vcombine.high %v1235_v12, %v1251_v13 }
 0x497   : > { %13355 = vmatpush1.bf16.xpose.msra.mxu0 %v16249_v57  ;;  %13396 = vmatpush1.bf16.xpose.msra.mxu1 %v16251_v25 }
 0x498   : > { %13356 = vmatprep.subr.bf16.mxu0 %v16282_v31  ;;  %13397 = vmatprep.subr.bf16.mxu1 %v16284_v43  ;;  %v16345_v31 = vcombine.low %v1203_v0, %v1219_v1  ;;  %v1284_v0 = vld [vmem:[%s17872_s12 + $0x1d88] sm:$0xff]  ;;  %v16377_v1 = vcombine.low %v1235_v12, %v1251_v13  ;;  %v1331_v12 = vld [vmem:[%s17872_s12 + $0x1f00] sm:$0xff] }
 0x499   : > { %v1347_v13 = vld [vmem:[%s17872_s12 + $0x1f80] sm:$0xff] }
 0x49f   : > { %13357 = vmatpush1.bf16.xpose.msra.mxu0 %v16281_v55  ;;  %13398 = vmatpush1.bf16.xpose.msra.mxu1 %v16283_v58  ;;  %v16380_v58 = vcombine.high %v1236_v22, %v1252_v23 }
 0x4a0   : > { %13358 = vmatprep.subr.bf16.mxu0 %v16314_v63  ;;  %13399 = vmatprep.subr.bf16.mxu1 %v16316_v37  ;;  %v1283_v63 = vld [vmem:[%s17872_s12 + $0x1d80] sm:$0xff]  ;;  %v1268_v37 = vld [vmem:[%s17872_s12 + $0x1d08] sm:$0xff] }
 0x4a1   : > { %v16412_v6 = vcombine.high %v1268_v37, %v1284_v0 }
 0x4a7   : > { %13359 = vmatpush1.bf16.xpose.msra.mxu0 %v16313_v21  ;;  %13400 = vmatpush1.bf16.xpose.msra.mxu1 %v16315_v7  ;;  %v16379_v21 = vcombine.low %v1236_v22, %v1252_v23  ;;  %v1299_v7 = vld [vmem:[%s17872_s12 + $0x1e00] sm:$0xff]  ;;  %v1332_v22 = vld [vmem:[%s17872_s12 + $0x1f08] sm:$0xff] }
 0x4a8   : > { %13360 = vmatprep.subr.bf16.mxu0 %v16346_v8  ;;  %13401 = vmatprep.subr.bf16.mxu1 %v16348_v9  ;;  %v1315_v8 = vld [vmem:[%s17872_s12 + $0x1e80] sm:$0xff]  ;;  %v1300_v9 = vld [vmem:[%s17872_s12 + $0x1e08] sm:$0xff] }
 0x4a9   : > { %v13208_v10 = vpop.f32.mrb[24].mxu0  ;;  %v13249_v17 = vpop.f32.mrb[24].mxu1  ;;  %v1348_v23 = vld [vmem:[%s17872_s12 + $0x1f88] sm:$0xff] }
 0x4aa   : > { %v13209_v15 = vadd.f32 %v13208_v10, %v18599_v59  ;;  %v13210_v19 = vpop.f32.mrb[25].mxu0  ;;  %v13251_v57 = vpop.f32.mrb[25].mxu1  ;;  %v1316_v10 = vld [vmem:[%s17872_s12 + $0x1e88] sm:$0xff] }
 0x4ab   : > { %v13211_v32 = vadd.f32 %v13210_v19, %v18601_v18  ;;  %v13212_v25 = vpop.f32.mrb[26].mxu0  ;;  %v13253_v45 = vpop.f32.mrb[26].mxu1  ;;  %v1267_v18 = vld [vmem:[%s17872_s12 + $0x1d00] sm:$0xff]  ;;  %v16442_v19 = vcombine.high %v1299_v7, %v1315_v8 }
 0x4ac   : > { %v18683_v43 = vadd.f32 %v13249_v17, %v13209_v15  ;;  %v13213_v46 = vpop.f32.mrb[27].mxu0  ;;  %v13254_v55 = vpop.f32.mrb[27].mxu1  ;;  %v16410_v4 = vcombine.high %v1267_v18, %v1283_v63  ;;  %v16409_v15 = vcombine.low %v1267_v18, %v1283_v63  ;;  %v16411_v17 = vcombine.low %v1268_v37, %v1284_v0  ;;  %v885_v0 = vld [vmem:[%s17872_s12 + $0x1110] sm:$0xff] }
 0x4ad   : > { %v18685_v59 = vadd.f32 %v13251_v57, %v13211_v32  ;;  %v16444_v32 = vcombine.high %v1300_v9, %v1316_v10  ;;  %v16441_v57 = vcombine.low %v1299_v7, %v1315_v8  ;;  %v16443_v25 = vcombine.low %v1300_v9, %v1316_v10  ;;  %v853_v46 = vld [vmem:[%s17872_s12 + $0x1010] sm:$0xff]  ;;  %v870_v55 = vld [vmem:[%s17872_s12 + $0x1098] sm:$0xff] }
 0x4ae   : > { %v16476_v45 = vcombine.high %v1332_v22, %v1348_v23  ;;  %v16475_v18 = vcombine.low %v1332_v22, %v1348_v23  ;;  %v917_v10 = vld [vmem:[%s17872_s12 + $0x1210] sm:$0xff] }
 0x4af   : > { %13361 = vmatpush1.bf16.xpose.msra.mxu0 %v16345_v31  ;;  %13402 = vmatpush1.bf16.xpose.msra.mxu1 %v16347_v51  ;;  %v16474_v31 = vcombine.high %v1331_v12, %v1347_v13  ;;  %v869_v51 = vld [vmem:[%s17872_s12 + $0x1090] sm:$0xff] }
 0x4b0   : > { %13362 = vmatprep.subr.bf16.mxu0 %v16378_v54  ;;  %13403 = vmatprep.subr.bf16.mxu1 %v16380_v58  ;;  %v854_v54 = vld [vmem:[%s17872_s12 + $0x1018] sm:$0xff]  ;;  %v16473_v58 = vcombine.low %v1331_v12, %v1347_v13  ;;  %v15998_v63 = vcombine.high %v853_v46, %v869_v51  ;;  %v949_v23 = vld [vmem:[%s17872_s12 + $0x1310] sm:$0xff] }
 0x4b1   : > { %v16000_v37 = vcombine.high %v854_v54, %v870_v55  ;;  %v15999_v7 = vcombine.low %v854_v54, %v870_v55  ;;  %v981_v55 = vld [vmem:[%s17872_s12 + $0x1410] sm:$0xff] }
 0x4b7   : > { %13363 = vmatpush1.bf16.xpose.msra.mxu0 %v16377_v1  ;;  %13404 = vmatpush1.bf16.xpose.msra.mxu1 %v16379_v21  ;;  %v901_v1 = vld [vmem:[%s17872_s12 + $0x1190] sm:$0xff]  ;;  %v886_v21 = vld [vmem:[%s17872_s12 + $0x1118] sm:$0xff] }
 0x4b8   : > { %13364 = vmatprep.subr.bf16.mxu0 %v16410_v4  ;;  %13405 = vmatprep.subr.bf16.mxu1 %v16412_v6  ;;  %v902_v4 = vld [vmem:[%s17872_s12 + $0x1198] sm:$0xff]  ;;  %v15997_v6 = vcombine.low %v853_v46, %v869_v51  ;;  %v16030_v8 = vcombine.high %v885_v0, %v901_v1 }
 0x4b9   : > { %v16032_v9 = vcombine.high %v886_v21, %v902_v4  ;;  %v16031_v12 = vcombine.low %v886_v21, %v902_v4  ;;  %v1013_v4 = vld [vmem:[%s17872_s12 + $0x1510] sm:$0xff] }
 0x4bf   : > { %13365 = vmatpush1.bf16.xpose.msra.mxu0 %v16409_v15  ;;  %13406 = vmatpush1.bf16.xpose.msra.mxu1 %v16411_v17  ;;  %v933_v15 = vld [vmem:[%s17872_s12 + $0x1290] sm:$0xff]  ;;  %v918_v17 = vld [vmem:[%s17872_s12 + $0x1218] sm:$0xff] }
 0x4c0   : > { %13366 = vmatprep.subr.bf16.mxu0 %v16442_v19  ;;  %13407 = vmatprep.subr.bf16.mxu1 %v16444_v32  ;;  %v934_v19 = vld [vmem:[%s17872_s12 + $0x1298] sm:$0xff]  ;;  %v16029_v32 = vcombine.low %v885_v0, %v901_v1  ;;  %v16062_v13 = vcombine.high %v917_v10, %v933_v15 }
 0x4c1   : > { %v16064_v22 = vcombine.high %v918_v17, %v934_v19  ;;  %v16063_v46 = vcombine.low %v918_v17, %v934_v19  ;;  %v1045_v19 = vld [vmem:[%s17872_s12 + $0x1610] sm:$0xff] }
 0x4c7   : > { %13367 = vmatpush1.bf16.xpose.msra.mxu0 %v16441_v57  ;;  %13408 = vmatpush1.bf16.xpose.msra.mxu1 %v16443_v25  ;;  %v965_v57 = vld [vmem:[%s17872_s12 + $0x1390] sm:$0xff]  ;;  %v950_v25 = vld [vmem:[%s17872_s12 + $0x1318] sm:$0xff] }
 0x4c8   : > { %13368 = vmatprep.subr.bf16.mxu0 %v16474_v31  ;;  %13409 = vmatprep.subr.bf16.mxu1 %v16476_v45  ;;  %v966_v31 = vld [vmem:[%s17872_s12 + $0x1398] sm:$0xff]  ;;  %v16061_v45 = vcombine.low %v917_v10, %v933_v15  ;;  %v16094_v51 = vcombine.high %v949_v23, %v965_v57 }
 0x4c9   : > { %v16096_v54 = vcombine.high %v950_v25, %v966_v31  ;;  %v16095_v0 = vcombine.low %v950_v25, %v966_v31  ;;  %v1077_v31 = vld [vmem:[%s17872_s12 + $0x1710] sm:$0xff] }
 0x4cf   : > { %13369 = vmatpush1.bf16.xpose.msra.mxu0 %v16473_v58  ;;  %13410 = vmatpush1.bf16.xpose.msra.mxu1 %v16475_v18  ;;  %v997_v58 = vld [vmem:[%s17872_s12 + $0x1490] sm:$0xff]  ;;  %v982_v18 = vld [vmem:[%s17872_s12 + $0x1418] sm:$0xff] }
 0x4d0   : > { %13420 = vmatprep.subr.bf16.mxu0 %v15998_v63  ;;  %13461 = vmatprep.subr.bf16.mxu1 %v16000_v37  ;;  %v998_v63 = vld [vmem:[%s17872_s12 + $0x1498] sm:$0xff]  ;;  %v16093_v37 = vcombine.low %v949_v23, %v965_v57  ;;  %v16126_v1 = vcombine.high %v981_v55, %v997_v58 }
 0x4d1   : > { %v16128_v21 = vcombine.high %v982_v18, %v998_v63  ;;  %v16127_v10 = vcombine.low %v982_v18, %v998_v63  ;;  %v1109_v63 = vld [vmem:[%s17872_s12 + $0x1810] sm:$0xff] }
 0x4d6   : > { %13371 = vmatmul.mubr.bf16.vlgmr.msra.gmra.mrb[32].mxu0 %v17972_v16  ;;  %13412 = vmatmul.mubr.bf16.vlgmr.msra.gmra.mrb[32].mxu1 %v17979_v20 }
 0x4d7   : > { %13421 = vmatpush1.bf16.xpose.msra.mxu0 %v15997_v6  ;;  %13462 = vmatpush1.bf16.xpose.msra.mxu1 %v15999_v7  ;;  %v1029_v6 = vld [vmem:[%s17872_s12 + $0x1590] sm:$0xff]  ;;  %v1014_v7 = vld [vmem:[%s17872_s12 + $0x1518] sm:$0xff] }
 0x4d8   : > { %13422 = vmatprep.subr.bf16.mxu0 %v16030_v8  ;;  %13463 = vmatprep.subr.bf16.mxu1 %v16032_v9  ;;  %v1030_v8 = vld [vmem:[%s17872_s12 + $0x1598] sm:$0xff]  ;;  %v16125_v9 = vcombine.low %v981_v55, %v997_v58  ;;  %v16158_v15 = vcombine.high %v1013_v4, %v1029_v6 }
 0x4d9   : > { %13452 = vmatprep.mubr.bf16.mxu0 %v17984_v26  ;;  %13493 = vmatprep.mubr.bf16.mxu1 %v17987_v27  ;;  %v16160_v17 = vcombine.high %v1014_v7, %v1030_v8  ;;  %v16159_v23 = vcombine.low %v1014_v7, %v1030_v8  ;;  %v1141_v8 = vld [vmem:[%s17872_s12 + $0x1910] sm:$0xff] }
 0x4df   : > { %13423 = vmatpush1.bf16.xpose.msra.mxu0 %v16029_v32  ;;  %13464 = vmatpush1.bf16.xpose.msra.mxu1 %v16031_v12  ;;  %v1061_v32 = vld [vmem:[%s17872_s12 + $0x1690] sm:$0xff]  ;;  %v1046_v12 = vld [vmem:[%s17872_s12 + $0x1618] sm:$0xff] }
 0x4e0   : > { %13424 = vmatprep.subr.bf16.mxu0 %v16062_v13  ;;  %13465 = vmatprep.subr.bf16.mxu1 %v16064_v22  ;;  %v1062_v13 = vld [vmem:[%s17872_s12 + $0x1698] sm:$0xff]  ;;  %v16157_v22 = vcombine.low %v1013_v4, %v1029_v6  ;;  %v16190_v57 = vcombine.high %v1045_v19, %v1061_v32 }
 0x4e1   : > { %v16192_v25 = vcombine.high %v1046_v12, %v1062_v13  ;;  %v16191_v55 = vcombine.low %v1046_v12, %v1062_v13  ;;  %v1173_v13 = vld [vmem:[%s17872_s12 + $0x1a10] sm:$0xff] }
 0x4e7   : > { %13425 = vmatpush1.bf16.xpose.msra.mxu0 %v16061_v45  ;;  %13466 = vmatpush1.bf16.xpose.msra.mxu1 %v16063_v46  ;;  %v1093_v45 = vld [vmem:[%s17872_s12 + $0x1790] sm:$0xff]  ;;  %v1078_v46 = vld [vmem:[%s17872_s12 + $0x1718] sm:$0xff] }
 0x4e8   : > { %13426 = vmatprep.subr.bf16.mxu0 %v16094_v51  ;;  %13467 = vmatprep.subr.bf16.mxu1 %v16096_v54  ;;  %v1094_v51 = vld [vmem:[%s17872_s12 + $0x1798] sm:$0xff]  ;;  %v16189_v54 = vcombine.low %v1045_v19, %v1061_v32  ;;  %v16222_v58 = vcombine.high %v1077_v31, %v1093_v45 }
 0x4e9   : > { %v16224_v18 = vcombine.high %v1078_v46, %v1094_v51  ;;  %v16223_v4 = vcombine.low %v1078_v46, %v1094_v51  ;;  %v1205_v51 = vld [vmem:[%s17872_s12 + $0x1b10] sm:$0xff] }
 0x4ef   : > { %13427 = vmatpush1.bf16.xpose.msra.mxu0 %v16093_v37  ;;  %13468 = vmatpush1.bf16.xpose.msra.mxu1 %v16095_v0  ;;  %v1125_v37 = vld [vmem:[%s17872_s12 + $0x1890] sm:$0xff]  ;;  %v1110_v0 = vld [vmem:[%s17872_s12 + $0x1818] sm:$0xff] }
 0x4f0   : > { %13428 = vmatprep.subr.bf16.mxu0 %v16126_v1  ;;  %13469 = vmatprep.subr.bf16.mxu1 %v16128_v21  ;;  %v1126_v1 = vld [vmem:[%s17872_s12 + $0x1898] sm:$0xff]  ;;  %v16221_v21 = vcombine.low %v1077_v31, %v1093_v45  ;;  %v16254_v6 = vcombine.high %v1109_v63, %v1125_v37 }
 0x4f1   : > { %v16256_v7 = vcombine.high %v1110_v0, %v1126_v1  ;;  %v16255_v19 = vcombine.low %v1110_v0, %v1126_v1  ;;  %v2392_v1 = vld [vmem:[%s18756_s5] sm:$0xff] }
 0x4f7   : > { %13429 = vmatpush1.bf16.xpose.msra.mxu0 %v16125_v9  ;;  %13470 = vmatpush1.bf16.xpose.msra.mxu1 %v16127_v10  ;;  %v1157_v9 = vld [vmem:[%s17872_s12 + $0x1990] sm:$0xff]  ;;  %v1142_v10 = vld [vmem:[%s17872_s12 + $0x1918] sm:$0xff] }
 0x4f8   : > { %13430 = vmatprep.subr.bf16.mxu0 %v16158_v15  ;;  %13471 = vmatprep.subr.bf16.mxu1 %v16160_v17  ;;  %v1158_v15 = vld [vmem:[%s17872_s12 + $0x1998] sm:$0xff]  ;;  %v16253_v17 = vcombine.low %v1109_v63, %v1125_v37  ;;  %v16286_v32 = vcombine.high %v1141_v8, %v1157_v9 }
 0x4f9   : > { %v16288_v12 = vcombine.high %v1142_v10, %v1158_v15  ;;  %v16287_v31 = vcombine.low %v1142_v10, %v1158_v15  ;;  %v15306_v10 = vmul.f32 2.0, %v2392_v1 }
 0x4ff   : > { %13431 = vmatpush1.bf16.xpose.msra.mxu0 %v16157_v22  ;;  %13472 = vmatpush1.bf16.xpose.msra.mxu1 %v16159_v23  ;;  %v1189_v22 = vld [vmem:[%s17872_s12 + $0x1a90] sm:$0xff]  ;;  %v1174_v23 = vld [vmem:[%s17872_s12 + $0x1a18] sm:$0xff] }
 0x500   : > { %13432 = vmatprep.subr.bf16.mxu0 %v16190_v57  ;;  %13473 = vmatprep.subr.bf16.mxu1 %v16192_v25  ;;  %v1190_v57 = vld [vmem:[%s17872_s12 + $0x1a98] sm:$0xff]  ;;  %v16285_v25 = vcombine.low %v1141_v8, %v1157_v9  ;;  %v16318_v45 = vcombine.high %v1173_v13, %v1189_v22 }
 0x501   : > { %v16320_v46 = vcombine.high %v1174_v23, %v1190_v57  ;;  %v16319_v63 = vcombine.low %v1174_v23, %v1190_v57 }
 0x507   : > { %13433 = vmatpush1.bf16.xpose.msra.mxu0 %v16189_v54  ;;  %13474 = vmatpush1.bf16.xpose.msra.mxu1 %v16191_v55  ;;  %v1221_v54 = vld [vmem:[%s17872_s12 + $0x1b90] sm:$0xff]  ;;  %v1206_v55 = vld [vmem:[%s17872_s12 + $0x1b18] sm:$0xff] }
 0x508   : > { %13434 = vmatprep.subr.bf16.mxu0 %v16222_v58  ;;  %13475 = vmatprep.subr.bf16.mxu1 %v16224_v18  ;;  %v1222_v58 = vld [vmem:[%s17872_s12 + $0x1b98] sm:$0xff]  ;;  %v16317_v18 = vcombine.low %v1173_v13, %v1189_v22  ;;  %v16350_v37 = vcombine.high %v1205_v51, %v1221_v54  ;;  %v16349_v23 = vcombine.low %v1205_v51, %v1221_v54 }
 0x509   : > { %v16352_v0 = vcombine.high %v1206_v55, %v1222_v58 }
 0x50f   : > { %13435 = vmatpush1.bf16.xpose.msra.mxu0 %v16221_v21  ;;  %13476 = vmatpush1.bf16.xpose.msra.mxu1 %v16223_v4  ;;  %v2393_v21 = vld [vmem:[%s18756_s5 + $0x8] sm:$0xff] }
 0x510   : > { %13436 = vmatprep.subr.bf16.mxu0 %v16254_v6  ;;  %13477 = vmatprep.subr.bf16.mxu1 %v16256_v7  ;;  %v1237_v6 = vld [vmem:[%s17872_s12 + $0x1c10] sm:$0xff]  ;;  %v15307_v13 = vmul.f32 2.0, %v2393_v21 }
 0x511   : > { %v1253_v7 = vld [vmem:[%s17872_s12 + $0x1c90] sm:$0xff] }
 0x517   : > { %13437 = vmatpush1.bf16.xpose.msra.mxu0 %v16253_v17  ;;  %13478 = vmatpush1.bf16.xpose.msra.mxu1 %v16255_v19  ;;  %v1238_v17 = vld [vmem:[%s17872_s12 + $0x1c18] sm:$0xff] }
 0x518   : > { %13438 = vmatprep.subr.bf16.mxu0 %v16286_v32  ;;  %13479 = vmatprep.subr.bf16.mxu1 %v16288_v12  ;;  %v1254_v19 = vld [vmem:[%s17872_s12 + $0x1c98] sm:$0xff] }
 0x519   : > { %v16383_v1 = vcombine.low %v1238_v17, %v1254_v19 }
 0x51f   : > { %13439 = vmatpush1.bf16.xpose.msra.mxu0 %v16285_v25  ;;  %13480 = vmatpush1.bf16.xpose.msra.mxu1 %v16287_v31 }
 0x520   : > { %13440 = vmatprep.subr.bf16.mxu0 %v16318_v45  ;;  %13481 = vmatprep.subr.bf16.mxu1 %v16320_v46  ;;  %v16351_v45 = vcombine.low %v1206_v55, %v1222_v58  ;;  %v1269_v55 = vld [vmem:[%s17872_s12 + $0x1d10] sm:$0xff] }
 0x521   : > { %v1285_v58 = vld [vmem:[%s17872_s12 + $0x1d90] sm:$0xff] }
 0x522   : > { %v16414_v21 = vcombine.high %v1269_v55, %v1285_v58 }
 0x527   : > { %13441 = vmatpush1.bf16.xpose.msra.mxu0 %v16317_v18  ;;  %13482 = vmatpush1.bf16.xpose.msra.mxu1 %v16319_v63  ;;  %v16384_v18 = vcombine.high %v1238_v17, %v1254_v19  ;;  %v1270_v63 = vld [vmem:[%s17872_s12 + $0x1d18] sm:$0xff] }
 0x528   : > { %13442 = vmatprep.subr.bf16.mxu0 %v16350_v37  ;;  %13483 = vmatprep.subr.bf16.mxu1 %v16352_v0  ;;  %v1286_v37 = vld [vmem:[%s17872_s12 + $0x1d98] sm:$0xff]  ;;  %v16381_v0 = vcombine.low %v1237_v6, %v1253_v7 }
 0x529   : > { %v13290_v4 = vpop.f32.mrb[28].mxu0  ;;  %v13331_v9 = vpop.f32.mrb[28].mxu1  ;;  %v1334_v17 = vld [vmem:[%s17872_s12 + $0x1f18] sm:$0xff] }
 0x52a   : > { %v13291_v8 = vadd.f32 %v13290_v4, %v18683_v43  ;;  %v13292_v15 = vpop.f32.mrb[29].mxu0  ;;  %v13333_v12 = vpop.f32.mrb[29].mxu1  ;;  %v16382_v43 = vcombine.high %v1237_v6, %v1253_v7  ;;  %v16416_v4 = vcombine.high %v1270_v63, %v1286_v37  ;;  %v1333_v6 = vld [vmem:[%s17872_s12 + $0x1f10] sm:$0xff]  ;;  %v1350_v19 = vld [vmem:[%s17872_s12 + $0x1f98] sm:$0xff] }
 0x52b   : > { %v13293_v32 = vadd.f32 %v13292_v15, %v18685_v59  ;;  %v13294_v22 = vpop.f32.mrb[30].mxu0  ;;  %v13335_v25 = vpop.f32.mrb[30].mxu1  ;;  %v1318_v15 = vld [vmem:[%s17872_s12 + $0x1e98] sm:$0xff]  ;;  %v1349_v7 = vld [vmem:[%s17872_s12 + $0x1f90] sm:$0xff] }
 0x52c   : > { %v13332_v57 = vadd.f32 %v13331_v9, %v13291_v8  ;;  %v13295_v31 = vpop.f32.mrb[31].mxu0  ;;  %v13336_v46 = vpop.f32.mrb[31].mxu1  ;;  %v1301_v8 = vld [vmem:[%s17872_s12 + $0x1e10] sm:$0xff]  ;;  %v16478_v25 = vcombine.high %v1333_v6, %v1349_v7 }
 0x52d   : > { %v13334_v59 = vadd.f32 %v13333_v12, %v13293_v32  ;;  %v1317_v9 = vld [vmem:[%s17872_s12 + $0x1e90] sm:$0xff]  ;;  %v16413_v32 = vcombine.low %v1269_v55, %v1285_v58  ;;  %v16415_v12 = vcombine.low %v1270_v63, %v1286_v37  ;;  %v16480_v31 = vcombine.high %v1334_v17, %v1350_v19  ;;  %v872_v46 = vld [vmem:[%s17872_s12 + $0x10a8] sm:$0xff]  ;;  %v887_v58 = vld [vmem:[%s17872_s12 + $0x1120] sm:$0xff] }
 0x52e   : > { %v15314_v51 = vadd.f32 %v15306_v10, %v13332_v57  ;;  %v1302_v10 = vld [vmem:[%s17872_s12 + $0x1e18] sm:$0xff]  ;;  %v903_v63 = vld [vmem:[%s17872_s12 + $0x11a0] sm:$0xff]  ;;  %v888_v37 = vld [vmem:[%s17872_s12 + $0x1128] sm:$0xff] }
 0x52f   : > { %v15315_v54 = vadd.f32 %v15307_v13, %v13334_v59  ;;  %13443 = vmatpush1.bf16.xpose.msra.mxu0 %v16349_v23  ;;  %13484 = vmatpush1.bf16.xpose.msra.mxu1 %v16351_v45  ;;  %v16446_v13 = vcombine.high %v1301_v8, %v1317_v9  ;;  %v16448_v22 = vcombine.high %v1302_v10, %v1318_v15  ;;  %v855_v45 = vld [vmem:[%s17872_s12 + $0x1020] sm:$0xff]  ;;  %v856_v59 = vld [vmem:[%s17872_s12 + $0x1028] sm:$0xff] }
 0x530   : > { %15322 = vst [vmem:[%s18769_s4] sm:$0xff] %v15314_v51  ;;  %13444 = vmatprep.subr.bf16.mxu0 %v16382_v43  ;;  %13485 = vmatprep.subr.bf16.mxu1 %v16384_v18  ;;  %v16445_v23 = vcombine.low %v1301_v8, %v1317_v9  ;;  %v16447_v57 = vcombine.low %v1302_v10, %v1318_v15  ;;  %v871_v43 = vld [vmem:[%s17872_s12 + $0x10a0] sm:$0xff]  ;;  %v920_v15 = vld [vmem:[%s17872_s12 + $0x1228] sm:$0xff] }
 0x531   : > { %15323 = vst [vmem:[%s18769_s4 + $0x8] sm:$0xff] %v15315_v54  ;;  %v16477_v18 = vcombine.low %v1333_v6, %v1349_v7  ;;  %v16479_v51 = vcombine.low %v1334_v17, %v1350_v19  ;;  %v16002_v54 = vcombine.high %v855_v45, %v871_v43  ;;  %v16004_v55 = vcombine.high %v856_v59, %v872_v46  ;;  %v919_v9 = vld [vmem:[%s17872_s12 + $0x1220] sm:$0xff]  ;;  %v952_v19 = vld [vmem:[%s17872_s12 + $0x1328] sm:$0xff] }
 0x532   : > { %v935_v10 = vld [vmem:[%s17872_s12 + $0x12a0] sm:$0xff] }
 0x533   : > { %v951_v7 = vld [vmem:[%s17872_s12 + $0x1320] sm:$0xff] }
 0x534   : > { %v967_v17 = vld [vmem:[%s17872_s12 + $0x13a0] sm:$0xff] }
 0x537   : > { %13445 = vmatpush1.bf16.xpose.msra.mxu0 %v16381_v0  ;;  %13486 = vmatpush1.bf16.xpose.msra.mxu1 %v16383_v1  ;;  %v904_v0 = vld [vmem:[%s17872_s12 + $0x11a8] sm:$0xff]  ;;  %v16001_v1 = vcombine.low %v855_v45, %v871_v43  ;;  %v983_v43 = vld [vmem:[%s17872_s12 + $0x1420] sm:$0xff] }
 0x538   : > { %13446 = vmatprep.subr.bf16.mxu0 %v16414_v21  ;;  %13487 = vmatprep.subr.bf16.mxu1 %v16416_v4  ;;  %v16003_v21 = vcombine.low %v856_v59, %v872_v46  ;;  %v16034_v4 = vcombine.high %v887_v58, %v903_v63  ;;  %v16036_v8 = vcombine.high %v888_v37, %v904_v0  ;;  %v999_v59 = vld [vmem:[%s17872_s12 + $0x14a0] sm:$0xff]  ;;  %v984_v46 = vld [vmem:[%s17872_s12 + $0x1428] sm:$0xff] }
 0x53f   : > { %13447 = vmatpush1.bf16.xpose.msra.mxu0 %v16413_v32  ;;  %13488 = vmatpush1.bf16.xpose.msra.mxu1 %v16415_v12  ;;  %v936_v32 = vld [vmem:[%s17872_s12 + $0x12a8] sm:$0xff]  ;;  %v16033_v12 = vcombine.low %v887_v58, %v903_v63  ;;  %v1015_v63 = vld [vmem:[%s17872_s12 + $0x1520] sm:$0xff] }
 0x540   : > { %13448 = vmatprep.subr.bf16.mxu0 %v16446_v13  ;;  %13489 = vmatprep.subr.bf16.mxu1 %v16448_v22  ;;  %v16035_v13 = vcombine.low %v888_v37, %v904_v0  ;;  %v16066_v22 = vcombine.high %v919_v9, %v935_v10  ;;  %v16068_v6 = vcombine.high %v920_v15, %v936_v32  ;;  %v1031_v37 = vld [vmem:[%s17872_s12 + $0x15a0] sm:$0xff]  ;;  %v1016_v0 = vld [vmem:[%s17872_s12 + $0x1528] sm:$0xff] }
 0x547   : > { %13449 = vmatpush1.bf16.xpose.msra.mxu0 %v16445_v23  ;;  %13490 = vmatpush1.bf16.xpose.msra.mxu1 %v16447_v57  ;;  %v968_v23 = vld [vmem:[%s17872_s12 + $0x13a8] sm:$0xff]  ;;  %v16065_v57 = vcombine.low %v919_v9, %v935_v10  ;;  %v1047_v10 = vld [vmem:[%s17872_s12 + $0x1620] sm:$0xff] }
 0x548   : > { %13450 = vmatprep.subr.bf16.mxu0 %v16478_v25  ;;  %13491 = vmatprep.subr.bf16.mxu1 %v16480_v31  ;;  %v16067_v25 = vcombine.low %v920_v15, %v936_v32  ;;  %v16098_v31 = vcombine.high %v951_v7, %v967_v17  ;;  %v16100_v45 = vcombine.high %v952_v19, %v968_v23  ;;  %v1063_v15 = vld [vmem:[%s17872_s12 + $0x16a0] sm:$0xff]  ;;  %v1048_v32 = vld [vmem:[%s17872_s12 + $0x1628] sm:$0xff] }
 0x54f   : > { %13451 = vmatpush1.bf16.xpose.msra.mxu0 %v16477_v18  ;;  %13492 = vmatpush1.bf16.xpose.msra.mxu1 %v16479_v51  ;;  %v1000_v18 = vld [vmem:[%s17872_s12 + $0x14a8] sm:$0xff]  ;;  %v16097_v51 = vcombine.low %v951_v7, %v967_v17  ;;  %v1079_v17 = vld [vmem:[%s17872_s12 + $0x1720] sm:$0xff] }
 0x550   : > { %13502 = vmatprep.subr.bf16.mxu0 %v16002_v54  ;;  %13543 = vmatprep.subr.bf16.mxu1 %v16004_v55  ;;  %v16099_v54 = vcombine.low %v952_v19, %v968_v23  ;;  %v16130_v55 = vcombine.high %v983_v43, %v999_v59  ;;  %v16132_v58 = vcombine.high %v984_v46, %v1000_v18  ;;  %v1095_v19 = vld [vmem:[%s17872_s12 + $0x17a0] sm:$0xff]  ;;  %v1080_v23 = vld [vmem:[%s17872_s12 + $0x1728] sm:$0xff] }
 0x556   : > { %13453 = vmatmul.mubr.bf16.vlgmr.msra.gmra.mrb[36].mxu0 %v18060_v38  ;;  %13494 = vmatmul.mubr.bf16.vlgmr.msra.gmra.mrb[36].mxu1 %v18067_v42 }
 0x557   : > { %13503 = vmatpush1.bf16.xpose.msra.mxu0 %v16001_v1  ;;  %13544 = vmatpush1.bf16.xpose.msra.mxu1 %v16003_v21  ;;  %v1032_v1 = vld [vmem:[%s17872_s12 + $0x15a8] sm:$0xff]  ;;  %v16129_v21 = vcombine.low %v983_v43, %v999_v59  ;;  %v1111_v59 = vld [vmem:[%s17872_s12 + $0x1820] sm:$0xff] }
 0x558   : > { %13504 = vmatprep.subr.bf16.mxu0 %v16034_v4  ;;  %13545 = vmatprep.subr.bf16.mxu1 %v16036_v8  ;;  %v16131_v4 = vcombine.low %v984_v46, %v1000_v18  ;;  %v16162_v8 = vcombine.high %v1015_v63, %v1031_v37  ;;  %v16164_v9 = vcombine.high %v1016_v0, %v1032_v1  ;;  %v1127_v46 = vld [vmem:[%s17872_s12 + $0x18a0] sm:$0xff]  ;;  %v1112_v18 = vld [vmem:[%s17872_s12 + $0x1828] sm:$0xff] }
 0x559   : > { %13534 = vmatprep.mubr.bf16.mxu0 %v18072_v48  ;;  %13575 = vmatprep.mubr.bf16.mxu1 %v18075_v49 }
 0x55f   : > { %13505 = vmatpush1.bf16.xpose.msra.mxu0 %v16033_v12  ;;  %13546 = vmatpush1.bf16.xpose.msra.mxu1 %v16035_v13  ;;  %v1064_v12 = vld [vmem:[%s17872_s12 + $0x16a8] sm:$0xff]  ;;  %v16161_v13 = vcombine.low %v1015_v63, %v1031_v37  ;;  %v1143_v37 = vld [vmem:[%s17872_s12 + $0x1920] sm:$0xff] }
 0x560   : > { %13506 = vmatprep.subr.bf16.mxu0 %v16066_v22  ;;  %13547 = vmatprep.subr.bf16.mxu1 %v16068_v6  ;;  %v16163_v22 = vcombine.low %v1016_v0, %v1032_v1  ;;  %v16194_v6 = vcombine.high %v1047_v10, %v1063_v15  ;;  %v16196_v7 = vcombine.high %v1048_v32, %v1064_v12  ;;  %v1159_v0 = vld [vmem:[%s17872_s12 + $0x19a0] sm:$0xff]  ;;  %v1144_v1 = vld [vmem:[%s17872_s12 + $0x1928] sm:$0xff] }
 0x567   : > { %13507 = vmatpush1.bf16.xpose.msra.mxu0 %v16065_v57  ;;  %13548 = vmatpush1.bf16.xpose.msra.mxu1 %v16067_v25  ;;  %v1096_v57 = vld [vmem:[%s17872_s12 + $0x17a8] sm:$0xff]  ;;  %v16193_v25 = vcombine.low %v1047_v10, %v1063_v15  ;;  %v1175_v15 = vld [vmem:[%s17872_s12 + $0x1a20] sm:$0xff] }
 0x568   : > { %13508 = vmatprep.subr.bf16.mxu0 %v16098_v31  ;;  %13549 = vmatprep.subr.bf16.mxu1 %v16100_v45  ;;  %v16195_v31 = vcombine.low %v1048_v32, %v1064_v12  ;;  %v16226_v45 = vcombine.high %v1079_v17, %v1095_v19  ;;  %v16228_v43 = vcombine.high %v1080_v23, %v1096_v57  ;;  %v1191_v32 = vld [vmem:[%s17872_s12 + $0x1aa0] sm:$0xff]  ;;  %v1176_v12 = vld [vmem:[%s17872_s12 + $0x1a28] sm:$0xff] }
 0x56f   : > { %13509 = vmatpush1.bf16.xpose.msra.mxu0 %v16097_v51  ;;  %13550 = vmatpush1.bf16.xpose.msra.mxu1 %v16099_v54  ;;  %v1128_v51 = vld [vmem:[%s17872_s12 + $0x18a8] sm:$0xff]  ;;  %v16225_v54 = vcombine.low %v1079_v17, %v1095_v19  ;;  %v1207_v19 = vld [vmem:[%s17872_s12 + $0x1b20] sm:$0xff] }
 0x570   : > { %13510 = vmatprep.subr.bf16.mxu0 %v16130_v55  ;;  %13551 = vmatprep.subr.bf16.mxu1 %v16132_v58  ;;  %v16227_v55 = vcombine.low %v1080_v23, %v1096_v57  ;;  %v16258_v58 = vcombine.high %v1111_v59, %v1127_v46  ;;  %v16260_v63 = vcombine.high %v1112_v18, %v1128_v51  ;;  %v1223_v23 = vld [vmem:[%s17872_s12 + $0x1ba0] sm:$0xff]  ;;  %v2412_v57 = vsub.s32 2, %v18116_v5 }
 0x577   : > { %13511 = vmatpush1.bf16.xpose.msra.mxu0 %v16129_v21  ;;  %13552 = vmatpush1.bf16.xpose.msra.mxu1 %v16131_v4  ;;  %v1160_v21 = vld [vmem:[%s17872_s12 + $0x19a8] sm:$0xff]  ;;  %v16257_v4 = vcombine.low %v1111_v59, %v1127_v46  ;;  %v16354_v46 = vcombine.high %v1207_v19, %v1223_v23 }
 0x578   : > { %13512 = vmatprep.subr.bf16.mxu0 %v16162_v8  ;;  %13553 = vmatprep.subr.bf16.mxu1 %v16164_v9  ;;  %v16259_v8 = vcombine.low %v1112_v18, %v1128_v51  ;;  %v16290_v9 = vcombine.high %v1143_v37, %v1159_v0  ;;  %v16292_v10 = vcombine.high %v1144_v1, %v1160_v21  ;;  %v17596_v51 = vld [vmem:[%s17878_s7] sm:$0xff] }
 0x57f   : > { %13513 = vmatpush1.bf16.xpose.msra.mxu0 %v16161_v13  ;;  %13554 = vmatpush1.bf16.xpose.msra.mxu1 %v16163_v22  ;;  %v1192_v13 = vld [vmem:[%s17872_s12 + $0x1aa8] sm:$0xff]  ;;  %v16289_v22 = vcombine.low %v1143_v37, %v1159_v0  ;;  %v1255_v37 = vld [vmem:[%s17872_s12 + $0x1ca0] sm:$0xff] }
 0x580   : > { %13514 = vmatprep.subr.bf16.mxu0 %v16194_v6  ;;  %13555 = vmatprep.subr.bf16.mxu1 %v16196_v7  ;;  %v16291_v6 = vcombine.low %v1144_v1, %v1160_v21  ;;  %v16322_v7 = vcombine.high %v1175_v15, %v1191_v32  ;;  %v16324_v17 = vcombine.high %v1176_v12, %v1192_v13 }
 0x581   : > { %v16323_v59 = vcombine.low %v1176_v12, %v1192_v13 }
 0x587   : > { %13515 = vmatpush1.bf16.xpose.msra.mxu0 %v16193_v25  ;;  %13556 = vmatpush1.bf16.xpose.msra.mxu1 %v16195_v31  ;;  %v1208_v25 = vld [vmem:[%s17872_s12 + $0x1b28] sm:$0xff] }
 0x588   : > { %13516 = vmatprep.subr.bf16.mxu0 %v16226_v45  ;;  %13557 = vmatprep.subr.bf16.mxu1 %v16228_v43  ;;  %v1224_v31 = vld [vmem:[%s17872_s12 + $0x1ba8] sm:$0xff]  ;;  %v16321_v45 = vcombine.low %v1175_v15, %v1191_v32  ;;  %v2416_v43 = vsub.s32 3, %v18116_v5  ;;  %v16353_v32 = vcombine.low %v1207_v19, %v1223_v23  ;;  %v1271_v19 = vld [vmem:[%s17872_s12 + $0x1d20] sm:$0xff] }
 0x589   : > { %v16356_v18 = vcombine.high %v1208_v25, %v1224_v31  ;;  %v1287_v23 = vld [vmem:[%s17872_s12 + $0x1da0] sm:$0xff] }
 0x58f   : > { %13517 = vmatpush1.bf16.xpose.msra.mxu0 %v16225_v54  ;;  %13558 = vmatpush1.bf16.xpose.msra.mxu1 %v16227_v55  ;;  %v2413_v54 = vrot.slane %v17596_v51, %v2412_v57  ;;  %v2417_v55 = vrot.slane %v17596_v51, %v2416_v43  ;;  %v1272_v43 = vld [vmem:[%s17872_s12 + $0x1d28] sm:$0xff]  ;;  %v1303_v51 = vld [vmem:[%s17872_s12 + $0x1e20] sm:$0xff] }
 0x590   : > { %13518 = vmatprep.subr.bf16.mxu0 %v16258_v58  ;;  %13559 = vmatprep.subr.bf16.mxu1 %v16260_v63  ;;  %v1239_v63 = vld [vmem:[%s17872_s12 + $0x1c20] sm:$0xff] }
 0x597   : > { %13519 = vmatpush1.bf16.xpose.msra.mxu0 %v16257_v4  ;;  %13560 = vmatpush1.bf16.xpose.msra.mxu1 %v16259_v8  ;;  %v1240_v4 = vld [vmem:[%s17872_s12 + $0x1c28] sm:$0xff] }
 0x598   : > { %13520 = vmatprep.subr.bf16.mxu0 %v16290_v9  ;;  %13561 = vmatprep.subr.bf16.mxu1 %v16292_v10  ;;  %v1256_v8 = vld [vmem:[%s17872_s12 + $0x1ca8] sm:$0xff] }
 0x59f   : > { %13521 = vmatpush1.bf16.xpose.msra.mxu0 %v16289_v22  ;;  %13562 = vmatpush1.bf16.xpose.msra.mxu1 %v16291_v6  ;;  %v16355_v6 = vcombine.low %v1208_v25, %v1224_v31  ;;  %v16418_v25 = vcombine.high %v1271_v19, %v1287_v23 }
 0x5a0   : > { %13522 = vmatprep.subr.bf16.mxu0 %v16322_v7  ;;  %13563 = vmatprep.subr.bf16.mxu1 %v16324_v17  ;;  %v16386_v7 = vcombine.high %v1239_v63, %v1255_v37 }
 0x5a7   : > { %13523 = vmatpush1.bf16.xpose.msra.mxu0 %v16321_v45  ;;  %13564 = vmatpush1.bf16.xpose.msra.mxu1 %v16323_v59  ;;  %v16388_v45 = vcombine.high %v1240_v4, %v1256_v8  ;;  %v1288_v59 = vld [vmem:[%s17872_s12 + $0x1da8] sm:$0xff] }
 0x5a8   : > { %13524 = vmatprep.subr.bf16.mxu0 %v16354_v46  ;;  %13565 = vmatprep.subr.bf16.mxu1 %v16356_v18  ;;  %v16385_v46 = vcombine.low %v1239_v63, %v1255_v37  ;;  %v16387_v18 = vcombine.low %v1240_v4, %v1256_v8  ;;  %v16420_v31 = vcombine.high %v1272_v43, %v1288_v59  ;;  %v1335_v63 = vld [vmem:[%s17872_s12 + $0x1f20] sm:$0xff]  ;;  %v1336_v4 = vld [vmem:[%s17872_s12 + $0x1f28] sm:$0xff] }
 0x5a9   : > { %v13372_v58 = vpop.f32.mrb[32].mxu0  ;;  %v13413_v1 = vpop.f32.mrb[32].mxu1  ;;  %v1351_v37 = vld [vmem:[%s17872_s12 + $0x1fa0] sm:$0xff]  ;;  %v1352_v8 = vld [vmem:[%s17872_s12 + $0x1fa8] sm:$0xff] }
 0x5aa   : > { %v13373_v0 = vadd.f32 %v13372_v58, %v2413_v54  ;;  %v13374_v21 = vpop.f32.mrb[33].mxu0  ;;  %v13415_v10 = vpop.f32.mrb[33].mxu1  ;;  %v1319_v54 = vld [vmem:[%s17872_s12 + $0x1ea0] sm:$0xff]  ;;  %v1320_v58 = vld [vmem:[%s17872_s12 + $0x1ea8] sm:$0xff] }
 0x5ab   : > { %v13375_v9 = vadd.f32 %v13374_v21, %v2417_v55  ;;  %v13376_v15 = vpop.f32.mrb[34].mxu0  ;;  %v13417_v13 = vpop.f32.mrb[34].mxu1  ;;  %v1304_v55 = vld [vmem:[%s17872_s12 + $0x1e28] sm:$0xff]  ;;  %v16450_v21 = vcombine.high %v1303_v51, %v1319_v54 }
 0x5ac   : > { %v18844_v12 = vadd.f32 %v13413_v1, %v13373_v0  ;;  %v13377_v22 = vpop.f32.mrb[35].mxu0  ;;  %v13418_v57 = vpop.f32.mrb[35].mxu1  ;;  %v16417_v0 = vcombine.low %v1271_v19, %v1287_v23  ;;  %v16419_v1 = vcombine.low %v1272_v43, %v1288_v59  ;;  %v16451_v15 = vcombine.low %v1304_v55, %v1320_v58  ;;  %v889_v59 = vld [vmem:[%s17872_s12 + $0x1130] sm:$0xff] }
 0x5ad   : > { %v18846_v17 = vadd.f32 %v13415_v10, %v13375_v9  ;;  %v16452_v9 = vcombine.high %v1304_v55, %v1320_v58  ;;  %v16449_v10 = vcombine.low %v1303_v51, %v1319_v54  ;;  %v16484_v13 = vcombine.high %v1336_v4, %v1352_v8  ;;  %v857_v22 = vld [vmem:[%s17872_s12 + $0x1030] sm:$0xff]  ;;  %v874_v57 = vld [vmem:[%s17872_s12 + $0x10b8] sm:$0xff] }
 0x5ae   : > { %v16483_v19 = vcombine.low %v1336_v4, %v1352_v8  ;;  %v921_v58 = vld [vmem:[%s17872_s12 + $0x1230] sm:$0xff] }
 0x5af   : > { %13525 = vmatpush1.bf16.xpose.msra.mxu0 %v16353_v32  ;;  %13566 = vmatpush1.bf16.xpose.msra.mxu1 %v16355_v6  ;;  %v16482_v32 = vcombine.high %v1335_v63, %v1351_v37  ;;  %v873_v6 = vld [vmem:[%s17872_s12 + $0x10b0] sm:$0xff] }
 0x5b0   : > { %13526 = vmatprep.subr.bf16.mxu0 %v16386_v7  ;;  %13567 = vmatprep.subr.bf16.mxu1 %v16388_v45  ;;  %v858_v7 = vld [vmem:[%s17872_s12 + $0x1038] sm:$0xff]  ;;  %v16481_v45 = vcombine.low %v1335_v63, %v1351_v37  ;;  %v16006_v23 = vcombine.high %v857_v22, %v873_v6  ;;  %v953_v8 = vld [vmem:[%s17872_s12 + $0x1330] sm:$0xff] }
 0x5b1   : > { %v16008_v43 = vcombine.high %v858_v7, %v874_v57  ;;  %v16007_v51 = vcombine.low %v858_v7, %v874_v57  ;;  %v985_v57 = vld [vmem:[%s17872_s12 + $0x1430] sm:$0xff] }
 0x5b7   : > { %13527 = vmatpush1.bf16.xpose.msra.mxu0 %v16385_v46  ;;  %13568 = vmatpush1.bf16.xpose.msra.mxu1 %v16387_v18  ;;  %v905_v46 = vld [vmem:[%s17872_s12 + $0x11b0] sm:$0xff]  ;;  %v890_v18 = vld [vmem:[%s17872_s12 + $0x1138] sm:$0xff] }
 0x5b8   : > { %13528 = vmatprep.subr.bf16.mxu0 %v16418_v25  ;;  %13569 = vmatprep.subr.bf16.mxu1 %v16420_v31  ;;  %v906_v25 = vld [vmem:[%s17872_s12 + $0x11b8] sm:$0xff]  ;;  %v16005_v31 = vcombine.low %v857_v22, %v873_v6  ;;  %v16038_v54 = vcombine.high %v889_v59, %v905_v46 }
 0x5b9   : > { %v16040_v55 = vcombine.high %v890_v18, %v906_v25  ;;  %v16039_v63 = vcombine.low %v890_v18, %v906_v25  ;;  %v1017_v25 = vld [vmem:[%s17872_s12 + $0x1530] sm:$0xff] }
 0x5bf   : > { %13529 = vmatpush1.bf16.xpose.msra.mxu0 %v16417_v0  ;;  %13570 = vmatpush1.bf16.xpose.msra.mxu1 %v16419_v1  ;;  %v937_v0 = vld [vmem:[%s17872_s12 + $0x12b0] sm:$0xff]  ;;  %v922_v1 = vld [vmem:[%s17872_s12 + $0x1238] sm:$0xff] }
 0x5c0   : > { %13530 = vmatprep.subr.bf16.mxu0 %v16450_v21  ;;  %13571 = vmatprep.subr.bf16.mxu1 %v16452_v9  ;;  %v938_v21 = vld [vmem:[%s17872_s12 + $0x12b8] sm:$0xff]  ;;  %v16037_v9 = vcombine.low %v889_v59, %v905_v46  ;;  %v16070_v37 = vcombine.high %v921_v58, %v937_v0 }
 0x5c1   : > { %v16072_v4 = vcombine.high %v922_v1, %v938_v21  ;;  %v16071_v22 = vcombine.low %v922_v1, %v938_v21  ;;  %v1049_v21 = vld [vmem:[%s17872_s12 + $0x1630] sm:$0xff] }
 0x5c7   : > { %13531 = vmatpush1.bf16.xpose.msra.mxu0 %v16449_v10  ;;  %13572 = vmatpush1.bf16.xpose.msra.mxu1 %v16451_v15  ;;  %v969_v10 = vld [vmem:[%s17872_s12 + $0x13b0] sm:$0xff]  ;;  %v954_v15 = vld [vmem:[%s17872_s12 + $0x1338] sm:$0xff] }
 0x5c8   : > { %13532 = vmatprep.subr.bf16.mxu0 %v16482_v32  ;;  %13573 = vmatprep.subr.bf16.mxu1 %v16484_v13  ;;  %v970_v32 = vld [vmem:[%s17872_s12 + $0x13b8] sm:$0xff]  ;;  %v16069_v13 = vcombine.low %v921_v58, %v937_v0  ;;  %v16102_v6 = vcombine.high %v953_v8, %v969_v10 }
 0x5c9   : > { %v16104_v7 = vcombine.high %v954_v15, %v970_v32  ;;  %v16103_v59 = vcombine.low %v954_v15, %v970_v32  ;;  %v1081_v32 = vld [vmem:[%s17872_s12 + $0x1730] sm:$0xff] }
 0x5cf   : > { %13533 = vmatpush1.bf16.xpose.msra.mxu0 %v16481_v45  ;;  %13574 = vmatpush1.bf16.xpose.msra.mxu1 %v16483_v19  ;;  %v1001_v45 = vld [vmem:[%s17872_s12 + $0x14b0] sm:$0xff]  ;;  %v986_v19 = vld [vmem:[%s17872_s12 + $0x1438] sm:$0xff] }
 0x5d0   : > { %13584 = vmatprep.subr.bf16.mxu0 %v16006_v23  ;;  %13625 = vmatprep.subr.bf16.mxu1 %v16008_v43  ;;  %v1002_v23 = vld [vmem:[%s17872_s12 + $0x14b8] sm:$0xff]  ;;  %v16101_v43 = vcombine.low %v953_v8, %v969_v10  ;;  %v16134_v46 = vcombine.high %v985_v57, %v1001_v45 }
 0x5d1   : > { %v16136_v18 = vcombine.high %v986_v19, %v1002_v23  ;;  %v16135_v58 = vcombine.low %v986_v19, %v1002_v23  ;;  %v1113_v23 = vld [vmem:[%s17872_s12 + $0x1830] sm:$0xff] }
 0x5d6   : > { %13535 = vmatmul.mubr.bf16.vlgmr.msra.gmra.mrb[40].mxu0 %v18157_v24  ;;  %13576 = vmatmul.mubr.bf16.vlgmr.msra.gmra.mrb[40].mxu1 %v18164_v30 }
 0x5d7   : > { %13585 = vmatpush1.bf16.xpose.msra.mxu0 %v16005_v31  ;;  %13626 = vmatpush1.bf16.xpose.msra.mxu1 %v16007_v51  ;;  %v1033_v31 = vld [vmem:[%s17872_s12 + $0x15b0] sm:$0xff]  ;;  %v1018_v51 = vld [vmem:[%s17872_s12 + $0x1538] sm:$0xff] }
 0x5d8   : > { %13586 = vmatprep.subr.bf16.mxu0 %v16038_v54  ;;  %13627 = vmatprep.subr.bf16.mxu1 %v16040_v55  ;;  %v1034_v54 = vld [vmem:[%s17872_s12 + $0x15b8] sm:$0xff]  ;;  %v16133_v55 = vcombine.low %v985_v57, %v1001_v45  ;;  %v16166_v0 = vcombine.high %v1017_v25, %v1033_v31 }
 0x5d9   : > { %13616 = vmatprep.mubr.bf16.mxu0 %v18169_v40  ;;  %13657 = vmatprep.mubr.bf16.mxu1 %v18172_v41  ;;  %v16168_v1 = vcombine.high %v1018_v51, %v1034_v54  ;;  %v16167_v8 = vcombine.low %v1018_v51, %v1034_v54  ;;  %v1145_v54 = vld [vmem:[%s17872_s12 + $0x1930] sm:$0xff] }
 0x5df   : > { %13587 = vmatpush1.bf16.xpose.msra.mxu0 %v16037_v9  ;;  %13628 = vmatpush1.bf16.xpose.msra.mxu1 %v16039_v63  ;;  %v1065_v9 = vld [vmem:[%s17872_s12 + $0x16b0] sm:$0xff]  ;;  %v1050_v63 = vld [vmem:[%s17872_s12 + $0x1638] sm:$0xff] }
 0x5e0   : > { %13588 = vmatprep.subr.bf16.mxu0 %v16070_v37  ;;  %13629 = vmatprep.subr.bf16.mxu1 %v16072_v4  ;;  %v1066_v37 = vld [vmem:[%s17872_s12 + $0x16b8] sm:$0xff]  ;;  %v16165_v4 = vcombine.low %v1017_v25, %v1033_v31  ;;  %v16198_v10 = vcombine.high %v1049_v21, %v1065_v9 }
 0x5e1   : > { %v16200_v15 = vcombine.high %v1050_v63, %v1066_v37  ;;  %v16199_v57 = vcombine.low %v1050_v63, %v1066_v37  ;;  %v1177_v37 = vld [vmem:[%s17872_s12 + $0x1a30] sm:$0xff] }
 0x5e7   : > { %13589 = vmatpush1.bf16.xpose.msra.mxu0 %v16069_v13  ;;  %13630 = vmatpush1.bf16.xpose.msra.mxu1 %v16071_v22  ;;  %v1097_v13 = vld [vmem:[%s17872_s12 + $0x17b0] sm:$0xff]  ;;  %v1082_v22 = vld [vmem:[%s17872_s12 + $0x1738] sm:$0xff] }
 0x5e8   : > { %13590 = vmatprep.subr.bf16.mxu0 %v16102_v6  ;;  %13631 = vmatprep.subr.bf16.mxu1 %v16104_v7  ;;  %v1098_v6 = vld [vmem:[%s17872_s12 + $0x17b8] sm:$0xff]  ;;  %v16197_v7 = vcombine.low %v1049_v21, %v1065_v9  ;;  %v16230_v45 = vcombine.high %v1081_v32, %v1097_v13 }
 0x5e9   : > { %v16232_v19 = vcombine.high %v1082_v22, %v1098_v6  ;;  %v16231_v25 = vcombine.low %v1082_v22, %v1098_v6  ;;  %v1209_v6 = vld [vmem:[%s17872_s12 + $0x1b30] sm:$0xff] }
 0x5ef   : > { %13591 = vmatpush1.bf16.xpose.msra.mxu0 %v16101_v43  ;;  %13632 = vmatpush1.bf16.xpose.msra.mxu1 %v16103_v59  ;;  %v1129_v43 = vld [vmem:[%s17872_s12 + $0x18b0] sm:$0xff]  ;;  %v1114_v59 = vld [vmem:[%s17872_s12 + $0x1838] sm:$0xff] }
 0x5f0   : > { %13592 = vmatprep.subr.bf16.mxu0 %v16134_v46  ;;  %13633 = vmatprep.subr.bf16.mxu1 %v16136_v18  ;;  %v1130_v46 = vld [vmem:[%s17872_s12 + $0x18b8] sm:$0xff]  ;;  %v16229_v18 = vcombine.low %v1081_v32, %v1097_v13  ;;  %v16262_v31 = vcombine.high %v1113_v23, %v1129_v43 }
 0x5f1   : > { %v16264_v51 = vcombine.high %v1114_v59, %v1130_v46  ;;  %v16263_v21 = vcombine.low %v1114_v59, %v1130_v46 }
 0x5f7   : > { %13593 = vmatpush1.bf16.xpose.msra.mxu0 %v16133_v55  ;;  %13634 = vmatpush1.bf16.xpose.msra.mxu1 %v16135_v58  ;;  %v1161_v55 = vld [vmem:[%s17872_s12 + $0x19b0] sm:$0xff]  ;;  %v1146_v58 = vld [vmem:[%s17872_s12 + $0x1938] sm:$0xff] }
 0x5f8   : > { %13594 = vmatprep.subr.bf16.mxu0 %v16166_v0  ;;  %13635 = vmatprep.subr.bf16.mxu1 %v16168_v1  ;;  %v1162_v0 = vld [vmem:[%s17872_s12 + $0x19b8] sm:$0xff]  ;;  %v16261_v1 = vcombine.low %v1113_v23, %v1129_v43  ;;  %v16294_v9 = vcombine.high %v1145_v54, %v1161_v55 }
 0x5f9   : > { %v16296_v63 = vcombine.high %v1146_v58, %v1162_v0  ;;  %v16295_v32 = vcombine.low %v1146_v58, %v1162_v0  ;;  %v1258_v58 = vld [vmem:[%s17872_s12 + $0x1cb8] sm:$0xff] }
 0x5ff   : > { %13595 = vmatpush1.bf16.xpose.msra.mxu0 %v16165_v4  ;;  %13636 = vmatpush1.bf16.xpose.msra.mxu1 %v16167_v8  ;;  %v1193_v4 = vld [vmem:[%s17872_s12 + $0x1ab0] sm:$0xff]  ;;  %v1178_v8 = vld [vmem:[%s17872_s12 + $0x1a38] sm:$0xff] }
 0x600   : > { %13596 = vmatprep.subr.bf16.mxu0 %v16198_v10  ;;  %13637 = vmatprep.subr.bf16.mxu1 %v16200_v15  ;;  %v1194_v10 = vld [vmem:[%s17872_s12 + $0x1ab8] sm:$0xff]  ;;  %v16293_v15 = vcombine.low %v1145_v54, %v1161_v55  ;;  %v16326_v13 = vcombine.high %v1177_v37, %v1193_v4 }
 0x601   : > { %v16328_v22 = vcombine.high %v1178_v8, %v1194_v10  ;;  %v16327_v23 = vcombine.low %v1178_v8, %v1194_v10  ;;  %v1242_v55 = vld [vmem:[%s17872_s12 + $0x1c38] sm:$0xff] }
 0x607   : > { %13597 = vmatpush1.bf16.xpose.msra.mxu0 %v16197_v7  ;;  %13638 = vmatpush1.bf16.xpose.msra.mxu1 %v16199_v57  ;;  %v1225_v7 = vld [vmem:[%s17872_s12 + $0x1bb0] sm:$0xff]  ;;  %v1210_v57 = vld [vmem:[%s17872_s12 + $0x1b38] sm:$0xff] }
 0x608   : > { %13598 = vmatprep.subr.bf16.mxu0 %v16230_v45  ;;  %13639 = vmatprep.subr.bf16.mxu1 %v16232_v19  ;;  %v1226_v45 = vld [vmem:[%s17872_s12 + $0x1bb8] sm:$0xff]  ;;  %v16325_v19 = vcombine.low %v1177_v37, %v1193_v4  ;;  %v16358_v43 = vcombine.high %v1209_v6, %v1225_v7 }
 0x609   : > { %v16360_v59 = vcombine.high %v1210_v57, %v1226_v45  ;;  %v16359_v8 = vcombine.low %v1210_v57, %v1226_v45 }
 0x60f   : > { %13599 = vmatpush1.bf16.xpose.msra.mxu0 %v16229_v18  ;;  %13640 = vmatpush1.bf16.xpose.msra.mxu1 %v16231_v25  ;;  %v1241_v18 = vld [vmem:[%s17872_s12 + $0x1c30] sm:$0xff] }
 0x610   : > { %13600 = vmatprep.subr.bf16.mxu0 %v16262_v31  ;;  %13641 = vmatprep.subr.bf16.mxu1 %v16264_v51  ;;  %v1257_v25 = vld [vmem:[%s17872_s12 + $0x1cb0] sm:$0xff] }
 0x611   : > { %v16390_v10 = vcombine.high %v1241_v18, %v1257_v25 }
 0x617   : > { %13601 = vmatpush1.bf16.xpose.msra.mxu0 %v16261_v1  ;;  %13642 = vmatpush1.bf16.xpose.msra.mxu1 %v16263_v21 }
 0x618   : > { %13602 = vmatprep.subr.bf16.mxu0 %v16294_v9  ;;  %13643 = vmatprep.subr.bf16.mxu1 %v16296_v63  ;;  %v16357_v9 = vcombine.low %v1209_v6, %v1225_v7  ;;  %v1290_v6 = vld [vmem:[%s17872_s12 + $0x1db8] sm:$0xff]  ;;  %v16389_v7 = vcombine.low %v1241_v18, %v1257_v25  ;;  %v1337_v18 = vld [vmem:[%s17872_s12 + $0x1f30] sm:$0xff] }
 0x619   : > { %v1353_v25 = vld [vmem:[%s17872_s12 + $0x1fb0] sm:$0xff] }
 0x61f   : > { %13603 = vmatpush1.bf16.xpose.msra.mxu0 %v16293_v15  ;;  %13644 = vmatpush1.bf16.xpose.msra.mxu1 %v16295_v32  ;;  %v16392_v32 = vcombine.high %v1242_v55, %v1258_v58 }
 0x620   : > { %13604 = vmatprep.subr.bf16.mxu0 %v16326_v13  ;;  %13645 = vmatprep.subr.bf16.mxu1 %v16328_v22  ;;  %v1289_v13 = vld [vmem:[%s17872_s12 + $0x1db0] sm:$0xff]  ;;  %v1274_v22 = vld [vmem:[%s17872_s12 + $0x1d38] sm:$0xff] }
 0x621   : > { %v16424_v45 = vcombine.high %v1274_v22, %v1290_v6 }
 0x627   : > { %13605 = vmatpush1.bf16.xpose.msra.mxu0 %v16325_v19  ;;  %13646 = vmatpush1.bf16.xpose.msra.mxu1 %v16327_v23  ;;  %v16391_v19 = vcombine.low %v1242_v55, %v1258_v58  ;;  %v1305_v23 = vld [vmem:[%s17872_s12 + $0x1e30] sm:$0xff]  ;;  %v1338_v55 = vld [vmem:[%s17872_s12 + $0x1f38] sm:$0xff] }
 0x628   : > { %13606 = vmatprep.subr.bf16.mxu0 %v16358_v43  ;;  %13647 = vmatprep.subr.bf16.mxu1 %v16360_v59  ;;  %v1321_v43 = vld [vmem:[%s17872_s12 + $0x1eb0] sm:$0xff]  ;;  %v1306_v59 = vld [vmem:[%s17872_s12 + $0x1e38] sm:$0xff] }
 0x629   : > { %v13454_v46 = vpop.f32.mrb[36].mxu0  ;;  %v13495_v51 = vpop.f32.mrb[36].mxu1  ;;  %v1354_v58 = vld [vmem:[%s17872_s12 + $0x1fb8] sm:$0xff] }
 0x62a   : > { %v13455_v31 = vadd.f32 %v13454_v46, %v18844_v12  ;;  %v13456_v54 = vpop.f32.mrb[37].mxu0  ;;  %v13497_v1 = vpop.f32.mrb[37].mxu1  ;;  %v1322_v46 = vld [vmem:[%s17872_s12 + $0x1eb8] sm:$0xff] }
 0x62b   : > { %v13457_v0 = vadd.f32 %v13456_v54, %v18846_v17  ;;  %v13458_v21 = vpop.f32.mrb[38].mxu0  ;;  %v13499_v37 = vpop.f32.mrb[38].mxu1  ;;  %v1273_v17 = vld [vmem:[%s17872_s12 + $0x1d30] sm:$0xff]  ;;  %v16454_v54 = vcombine.high %v1305_v23, %v1321_v43 }
 0x62c   : > { %v18918_v63 = vadd.f32 %v13495_v51, %v13455_v31  ;;  %v13459_v4 = vpop.f32.mrb[39].mxu0  ;;  %v13500_v15 = vpop.f32.mrb[39].mxu1  ;;  %v16422_v57 = vcombine.high %v1273_v17, %v1289_v13  ;;  %v16421_v31 = vcombine.low %v1273_v17, %v1289_v13  ;;  %v16423_v51 = vcombine.low %v1274_v22, %v1290_v6  ;;  %v891_v6 = vld [vmem:[%s17872_s12 + $0x1140] sm:$0xff] }
 0x62d   : > { %v18920_v12 = vadd.f32 %v13497_v1, %v13457_v0  ;;  %v16456_v0 = vcombine.high %v1306_v59, %v1322_v46  ;;  %v16453_v1 = vcombine.low %v1305_v23, %v1321_v43  ;;  %v16455_v21 = vcombine.low %v1306_v59, %v1322_v46  ;;  %v859_v4 = vld [vmem:[%s17872_s12 + $0x1040] sm:$0xff]  ;;  %v876_v15 = vld [vmem:[%s17872_s12 + $0x10c8] sm:$0xff] }
 0x62e   : > { %v16488_v37 = vcombine.high %v1338_v55, %v1354_v58  ;;  %v16487_v17 = vcombine.low %v1338_v55, %v1354_v58  ;;  %v923_v46 = vld [vmem:[%s17872_s12 + $0x1240] sm:$0xff] }
 0x62f   : > { %13607 = vmatpush1.bf16.xpose.msra.mxu0 %v16357_v9  ;;  %13648 = vmatpush1.bf16.xpose.msra.mxu1 %v16359_v8  ;;  %v16486_v9 = vcombine.high %v1337_v18, %v1353_v25  ;;  %v875_v8 = vld [vmem:[%s17872_s12 + $0x10c0] sm:$0xff] }
 0x630   : > { %13608 = vmatprep.subr.bf16.mxu0 %v16390_v10  ;;  %13649 = vmatprep.subr.bf16.mxu1 %v16392_v32  ;;  %v860_v10 = vld [vmem:[%s17872_s12 + $0x1048] sm:$0xff]  ;;  %v16485_v32 = vcombine.low %v1337_v18, %v1353_v25  ;;  %v16010_v13 = vcombine.high %v859_v4, %v875_v8  ;;  %v955_v58 = vld [vmem:[%s17872_s12 + $0x1340] sm:$0xff] }
 0x631   : > { %v16012_v22 = vcombine.high %v860_v10, %v876_v15  ;;  %v16011_v23 = vcombine.low %v860_v10, %v876_v15  ;;  %v987_v15 = vld [vmem:[%s17872_s12 + $0x1440] sm:$0xff] }
 0x637   : > { %13609 = vmatpush1.bf16.xpose.msra.mxu0 %v16389_v7  ;;  %13650 = vmatpush1.bf16.xpose.msra.mxu1 %v16391_v19  ;;  %v907_v7 = vld [vmem:[%s17872_s12 + $0x11c0] sm:$0xff]  ;;  %v892_v19 = vld [vmem:[%s17872_s12 + $0x1148] sm:$0xff] }
 0x638   : > { %13610 = vmatprep.subr.bf16.mxu0 %v16422_v57  ;;  %13651 = vmatprep.subr.bf16.mxu1 %v16424_v45  ;;  %v908_v57 = vld [vmem:[%s17872_s12 + $0x11c8] sm:$0xff]  ;;  %v16009_v45 = vcombine.low %v859_v4, %v875_v8  ;;  %v16042_v43 = vcombine.high %v891_v6, %v907_v7 }
 0x639   : > { %v16044_v59 = vcombine.high %v892_v19, %v908_v57  ;;  %v16043_v18 = vcombine.low %v892_v19, %v908_v57  ;;  %v1019_v57 = vld [vmem:[%s17872_s12 + $0x1540] sm:$0xff] }
 0x63f   : > { %13611 = vmatpush1.bf16.xpose.msra.mxu0 %v16421_v31  ;;  %13652 = vmatpush1.bf16.xpose.msra.mxu1 %v16423_v51  ;;  %v939_v31 = vld [vmem:[%s17872_s12 + $0x12c0] sm:$0xff]  ;;  %v924_v51 = vld [vmem:[%s17872_s12 + $0x1248] sm:$0xff] }
 0x640   : > { %13612 = vmatprep.subr.bf16.mxu0 %v16454_v54  ;;  %13653 = vmatprep.subr.bf16.mxu1 %v16456_v0  ;;  %v940_v54 = vld [vmem:[%s17872_s12 + $0x12c8] sm:$0xff]  ;;  %v16041_v0 = vcombine.low %v891_v6, %v907_v7  ;;  %v16074_v25 = vcombine.high %v923_v46, %v939_v31 }
 0x641   : > { %v16076_v55 = vcombine.high %v924_v51, %v940_v54  ;;  %v16075_v4 = vcombine.low %v924_v51, %v940_v54  ;;  %v1051_v54 = vld [vmem:[%s17872_s12 + $0x1640] sm:$0xff] }
 0x647   : > { %13613 = vmatpush1.bf16.xpose.msra.mxu0 %v16453_v1  ;;  %13654 = vmatpush1.bf16.xpose.msra.mxu1 %v16455_v21  ;;  %v971_v1 = vld [vmem:[%s17872_s12 + $0x13c0] sm:$0xff]  ;;  %v956_v21 = vld [vmem:[%s17872_s12 + $0x1348] sm:$0xff] }
 0x648   : > { %13614 = vmatprep.subr.bf16.mxu0 %v16486_v9  ;;  %13655 = vmatprep.subr.bf16.mxu1 %v16488_v37  ;;  %v972_v9 = vld [vmem:[%s17872_s12 + $0x13c8] sm:$0xff]  ;;  %v16073_v37 = vcombine.low %v923_v46, %v939_v31  ;;  %v16106_v8 = vcombine.high %v955_v58, %v971_v1 }
 0x649   : > { %v16108_v10 = vcombine.high %v956_v21, %v972_v9  ;;  %v16107_v6 = vcombine.low %v956_v21, %v972_v9  ;;  %v1083_v9 = vld [vmem:[%s17872_s12 + $0x1740] sm:$0xff] }
 0x64f   : > { %13615 = vmatpush1.bf16.xpose.msra.mxu0 %v16485_v32  ;;  %13656 = vmatpush1.bf16.xpose.msra.mxu1 %v16487_v17  ;;  %v1003_v32 = vld [vmem:[%s17872_s12 + $0x14c0] sm:$0xff]  ;;  %v988_v17 = vld [vmem:[%s17872_s12 + $0x1448] sm:$0xff] }
 0x650   : > { %13666 = vmatprep.subr.bf16.mxu0 %v16010_v13  ;;  %13707 = vmatprep.subr.bf16.mxu1 %v16012_v22  ;;  %v1004_v13 = vld [vmem:[%s17872_s12 + $0x14c8] sm:$0xff]  ;;  %v16105_v22 = vcombine.low %v955_v58, %v971_v1  ;;  %v16138_v7 = vcombine.high %v987_v15, %v1003_v32 }
 0x651   : > { %v16140_v19 = vcombine.high %v988_v17, %v1004_v13  ;;  %v16139_v46 = vcombine.low %v988_v17, %v1004_v13  ;;  %v1115_v13 = vld [vmem:[%s17872_s12 + $0x1840] sm:$0xff] }
 0x656   : > { %13617 = vmatmul.mubr.bf16.vlgmr.msra.gmra.mrb[44].mxu0 %v18251_v28  ;;  %13658 = vmatmul.mubr.bf16.vlgmr.msra.gmra.mrb[44].mxu1 %v18258_v33 }
 0x657   : > { %13667 = vmatpush1.bf16.xpose.msra.mxu0 %v16009_v45  ;;  %13708 = vmatpush1.bf16.xpose.msra.mxu1 %v16011_v23  ;;  %v1035_v45 = vld [vmem:[%s17872_s12 + $0x15c0] sm:$0xff]  ;;  %v1020_v23 = vld [vmem:[%s17872_s12 + $0x1548] sm:$0xff] }
 0x658   : > { %13668 = vmatprep.subr.bf16.mxu0 %v16042_v43  ;;  %13709 = vmatprep.subr.bf16.mxu1 %v16044_v59  ;;  %v1036_v43 = vld [vmem:[%s17872_s12 + $0x15c8] sm:$0xff]  ;;  %v16137_v59 = vcombine.low %v987_v15, %v1003_v32  ;;  %v16170_v31 = vcombine.high %v1019_v57, %v1035_v45 }
 0x659   : > { %13698 = vmatprep.mubr.bf16.mxu0 %v18263_v50  ;;  %13739 = vmatprep.mubr.bf16.mxu1 %v18266_v44  ;;  %v16172_v51 = vcombine.high %v1020_v23, %v1036_v43  ;;  %v16171_v58 = vcombine.low %v1020_v23, %v1036_v43  ;;  %v1147_v43 = vld [vmem:[%s17872_s12 + $0x1940] sm:$0xff] }
 0x65f   : > { %13669 = vmatpush1.bf16.xpose.msra.mxu0 %v16041_v0  ;;  %13710 = vmatpush1.bf16.xpose.msra.mxu1 %v16043_v18  ;;  %v1067_v0 = vld [vmem:[%s17872_s12 + $0x16c0] sm:$0xff]  ;;  %v1052_v18 = vld [vmem:[%s17872_s12 + $0x1648] sm:$0xff] }
 0x660   : > { %13670 = vmatprep.subr.bf16.mxu0 %v16074_v25  ;;  %13711 = vmatprep.subr.bf16.mxu1 %v16076_v55  ;;  %v1068_v25 = vld [vmem:[%s17872_s12 + $0x16c8] sm:$0xff]  ;;  %v16169_v55 = vcombine.low %v1019_v57, %v1035_v45  ;;  %v16202_v1 = vcombine.high %v1051_v54, %v1067_v0 }
 0x661   : > { %v16204_v21 = vcombine.high %v1052_v18, %v1068_v25  ;;  %v16203_v15 = vcombine.low %v1052_v18, %v1068_v25  ;;  %v1179_v25 = vld [vmem:[%s17872_s12 + $0x1a40] sm:$0xff] }
 0x667   : > { %13671 = vmatpush1.bf16.xpose.msra.mxu0 %v16073_v37  ;;  %13712 = vmatpush1.bf16.xpose.msra.mxu1 %v16075_v4  ;;  %v1099_v37 = vld [vmem:[%s17872_s12 + $0x17c0] sm:$0xff]  ;;  %v1084_v4 = vld [vmem:[%s17872_s12 + $0x1748] sm:$0xff] }
 0x668   : > { %13672 = vmatprep.subr.bf16.mxu0 %v16106_v8  ;;  %13713 = vmatprep.subr.bf16.mxu1 %v16108_v10  ;;  %v1100_v8 = vld [vmem:[%s17872_s12 + $0x17c8] sm:$0xff]  ;;  %v16201_v10 = vcombine.low %v1051_v54, %v1067_v0  ;;  %v16234_v32 = vcombine.high %v1083_v9, %v1099_v37 }
 0x669   : > { %v16236_v17 = vcombine.high %v1084_v4, %v1100_v8  ;;  %v16235_v57 = vcombine.low %v1084_v4, %v1100_v8  ;;  %v1211_v8 = vld [vmem:[%s17872_s12 + $0x1b40] sm:$0xff] }
 0x66f   : > { %13673 = vmatpush1.bf16.xpose.msra.mxu0 %v16105_v22  ;;  %13714 = vmatpush1.bf16.xpose.msra.mxu1 %v16107_v6  ;;  %v1131_v22 = vld [vmem:[%s17872_s12 + $0x18c0] sm:$0xff]  ;;  %v1116_v6 = vld [vmem:[%s17872_s12 + $0x1848] sm:$0xff] }
 0x670   : > { %13674 = vmatprep.subr.bf16.mxu0 %v16138_v7  ;;  %13715 = vmatprep.subr.bf16.mxu1 %v16140_v19  ;;  %v1132_v7 = vld [vmem:[%s17872_s12 + $0x18c8] sm:$0xff]  ;;  %v16233_v19 = vcombine.low %v1083_v9, %v1099_v37  ;;  %v16266_v45 = vcombine.high %v1115_v13, %v1131_v22 }
 0x671   : > { %v16268_v23 = vcombine.high %v1116_v6, %v1132_v7  ;;  %v16267_v54 = vcombine.low %v1116_v6, %v1132_v7 }
 0x677   : > { %13675 = vmatpush1.bf16.xpose.msra.mxu0 %v16137_v59  ;;  %13716 = vmatpush1.bf16.xpose.msra.mxu1 %v16139_v46  ;;  %v1163_v59 = vld [vmem:[%s17872_s12 + $0x19c0] sm:$0xff]  ;;  %v1148_v46 = vld [vmem:[%s17872_s12 + $0x1948] sm:$0xff] }
 0x678   : > { %13676 = vmatprep.subr.bf16.mxu0 %v16170_v31  ;;  %13717 = vmatprep.subr.bf16.mxu1 %v16172_v51  ;;  %v1164_v31 = vld [vmem:[%s17872_s12 + $0x19c8] sm:$0xff]  ;;  %v16265_v51 = vcombine.low %v1115_v13, %v1131_v22  ;;  %v16298_v0 = vcombine.high %v1147_v43, %v1163_v59 }
 0x679   : > { %v16300_v18 = vcombine.high %v1148_v46, %v1164_v31  ;;  %v16299_v9 = vcombine.low %v1148_v46, %v1164_v31  ;;  %v1260_v46 = vld [vmem:[%s17872_s12 + $0x1cc8] sm:$0xff] }
 0x67f   : > { %13677 = vmatpush1.bf16.xpose.msra.mxu0 %v16169_v55  ;;  %13718 = vmatpush1.bf16.xpose.msra.mxu1 %v16171_v58  ;;  %v1195_v55 = vld [vmem:[%s17872_s12 + $0x1ac0] sm:$0xff]  ;;  %v1180_v58 = vld [vmem:[%s17872_s12 + $0x1a48] sm:$0xff] }
 0x680   : > { %13678 = vmatprep.subr.bf16.mxu0 %v16202_v1  ;;  %13719 = vmatprep.subr.bf16.mxu1 %v16204_v21  ;;  %v1196_v1 = vld [vmem:[%s17872_s12 + $0x1ac8] sm:$0xff]  ;;  %v16297_v21 = vcombine.low %v1147_v43, %v1163_v59  ;;  %v16330_v37 = vcombine.high %v1179_v25, %v1195_v55 }
 0x681   : > { %v16332_v4 = vcombine.high %v1180_v58, %v1196_v1  ;;  %v16331_v13 = vcombine.low %v1180_v58, %v1196_v1  ;;  %v1244_v59 = vld [vmem:[%s17872_s12 + $0x1c48] sm:$0xff] }
 0x687   : > { %13679 = vmatpush1.bf16.xpose.msra.mxu0 %v16201_v10  ;;  %13720 = vmatpush1.bf16.xpose.msra.mxu1 %v16203_v15  ;;  %v1227_v10 = vld [vmem:[%s17872_s12 + $0x1bc0] sm:$0xff]  ;;  %v1212_v15 = vld [vmem:[%s17872_s12 + $0x1b48] sm:$0xff] }
 0x688   : > { %13680 = vmatprep.subr.bf16.mxu0 %v16234_v32  ;;  %13721 = vmatprep.subr.bf16.mxu1 %v16236_v17  ;;  %v1228_v32 = vld [vmem:[%s17872_s12 + $0x1bc8] sm:$0xff]  ;;  %v16329_v17 = vcombine.low %v1179_v25, %v1195_v55  ;;  %v16362_v22 = vcombine.high %v1211_v8, %v1227_v10 }
 0x689   : > { %v16364_v6 = vcombine.high %v1212_v15, %v1228_v32  ;;  %v16363_v58 = vcombine.low %v1212_v15, %v1228_v32 }
 0x68f   : > { %13681 = vmatpush1.bf16.xpose.msra.mxu0 %v16233_v19  ;;  %13722 = vmatpush1.bf16.xpose.msra.mxu1 %v16235_v57  ;;  %v1243_v19 = vld [vmem:[%s17872_s12 + $0x1c40] sm:$0xff] }
 0x690   : > { %13682 = vmatprep.subr.bf16.mxu0 %v16266_v45  ;;  %13723 = vmatprep.subr.bf16.mxu1 %v16268_v23  ;;  %v1259_v57 = vld [vmem:[%s17872_s12 + $0x1cc0] sm:$0xff] }
 0x691   : > { %v16394_v1 = vcombine.high %v1243_v19, %v1259_v57 }
 0x697   : > { %13683 = vmatpush1.bf16.xpose.msra.mxu0 %v16265_v51  ;;  %13724 = vmatpush1.bf16.xpose.msra.mxu1 %v16267_v54 }
 0x698   : > { %13684 = vmatprep.subr.bf16.mxu0 %v16298_v0  ;;  %13725 = vmatprep.subr.bf16.mxu1 %v16300_v18  ;;  %v16361_v0 = vcombine.low %v1211_v8, %v1227_v10  ;;  %v1292_v8 = vld [vmem:[%s17872_s12 + $0x1dc8] sm:$0xff]  ;;  %v16393_v10 = vcombine.low %v1243_v19, %v1259_v57  ;;  %v1339_v19 = vld [vmem:[%s17872_s12 + $0x1f40] sm:$0xff] }
 0x699   : > { %v1355_v57 = vld [vmem:[%s17872_s12 + $0x1fc0] sm:$0xff] }
 0x69f   : > { %13685 = vmatpush1.bf16.xpose.msra.mxu0 %v16297_v21  ;;  %13726 = vmatpush1.bf16.xpose.msra.mxu1 %v16299_v9  ;;  %v16396_v9 = vcombine.high %v1244_v59, %v1260_v46 }
 0x6a0   : > { %13686 = vmatprep.subr.bf16.mxu0 %v16330_v37  ;;  %13727 = vmatprep.subr.bf16.mxu1 %v16332_v4  ;;  %v1291_v37 = vld [vmem:[%s17872_s12 + $0x1dc0] sm:$0xff]  ;;  %v1276_v4 = vld [vmem:[%s17872_s12 + $0x1d48] sm:$0xff] }
 0x6a1   : > { %v16428_v32 = vcombine.high %v1276_v4, %v1292_v8 }
 0x6a7   : > { %13687 = vmatpush1.bf16.xpose.msra.mxu0 %v16329_v17  ;;  %13728 = vmatpush1.bf16.xpose.msra.mxu1 %v16331_v13  ;;  %v16395_v17 = vcombine.low %v1244_v59, %v1260_v46  ;;  %v1307_v13 = vld [vmem:[%s17872_s12 + $0x1e40] sm:$0xff]  ;;  %v1340_v59 = vld [vmem:[%s17872_s12 + $0x1f48] sm:$0xff] }
 0x6a8   : > { %13688 = vmatprep.subr.bf16.mxu0 %v16362_v22  ;;  %13729 = vmatprep.subr.bf16.mxu1 %v16364_v6  ;;  %v1323_v22 = vld [vmem:[%s17872_s12 + $0x1ec0] sm:$0xff]  ;;  %v1308_v6 = vld [vmem:[%s17872_s12 + $0x1e48] sm:$0xff] }
 0x6a9   : > { %v13536_v7 = vpop.f32.mrb[40].mxu0  ;;  %v13577_v23 = vpop.f32.mrb[40].mxu1  ;;  %v1356_v46 = vld [vmem:[%s17872_s12 + $0x1fc8] sm:$0xff] }
 0x6aa   : > { %v13537_v45 = vadd.f32 %v13536_v7, %v18918_v63  ;;  %v13538_v43 = vpop.f32.mrb[41].mxu0  ;;  %v13579_v51 = vpop.f32.mrb[41].mxu1  ;;  %v1324_v7 = vld [vmem:[%s17872_s12 + $0x1ec8] sm:$0xff] }
 0x6ab   : > { %v13539_v31 = vadd.f32 %v13538_v43, %v18920_v12  ;;  %v13540_v54 = vpop.f32.mrb[42].mxu0  ;;  %v13581_v25 = vpop.f32.mrb[42].mxu1  ;;  %v1275_v12 = vld [vmem:[%s17872_s12 + $0x1d40] sm:$0xff]  ;;  %v16458_v43 = vcombine.high %v1307_v13, %v1323_v22 }
 0x6ac   : > { %v18992_v18 = vadd.f32 %v13577_v23, %v13537_v45  ;;  %v13541_v55 = vpop.f32.mrb[43].mxu0  ;;  %v13582_v21 = vpop.f32.mrb[43].mxu1  ;;  %v16426_v15 = vcombine.high %v1275_v12, %v1291_v37  ;;  %v16425_v45 = vcombine.low %v1275_v12, %v1291_v37  ;;  %v16427_v23 = vcombine.low %v1276_v4, %v1292_v8  ;;  %v893_v8 = vld [vmem:[%s17872_s12 + $0x1150] sm:$0xff] }
 0x6ad   : > { %v18994_v63 = vadd.f32 %v13579_v51, %v13539_v31  ;;  %v16460_v31 = vcombine.high %v1308_v6, %v1324_v7  ;;  %v16457_v51 = vcombine.low %v1307_v13, %v1323_v22  ;;  %v16459_v54 = vcombine.low %v1308_v6, %v1324_v7  ;;  %v861_v55 = vld [vmem:[%s17872_s12 + $0x1050] sm:$0xff]  ;;  %v878_v21 = vld [vmem:[%s17872_s12 + $0x10d8] sm:$0xff] }
 0x6ae   : > { %v16492_v25 = vcombine.high %v1340_v59, %v1356_v46  ;;  %v16491_v12 = vcombine.low %v1340_v59, %v1356_v46  ;;  %v925_v7 = vld [vmem:[%s17872_s12 + $0x1250] sm:$0xff] }
 0x6af   : > { %13689 = vmatpush1.bf16.xpose.msra.mxu0 %v16361_v0  ;;  %13730 = vmatpush1.bf16.xpose.msra.mxu1 %v16363_v58  ;;  %v16490_v0 = vcombine.high %v1339_v19, %v1355_v57  ;;  %v877_v58 = vld [vmem:[%s17872_s12 + $0x10d0] sm:$0xff] }
 0x6b0   : > { %13690 = vmatprep.subr.bf16.mxu0 %v16394_v1  ;;  %13731 = vmatprep.subr.bf16.mxu1 %v16396_v9  ;;  %v862_v1 = vld [vmem:[%s17872_s12 + $0x1058] sm:$0xff]  ;;  %v16489_v9 = vcombine.low %v1339_v19, %v1355_v57  ;;  %v16014_v37 = vcombine.high %v861_v55, %v877_v58  ;;  %v957_v46 = vld [vmem:[%s17872_s12 + $0x1350] sm:$0xff] }
 0x6b1   : > { %v16016_v4 = vcombine.high %v862_v1, %v878_v21  ;;  %v16015_v13 = vcombine.low %v862_v1, %v878_v21  ;;  %v989_v21 = vld [vmem:[%s17872_s12 + $0x1450] sm:$0xff] }
 0x6b7   : > { %13691 = vmatpush1.bf16.xpose.msra.mxu0 %v16393_v10  ;;  %13732 = vmatpush1.bf16.xpose.msra.mxu1 %v16395_v17  ;;  %v909_v10 = vld [vmem:[%s17872_s12 + $0x11d0] sm:$0xff]  ;;  %v894_v17 = vld [vmem:[%s17872_s12 + $0x1158] sm:$0xff] }
 0x6b8   : > { %13692 = vmatprep.subr.bf16.mxu0 %v16426_v15  ;;  %13733 = vmatprep.subr.bf16.mxu1 %v16428_v32  ;;  %v910_v15 = vld [vmem:[%s17872_s12 + $0x11d8] sm:$0xff]  ;;  %v16013_v32 = vcombine.low %v861_v55, %v877_v58  ;;  %v16046_v22 = vcombine.high %v893_v8, %v909_v10 }
 0x6b9   : > { %v16048_v6 = vcombine.high %v894_v17, %v910_v15  ;;  %v16047_v19 = vcombine.low %v894_v17, %v910_v15  ;;  %v1021_v15 = vld [vmem:[%s17872_s12 + $0x1550] sm:$0xff] }
 0x6bf   : > { %13693 = vmatpush1.bf16.xpose.msra.mxu0 %v16425_v45  ;;  %13734 = vmatpush1.bf16.xpose.msra.mxu1 %v16427_v23  ;;  %v941_v45 = vld [vmem:[%s17872_s12 + $0x12d0] sm:$0xff]  ;;  %v926_v23 = vld [vmem:[%s17872_s12 + $0x1258] sm:$0xff] }
 0x6c0   : > { %13694 = vmatprep.subr.bf16.mxu0 %v16458_v43  ;;  %13735 = vmatprep.subr.bf16.mxu1 %v16460_v31  ;;  %v942_v43 = vld [vmem:[%s17872_s12 + $0x12d8] sm:$0xff]  ;;  %v16045_v31 = vcombine.low %v893_v8, %v909_v10  ;;  %v16078_v57 = vcombine.high %v925_v7, %v941_v45 }
 0x6c1   : > { %v16080_v59 = vcombine.high %v926_v23, %v942_v43  ;;  %v16079_v55 = vcombine.low %v926_v23, %v942_v43  ;;  %v1053_v43 = vld [vmem:[%s17872_s12 + $0x1650] sm:$0xff] }
 0x6c7   : > { %13695 = vmatpush1.bf16.xpose.msra.mxu0 %v16457_v51  ;;  %13736 = vmatpush1.bf16.xpose.msra.mxu1 %v16459_v54  ;;  %v973_v51 = vld [vmem:[%s17872_s12 + $0x13d0] sm:$0xff]  ;;  %v958_v54 = vld [vmem:[%s17872_s12 + $0x1358] sm:$0xff] }
 0x6c8   : > { %13696 = vmatprep.subr.bf16.mxu0 %v16490_v0  ;;  %13737 = vmatprep.subr.bf16.mxu1 %v16492_v25  ;;  %v974_v0 = vld [vmem:[%s17872_s12 + $0x13d8] sm:$0xff]  ;;  %v16077_v25 = vcombine.low %v925_v7, %v941_v45  ;;  %v16110_v58 = vcombine.high %v957_v46, %v973_v51 }
 0x6c9   : > { %v16112_v1 = vcombine.high %v958_v54, %v974_v0  ;;  %v16111_v8 = vcombine.low %v958_v54, %v974_v0  ;;  %v1085_v0 = vld [vmem:[%s17872_s12 + $0x1750] sm:$0xff] }
 0x6cf   : > { %13697 = vmatpush1.bf16.xpose.msra.mxu0 %v16489_v9  ;;  %13738 = vmatpush1.bf16.xpose.msra.mxu1 %v16491_v12  ;;  %v1005_v9 = vld [vmem:[%s17872_s12 + $0x14d0] sm:$0xff]  ;;  %v990_v12 = vld [vmem:[%s17872_s12 + $0x1458] sm:$0xff] }
 0x6d0   : > { %13748 = vmatprep.subr.bf16.mxu0 %v16014_v37  ;;  %13789 = vmatprep.subr.bf16.mxu1 %v16016_v4  ;;  %v1006_v37 = vld [vmem:[%s17872_s12 + $0x14d8] sm:$0xff]  ;;  %v16109_v4 = vcombine.low %v957_v46, %v973_v51  ;;  %v16142_v10 = vcombine.high %v989_v21, %v1005_v9 }
 0x6d1   : > { %v16144_v17 = vcombine.high %v990_v12, %v1006_v37  ;;  %v16143_v7 = vcombine.low %v990_v12, %v1006_v37  ;;  %v1117_v37 = vld [vmem:[%s17872_s12 + $0x1850] sm:$0xff] }
 0x6d6   : > { %13699 = vmatmul.mubr.bf16.vlgmr.msra.gmra.mrb[48].mxu0 %v18345_v56  ;;  %13740 = vmatmul.mubr.bf16.vlgmr.msra.gmra.mrb[48].mxu1 %v18352_v61 }
 0x6d7   : > { %13749 = vmatpush1.bf16.xpose.msra.mxu0 %v16013_v32  ;;  %13790 = vmatpush1.bf16.xpose.msra.mxu1 %v16015_v13  ;;  %v1037_v32 = vld [vmem:[%s17872_s12 + $0x15d0] sm:$0xff]  ;;  %v1022_v13 = vld [vmem:[%s17872_s12 + $0x1558] sm:$0xff] }
 0x6d8   : > { %13750 = vmatprep.subr.bf16.mxu0 %v16046_v22  ;;  %13791 = vmatprep.subr.bf16.mxu1 %v16048_v6  ;;  %v1038_v22 = vld [vmem:[%s17872_s12 + $0x15d8] sm:$0xff]  ;;  %v16141_v6 = vcombine.low %v989_v21, %v1005_v9  ;;  %v16174_v45 = vcombine.high %v1021_v15, %v1037_v32 }
 0x6d9   : > { %13780 = vmatprep.mubr.bf16.mxu0 %v18357_v2  ;;  %13821 = vmatprep.mubr.bf16.mxu1 %v18360_v3  ;;  %v16176_v23 = vcombine.high %v1022_v13, %v1038_v22  ;;  %v16175_v46 = vcombine.low %v1022_v13, %v1038_v22  ;;  %v1149_v22 = vld [vmem:[%s17872_s12 + $0x1950] sm:$0xff] }
 0x6df   : > { %13751 = vmatpush1.bf16.xpose.msra.mxu0 %v16045_v31  ;;  %13792 = vmatpush1.bf16.xpose.msra.mxu1 %v16047_v19  ;;  %v1069_v31 = vld [vmem:[%s17872_s12 + $0x16d0] sm:$0xff]  ;;  %v1054_v19 = vld [vmem:[%s17872_s12 + $0x1658] sm:$0xff] }
 0x6e0   : > { %13752 = vmatprep.subr.bf16.mxu0 %v16078_v57  ;;  %13793 = vmatprep.subr.bf16.mxu1 %v16080_v59  ;;  %v1070_v57 = vld [vmem:[%s17872_s12 + $0x16d8] sm:$0xff]  ;;  %v16173_v59 = vcombine.low %v1021_v15, %v1037_v32  ;;  %v16206_v51 = vcombine.high %v1053_v43, %v1069_v31 }
 0x6e1   : > { %v16208_v54 = vcombine.high %v1054_v19, %v1070_v57  ;;  %v16207_v21 = vcombine.low %v1054_v19, %v1070_v57  ;;  %v1181_v57 = vld [vmem:[%s17872_s12 + $0x1a50] sm:$0xff] }
 0x6e7   : > { %13753 = vmatpush1.bf16.xpose.msra.mxu0 %v16077_v25  ;;  %13794 = vmatpush1.bf16.xpose.msra.mxu1 %v16079_v55  ;;  %v1101_v25 = vld [vmem:[%s17872_s12 + $0x17d0] sm:$0xff]  ;;  %v1086_v55 = vld [vmem:[%s17872_s12 + $0x1758] sm:$0xff] }
 0x6e8   : > { %13754 = vmatprep.subr.bf16.mxu0 %v16110_v58  ;;  %13795 = vmatprep.subr.bf16.mxu1 %v16112_v1  ;;  %v1102_v58 = vld [vmem:[%s17872_s12 + $0x17d8] sm:$0xff]  ;;  %v16205_v1 = vcombine.low %v1053_v43, %v1069_v31  ;;  %v16238_v9 = vcombine.high %v1085_v0, %v1101_v25 }
 0x6e9   : > { %v16240_v12 = vcombine.high %v1086_v55, %v1102_v58  ;;  %v16239_v15 = vcombine.low %v1086_v55, %v1102_v58  ;;  %v1213_v58 = vld [vmem:[%s17872_s12 + $0x1b50] sm:$0xff] }
 0x6ef   : > { %13755 = vmatpush1.bf16.xpose.msra.mxu0 %v16109_v4  ;;  %13796 = vmatpush1.bf16.xpose.msra.mxu1 %v16111_v8  ;;  %v1133_v4 = vld [vmem:[%s17872_s12 + $0x18d0] sm:$0xff]  ;;  %v1118_v8 = vld [vmem:[%s17872_s12 + $0x1858] sm:$0xff] }
 0x6f0   : > { %13756 = vmatprep.subr.bf16.mxu0 %v16142_v10  ;;  %13797 = vmatprep.subr.bf16.mxu1 %v16144_v17  ;;  %v1134_v10 = vld [vmem:[%s17872_s12 + $0x18d8] sm:$0xff]  ;;  %v16237_v17 = vcombine.low %v1085_v0, %v1101_v25  ;;  %v16270_v32 = vcombine.high %v1117_v37, %v1133_v4 }
 0x6f1   : > { %v16272_v13 = vcombine.high %v1118_v8, %v1134_v10  ;;  %v16271_v43 = vcombine.low %v1118_v8, %v1134_v10 }
 0x6f7   : > { %13757 = vmatpush1.bf16.xpose.msra.mxu0 %v16141_v6  ;;  %13798 = vmatpush1.bf16.xpose.msra.mxu1 %v16143_v7  ;;  %v1165_v6 = vld [vmem:[%s17872_s12 + $0x19d0] sm:$0xff]  ;;  %v1150_v7 = vld [vmem:[%s17872_s12 + $0x1958] sm:$0xff] }
 0x6f8   : > { %13758 = vmatprep.subr.bf16.mxu0 %v16174_v45  ;;  %13799 = vmatprep.subr.bf16.mxu1 %v16176_v23  ;;  %v1166_v45 = vld [vmem:[%s17872_s12 + $0x19d8] sm:$0xff]  ;;  %v16269_v23 = vcombine.low %v1117_v37, %v1133_v4  ;;  %v16302_v31 = vcombine.high %v1149_v22, %v1165_v6 }
 0x6f9   : > { %v16304_v19 = vcombine.high %v1150_v7, %v1166_v45  ;;  %v16303_v0 = vcombine.low %v1150_v7, %v1166_v45  ;;  %v1262_v7 = vld [vmem:[%s17872_s12 + $0x1cd8] sm:$0xff] }
 0x6ff   : > { %13759 = vmatpush1.bf16.xpose.msra.mxu0 %v16173_v59  ;;  %13800 = vmatpush1.bf16.xpose.msra.mxu1 %v16175_v46  ;;  %v1197_v59 = vld [vmem:[%s17872_s12 + $0x1ad0] sm:$0xff]  ;;  %v1182_v46 = vld [vmem:[%s17872_s12 + $0x1a58] sm:$0xff] }
 0x700   : > { %13760 = vmatprep.subr.bf16.mxu0 %v16206_v51  ;;  %13801 = vmatprep.subr.bf16.mxu1 %v16208_v54  ;;  %v1198_v51 = vld [vmem:[%s17872_s12 + $0x1ad8] sm:$0xff]  ;;  %v16301_v54 = vcombine.low %v1149_v22, %v1165_v6  ;;  %v16334_v25 = vcombine.high %v1181_v57, %v1197_v59 }
 0x701   : > { %v16336_v55 = vcombine.high %v1182_v46, %v1198_v51  ;;  %v16335_v37 = vcombine.low %v1182_v46, %v1198_v51  ;;  %v1246_v6 = vld [vmem:[%s17872_s12 + $0x1c58] sm:$0xff] }
 0x707   : > { %13761 = vmatpush1.bf16.xpose.msra.mxu0 %v16205_v1  ;;  %13802 = vmatpush1.bf16.xpose.msra.mxu1 %v16207_v21  ;;  %v1229_v1 = vld [vmem:[%s17872_s12 + $0x1bd0] sm:$0xff]  ;;  %v1214_v21 = vld [vmem:[%s17872_s12 + $0x1b58] sm:$0xff] }
 0x708   : > { %13762 = vmatprep.subr.bf16.mxu0 %v16238_v9  ;;  %13803 = vmatprep.subr.bf16.mxu1 %v16240_v12  ;;  %v1230_v9 = vld [vmem:[%s17872_s12 + $0x1bd8] sm:$0xff]  ;;  %v16333_v12 = vcombine.low %v1181_v57, %v1197_v59  ;;  %v16366_v4 = vcombine.high %v1213_v58, %v1229_v1 }
 0x709   : > { %v16368_v8 = vcombine.high %v1214_v21, %v1230_v9  ;;  %v16367_v46 = vcombine.low %v1214_v21, %v1230_v9 }
 0x70f   : > { %13763 = vmatpush1.bf16.xpose.msra.mxu0 %v16237_v17  ;;  %13804 = vmatpush1.bf16.xpose.msra.mxu1 %v16239_v15  ;;  %v1245_v17 = vld [vmem:[%s17872_s12 + $0x1c50] sm:$0xff] }
 0x710   : > { %13764 = vmatprep.subr.bf16.mxu0 %v16270_v32  ;;  %13805 = vmatprep.subr.bf16.mxu1 %v16272_v13  ;;  %v1261_v15 = vld [vmem:[%s17872_s12 + $0x1cd0] sm:$0xff] }
 0x711   : > { %v16398_v51 = vcombine.high %v1245_v17, %v1261_v15 }
 0x717   : > { %13765 = vmatpush1.bf16.xpose.msra.mxu0 %v16269_v23  ;;  %13806 = vmatpush1.bf16.xpose.msra.mxu1 %v16271_v43 }
 0x718   : > { %13766 = vmatprep.subr.bf16.mxu0 %v16302_v31  ;;  %13807 = vmatprep.subr.bf16.mxu1 %v16304_v19  ;;  %v16365_v31 = vcombine.low %v1213_v58, %v1229_v1  ;;  %v1294_v58 = vld [vmem:[%s17872_s12 + $0x1dd8] sm:$0xff]  ;;  %v16397_v1 = vcombine.low %v1245_v17, %v1261_v15  ;;  %v1341_v17 = vld [vmem:[%s17872_s12 + $0x1f50] sm:$0xff] }
 0x719   : > { %v1357_v15 = vld [vmem:[%s17872_s12 + $0x1fd0] sm:$0xff] }
 0x71f   : > { %13767 = vmatpush1.bf16.xpose.msra.mxu0 %v16301_v54  ;;  %13808 = vmatpush1.bf16.xpose.msra.mxu1 %v16303_v0  ;;  %v16400_v0 = vcombine.high %v1246_v6, %v1262_v7 }
 0x720   : > { %13768 = vmatprep.subr.bf16.mxu0 %v16334_v25  ;;  %13809 = vmatprep.subr.bf16.mxu1 %v16336_v55  ;;  %v1293_v25 = vld [vmem:[%s17872_s12 + $0x1dd0] sm:$0xff]  ;;  %v1278_v55 = vld [vmem:[%s17872_s12 + $0x1d58] sm:$0xff] }
 0x721   : > { %v16432_v9 = vcombine.high %v1278_v55, %v1294_v58 }
 0x727   : > { %13769 = vmatpush1.bf16.xpose.msra.mxu0 %v16333_v12  ;;  %13810 = vmatpush1.bf16.xpose.msra.mxu1 %v16335_v37  ;;  %v16399_v12 = vcombine.low %v1246_v6, %v1262_v7  ;;  %v1309_v37 = vld [vmem:[%s17872_s12 + $0x1e50] sm:$0xff]  ;;  %v1342_v6 = vld [vmem:[%s17872_s12 + $0x1f58] sm:$0xff] }
 0x728   : > { %13770 = vmatprep.subr.bf16.mxu0 %v16366_v4  ;;  %13811 = vmatprep.subr.bf16.mxu1 %v16368_v8  ;;  %v1325_v4 = vld [vmem:[%s17872_s12 + $0x1ed0] sm:$0xff]  ;;  %v1310_v8 = vld [vmem:[%s17872_s12 + $0x1e58] sm:$0xff] }
 0x729   : > { %v13618_v10 = vpop.f32.mrb[44].mxu0  ;;  %v13659_v13 = vpop.f32.mrb[44].mxu1  ;;  %v1358_v7 = vld [vmem:[%s17872_s12 + $0x1fd8] sm:$0xff] }
 0x72a   : > { %v13619_v32 = vadd.f32 %v13618_v10, %v18992_v18  ;;  %v13620_v22 = vpop.f32.mrb[45].mxu0  ;;  %v13661_v23 = vpop.f32.mrb[45].mxu1  ;;  %v1326_v10 = vld [vmem:[%s17872_s12 + $0x1ed8] sm:$0xff] }
 0x72b   : > { %v13621_v45 = vadd.f32 %v13620_v22, %v18994_v63  ;;  %v13622_v43 = vpop.f32.mrb[46].mxu0  ;;  %v13663_v57 = vpop.f32.mrb[46].mxu1  ;;  %v1277_v63 = vld [vmem:[%s17872_s12 + $0x1d50] sm:$0xff]  ;;  %v16462_v22 = vcombine.high %v1309_v37, %v1325_v4 }
 0x72c   : > { %v19066_v19 = vadd.f32 %v13659_v13, %v13619_v32  ;;  %v13623_v59 = vpop.f32.mrb[47].mxu0  ;;  %v13664_v54 = vpop.f32.mrb[47].mxu1  ;;  %v16430_v21 = vcombine.high %v1277_v63, %v1293_v25  ;;  %v16429_v32 = vcombine.low %v1277_v63, %v1293_v25  ;;  %v16431_v13 = vcombine.low %v1278_v55, %v1294_v58  ;;  %v895_v58 = vld [vmem:[%s17872_s12 + $0x1160] sm:$0xff] }
 0x72d   : > { %v19068_v18 = vadd.f32 %v13661_v23, %v13621_v45  ;;  %v16464_v45 = vcombine.high %v1310_v8, %v1326_v10  ;;  %v16461_v23 = vcombine.low %v1309_v37, %v1325_v4  ;;  %v16463_v43 = vcombine.low %v1310_v8, %v1326_v10  ;;  %v863_v59 = vld [vmem:[%s17872_s12 + $0x1060] sm:$0xff]  ;;  %v880_v54 = vld [vmem:[%s17872_s12 + $0x10e8] sm:$0xff] }
 0x72e   : > { %v16496_v57 = vcombine.high %v1342_v6, %v1358_v7  ;;  %v16495_v63 = vcombine.low %v1342_v6, %v1358_v7  ;;  %v927_v10 = vld [vmem:[%s17872_s12 + $0x1260] sm:$0xff] }
 0x72f   : > { %13771 = vmatpush1.bf16.xpose.msra.mxu0 %v16365_v31  ;;  %13812 = vmatpush1.bf16.xpose.msra.mxu1 %v16367_v46  ;;  %v16494_v31 = vcombine.high %v1341_v17, %v1357_v15  ;;  %v879_v46 = vld [vmem:[%s17872_s12 + $0x10e0] sm:$0xff] }
 0x730   : > { %13772 = vmatprep.subr.bf16.mxu0 %v16398_v51  ;;  %13813 = vmatprep.subr.bf16.mxu1 %v16400_v0  ;;  %v864_v51 = vld [vmem:[%s17872_s12 + $0x1068] sm:$0xff]  ;;  %v16493_v0 = vcombine.low %v1341_v17, %v1357_v15  ;;  %v16018_v25 = vcombine.high %v863_v59, %v879_v46  ;;  %v959_v7 = vld [vmem:[%s17872_s12 + $0x1360] sm:$0xff] }
 0x731   : > { %v16020_v55 = vcombine.high %v864_v51, %v880_v54  ;;  %v16019_v37 = vcombine.low %v864_v51, %v880_v54  ;;  %v991_v54 = vld [vmem:[%s17872_s12 + $0x1460] sm:$0xff] }
 0x737   : > { %13773 = vmatpush1.bf16.xpose.msra.mxu0 %v16397_v1  ;;  %13814 = vmatpush1.bf16.xpose.msra.mxu1 %v16399_v12  ;;  %v911_v1 = vld [vmem:[%s17872_s12 + $0x11e0] sm:$0xff]  ;;  %v896_v12 = vld [vmem:[%s17872_s12 + $0x1168] sm:$0xff] }
 0x738   : > { %13774 = vmatprep.subr.bf16.mxu0 %v16430_v21  ;;  %13815 = vmatprep.subr.bf16.mxu1 %v16432_v9  ;;  %v912_v21 = vld [vmem:[%s17872_s12 + $0x11e8] sm:$0xff]  ;;  %v16017_v9 = vcombine.low %v863_v59, %v879_v46  ;;  %v16050_v4 = vcombine.high %v895_v58, %v911_v1 }
 0x739   : > { %v16052_v8 = vcombine.high %v896_v12, %v912_v21  ;;  %v16051_v17 = vcombine.low %v896_v12, %v912_v21  ;;  %v1023_v21 = vld [vmem:[%s17872_s12 + $0x1560] sm:$0xff] }
 0x73f   : > { %13775 = vmatpush1.bf16.xpose.msra.mxu0 %v16429_v32  ;;  %13816 = vmatpush1.bf16.xpose.msra.mxu1 %v16431_v13  ;;  %v943_v32 = vld [vmem:[%s17872_s12 + $0x12e0] sm:$0xff]  ;;  %v928_v13 = vld [vmem:[%s17872_s12 + $0x1268] sm:$0xff] }
 0x740   : > { %13776 = vmatprep.subr.bf16.mxu0 %v16462_v22  ;;  %13817 = vmatprep.subr.bf16.mxu1 %v16464_v45  ;;  %v944_v22 = vld [vmem:[%s17872_s12 + $0x12e8] sm:$0xff]  ;;  %v16049_v45 = vcombine.low %v895_v58, %v911_v1  ;;  %v16082_v15 = vcombine.high %v927_v10, %v943_v32 }
 0x741   : > { %v16084_v6 = vcombine.high %v928_v13, %v944_v22  ;;  %v16083_v59 = vcombine.low %v928_v13, %v944_v22  ;;  %v1055_v22 = vld [vmem:[%s17872_s12 + $0x1660] sm:$0xff] }
 0x747   : > { %13777 = vmatpush1.bf16.xpose.msra.mxu0 %v16461_v23  ;;  %13818 = vmatpush1.bf16.xpose.msra.mxu1 %v16463_v43  ;;  %v975_v23 = vld [vmem:[%s17872_s12 + $0x13e0] sm:$0xff]  ;;  %v960_v43 = vld [vmem:[%s17872_s12 + $0x1368] sm:$0xff] }
 0x748   : > { %13778 = vmatprep.subr.bf16.mxu0 %v16494_v31  ;;  %13819 = vmatprep.subr.bf16.mxu1 %v16496_v57  ;;  %v976_v31 = vld [vmem:[%s17872_s12 + $0x13e8] sm:$0xff]  ;;  %v16081_v57 = vcombine.low %v927_v10, %v943_v32  ;;  %v16114_v46 = vcombine.high %v959_v7, %v975_v23 }
 0x749   : > { %v16116_v51 = vcombine.high %v960_v43, %v976_v31  ;;  %v16115_v58 = vcombine.low %v960_v43, %v976_v31  ;;  %v1087_v31 = vld [vmem:[%s17872_s12 + $0x1760] sm:$0xff] }
 0x74f   : > { %13779 = vmatpush1.bf16.xpose.msra.mxu0 %v16493_v0  ;;  %13820 = vmatpush1.bf16.xpose.msra.mxu1 %v16495_v63  ;;  %v1007_v0 = vld [vmem:[%s17872_s12 + $0x14e0] sm:$0xff]  ;;  %v992_v63 = vld [vmem:[%s17872_s12 + $0x1468] sm:$0xff] }
 0x750   : > { %13830 = vmatprep.subr.bf16.mxu0 %v16018_v25  ;;  %13871 = vmatprep.subr.bf16.mxu1 %v16020_v55  ;;  %v1008_v25 = vld [vmem:[%s17872_s12 + $0x14e8] sm:$0xff]  ;;  %v16113_v55 = vcombine.low %v959_v7, %v975_v23  ;;  %v16146_v1 = vcombine.high %v991_v54, %v1007_v0 }
 0x751   : > { %v16148_v12 = vcombine.high %v992_v63, %v1008_v25  ;;  %v16147_v10 = vcombine.low %v992_v63, %v1008_v25  ;;  %v1119_v25 = vld [vmem:[%s17872_s12 + $0x1860] sm:$0xff] }
 0x756   : > { %13781 = vmatmul.mubr.bf16.vlgmr.msra.gmra.mrb[52].mxu0 %v18439_v29  ;;  %13822 = vmatmul.mubr.bf16.vlgmr.msra.gmra.mrb[52].mxu1 %v18446_v39 }
 0x757   : > { %13831 = vmatpush1.bf16.xpose.msra.mxu0 %v16017_v9  ;;  %13872 = vmatpush1.bf16.xpose.msra.mxu1 %v16019_v37  ;;  %v1039_v9 = vld [vmem:[%s17872_s12 + $0x15e0] sm:$0xff]  ;;  %v1024_v37 = vld [vmem:[%s17872_s12 + $0x1568] sm:$0xff] }
 0x758   : > { %13832 = vmatprep.subr.bf16.mxu0 %v16050_v4  ;;  %13873 = vmatprep.subr.bf16.mxu1 %v16052_v8  ;;  %v1040_v4 = vld [vmem:[%s17872_s12 + $0x15e8] sm:$0xff]  ;;  %v16145_v8 = vcombine.low %v991_v54, %v1007_v0  ;;  %v16178_v32 = vcombine.high %v1023_v21, %v1039_v9 }
 0x759   : > { %13862 = vmatprep.mubr.bf16.mxu0 %v18451_v52  ;;  %13903 = vmatprep.mubr.bf16.mxu1 %v18454_v53  ;;  %v16180_v13 = vcombine.high %v1024_v37, %v1040_v4  ;;  %v16179_v7 = vcombine.low %v1024_v37, %v1040_v4  ;;  %v1151_v4 = vld [vmem:[%s17872_s12 + $0x1960] sm:$0xff] }
 0x75f   : > { %13833 = vmatpush1.bf16.xpose.msra.mxu0 %v16049_v45  ;;  %13874 = vmatpush1.bf16.xpose.msra.mxu1 %v16051_v17  ;;  %v1071_v45 = vld [vmem:[%s17872_s12 + $0x16e0] sm:$0xff]  ;;  %v1056_v17 = vld [vmem:[%s17872_s12 + $0x1668] sm:$0xff] }
 0x760   : > { %13834 = vmatprep.subr.bf16.mxu0 %v16082_v15  ;;  %13875 = vmatprep.subr.bf16.mxu1 %v16084_v6  ;;  %v1072_v15 = vld [vmem:[%s17872_s12 + $0x16e8] sm:$0xff]  ;;  %v16177_v6 = vcombine.low %v1023_v21, %v1039_v9  ;;  %v16210_v23 = vcombine.high %v1055_v22, %v1071_v45 }
 0x761   : > { %v16212_v43 = vcombine.high %v1056_v17, %v1072_v15  ;;  %v16211_v54 = vcombine.low %v1056_v17, %v1072_v15  ;;  %v1183_v15 = vld [vmem:[%s17872_s12 + $0x1a60] sm:$0xff] }
 0x767   : > { %13835 = vmatpush1.bf16.xpose.msra.mxu0 %v16081_v57  ;;  %13876 = vmatpush1.bf16.xpose.msra.mxu1 %v16083_v59  ;;  %v1103_v57 = vld [vmem:[%s17872_s12 + $0x17e0] sm:$0xff]  ;;  %v1088_v59 = vld [vmem:[%s17872_s12 + $0x1768] sm:$0xff] }
 0x768   : > { %13836 = vmatprep.subr.bf16.mxu0 %v16114_v46  ;;  %13877 = vmatprep.subr.bf16.mxu1 %v16116_v51  ;;  %v1104_v46 = vld [vmem:[%s17872_s12 + $0x17e8] sm:$0xff]  ;;  %v16209_v51 = vcombine.low %v1055_v22, %v1071_v45  ;;  %v16242_v0 = vcombine.high %v1087_v31, %v1103_v57 }
 0x769   : > { %v16244_v63 = vcombine.high %v1088_v59, %v1104_v46  ;;  %v16243_v21 = vcombine.low %v1088_v59, %v1104_v46  ;;  %v1215_v46 = vld [vmem:[%s17872_s12 + $0x1b60] sm:$0xff] }
 0x76f   : > { %13837 = vmatpush1.bf16.xpose.msra.mxu0 %v16113_v55  ;;  %13878 = vmatpush1.bf16.xpose.msra.mxu1 %v16115_v58  ;;  %v1135_v55 = vld [vmem:[%s17872_s12 + $0x18e0] sm:$0xff]  ;;  %v1120_v58 = vld [vmem:[%s17872_s12 + $0x1868] sm:$0xff] }
 0x770   : > { %13838 = vmatprep.subr.bf16.mxu0 %v16146_v1  ;;  %13879 = vmatprep.subr.bf16.mxu1 %v16148_v12  ;;  %v1136_v1 = vld [vmem:[%s17872_s12 + $0x18e8] sm:$0xff]  ;;  %v16241_v12 = vcombine.low %v1087_v31, %v1103_v57  ;;  %v16274_v9 = vcombine.high %v1119_v25, %v1135_v55 }
 0x771   : > { %v16276_v37 = vcombine.high %v1120_v58, %v1136_v1  ;;  %v16275_v22 = vcombine.low %v1120_v58, %v1136_v1 }
 0x777   : > { %13839 = vmatpush1.bf16.xpose.msra.mxu0 %v16145_v8  ;;  %13880 = vmatpush1.bf16.xpose.msra.mxu1 %v16147_v10  ;;  %v1167_v8 = vld [vmem:[%s17872_s12 + $0x19e0] sm:$0xff]  ;;  %v1152_v10 = vld [vmem:[%s17872_s12 + $0x1968] sm:$0xff] }
 0x778   : > { %13840 = vmatprep.subr.bf16.mxu0 %v16178_v32  ;;  %13881 = vmatprep.subr.bf16.mxu1 %v16180_v13  ;;  %v1168_v32 = vld [vmem:[%s17872_s12 + $0x19e8] sm:$0xff]  ;;  %v16273_v13 = vcombine.low %v1119_v25, %v1135_v55  ;;  %v16306_v45 = vcombine.high %v1151_v4, %v1167_v8 }
 0x779   : > { %v16308_v17 = vcombine.high %v1152_v10, %v1168_v32  ;;  %v16307_v31 = vcombine.low %v1152_v10, %v1168_v32  ;;  %v1264_v10 = vld [vmem:[%s17872_s12 + $0x1ce8] sm:$0xff] }
 0x77f   : > { %13841 = vmatpush1.bf16.xpose.msra.mxu0 %v16177_v6  ;;  %13882 = vmatpush1.bf16.xpose.msra.mxu1 %v16179_v7  ;;  %v1199_v6 = vld [vmem:[%s17872_s12 + $0x1ae0] sm:$0xff]  ;;  %v1184_v7 = vld [vmem:[%s17872_s12 + $0x1a68] sm:$0xff] }
 0x780   : > { %13842 = vmatprep.subr.bf16.mxu0 %v16210_v23  ;;  %13883 = vmatprep.subr.bf16.mxu1 %v16212_v43  ;;  %v1200_v23 = vld [vmem:[%s17872_s12 + $0x1ae8] sm:$0xff]  ;;  %v16305_v43 = vcombine.low %v1151_v4, %v1167_v8  ;;  %v16338_v57 = vcombine.high %v1183_v15, %v1199_v6 }
 0x781   : > { %v16340_v59 = vcombine.high %v1184_v7, %v1200_v23  ;;  %v16339_v25 = vcombine.low %v1184_v7, %v1200_v23  ;;  %v1248_v8 = vld [vmem:[%s17872_s12 + $0x1c68] sm:$0xff] }
 0x787   : > { %13843 = vmatpush1.bf16.xpose.msra.mxu0 %v16209_v51  ;;  %13884 = vmatpush1.bf16.xpose.msra.mxu1 %v16211_v54  ;;  %v1231_v51 = vld [vmem:[%s17872_s12 + $0x1be0] sm:$0xff]  ;;  %v1216_v54 = vld [vmem:[%s17872_s12 + $0x1b68] sm:$0xff] }
 0x788   : > { %13844 = vmatprep.subr.bf16.mxu0 %v16242_v0  ;;  %13885 = vmatprep.subr.bf16.mxu1 %v16244_v63  ;;  %v1232_v0 = vld [vmem:[%s17872_s12 + $0x1be8] sm:$0xff]  ;;  %v16337_v63 = vcombine.low %v1183_v15, %v1199_v6  ;;  %v16370_v55 = vcombine.high %v1215_v46, %v1231_v51 }
 0x789   : > { %v16372_v58 = vcombine.high %v1216_v54, %v1232_v0  ;;  %v16371_v7 = vcombine.low %v1216_v54, %v1232_v0 }
 0x78f   : > { %13845 = vmatpush1.bf16.xpose.msra.mxu0 %v16241_v12  ;;  %13886 = vmatpush1.bf16.xpose.msra.mxu1 %v16243_v21  ;;  %v1247_v12 = vld [vmem:[%s17872_s12 + $0x1c60] sm:$0xff] }
 0x790   : > { %13846 = vmatprep.subr.bf16.mxu0 %v16274_v9  ;;  %13887 = vmatprep.subr.bf16.mxu1 %v16276_v37  ;;  %v1263_v21 = vld [vmem:[%s17872_s12 + $0x1ce0] sm:$0xff] }
 0x791   : > { %v16402_v23 = vcombine.high %v1247_v12, %v1263_v21 }
 0x797   : > { %13847 = vmatpush1.bf16.xpose.msra.mxu0 %v16273_v13  ;;  %13888 = vmatpush1.bf16.xpose.msra.mxu1 %v16275_v22 }
 0x798   : > { %13848 = vmatprep.subr.bf16.mxu0 %v16306_v45  ;;  %13889 = vmatprep.subr.bf16.mxu1 %v16308_v17  ;;  %v16369_v45 = vcombine.low %v1215_v46, %v1231_v51  ;;  %v1296_v46 = vld [vmem:[%s17872_s12 + $0x1de8] sm:$0xff]  ;;  %v16401_v51 = vcombine.low %v1247_v12, %v1263_v21  ;;  %v1343_v12 = vld [vmem:[%s17872_s12 + $0x1f60] sm:$0xff] }
 0x799   : > { %v1359_v21 = vld [vmem:[%s17872_s12 + $0x1fe0] sm:$0xff] }
 0x79f   : > { %13849 = vmatpush1.bf16.xpose.msra.mxu0 %v16305_v43  ;;  %13890 = vmatpush1.bf16.xpose.msra.mxu1 %v16307_v31  ;;  %v16404_v31 = vcombine.high %v1248_v8, %v1264_v10 }
 0x7a0   : > { %13850 = vmatprep.subr.bf16.mxu0 %v16338_v57  ;;  %13891 = vmatprep.subr.bf16.mxu1 %v16340_v59  ;;  %v1295_v57 = vld [vmem:[%s17872_s12 + $0x1de0] sm:$0xff]  ;;  %v1280_v59 = vld [vmem:[%s17872_s12 + $0x1d68] sm:$0xff] }
 0x7a1   : > { %v16436_v0 = vcombine.high %v1280_v59, %v1296_v46 }
 0x7a7   : > { %13851 = vmatpush1.bf16.xpose.msra.mxu0 %v16337_v63  ;;  %13892 = vmatpush1.bf16.xpose.msra.mxu1 %v16339_v25  ;;  %v16403_v63 = vcombine.low %v1248_v8, %v1264_v10  ;;  %v1311_v25 = vld [vmem:[%s17872_s12 + $0x1e60] sm:$0xff]  ;;  %v1344_v8 = vld [vmem:[%s17872_s12 + $0x1f68] sm:$0xff] }
 0x7a8   : > { %13852 = vmatprep.subr.bf16.mxu0 %v16370_v55  ;;  %13893 = vmatprep.subr.bf16.mxu1 %v16372_v58  ;;  %v1327_v55 = vld [vmem:[%s17872_s12 + $0x1ee0] sm:$0xff]  ;;  %v1312_v58 = vld [vmem:[%s17872_s12 + $0x1e68] sm:$0xff] }
 0x7a9   : > { %v13700_v1 = vpop.f32.mrb[48].mxu0  ;;  %v13741_v37 = vpop.f32.mrb[48].mxu1  ;;  %v1360_v10 = vld [vmem:[%s17872_s12 + $0x1fe8] sm:$0xff] }
 0x7aa   : > { %v13701_v9 = vadd.f32 %v13700_v1, %v19066_v19  ;;  %v13702_v4 = vpop.f32.mrb[49].mxu0  ;;  %v13743_v13 = vpop.f32.mrb[49].mxu1  ;;  %v1328_v1 = vld [vmem:[%s17872_s12 + $0x1ee8] sm:$0xff] }
 0x7ab   : > { %v13703_v32 = vadd.f32 %v13702_v4, %v19068_v18  ;;  %v13704_v22 = vpop.f32.mrb[50].mxu0  ;;  %v13745_v15 = vpop.f32.mrb[50].mxu1  ;;  %v1279_v18 = vld [vmem:[%s17872_s12 + $0x1d60] sm:$0xff]  ;;  %v16466_v4 = vcombine.high %v1311_v25, %v1327_v55 }
 0x7ac   : > { %v19140_v17 = vadd.f32 %v13741_v37, %v13701_v9  ;;  %v13705_v6 = vpop.f32.mrb[51].mxu0  ;;  %v13746_v43 = vpop.f32.mrb[51].mxu1  ;;  %v16434_v54 = vcombine.high %v1279_v18, %v1295_v57  ;;  %v16433_v9 = vcombine.low %v1279_v18, %v1295_v57  ;;  %v16435_v37 = vcombine.low %v1280_v59, %v1296_v46  ;;  %v897_v46 = vld [vmem:[%s17872_s12 + $0x1170] sm:$0xff] }
 0x7ad   : > { %v19142_v19 = vadd.f32 %v13743_v13, %v13703_v32  ;;  %v16468_v32 = vcombine.high %v1312_v58, %v1328_v1  ;;  %v16465_v13 = vcombine.low %v1311_v25, %v1327_v55  ;;  %v16467_v22 = vcombine.low %v1312_v58, %v1328_v1  ;;  %v865_v6 = vld [vmem:[%s17872_s12 + $0x1070] sm:$0xff]  ;;  %v882_v43 = vld [vmem:[%s17872_s12 + $0x10f8] sm:$0xff] }
 0x7ae   : > { %v16500_v15 = vcombine.high %v1344_v8, %v1360_v10  ;;  %v16499_v18 = vcombine.low %v1344_v8, %v1360_v10  ;;  %v929_v1 = vld [vmem:[%s17872_s12 + $0x1270] sm:$0xff] }
 0x7af   : > { %13853 = vmatpush1.bf16.xpose.msra.mxu0 %v16369_v45  ;;  %13894 = vmatpush1.bf16.xpose.msra.mxu1 %v16371_v7  ;;  %v16498_v45 = vcombine.high %v1343_v12, %v1359_v21  ;;  %v881_v7 = vld [vmem:[%s17872_s12 + $0x10f0] sm:$0xff] }
 0x7b0   : > { %13854 = vmatprep.subr.bf16.mxu0 %v16402_v23  ;;  %13895 = vmatprep.subr.bf16.mxu1 %v16404_v31  ;;  %v866_v23 = vld [vmem:[%s17872_s12 + $0x1078] sm:$0xff]  ;;  %v16497_v31 = vcombine.low %v1343_v12, %v1359_v21  ;;  %v16022_v57 = vcombine.high %v865_v6, %v881_v7  ;;  %v961_v10 = vld [vmem:[%s17872_s12 + $0x1370] sm:$0xff] }
 0x7b1   : > { %v16024_v59 = vcombine.high %v866_v23, %v882_v43  ;;  %v16023_v25 = vcombine.low %v866_v23, %v882_v43  ;;  %v993_v43 = vld [vmem:[%s17872_s12 + $0x1470] sm:$0xff] }
 0x7b7   : > { %13855 = vmatpush1.bf16.xpose.msra.mxu0 %v16401_v51  ;;  %13896 = vmatpush1.bf16.xpose.msra.mxu1 %v16403_v63  ;;  %v913_v51 = vld [vmem:[%s17872_s12 + $0x11f0] sm:$0xff]  ;;  %v898_v63 = vld [vmem:[%s17872_s12 + $0x1178] sm:$0xff] }
 0x7b8   : > { %13856 = vmatprep.subr.bf16.mxu0 %v16434_v54  ;;  %13897 = vmatprep.subr.bf16.mxu1 %v16436_v0  ;;  %v914_v54 = vld [vmem:[%s17872_s12 + $0x11f8] sm:$0xff]  ;;  %v16021_v0 = vcombine.low %v865_v6, %v881_v7  ;;  %v16054_v55 = vcombine.high %v897_v46, %v913_v51 }
 0x7b9   : > { %v16056_v58 = vcombine.high %v898_v63, %v914_v54  ;;  %v16055_v12 = vcombine.low %v898_v63, %v914_v54  ;;  %v1025_v54 = vld [vmem:[%s17872_s12 + $0x1570] sm:$0xff] }
 0x7bf   : > { %13857 = vmatpush1.bf16.xpose.msra.mxu0 %v16433_v9  ;;  %13898 = vmatpush1.bf16.xpose.msra.mxu1 %v16435_v37  ;;  %v945_v9 = vld [vmem:[%s17872_s12 + $0x12f0] sm:$0xff]  ;;  %v930_v37 = vld [vmem:[%s17872_s12 + $0x1278] sm:$0xff] }
 0x7c0   : > { %13858 = vmatprep.subr.bf16.mxu0 %v16466_v4  ;;  %13899 = vmatprep.subr.bf16.mxu1 %v16468_v32  ;;  %v946_v4 = vld [vmem:[%s17872_s12 + $0x12f8] sm:$0xff]  ;;  %v16053_v32 = vcombine.low %v897_v46, %v913_v51  ;;  %v16086_v21 = vcombine.high %v929_v1, %v945_v9 }
 0x7c1   : > { %v16088_v8 = vcombine.high %v930_v37, %v946_v4  ;;  %v16087_v6 = vcombine.low %v930_v37, %v946_v4  ;;  %v1057_v4 = vld [vmem:[%s17872_s12 + $0x1670] sm:$0xff] }
 0x7c7   : > { %13859 = vmatpush1.bf16.xpose.msra.mxu0 %v16465_v13  ;;  %13900 = vmatpush1.bf16.xpose.msra.mxu1 %v16467_v22  ;;  %v977_v13 = vld [vmem:[%s17872_s12 + $0x13f0] sm:$0xff]  ;;  %v962_v22 = vld [vmem:[%s17872_s12 + $0x1378] sm:$0xff] }
 0x7c8   : > { %13860 = vmatprep.subr.bf16.mxu0 %v16498_v45  ;;  %13901 = vmatprep.subr.bf16.mxu1 %v16500_v15  ;;  %v978_v45 = vld [vmem:[%s17872_s12 + $0x13f8] sm:$0xff]  ;;  %v16085_v15 = vcombine.low %v929_v1, %v945_v9  ;;  %v16118_v7 = vcombine.high %v961_v10, %v977_v13 }
 0x7c9   : > { %v16120_v23 = vcombine.high %v962_v22, %v978_v45  ;;  %v16119_v46 = vcombine.low %v962_v22, %v978_v45  ;;  %v1089_v45 = vld [vmem:[%s17872_s12 + $0x1770] sm:$0xff] }
 0x7cf   : > { %13861 = vmatpush1.bf16.xpose.msra.mxu0 %v16497_v31  ;;  %13902 = vmatpush1.bf16.xpose.msra.mxu1 %v16499_v18  ;;  %v1009_v31 = vld [vmem:[%s17872_s12 + $0x14f0] sm:$0xff]  ;;  %v994_v18 = vld [vmem:[%s17872_s12 + $0x1478] sm:$0xff] }
 0x7d0   : > { %13912 = vmatprep.subr.bf16.mxu0 %v16022_v57  ;;  %13953 = vmatprep.subr.bf16.mxu1 %v16024_v59  ;;  %v1010_v57 = vld [vmem:[%s17872_s12 + $0x14f8] sm:$0xff]  ;;  %v16117_v59 = vcombine.low %v961_v10, %v977_v13  ;;  %v16150_v51 = vcombine.high %v993_v43, %v1009_v31 }
 0x7d1   : > { %v16152_v63 = vcombine.high %v994_v18, %v1010_v57  ;;  %v16151_v1 = vcombine.low %v994_v18, %v1010_v57  ;;  %v1121_v57 = vld [vmem:[%s17872_s12 + $0x1870] sm:$0xff] }
 0x7d6   : > { %13863 = vmatmul.mubr.bf16.vlgmr.msra.gmra.mrb[56].mxu0 %v18533_v36  ;;  %13904 = vmatmul.mubr.bf16.vlgmr.msra.gmra.mrb[56].mxu1 %v18540_v47 }
 0x7d7   : > { %13913 = vmatpush1.bf16.xpose.msra.mxu0 %v16021_v0  ;;  %13954 = vmatpush1.bf16.xpose.msra.mxu1 %v16023_v25  ;;  %v1041_v0 = vld [vmem:[%s17872_s12 + $0x15f0] sm:$0xff]  ;;  %v1026_v25 = vld [vmem:[%s17872_s12 + $0x1578] sm:$0xff] }
 0x7d8   : > { %13914 = vmatprep.subr.bf16.mxu0 %v16054_v55  ;;  %13955 = vmatprep.subr.bf16.mxu1 %v16056_v58  ;;  %v1042_v55 = vld [vmem:[%s17872_s12 + $0x15f8] sm:$0xff]  ;;  %v16149_v58 = vcombine.low %v993_v43, %v1009_v31  ;;  %v16182_v9 = vcombine.high %v1025_v54, %v1041_v0 }
 0x7d9   : > { %13944 = vmatprep.mubr.bf16.mxu0 %v18545_v60  ;;  %13985 = vmatprep.mubr.bf16.mxu1 %v18548_v62  ;;  %v16184_v37 = vcombine.high %v1026_v25, %v1042_v55  ;;  %v16183_v10 = vcombine.low %v1026_v25, %v1042_v55  ;;  %v1153_v55 = vld [vmem:[%s17872_s12 + $0x1970] sm:$0xff] }
 0x7df   : > { %13915 = vmatpush1.bf16.xpose.msra.mxu0 %v16053_v32  ;;  %13956 = vmatpush1.bf16.xpose.msra.mxu1 %v16055_v12  ;;  %v1073_v32 = vld [vmem:[%s17872_s12 + $0x16f0] sm:$0xff]  ;;  %v1058_v12 = vld [vmem:[%s17872_s12 + $0x1678] sm:$0xff] }
 0x7e0   : > { %13916 = vmatprep.subr.bf16.mxu0 %v16086_v21  ;;  %13957 = vmatprep.subr.bf16.mxu1 %v16088_v8  ;;  %v1074_v21 = vld [vmem:[%s17872_s12 + $0x16f8] sm:$0xff]  ;;  %v16181_v8 = vcombine.low %v1025_v54, %v1041_v0  ;;  %v16214_v13 = vcombine.high %v1057_v4, %v1073_v32 }
 0x7e1   : > { %v16216_v22 = vcombine.high %v1058_v12, %v1074_v21  ;;  %v16215_v43 = vcombine.low %v1058_v12, %v1074_v21  ;;  %v1185_v21 = vld [vmem:[%s17872_s12 + $0x1a70] sm:$0xff] }
 0x7e7   : > { %13917 = vmatpush1.bf16.xpose.msra.mxu0 %v16085_v15  ;;  %13958 = vmatpush1.bf16.xpose.msra.mxu1 %v16087_v6  ;;  %v1105_v15 = vld [vmem:[%s17872_s12 + $0x17f0] sm:$0xff]  ;;  %v1090_v6 = vld [vmem:[%s17872_s12 + $0x1778] sm:$0xff] }
 0x7e8   : > { %13918 = vmatprep.subr.bf16.mxu0 %v16118_v7  ;;  %13959 = vmatprep.subr.bf16.mxu1 %v16120_v23  ;;  %v1106_v7 = vld [vmem:[%s17872_s12 + $0x17f8] sm:$0xff]  ;;  %v16213_v23 = vcombine.low %v1057_v4, %v1073_v32  ;;  %v16246_v31 = vcombine.high %v1089_v45, %v1105_v15 }
 0x7e9   : > { %v16248_v18 = vcombine.high %v1090_v6, %v1106_v7  ;;  %v16247_v54 = vcombine.low %v1090_v6, %v1106_v7  ;;  %v1217_v7 = vld [vmem:[%s17872_s12 + $0x1b70] sm:$0xff] }
 0x7ef   : > { %13919 = vmatpush1.bf16.xpose.msra.mxu0 %v16117_v59  ;;  %13960 = vmatpush1.bf16.xpose.msra.mxu1 %v16119_v46  ;;  %v1137_v59 = vld [vmem:[%s17872_s12 + $0x18f0] sm:$0xff]  ;;  %v1122_v46 = vld [vmem:[%s17872_s12 + $0x1878] sm:$0xff] }
 0x7f0   : > { %13920 = vmatprep.subr.bf16.mxu0 %v16150_v51  ;;  %13961 = vmatprep.subr.bf16.mxu1 %v16152_v63  ;;  %v1138_v51 = vld [vmem:[%s17872_s12 + $0x18f8] sm:$0xff]  ;;  %v16245_v63 = vcombine.low %v1089_v45, %v1105_v15  ;;  %v16278_v0 = vcombine.high %v1121_v57, %v1137_v59 }
 0x7f1   : > { %v16280_v25 = vcombine.high %v1122_v46, %v1138_v51  ;;  %v16279_v4 = vcombine.low %v1122_v46, %v1138_v51 }
 0x7f7   : > { %13921 = vmatpush1.bf16.xpose.msra.mxu0 %v16149_v58  ;;  %13962 = vmatpush1.bf16.xpose.msra.mxu1 %v16151_v1  ;;  %v1169_v58 = vld [vmem:[%s17872_s12 + $0x19f0] sm:$0xff]  ;;  %v1154_v1 = vld [vmem:[%s17872_s12 + $0x1978] sm:$0xff] }
 0x7f8   : > { %13922 = vmatprep.subr.bf16.mxu0 %v16182_v9  ;;  %13963 = vmatprep.subr.bf16.mxu1 %v16184_v37  ;;  %v1170_v9 = vld [vmem:[%s17872_s12 + $0x19f8] sm:$0xff]  ;;  %v16277_v37 = vcombine.low %v1121_v57, %v1137_v59  ;;  %v16310_v32 = vcombine.high %v1153_v55, %v1169_v58 }
 0x7f9   : > { %v16312_v12 = vcombine.high %v1154_v1, %v1170_v9  ;;  %v16311_v45 = vcombine.low %v1154_v1, %v1170_v9  ;;  %v1266_v1 = vld [vmem:[%s17872_s12 + $0x1cf8] sm:$0xff] }
 0x7ff   : > { %13923 = vmatpush1.bf16.xpose.msra.mxu0 %v16181_v8  ;;  %13964 = vmatpush1.bf16.xpose.msra.mxu1 %v16183_v10  ;;  %v1201_v8 = vld [vmem:[%s17872_s12 + $0x1af0] sm:$0xff]  ;;  %v1186_v10 = vld [vmem:[%s17872_s12 + $0x1a78] sm:$0xff] }
 0x800   : > { %13924 = vmatprep.subr.bf16.mxu0 %v16214_v13  ;;  %13965 = vmatprep.subr.bf16.mxu1 %v16216_v22  ;;  %v1202_v13 = vld [vmem:[%s17872_s12 + $0x1af8] sm:$0xff]  ;;  %v16309_v22 = vcombine.low %v1153_v55, %v1169_v58  ;;  %v16342_v15 = vcombine.high %v1185_v21, %v1201_v8 }
 0x801   : > { %v16344_v6 = vcombine.high %v1186_v10, %v1202_v13  ;;  %v16343_v57 = vcombine.low %v1186_v10, %v1202_v13  ;;  %v1250_v58 = vld [vmem:[%s17872_s12 + $0x1c78] sm:$0xff] }
 0x807   : > { %13925 = vmatpush1.bf16.xpose.msra.mxu0 %v16213_v23  ;;  %13966 = vmatpush1.bf16.xpose.msra.mxu1 %v16215_v43  ;;  %v1233_v23 = vld [vmem:[%s17872_s12 + $0x1bf0] sm:$0xff]  ;;  %v1218_v43 = vld [vmem:[%s17872_s12 + $0x1b78] sm:$0xff] }
 0x808   : > { %13926 = vmatprep.subr.bf16.mxu0 %v16246_v31  ;;  %13967 = vmatprep.subr.bf16.mxu1 %v16248_v18  ;;  %v1234_v31 = vld [vmem:[%s17872_s12 + $0x1bf8] sm:$0xff]  ;;  %v16341_v18 = vcombine.low %v1185_v21, %v1201_v8  ;;  %v16374_v59 = vcombine.high %v1217_v7, %v1233_v23 }
 0x809   : > { %v16376_v46 = vcombine.high %v1218_v43, %v1234_v31  ;;  %v16375_v10 = vcombine.low %v1218_v43, %v1234_v31 }
 0x80f   : > { %13927 = vmatpush1.bf16.xpose.msra.mxu0 %v16245_v63  ;;  %13968 = vmatpush1.bf16.xpose.msra.mxu1 %v16247_v54  ;;  %v1249_v63 = vld [vmem:[%s17872_s12 + $0x1c70] sm:$0xff] }
 0x810   : > { %13928 = vmatprep.subr.bf16.mxu0 %v16278_v0  ;;  %13969 = vmatprep.subr.bf16.mxu1 %v16280_v25  ;;  %v1265_v54 = vld [vmem:[%s17872_s12 + $0x1cf0] sm:$0xff] }
 0x811   : > { %v16406_v13 = vcombine.high %v1249_v63, %v1265_v54 }
 0x817   : > { %13929 = vmatpush1.bf16.xpose.msra.mxu0 %v16277_v37  ;;  %13970 = vmatpush1.bf16.xpose.msra.mxu1 %v16279_v4 }
 0x818   : > { %13930 = vmatprep.subr.bf16.mxu0 %v16310_v32  ;;  %13971 = vmatprep.subr.bf16.mxu1 %v16312_v12  ;;  %v16373_v32 = vcombine.low %v1217_v7, %v1233_v23  ;;  %v1298_v7 = vld [vmem:[%s17872_s12 + $0x1df8] sm:$0xff]  ;;  %v16405_v23 = vcombine.low %v1249_v63, %v1265_v54  ;;  %v1345_v63 = vld [vmem:[%s17872_s12 + $0x1f70] sm:$0xff] }
 0x819   : > { %v1361_v54 = vld [vmem:[%s17872_s12 + $0x1ff0] sm:$0xff] }
 0x81f   : > { %13931 = vmatpush1.bf16.xpose.msra.mxu0 %v16309_v22  ;;  %13972 = vmatpush1.bf16.xpose.msra.mxu1 %v16311_v45  ;;  %v16408_v45 = vcombine.high %v1250_v58, %v1266_v1 }
 0x820   : > { %13932 = vmatprep.subr.bf16.mxu0 %v16342_v15  ;;  %13973 = vmatprep.subr.bf16.mxu1 %v16344_v6  ;;  %v1297_v15 = vld [vmem:[%s17872_s12 + $0x1df0] sm:$0xff]  ;;  %v1282_v6 = vld [vmem:[%s17872_s12 + $0x1d78] sm:$0xff] }
 0x821   : > { %v16440_v31 = vcombine.high %v1282_v6, %v1298_v7 }
 0x827   : > { %13933 = vmatpush1.bf16.xpose.msra.mxu0 %v16341_v18  ;;  %13974 = vmatpush1.bf16.xpose.msra.mxu1 %v16343_v57  ;;  %v16407_v18 = vcombine.low %v1250_v58, %v1266_v1  ;;  %v1313_v57 = vld [vmem:[%s17872_s12 + $0x1e70] sm:$0xff]  ;;  %v1346_v58 = vld [vmem:[%s17872_s12 + $0x1f78] sm:$0xff] }
 0x828   : > { %13934 = vmatprep.subr.bf16.mxu0 %v16374_v59  ;;  %13975 = vmatprep.subr.bf16.mxu1 %v16376_v46  ;;  %v1329_v59 = vld [vmem:[%s17872_s12 + $0x1ef0] sm:$0xff]  ;;  %v1314_v46 = vld [vmem:[%s17872_s12 + $0x1e78] sm:$0xff] }
 0x829   : > { %v13782_v51 = vpop.f32.mrb[52].mxu0  ;;  %v13823_v25 = vpop.f32.mrb[52].mxu1  ;;  %v1362_v1 = vld [vmem:[%s17872_s12 + $0x1ff8] sm:$0xff] }
 0x82a   : > { %v13783_v0 = vadd.f32 %v13782_v51, %v19140_v17  ;;  %v13784_v55 = vpop.f32.mrb[53].mxu0  ;;  %v13825_v37 = vpop.f32.mrb[53].mxu1  ;;  %v1330_v51 = vld [vmem:[%s17872_s12 + $0x1ef8] sm:$0xff] }
 0x82b   : > { %v13785_v9 = vadd.f32 %v13784_v55, %v19142_v19  ;;  %v13786_v4 = vpop.f32.mrb[54].mxu0  ;;  %v13827_v21 = vpop.f32.mrb[54].mxu1  ;;  %v1281_v19 = vld [vmem:[%s17872_s12 + $0x1d70] sm:$0xff]  ;;  %v16470_v55 = vcombine.high %v1313_v57, %v1329_v59 }
 0x82c   : > { %v19214_v12 = vadd.f32 %v13823_v25, %v13783_v0  ;;  %v13787_v8 = vpop.f32.mrb[55].mxu0  ;;  %v13828_v22 = vpop.f32.mrb[55].mxu1  ;;  %v16438_v43 = vcombine.high %v1281_v19, %v1297_v15  ;;  %v16437_v0 = vcombine.low %v1281_v19, %v1297_v15  ;;  %v16439_v25 = vcombine.low %v1282_v6, %v1298_v7  ;;  %v1395_v7 = vld [vmem:[%s17872_s12 + $0x2100] sm:$0xff] }
 0x82d   : > { %v19216_v17 = vadd.f32 %v13825_v37, %v13785_v9  ;;  %v16472_v9 = vcombine.high %v1314_v46, %v1330_v51  ;;  %v16469_v37 = vcombine.low %v1313_v57, %v1329_v59  ;;  %v16471_v4 = vcombine.low %v1314_v46, %v1330_v51  ;;  %v1363_v8 = vld [vmem:[%s17872_s12 + $0x2000] sm:$0xff]  ;;  %v1380_v22 = vld [vmem:[%s17872_s12 + $0x2088] sm:$0xff] }
 0x82e   : > { %v16504_v21 = vcombine.high %v1346_v58, %v1362_v1  ;;  %v16503_v19 = vcombine.low %v1346_v58, %v1362_v1  ;;  %v1427_v51 = vld [vmem:[%s17872_s12 + $0x2200] sm:$0xff] }
 0x82f   : > { %13935 = vmatpush1.bf16.xpose.msra.mxu0 %v16373_v32  ;;  %13976 = vmatpush1.bf16.xpose.msra.mxu1 %v16375_v10  ;;  %v16502_v32 = vcombine.high %v1345_v63, %v1361_v54  ;;  %v1379_v10 = vld [vmem:[%s17872_s12 + $0x2080] sm:$0xff] }
 0x830   : > { %13936 = vmatprep.subr.bf16.mxu0 %v16406_v13  ;;  %13977 = vmatprep.subr.bf16.mxu1 %v16408_v45  ;;  %v1364_v13 = vld [vmem:[%s17872_s12 + $0x2008] sm:$0xff]  ;;  %v16501_v45 = vcombine.low %v1345_v63, %v1361_v54  ;;  %v16506_v15 = vcombine.high %v1363_v8, %v1379_v10  ;;  %v1459_v1 = vld [vmem:[%s17872_s12 + $0x2300] sm:$0xff] }
 0x831   : > { %v16508_v6 = vcombine.high %v1364_v13, %v1380_v22  ;;  %v16507_v57 = vcombine.low %v1364_v13, %v1380_v22  ;;  %v1491_v22 = vld [vmem:[%s17872_s12 + $0x2400] sm:$0xff] }
 0x837   : > { %13937 = vmatpush1.bf16.xpose.msra.mxu0 %v16405_v23  ;;  %13978 = vmatpush1.bf16.xpose.msra.mxu1 %v16407_v18  ;;  %v1411_v23 = vld [vmem:[%s17872_s12 + $0x2180] sm:$0xff]  ;;  %v1396_v18 = vld [vmem:[%s17872_s12 + $0x2108] sm:$0xff] }
 0x838   : > { %13938 = vmatprep.subr.bf16.mxu0 %v16438_v43  ;;  %13979 = vmatprep.subr.bf16.mxu1 %v16440_v31  ;;  %v1412_v43 = vld [vmem:[%s17872_s12 + $0x2188] sm:$0xff]  ;;  %v16505_v31 = vcombine.low %v1363_v8, %v1379_v10  ;;  %v16538_v59 = vcombine.high %v1395_v7, %v1411_v23 }
 0x839   : > { %v16540_v46 = vcombine.high %v1396_v18, %v1412_v43  ;;  %v16539_v63 = vcombine.low %v1396_v18, %v1412_v43  ;;  %v1523_v43 = vld [vmem:[%s17872_s12 + $0x2500] sm:$0xff] }
 0x83f   : > { %13939 = vmatpush1.bf16.xpose.msra.mxu0 %v16437_v0  ;;  %13980 = vmatpush1.bf16.xpose.msra.mxu1 %v16439_v25  ;;  %v1443_v0 = vld [vmem:[%s17872_s12 + $0x2280] sm:$0xff]  ;;  %v1428_v25 = vld [vmem:[%s17872_s12 + $0x2208] sm:$0xff] }
 0x840   : > { %13940 = vmatprep.subr.bf16.mxu0 %v16470_v55  ;;  %13981 = vmatprep.subr.bf16.mxu1 %v16472_v9  ;;  %v1444_v55 = vld [vmem:[%s17872_s12 + $0x2288] sm:$0xff]  ;;  %v16537_v9 = vcombine.low %v1395_v7, %v1411_v23  ;;  %v16570_v54 = vcombine.high %v1427_v51, %v1443_v0 }
 0x841   : > { %v16572_v58 = vcombine.high %v1428_v25, %v1444_v55  ;;  %v16571_v8 = vcombine.low %v1428_v25, %v1444_v55  ;;  %v1555_v55 = vld [vmem:[%s17872_s12 + $0x2600] sm:$0xff] }
 0x847   : > { %13941 = vmatpush1.bf16.xpose.msra.mxu0 %v16469_v37  ;;  %13982 = vmatpush1.bf16.xpose.msra.mxu1 %v16471_v4  ;;  %v1475_v37 = vld [vmem:[%s17872_s12 + $0x2380] sm:$0xff]  ;;  %v1460_v4 = vld [vmem:[%s17872_s12 + $0x2308] sm:$0xff] }
 0x848   : > { %13942 = vmatprep.subr.bf16.mxu0 %v16502_v32  ;;  %13983 = vmatprep.subr.bf16.mxu1 %v16504_v21  ;;  %v1476_v32 = vld [vmem:[%s17872_s12 + $0x2388] sm:$0xff]  ;;  %v16569_v21 = vcombine.low %v1427_v51, %v1443_v0  ;;  %v16602_v10 = vcombine.high %v1459_v1, %v1475_v37 }
 0x849   : > { %v16604_v13 = vcombine.high %v1460_v4, %v1476_v32  ;;  %v16603_v7 = vcombine.low %v1460_v4, %v1476_v32  ;;  %v1587_v32 = vld [vmem:[%s17872_s12 + $0x2700] sm:$0xff] }
 0x84f   : > { %13943 = vmatpush1.bf16.xpose.msra.mxu0 %v16501_v45  ;;  %13984 = vmatpush1.bf16.xpose.msra.mxu1 %v16503_v19  ;;  %v1507_v45 = vld [vmem:[%s17872_s12 + $0x2480] sm:$0xff]  ;;  %v1492_v19 = vld [vmem:[%s17872_s12 + $0x2408] sm:$0xff] }
 0x850   : > { %13994 = vmatprep.subr.bf16.mxu0 %v16506_v15  ;;  %14035 = vmatprep.subr.bf16.mxu1 %v16508_v6  ;;  %v1508_v15 = vld [vmem:[%s17872_s12 + $0x2488] sm:$0xff]  ;;  %v16601_v6 = vcombine.low %v1459_v1, %v1475_v37  ;;  %v16634_v23 = vcombine.high %v1491_v22, %v1507_v45 }
 0x851   : > { %v16636_v18 = vcombine.high %v1492_v19, %v1508_v15  ;;  %v16635_v51 = vcombine.low %v1492_v19, %v1508_v15  ;;  %v1619_v15 = vld [vmem:[%s17872_s12 + $0x2800] sm:$0xff] }
 0x856   : > { %13945 = vmatmul.mubr.bf16.vlgmr.msra.gmra.mrb[60].mxu0 %v18627_v11  ;;  %13986 = vmatmul.mubr.bf16.vlgmr.msra.gmra.mrb[60].mxu1 %v18631_v14 }
 0x857   : > { %13995 = vmatpush1.bf16.xpose.msra.mxu0 %v16505_v31  ;;  %14036 = vmatpush1.bf16.xpose.msra.mxu1 %v16507_v57  ;;  %v1539_v31 = vld [vmem:[%s17872_s12 + $0x2580] sm:$0xff]  ;;  %v1524_v57 = vld [vmem:[%s17872_s12 + $0x2508] sm:$0xff] }
 0x858   : > { %13996 = vmatprep.subr.bf16.mxu0 %v16538_v59  ;;  %14037 = vmatprep.subr.bf16.mxu1 %v16540_v46  ;;  %v1540_v59 = vld [vmem:[%s17872_s12 + $0x2588] sm:$0xff]  ;;  %v16633_v46 = vcombine.low %v1491_v22, %v1507_v45  ;;  %v16666_v0 = vcombine.high %v1523_v43, %v1539_v31 }
 0x859   : > { %14026 = vmatprep.mubr.bf16.mxu0 %v17908_v34  ;;  %14067 = vmatprep.mubr.bf16.mxu1 %v17910_v35  ;;  %v16668_v25 = vcombine.high %v1524_v57, %v1540_v59  ;;  %v16667_v1 = vcombine.low %v1524_v57, %v1540_v59  ;;  %v1651_v59 = vld [vmem:[%s17872_s12 + $0x2900] sm:$0xff] }
 0x85f   : > { %13997 = vmatpush1.bf16.xpose.msra.mxu0 %v16537_v9  ;;  %14038 = vmatpush1.bf16.xpose.msra.mxu1 %v16539_v63  ;;  %v1571_v9 = vld [vmem:[%s17872_s12 + $0x2680] sm:$0xff]  ;;  %v1556_v63 = vld [vmem:[%s17872_s12 + $0x2608] sm:$0xff] }
 0x860   : > { %13998 = vmatprep.subr.bf16.mxu0 %v16570_v54  ;;  %14039 = vmatprep.subr.bf16.mxu1 %v16572_v58  ;;  %v1572_v54 = vld [vmem:[%s17872_s12 + $0x2688] sm:$0xff]  ;;  %v16665_v58 = vcombine.low %v1523_v43, %v1539_v31  ;;  %v16698_v37 = vcombine.high %v1555_v55, %v1571_v9 }
 0x861   : > { %v16700_v4 = vcombine.high %v1556_v63, %v1572_v54  ;;  %v16699_v22 = vcombine.low %v1556_v63, %v1572_v54  ;;  %v1683_v54 = vld [vmem:[%s17872_s12 + $0x2a00] sm:$0xff] }
 0x867   : > { %13999 = vmatpush1.bf16.xpose.msra.mxu0 %v16569_v21  ;;  %14040 = vmatpush1.bf16.xpose.msra.mxu1 %v16571_v8  ;;  %v1603_v21 = vld [vmem:[%s17872_s12 + $0x2780] sm:$0xff]  ;;  %v1588_v8 = vld [vmem:[%s17872_s12 + $0x2708] sm:$0xff] }
 0x868   : > { %14000 = vmatprep.subr.bf16.mxu0 %v16602_v10  ;;  %14041 = vmatprep.subr.bf16.mxu1 %v16604_v13  ;;  %v1604_v10 = vld [vmem:[%s17872_s12 + $0x2788] sm:$0xff]  ;;  %v16697_v13 = vcombine.low %v1555_v55, %v1571_v9  ;;  %v16730_v45 = vcombine.high %v1587_v32, %v1603_v21 }
 0x869   : > { %v16732_v19 = vcombine.high %v1588_v8, %v1604_v10  ;;  %v16731_v43 = vcombine.low %v1588_v8, %v1604_v10  ;;  %v1715_v10 = vld [vmem:[%s17872_s12 + $0x2b00] sm:$0xff] }
 0x86f   : > { %14001 = vmatpush1.bf16.xpose.msra.mxu0 %v16601_v6  ;;  %14042 = vmatpush1.bf16.xpose.msra.mxu1 %v16603_v7  ;;  %v1635_v6 = vld [vmem:[%s17872_s12 + $0x2880] sm:$0xff]  ;;  %v1620_v7 = vld [vmem:[%s17872_s12 + $0x2808] sm:$0xff] }
 0x870   : > { %14002 = vmatprep.subr.bf16.mxu0 %v16634_v23  ;;  %14043 = vmatprep.subr.bf16.mxu1 %v16636_v18  ;;  %v1636_v23 = vld [vmem:[%s17872_s12 + $0x2888] sm:$0xff]  ;;  %v16729_v18 = vcombine.low %v1587_v32, %v1603_v21  ;;  %v16762_v31 = vcombine.high %v1619_v15, %v1635_v6 }
 0x871   : > { %v16764_v57 = vcombine.high %v1620_v7, %v1636_v23  ;;  %v16763_v55 = vcombine.low %v1620_v7, %v1636_v23 }
 0x877   : > { %14003 = vmatpush1.bf16.xpose.msra.mxu0 %v16633_v46  ;;  %14044 = vmatpush1.bf16.xpose.msra.mxu1 %v16635_v51  ;;  %v1667_v46 = vld [vmem:[%s17872_s12 + $0x2980] sm:$0xff]  ;;  %v1652_v51 = vld [vmem:[%s17872_s12 + $0x2908] sm:$0xff] }
 0x878   : > { %14004 = vmatprep.subr.bf16.mxu0 %v16666_v0  ;;  %14045 = vmatprep.subr.bf16.mxu1 %v16668_v25  ;;  %v1668_v0 = vld [vmem:[%s17872_s12 + $0x2988] sm:$0xff]  ;;  %v16761_v25 = vcombine.low %v1619_v15, %v1635_v6  ;;  %v16794_v9 = vcombine.high %v1651_v59, %v1667_v46 }
 0x879   : > { %v16796_v63 = vcombine.high %v1652_v51, %v1668_v0  ;;  %v16795_v32 = vcombine.low %v1652_v51, %v1668_v0  ;;  %v1764_v51 = vld [vmem:[%s17872_s12 + $0x2c88] sm:$0xff] }
 0x87f   : > { %14005 = vmatpush1.bf16.xpose.msra.mxu0 %v16665_v58  ;;  %14046 = vmatpush1.bf16.xpose.msra.mxu1 %v16667_v1  ;;  %v1699_v58 = vld [vmem:[%s17872_s12 + $0x2a80] sm:$0xff]  ;;  %v1684_v1 = vld [vmem:[%s17872_s12 + $0x2a08] sm:$0xff] }
 0x880   : > { %14006 = vmatprep.subr.bf16.mxu0 %v16698_v37  ;;  %14047 = vmatprep.subr.bf16.mxu1 %v16700_v4  ;;  %v1700_v37 = vld [vmem:[%s17872_s12 + $0x2a88] sm:$0xff]  ;;  %v16793_v4 = vcombine.low %v1651_v59, %v1667_v46  ;;  %v16826_v21 = vcombine.high %v1683_v54, %v1699_v58 }
 0x881   : > { %v16828_v8 = vcombine.high %v1684_v1, %v1700_v37  ;;  %v16827_v15 = vcombine.low %v1684_v1, %v1700_v37  ;;  %v1748_v46 = vld [vmem:[%s17872_s12 + $0x2c08] sm:$0xff] }
 0x887   : > { %14007 = vmatpush1.bf16.xpose.msra.mxu0 %v16697_v13  ;;  %14048 = vmatpush1.bf16.xpose.msra.mxu1 %v16699_v22  ;;  %v1731_v13 = vld [vmem:[%s17872_s12 + $0x2b80] sm:$0xff]  ;;  %v1716_v22 = vld [vmem:[%s17872_s12 + $0x2b08] sm:$0xff] }
 0x888   : > { %14008 = vmatprep.subr.bf16.mxu0 %v16730_v45  ;;  %14049 = vmatprep.subr.bf16.mxu1 %v16732_v19  ;;  %v1732_v45 = vld [vmem:[%s17872_s12 + $0x2b88] sm:$0xff]  ;;  %v16825_v19 = vcombine.low %v1683_v54, %v1699_v58  ;;  %v16858_v6 = vcombine.high %v1715_v10, %v1731_v13 }
 0x889   : > { %v16860_v7 = vcombine.high %v1716_v22, %v1732_v45  ;;  %v16859_v1 = vcombine.low %v1716_v22, %v1732_v45 }
 0x88f   : > { %14009 = vmatpush1.bf16.xpose.msra.mxu0 %v16729_v18  ;;  %14050 = vmatpush1.bf16.xpose.msra.mxu1 %v16731_v43  ;;  %v1747_v18 = vld [vmem:[%s17872_s12 + $0x2c00] sm:$0xff] }
 0x890   : > { %14010 = vmatprep.subr.bf16.mxu0 %v16762_v31  ;;  %14051 = vmatprep.subr.bf16.mxu1 %v16764_v57  ;;  %v1763_v43 = vld [vmem:[%s17872_s12 + $0x2c80] sm:$0xff] }
 0x891   : > { %v16890_v37 = vcombine.high %v1747_v18, %v1763_v43 }
 0x897   : > { %14011 = vmatpush1.bf16.xpose.msra.mxu0 %v16761_v25  ;;  %14052 = vmatpush1.bf16.xpose.msra.mxu1 %v16763_v55 }
 0x898   : > { %14012 = vmatprep.subr.bf16.mxu0 %v16794_v9  ;;  %14053 = vmatprep.subr.bf16.mxu1 %v16796_v63  ;;  %v16857_v9 = vcombine.low %v1715_v10, %v1731_v13  ;;  %v1796_v10 = vld [vmem:[%s17872_s12 + $0x2d88] sm:$0xff]  ;;  %v16889_v13 = vcombine.low %v1747_v18, %v1763_v43  ;;  %v1843_v18 = vld [vmem:[%s17872_s12 + $0x2f00] sm:$0xff] }
 0x899   : > { %v1859_v43 = vld [vmem:[%s17872_s12 + $0x2f80] sm:$0xff] }
 0x89f   : > { %14013 = vmatpush1.bf16.xpose.msra.mxu0 %v16793_v4  ;;  %14054 = vmatpush1.bf16.xpose.msra.mxu1 %v16795_v32  ;;  %v16892_v32 = vcombine.high %v1748_v46, %v1764_v51 }
 0x8a0   : > { %14014 = vmatprep.subr.bf16.mxu0 %v16826_v21  ;;  %14055 = vmatprep.subr.bf16.mxu1 %v16828_v8  ;;  %v1795_v21 = vld [vmem:[%s17872_s12 + $0x2d80] sm:$0xff]  ;;  %v1780_v8 = vld [vmem:[%s17872_s12 + $0x2d08] sm:$0xff] }
 0x8a1   : > { %v16924_v45 = vcombine.high %v1780_v8, %v1796_v10 }
 0x8a7   : > { %14015 = vmatpush1.bf16.xpose.msra.mxu0 %v16825_v19  ;;  %14056 = vmatpush1.bf16.xpose.msra.mxu1 %v16827_v15  ;;  %v16891_v19 = vcombine.low %v1748_v46, %v1764_v51  ;;  %v1811_v15 = vld [vmem:[%s17872_s12 + $0x2e00] sm:$0xff]  ;;  %v1844_v46 = vld [vmem:[%s17872_s12 + $0x2f08] sm:$0xff] }
 0x8a8   : > { %14016 = vmatprep.subr.bf16.mxu0 %v16858_v6  ;;  %14057 = vmatprep.subr.bf16.mxu1 %v16860_v7  ;;  %v1827_v6 = vld [vmem:[%s17872_s12 + $0x2e80] sm:$0xff]  ;;  %v1812_v7 = vld [vmem:[%s17872_s12 + $0x2e08] sm:$0xff] }
 0x8a9   : > { %v13864_v23 = vpop.f32.mrb[56].mxu0  ;;  %v13905_v57 = vpop.f32.mrb[56].mxu1  ;;  %v1860_v51 = vld [vmem:[%s17872_s12 + $0x2f88] sm:$0xff] }
 0x8aa   : > { %v13865_v31 = vadd.f32 %v13864_v23, %v19214_v12  ;;  %v13866_v59 = vpop.f32.mrb[57].mxu0  ;;  %v13907_v25 = vpop.f32.mrb[57].mxu1  ;;  %v1828_v23 = vld [vmem:[%s17872_s12 + $0x2e88] sm:$0xff] }
 0x8ab   : > { %v13867_v0 = vadd.f32 %v13866_v59, %v19216_v17  ;;  %v13868_v55 = vpop.f32.mrb[58].mxu0  ;;  %v13909_v54 = vpop.f32.mrb[58].mxu1  ;;  %v1779_v17 = vld [vmem:[%s17872_s12 + $0x2d00] sm:$0xff]  ;;  %v16954_v59 = vcombine.high %v1811_v15, %v1827_v6 }
 0x8ac   : > { %v19288_v63 = vadd.f32 %v13905_v57, %v13865_v31  ;;  %v13869_v58 = vpop.f32.mrb[59].mxu0  ;;  %v13910_v4 = vpop.f32.mrb[59].mxu1  ;;  %v16922_v22 = vcombine.high %v1779_v17, %v1795_v21  ;;  %v16921_v31 = vcombine.low %v1779_v17, %v1795_v21  ;;  %v16923_v57 = vcombine.low %v1780_v8, %v1796_v10  ;;  %v1397_v10 = vld [vmem:[%s17872_s12 + $0x2110] sm:$0xff] }
 0x8ad   : > { %v19290_v12 = vadd.f32 %v13907_v25, %v13867_v0  ;;  %v16956_v0 = vcombine.high %v1812_v7, %v1828_v23  ;;  %v16953_v25 = vcombine.low %v1811_v15, %v1827_v6  ;;  %v16955_v55 = vcombine.low %v1812_v7, %v1828_v23  ;;  %v1365_v58 = vld [vmem:[%s17872_s12 + $0x2010] sm:$0xff]  ;;  %v1382_v4 = vld [vmem:[%s17872_s12 + $0x2098] sm:$0xff] }
 0x8ae   : > { %v16988_v54 = vcombine.high %v1844_v46, %v1860_v51  ;;  %v16987_v17 = vcombine.low %v1844_v46, %v1860_v51  ;;  %v1429_v23 = vld [vmem:[%s17872_s12 + $0x2210] sm:$0xff] }
 0x8af   : > { %14017 = vmatpush1.bf16.xpose.msra.mxu0 %v16857_v9  ;;  %14058 = vmatpush1.bf16.xpose.msra.mxu1 %v16859_v1  ;;  %v16986_v9 = vcombine.high %v1843_v18, %v1859_v43  ;;  %v1381_v1 = vld [vmem:[%s17872_s12 + $0x2090] sm:$0xff] }
 0x8b0   : > { %14018 = vmatprep.subr.bf16.mxu0 %v16890_v37  ;;  %14059 = vmatprep.subr.bf16.mxu1 %v16892_v32  ;;  %v1366_v37 = vld [vmem:[%s17872_s12 + $0x2018] sm:$0xff]  ;;  %v16985_v32 = vcombine.low %v1843_v18, %v1859_v43  ;;  %v16510_v21 = vcombine.high %v1365_v58, %v1381_v1  ;;  %v1461_v51 = vld [vmem:[%s17872_s12 + $0x2310] sm:$0xff] }
 0x8b1   : > { %v16512_v8 = vcombine.high %v1366_v37, %v1382_v4  ;;  %v16511_v15 = vcombine.low %v1366_v37, %v1382_v4  ;;  %v1493_v4 = vld [vmem:[%s17872_s12 + $0x2410] sm:$0xff] }
 0x8b7   : > { %14019 = vmatpush1.bf16.xpose.msra.mxu0 %v16889_v13  ;;  %14060 = vmatpush1.bf16.xpose.msra.mxu1 %v16891_v19  ;;  %v1413_v13 = vld [vmem:[%s17872_s12 + $0x2190] sm:$0xff]  ;;  %v1398_v19 = vld [vmem:[%s17872_s12 + $0x2118] sm:$0xff] }
 0x8b8   : > { %14020 = vmatprep.subr.bf16.mxu0 %v16922_v22  ;;  %14061 = vmatprep.subr.bf16.mxu1 %v16924_v45  ;;  %v1414_v22 = vld [vmem:[%s17872_s12 + $0x2198] sm:$0xff]  ;;  %v16509_v45 = vcombine.low %v1365_v58, %v1381_v1  ;;  %v16542_v6 = vcombine.high %v1397_v10, %v1413_v13 }
 0x8b9   : > { %v16544_v7 = vcombine.high %v1398_v19, %v1414_v22  ;;  %v16543_v18 = vcombine.low %v1398_v19, %v1414_v22  ;;  %v1525_v22 = vld [vmem:[%s17872_s12 + $0x2510] sm:$0xff] }
 0x8bf   : > { %14021 = vmatpush1.bf16.xpose.msra.mxu0 %v16921_v31  ;;  %14062 = vmatpush1.bf16.xpose.msra.mxu1 %v16923_v57  ;;  %v1445_v31 = vld [vmem:[%s17872_s12 + $0x2290] sm:$0xff]  ;;  %v1430_v57 = vld [vmem:[%s17872_s12 + $0x2218] sm:$0xff] }
 0x8c0   : > { %14022 = vmatprep.subr.bf16.mxu0 %v16954_v59  ;;  %14063 = vmatprep.subr.bf16.mxu1 %v16956_v0  ;;  %v1446_v59 = vld [vmem:[%s17872_s12 + $0x2298] sm:$0xff]  ;;  %v16541_v0 = vcombine.low %v1397_v10, %v1413_v13  ;;  %v16574_v43 = vcombine.high %v1429_v23, %v1445_v31 }
 0x8c1   : > { %v16576_v46 = vcombine.high %v1430_v57, %v1446_v59  ;;  %v16575_v58 = vcombine.low %v1430_v57, %v1446_v59  ;;  %v1557_v59 = vld [vmem:[%s17872_s12 + $0x2610] sm:$0xff] }
 0x8c7   : > { %14023 = vmatpush1.bf16.xpose.msra.mxu0 %v16953_v25  ;;  %14064 = vmatpush1.bf16.xpose.msra.mxu1 %v16955_v55  ;;  %v1477_v25 = vld [vmem:[%s17872_s12 + $0x2390] sm:$0xff]  ;;  %v1462_v55 = vld [vmem:[%s17872_s12 + $0x2318] sm:$0xff] }
 0x8c8   : > { %14024 = vmatprep.subr.bf16.mxu0 %v16986_v9  ;;  %14065 = vmatprep.subr.bf16.mxu1 %v16988_v54  ;;  %v1478_v9 = vld [vmem:[%s17872_s12 + $0x2398] sm:$0xff]  ;;  %v16573_v54 = vcombine.low %v1429_v23, %v1445_v31  ;;  %v16606_v1 = vcombine.high %v1461_v51, %v1477_v25 }
 0x8c9   : > { %v16608_v37 = vcombine.high %v1462_v55, %v1478_v9  ;;  %v16607_v10 = vcombine.low %v1462_v55, %v1478_v9  ;;  %v1589_v9 = vld [vmem:[%s17872_s12 + $0x2710] sm:$0xff] }
 0x8cf   : > { %14025 = vmatpush1.bf16.xpose.msra.mxu0 %v16985_v32  ;;  %14066 = vmatpush1.bf16.xpose.msra.mxu1 %v16987_v17  ;;  %v1509_v32 = vld [vmem:[%s17872_s12 + $0x2490] sm:$0xff]  ;;  %v1494_v17 = vld [vmem:[%s17872_s12 + $0x2418] sm:$0xff] }
 0x8d0   : > { %14076 = vmatprep.subr.bf16.mxu0 %v16510_v21  ;;  %14117 = vmatprep.subr.bf16.mxu1 %v16512_v8  ;;  %v1510_v21 = vld [vmem:[%s17872_s12 + $0x2498] sm:$0xff]  ;;  %v16605_v8 = vcombine.low %v1461_v51, %v1477_v25  ;;  %v16638_v13 = vcombine.high %v1493_v4, %v1509_v32 }
 0x8d1   : > { %v16640_v19 = vcombine.high %v1494_v17, %v1510_v21  ;;  %v16639_v23 = vcombine.low %v1494_v17, %v1510_v21  ;;  %v1621_v21 = vld [vmem:[%s17872_s12 + $0x2810] sm:$0xff] }
 0x8d6   : > { %14027 = vmatmul.mubr.bf16.vlgmr.msra.gmra.mrb[64].mxu0 %v17972_v16  ;;  %14068 = vmatmul.mubr.bf16.vlgmr.msra.gmra.mrb[64].mxu1 %v17979_v20 }
 0x8d7   : > { %14077 = vmatpush1.bf16.xpose.msra.mxu0 %v16509_v45  ;;  %14118 = vmatpush1.bf16.xpose.msra.mxu1 %v16511_v15  ;;  %v1541_v45 = vld [vmem:[%s17872_s12 + $0x2590] sm:$0xff]  ;;  %v1526_v15 = vld [vmem:[%s17872_s12 + $0x2518] sm:$0xff] }
 0x8d8   : > { %14078 = vmatprep.subr.bf16.mxu0 %v16542_v6  ;;  %14119 = vmatprep.subr.bf16.mxu1 %v16544_v7  ;;  %v1542_v6 = vld [vmem:[%s17872_s12 + $0x2598] sm:$0xff]  ;;  %v16637_v7 = vcombine.low %v1493_v4, %v1509_v32  ;;  %v16670_v31 = vcombine.high %v1525_v22, %v1541_v45 }
 0x8d9   : > { %14108 = vmatprep.mubr.bf16.mxu0 %v17984_v26  ;;  %14149 = vmatprep.mubr.bf16.mxu1 %v17987_v27  ;;  %v16672_v57 = vcombine.high %v1526_v15, %v1542_v6  ;;  %v16671_v51 = vcombine.low %v1526_v15, %v1542_v6  ;;  %v1653_v6 = vld [vmem:[%s17872_s12 + $0x2910] sm:$0xff] }
 0x8df   : > { %14079 = vmatpush1.bf16.xpose.msra.mxu0 %v16541_v0  ;;  %14120 = vmatpush1.bf16.xpose.msra.mxu1 %v16543_v18  ;;  %v1573_v0 = vld [vmem:[%s17872_s12 + $0x2690] sm:$0xff]  ;;  %v1558_v18 = vld [vmem:[%s17872_s12 + $0x2618] sm:$0xff] }
 0x8e0   : > { %14080 = vmatprep.subr.bf16.mxu0 %v16574_v43  ;;  %14121 = vmatprep.subr.bf16.mxu1 %v16576_v46  ;;  %v1574_v43 = vld [vmem:[%s17872_s12 + $0x2698] sm:$0xff]  ;;  %v16669_v46 = vcombine.low %v1525_v22, %v1541_v45  ;;  %v16702_v25 = vcombine.high %v1557_v59, %v1573_v0 }
 0x8e1   : > { %v16704_v55 = vcombine.high %v1558_v18, %v1574_v43  ;;  %v16703_v4 = vcombine.low %v1558_v18, %v1574_v43  ;;  %v1685_v43 = vld [vmem:[%s17872_s12 + $0x2a10] sm:$0xff] }
 0x8e7   : > { %14081 = vmatpush1.bf16.xpose.msra.mxu0 %v16573_v54  ;;  %14122 = vmatpush1.bf16.xpose.msra.mxu1 %v16575_v58  ;;  %v1605_v54 = vld [vmem:[%s17872_s12 + $0x2790] sm:$0xff]  ;;  %v1590_v58 = vld [vmem:[%s17872_s12 + $0x2718] sm:$0xff] }
 0x8e8   : > { %14082 = vmatprep.subr.bf16.mxu0 %v16606_v1  ;;  %14123 = vmatprep.subr.bf16.mxu1 %v16608_v37  ;;  %v1606_v1 = vld [vmem:[%s17872_s12 + $0x2798] sm:$0xff]  ;;  %v16701_v37 = vcombine.low %v1557_v59, %v1573_v0  ;;  %v16734_v32 = vcombine.high %v1589_v9, %v1605_v54 }
 0x8e9   : > { %v16736_v17 = vcombine.high %v1590_v58, %v1606_v1  ;;  %v16735_v22 = vcombine.low %v1590_v58, %v1606_v1  ;;  %v1717_v1 = vld [vmem:[%s17872_s12 + $0x2b10] sm:$0xff] }
 0x8ef   : > { %14083 = vmatpush1.bf16.xpose.msra.mxu0 %v16605_v8  ;;  %14124 = vmatpush1.bf16.xpose.msra.mxu1 %v16607_v10  ;;  %v1637_v8 = vld [vmem:[%s17872_s12 + $0x2890] sm:$0xff]  ;;  %v1622_v10 = vld [vmem:[%s17872_s12 + $0x2818] sm:$0xff] }
 0x8f0   : > { %14084 = vmatprep.subr.bf16.mxu0 %v16638_v13  ;;  %14125 = vmatprep.subr.bf16.mxu1 %v16640_v19  ;;  %v1638_v13 = vld [vmem:[%s17872_s12 + $0x2898] sm:$0xff]  ;;  %v16733_v19 = vcombine.low %v1589_v9, %v1605_v54  ;;  %v16766_v45 = vcombine.high %v1621_v21, %v1637_v8 }
 0x8f1   : > { %v16768_v15 = vcombine.high %v1622_v10, %v1638_v13  ;;  %v16767_v59 = vcombine.low %v1622_v10, %v1638_v13  ;;  %v2394_v13 = vld [vmem:[%s18756_s5 + $0x10] sm:$0xff] }
 0x8f7   : > { %14085 = vmatpush1.bf16.xpose.msra.mxu0 %v16637_v7  ;;  %14126 = vmatpush1.bf16.xpose.msra.mxu1 %v16639_v23  ;;  %v1669_v7 = vld [vmem:[%s17872_s12 + $0x2990] sm:$0xff]  ;;  %v1654_v23 = vld [vmem:[%s17872_s12 + $0x2918] sm:$0xff] }
 0x8f8   : > { %14086 = vmatprep.subr.bf16.mxu0 %v16670_v31  ;;  %14127 = vmatprep.subr.bf16.mxu1 %v16672_v57  ;;  %v1670_v31 = vld [vmem:[%s17872_s12 + $0x2998] sm:$0xff]  ;;  %v16765_v57 = vcombine.low %v1621_v21, %v1637_v8  ;;  %v16798_v0 = vcombine.high %v1653_v6, %v1669_v7 }
 0x8f9   : > { %v16800_v18 = vcombine.high %v1654_v23, %v1670_v31  ;;  %v16799_v9 = vcombine.low %v1654_v23, %v1670_v31  ;;  %v15308_v23 = vmul.f32 2.0, %v2394_v13 }
 0x8ff   : > { %14087 = vmatpush1.bf16.xpose.msra.mxu0 %v16669_v46  ;;  %14128 = vmatpush1.bf16.xpose.msra.mxu1 %v16671_v51  ;;  %v1701_v46 = vld [vmem:[%s17872_s12 + $0x2a90] sm:$0xff]  ;;  %v1686_v51 = vld [vmem:[%s17872_s12 + $0x2a18] sm:$0xff] }
 0x900   : > { %14088 = vmatprep.subr.bf16.mxu0 %v16702_v25  ;;  %14129 = vmatprep.subr.bf16.mxu1 %v16704_v55  ;;  %v1702_v25 = vld [vmem:[%s17872_s12 + $0x2a98] sm:$0xff]  ;;  %v16797_v55 = vcombine.low %v1653_v6, %v1669_v7  ;;  %v16830_v54 = vcombine.high %v1685_v43, %v1701_v46 }
 0x901   : > { %v16832_v58 = vcombine.high %v1686_v51, %v1702_v25  ;;  %v16831_v21 = vcombine.low %v1686_v51, %v1702_v25 }
 0x907   : > { %14089 = vmatpush1.bf16.xpose.msra.mxu0 %v16701_v37  ;;  %14130 = vmatpush1.bf16.xpose.msra.mxu1 %v16703_v4  ;;  %v1733_v37 = vld [vmem:[%s17872_s12 + $0x2b90] sm:$0xff]  ;;  %v1718_v4 = vld [vmem:[%s17872_s12 + $0x2b18] sm:$0xff] }
 0x908   : > { %14090 = vmatprep.subr.bf16.mxu0 %v16734_v32  ;;  %14131 = vmatprep.subr.bf16.mxu1 %v16736_v17  ;;  %v1734_v32 = vld [vmem:[%s17872_s12 + $0x2b98] sm:$0xff]  ;;  %v16829_v17 = vcombine.low %v1685_v43, %v1701_v46  ;;  %v16862_v8 = vcombine.high %v1717_v1, %v1733_v37  ;;  %v16861_v51 = vcombine.low %v1717_v1, %v1733_v37  ;;  %v1781_v1 = vld [vmem:[%s17872_s12 + $0x2d10] sm:$0xff] }
 0x909   : > { %v16864_v10 = vcombine.high %v1718_v4, %v1734_v32  ;;  %v1797_v37 = vld [vmem:[%s17872_s12 + $0x2d90] sm:$0xff] }
 0x90f   : > { %14091 = vmatpush1.bf16.xpose.msra.mxu0 %v16733_v19  ;;  %14132 = vmatpush1.bf16.xpose.msra.mxu1 %v16735_v22  ;;  %v2395_v19 = vld [vmem:[%s18756_s5 + $0x18] sm:$0xff] }
 0x910   : > { %14092 = vmatprep.subr.bf16.mxu0 %v16766_v45  ;;  %14133 = vmatprep.subr.bf16.mxu1 %v16768_v15  ;;  %v1749_v45 = vld [vmem:[%s17872_s12 + $0x2c10] sm:$0xff]  ;;  %v15309_v43 = vmul.f32 2.0, %v2395_v19  ;;  %v16926_v19 = vcombine.high %v1781_v1, %v1797_v37 }
 0x911   : > { %v1765_v15 = vld [vmem:[%s17872_s12 + $0x2c90] sm:$0xff] }
 0x917   : > { %14093 = vmatpush1.bf16.xpose.msra.mxu0 %v16765_v57  ;;  %14134 = vmatpush1.bf16.xpose.msra.mxu1 %v16767_v59  ;;  %v1750_v57 = vld [vmem:[%s17872_s12 + $0x2c18] sm:$0xff] }
 0x918   : > { %14094 = vmatprep.subr.bf16.mxu0 %v16798_v0  ;;  %14135 = vmatprep.subr.bf16.mxu1 %v16800_v18  ;;  %v1766_v59 = vld [vmem:[%s17872_s12 + $0x2c98] sm:$0xff] }
 0x919   : > { %v16895_v13 = vcombine.low %v1750_v57, %v1766_v59 }
 0x91f   : > { %14095 = vmatpush1.bf16.xpose.msra.mxu0 %v16797_v55  ;;  %14136 = vmatpush1.bf16.xpose.msra.mxu1 %v16799_v9 }
 0x920   : > { %14096 = vmatprep.subr.bf16.mxu0 %v16830_v54  ;;  %14137 = vmatprep.subr.bf16.mxu1 %v16832_v58  ;;  %v16894_v54 = vcombine.high %v1749_v45, %v1765_v15 }
 0x927   : > { %14097 = vmatpush1.bf16.xpose.msra.mxu0 %v16829_v17  ;;  %14138 = vmatpush1.bf16.xpose.msra.mxu1 %v16831_v21  ;;  %v16896_v21 = vcombine.high %v1750_v57, %v1766_v59  ;;  %v1846_v57 = vld [vmem:[%s17872_s12 + $0x2f18] sm:$0xff] }
 0x928   : > { %14098 = vmatprep.subr.bf16.mxu0 %v16862_v8  ;;  %14139 = vmatprep.subr.bf16.mxu1 %v16864_v10  ;;  %v16893_v10 = vcombine.low %v1749_v45, %v1765_v15  ;;  %v1845_v45 = vld [vmem:[%s17872_s12 + $0x2f10] sm:$0xff]  ;;  %v1862_v59 = vld [vmem:[%s17872_s12 + $0x2f98] sm:$0xff] }
 0x929   : > { %v13946_v22 = vpop.f32.mrb[60].mxu0  ;;  %v13987_v7 = vpop.f32.mrb[60].mxu1  ;;  %v1861_v15 = vld [vmem:[%s17872_s12 + $0x2f90] sm:$0xff] }
 0x92a   : > { %v13947_v6 = vadd.f32 %v13946_v22, %v19288_v63  ;;  %v13948_v31 = vpop.f32.mrb[61].mxu0  ;;  %v13989_v18 = vpop.f32.mrb[61].mxu1  ;;  %v16863_v63 = vcombine.low %v1718_v4, %v1734_v32  ;;  %v1782_v4 = vld [vmem:[%s17872_s12 + $0x2d18] sm:$0xff] }
 0x92b   : > { %v13949_v0 = vadd.f32 %v13948_v31, %v19290_v12  ;;  %v13950_v46 = vpop.f32.mrb[62].mxu0  ;;  %v13991_v55 = vpop.f32.mrb[62].mxu1  ;;  %v1798_v32 = vld [vmem:[%s17872_s12 + $0x2d98] sm:$0xff] }
 0x92c   : > { %v13988_v25 = vadd.f32 %v13987_v7, %v13947_v6  ;;  %v13951_v9 = vpop.f32.mrb[63].mxu0  ;;  %v13992_v17 = vpop.f32.mrb[63].mxu1  ;;  %v16928_v22 = vcombine.high %v1782_v4, %v1798_v32  ;;  %v1813_v6 = vld [vmem:[%s17872_s12 + $0x2e10] sm:$0xff]  ;;  %v1830_v31 = vld [vmem:[%s17872_s12 + $0x2e98] sm:$0xff]  ;;  %v16990_v55 = vcombine.high %v1845_v45, %v1861_v15 }
 0x92d   : > { %v13990_v58 = vadd.f32 %v13989_v18, %v13949_v0  ;;  %v1829_v7 = vld [vmem:[%s17872_s12 + $0x2e90] sm:$0xff]  ;;  %v16925_v0 = vcombine.low %v1781_v1, %v1797_v37  ;;  %v16927_v18 = vcombine.low %v1782_v4, %v1798_v32  ;;  %v16992_v9 = vcombine.high %v1846_v57, %v1862_v59  ;;  %v1384_v17 = vld [vmem:[%s17872_s12 + $0x20a8] sm:$0xff]  ;;  %v1399_v37 = vld [vmem:[%s17872_s12 + $0x2120] sm:$0xff] }
 0x92e   : > { %v15316_v8 = vadd.f32 %v15308_v23, %v13988_v25  ;;  %v1814_v23 = vld [vmem:[%s17872_s12 + $0x2e18] sm:$0xff]  ;;  %v1415_v4 = vld [vmem:[%s17872_s12 + $0x21a0] sm:$0xff]  ;;  %v1400_v32 = vld [vmem:[%s17872_s12 + $0x2128] sm:$0xff] }
 0x92f   : > { %v15317_v12 = vadd.f32 %v15309_v43, %v13990_v58  ;;  %14099 = vmatpush1.bf16.xpose.msra.mxu0 %v16861_v51  ;;  %14140 = vmatpush1.bf16.xpose.msra.mxu1 %v16863_v63  ;;  %v16958_v43 = vcombine.high %v1813_v6, %v1829_v7  ;;  %v16960_v46 = vcombine.high %v1814_v23, %v1830_v31  ;;  %v1367_v63 = vld [vmem:[%s17872_s12 + $0x2020] sm:$0xff]  ;;  %v1368_v58 = vld [vmem:[%s17872_s12 + $0x2028] sm:$0xff] }
 0x930   : > { %15324 = vst [vmem:[%s18769_s4 + $0x10] sm:$0xff] %v15316_v8  ;;  %14100 = vmatprep.subr.bf16.mxu0 %v16894_v54  ;;  %14141 = vmatprep.subr.bf16.mxu1 %v16896_v21  ;;  %v16957_v51 = vcombine.low %v1813_v6, %v1829_v7  ;;  %v16959_v25 = vcombine.low %v1814_v23, %v1830_v31  ;;  %v1383_v54 = vld [vmem:[%s17872_s12 + $0x20a0] sm:$0xff]  ;;  %v1432_v31 = vld [vmem:[%s17872_s12 + $0x2228] sm:$0xff] }
 0x931   : > { %15325 = vst [vmem:[%s18769_s4 + $0x18] sm:$0xff] %v15317_v12  ;;  %v16989_v21 = vcombine.low %v1845_v45, %v1861_v15  ;;  %v16991_v8 = vcombine.low %v1846_v57, %v1862_v59  ;;  %v16514_v12 = vcombine.high %v1367_v63, %v1383_v54  ;;  %v16516_v1 = vcombine.high %v1368_v58, %v1384_v17  ;;  %v1431_v7 = vld [vmem:[%s17872_s12 + $0x2220] sm:$0xff]  ;;  %v1464_v59 = vld [vmem:[%s17872_s12 + $0x2328] sm:$0xff] }
 0x932   : > { %v1447_v23 = vld [vmem:[%s17872_s12 + $0x22a0] sm:$0xff] }
 0x933   : > { %v1463_v15 = vld [vmem:[%s17872_s12 + $0x2320] sm:$0xff] }
 0x934   : > { %v1479_v57 = vld [vmem:[%s17872_s12 + $0x23a0] sm:$0xff] }
 0x937   : > { %14101 = vmatpush1.bf16.xpose.msra.mxu0 %v16893_v10  ;;  %14142 = vmatpush1.bf16.xpose.msra.mxu1 %v16895_v13  ;;  %v1416_v10 = vld [vmem:[%s17872_s12 + $0x21a8] sm:$0xff]  ;;  %v16513_v13 = vcombine.low %v1367_v63, %v1383_v54  ;;  %v1495_v54 = vld [vmem:[%s17872_s12 + $0x2420] sm:$0xff] }
 0x938   : > { %14102 = vmatprep.subr.bf16.mxu0 %v16926_v19  ;;  %14143 = vmatprep.subr.bf16.mxu1 %v16928_v22  ;;  %v16515_v19 = vcombine.low %v1368_v58, %v1384_v17  ;;  %v16546_v22 = vcombine.high %v1399_v37, %v1415_v4  ;;  %v16548_v6 = vcombine.high %v1400_v32, %v1416_v10  ;;  %v1511_v58 = vld [vmem:[%s17872_s12 + $0x24a0] sm:$0xff]  ;;  %v1496_v17 = vld [vmem:[%s17872_s12 + $0x2428] sm:$0xff] }
 0x93f   : > { %14103 = vmatpush1.bf16.xpose.msra.mxu0 %v16925_v0  ;;  %14144 = vmatpush1.bf16.xpose.msra.mxu1 %v16927_v18  ;;  %v1448_v0 = vld [vmem:[%s17872_s12 + $0x22a8] sm:$0xff]  ;;  %v16545_v18 = vcombine.low %v1399_v37, %v1415_v4  ;;  %v1527_v4 = vld [vmem:[%s17872_s12 + $0x2520] sm:$0xff] }
 0x940   : > { %14104 = vmatprep.subr.bf16.mxu0 %v16958_v43  ;;  %14145 = vmatprep.subr.bf16.mxu1 %v16960_v46  ;;  %v16547_v43 = vcombine.low %v1400_v32, %v1416_v10  ;;  %v16578_v46 = vcombine.high %v1431_v7, %v1447_v23  ;;  %v16580_v45 = vcombine.high %v1432_v31, %v1448_v0  ;;  %v1543_v32 = vld [vmem:[%s17872_s12 + $0x25a0] sm:$0xff]  ;;  %v1528_v10 = vld [vmem:[%s17872_s12 + $0x2528] sm:$0xff] }
 0x947   : > { %14105 = vmatpush1.bf16.xpose.msra.mxu0 %v16957_v51  ;;  %14146 = vmatpush1.bf16.xpose.msra.mxu1 %v16959_v25  ;;  %v1480_v51 = vld [vmem:[%s17872_s12 + $0x23a8] sm:$0xff]  ;;  %v16577_v25 = vcombine.low %v1431_v7, %v1447_v23  ;;  %v1559_v23 = vld [vmem:[%s17872_s12 + $0x2620] sm:$0xff] }
 0x948   : > { %14106 = vmatprep.subr.bf16.mxu0 %v16990_v55  ;;  %14147 = vmatprep.subr.bf16.mxu1 %v16992_v9  ;;  %v16579_v55 = vcombine.low %v1432_v31, %v1448_v0  ;;  %v16610_v9 = vcombine.high %v1463_v15, %v1479_v57  ;;  %v16612_v63 = vcombine.high %v1464_v59, %v1480_v51  ;;  %v1575_v31 = vld [vmem:[%s17872_s12 + $0x26a0] sm:$0xff]  ;;  %v1560_v0 = vld [vmem:[%s17872_s12 + $0x2628] sm:$0xff] }
 0x94f   : > { %14107 = vmatpush1.bf16.xpose.msra.mxu0 %v16989_v21  ;;  %14148 = vmatpush1.bf16.xpose.msra.mxu1 %v16991_v8  ;;  %v1512_v21 = vld [vmem:[%s17872_s12 + $0x24a8] sm:$0xff]  ;;  %v16609_v8 = vcombine.low %v1463_v15, %v1479_v57  ;;  %v1591_v57 = vld [vmem:[%s17872_s12 + $0x2720] sm:$0xff] }
 0x950   : > { %14158 = vmatprep.subr.bf16.mxu0 %v16514_v12  ;;  %14199 = vmatprep.subr.bf16.mxu1 %v16516_v1  ;;  %v16611_v12 = vcombine.low %v1464_v59, %v1480_v51  ;;  %v16642_v1 = vcombine.high %v1495_v54, %v1511_v58  ;;  %v16644_v37 = vcombine.high %v1496_v17, %v1512_v21  ;;  %v1607_v59 = vld [vmem:[%s17872_s12 + $0x27a0] sm:$0xff]  ;;  %v1592_v51 = vld [vmem:[%s17872_s12 + $0x2728] sm:$0xff] }
 0x956   : > { %14109 = vmatmul.mubr.bf16.vlgmr.msra.gmra.mrb[68].mxu0 %v18060_v38  ;;  %14150 = vmatmul.mubr.bf16.vlgmr.msra.gmra.mrb[68].mxu1 %v18067_v42 }
 0x957   : > { %14159 = vmatpush1.bf16.xpose.msra.mxu0 %v16513_v13  ;;  %14200 = vmatpush1.bf16.xpose.msra.mxu1 %v16515_v19  ;;  %v1544_v13 = vld [vmem:[%s17872_s12 + $0x25a8] sm:$0xff]  ;;  %v16641_v19 = vcombine.low %v1495_v54, %v1511_v58  ;;  %v1623_v58 = vld [vmem:[%s17872_s12 + $0x2820] sm:$0xff] }
 0x958   : > { %14160 = vmatprep.subr.bf16.mxu0 %v16546_v22  ;;  %14201 = vmatprep.subr.bf16.mxu1 %v16548_v6  ;;  %v16643_v22 = vcombine.low %v1496_v17, %v1512_v21  ;;  %v16674_v6 = vcombine.high %v1527_v4, %v1543_v32  ;;  %v16676_v7 = vcombine.high %v1528_v10, %v1544_v13  ;;  %v1639_v17 = vld [vmem:[%s17872_s12 + $0x28a0] sm:$0xff]  ;;  %v1624_v21 = vld [vmem:[%s17872_s12 + $0x2828] sm:$0xff] }
 0x959   : > { %14190 = vmatprep.mubr.bf16.mxu0 %v18072_v48  ;;  %14231 = vmatprep.mubr.bf16.mxu1 %v18075_v49 }
 0x95f   : > { %14161 = vmatpush1.bf16.xpose.msra.mxu0 %v16545_v18  ;;  %14202 = vmatpush1.bf16.xpose.msra.mxu1 %v16547_v43  ;;  %v1576_v18 = vld [vmem:[%s17872_s12 + $0x26a8] sm:$0xff]  ;;  %v16673_v43 = vcombine.low %v1527_v4, %v1543_v32  ;;  %v1655_v32 = vld [vmem:[%s17872_s12 + $0x2920] sm:$0xff] }
 0x960   : > { %14162 = vmatprep.subr.bf16.mxu0 %v16578_v46  ;;  %14203 = vmatprep.subr.bf16.mxu1 %v16580_v45  ;;  %v16675_v46 = vcombine.low %v1528_v10, %v1544_v13  ;;  %v16706_v45 = vcombine.high %v1559_v23, %v1575_v31  ;;  %v16708_v15 = vcombine.high %v1560_v0, %v1576_v18  ;;  %v1671_v10 = vld [vmem:[%s17872_s12 + $0x29a0] sm:$0xff]  ;;  %v1656_v13 = vld [vmem:[%s17872_s12 + $0x2928] sm:$0xff] }
 0x967   : > { %14163 = vmatpush1.bf16.xpose.msra.mxu0 %v16577_v25  ;;  %14204 = vmatpush1.bf16.xpose.msra.mxu1 %v16579_v55  ;;  %v1608_v25 = vld [vmem:[%s17872_s12 + $0x27a8] sm:$0xff]  ;;  %v16705_v55 = vcombine.low %v1559_v23, %v1575_v31  ;;  %v1687_v31 = vld [vmem:[%s17872_s12 + $0x2a20] sm:$0xff] }
 0x968   : > { %14164 = vmatprep.subr.bf16.mxu0 %v16610_v9  ;;  %14205 = vmatprep.subr.bf16.mxu1 %v16612_v63  ;;  %v16707_v9 = vcombine.low %v1560_v0, %v1576_v18  ;;  %v16738_v63 = vcombine.high %v1591_v57, %v1607_v59  ;;  %v16740_v54 = vcombine.high %v1592_v51, %v1608_v25  ;;  %v1703_v0 = vld [vmem:[%s17872_s12 + $0x2aa0] sm:$0xff]  ;;  %v1688_v18 = vld [vmem:[%s17872_s12 + $0x2a28] sm:$0xff] }
 0x96f   : > { %14165 = vmatpush1.bf16.xpose.msra.mxu0 %v16609_v8  ;;  %14206 = vmatpush1.bf16.xpose.msra.mxu1 %v16611_v12  ;;  %v1640_v8 = vld [vmem:[%s17872_s12 + $0x28a8] sm:$0xff]  ;;  %v16737_v12 = vcombine.low %v1591_v57, %v1607_v59  ;;  %v1719_v59 = vld [vmem:[%s17872_s12 + $0x2b20] sm:$0xff] }
 0x970   : > { %14166 = vmatprep.subr.bf16.mxu0 %v16642_v1  ;;  %14207 = vmatprep.subr.bf16.mxu1 %v16644_v37  ;;  %v16739_v1 = vcombine.low %v1592_v51, %v1608_v25  ;;  %v16770_v37 = vcombine.high %v1623_v58, %v1639_v17  ;;  %v16772_v4 = vcombine.high %v1624_v21, %v1640_v8  ;;  %v1735_v51 = vld [vmem:[%s17872_s12 + $0x2ba0] sm:$0xff]  ;;  %v2420_v25 = vsub.s32 4, %v18116_v5 }
 0x977   : > { %14167 = vmatpush1.bf16.xpose.msra.mxu0 %v16641_v19  ;;  %14208 = vmatpush1.bf16.xpose.msra.mxu1 %v16643_v22  ;;  %v1672_v19 = vld [vmem:[%s17872_s12 + $0x29a8] sm:$0xff]  ;;  %v16769_v22 = vcombine.low %v1623_v58, %v1639_v17  ;;  %v16866_v17 = vcombine.high %v1719_v59, %v1735_v51 }
 0x978   : > { %14168 = vmatprep.subr.bf16.mxu0 %v16674_v6  ;;  %14209 = vmatprep.subr.bf16.mxu1 %v16676_v7  ;;  %v16771_v6 = vcombine.low %v1624_v21, %v1640_v8  ;;  %v16802_v7 = vcombine.high %v1655_v32, %v1671_v10  ;;  %v16804_v23 = vcombine.high %v1656_v13, %v1672_v19  ;;  %v17597_v8 = vld [vmem:[%s17878_s7] sm:$0xff] }
 0x97f   : > { %14169 = vmatpush1.bf16.xpose.msra.mxu0 %v16673_v43  ;;  %14210 = vmatpush1.bf16.xpose.msra.mxu1 %v16675_v46  ;;  %v1704_v43 = vld [vmem:[%s17872_s12 + $0x2aa8] sm:$0xff]  ;;  %v16801_v46 = vcombine.low %v1655_v32, %v1671_v10  ;;  %v1767_v32 = vld [vmem:[%s17872_s12 + $0x2ca0] sm:$0xff] }
 0x980   : > { %14170 = vmatprep.subr.bf16.mxu0 %v16706_v45  ;;  %14211 = vmatprep.subr.bf16.mxu1 %v16708_v15  ;;  %v16803_v45 = vcombine.low %v1656_v13, %v1672_v19  ;;  %v16834_v15 = vcombine.high %v1687_v31, %v1703_v0  ;;  %v16836_v57 = vcombine.high %v1688_v18, %v1704_v43 }
 0x981   : > { %v16835_v58 = vcombine.low %v1688_v18, %v1704_v43 }
 0x987   : > { %14171 = vmatpush1.bf16.xpose.msra.mxu0 %v16705_v55  ;;  %14212 = vmatpush1.bf16.xpose.msra.mxu1 %v16707_v9  ;;  %v1720_v55 = vld [vmem:[%s17872_s12 + $0x2b28] sm:$0xff] }
 0x988   : > { %14172 = vmatprep.subr.bf16.mxu0 %v16738_v63  ;;  %14213 = vmatprep.subr.bf16.mxu1 %v16740_v54  ;;  %v1736_v9 = vld [vmem:[%s17872_s12 + $0x2ba8] sm:$0xff]  ;;  %v16833_v63 = vcombine.low %v1687_v31, %v1703_v0  ;;  %v2424_v54 = vsub.s32 5, %v18116_v5  ;;  %v16865_v0 = vcombine.low %v1719_v59, %v1735_v51  ;;  %v1783_v59 = vld [vmem:[%s17872_s12 + $0x2d20] sm:$0xff] }
 0x989   : > { %v16868_v21 = vcombine.high %v1720_v55, %v1736_v9  ;;  %v1799_v51 = vld [vmem:[%s17872_s12 + $0x2da0] sm:$0xff] }
 0x98f   : > { %14173 = vmatpush1.bf16.xpose.msra.mxu0 %v16737_v12  ;;  %14214 = vmatpush1.bf16.xpose.msra.mxu1 %v16739_v1  ;;  %v2421_v12 = vrot.slane %v17597_v8, %v2420_v25  ;;  %v2425_v1 = vrot.slane %v17597_v8, %v2424_v54  ;;  %v1784_v54 = vld [vmem:[%s17872_s12 + $0x2d28] sm:$0xff]  ;;  %v1815_v8 = vld [vmem:[%s17872_s12 + $0x2e20] sm:$0xff] }
 0x990   : > { %14174 = vmatprep.subr.bf16.mxu0 %v16770_v37  ;;  %14215 = vmatprep.subr.bf16.mxu1 %v16772_v4  ;;  %v1751_v4 = vld [vmem:[%s17872_s12 + $0x2c20] sm:$0xff] }
 0x997   : > { %14175 = vmatpush1.bf16.xpose.msra.mxu0 %v16769_v22  ;;  %14216 = vmatpush1.bf16.xpose.msra.mxu1 %v16771_v6  ;;  %v1752_v22 = vld [vmem:[%s17872_s12 + $0x2c28] sm:$0xff] }
 0x998   : > { %14176 = vmatprep.subr.bf16.mxu0 %v16802_v7  ;;  %14217 = vmatprep.subr.bf16.mxu1 %v16804_v23  ;;  %v1768_v6 = vld [vmem:[%s17872_s12 + $0x2ca8] sm:$0xff] }
 0x99f   : > { %14177 = vmatpush1.bf16.xpose.msra.mxu0 %v16801_v46  ;;  %14218 = vmatpush1.bf16.xpose.msra.mxu1 %v16803_v45  ;;  %v16867_v45 = vcombine.low %v1720_v55, %v1736_v9  ;;  %v16930_v55 = vcombine.high %v1783_v59, %v1799_v51 }
 0x9a0   : > { %14178 = vmatprep.subr.bf16.mxu0 %v16834_v15  ;;  %14219 = vmatprep.subr.bf16.mxu1 %v16836_v57  ;;  %v16898_v15 = vcombine.high %v1751_v4, %v1767_v32 }
 0x9a7   : > { %14179 = vmatpush1.bf16.xpose.msra.mxu0 %v16833_v63  ;;  %14220 = vmatpush1.bf16.xpose.msra.mxu1 %v16835_v58  ;;  %v16900_v63 = vcombine.high %v1752_v22, %v1768_v6  ;;  %v1800_v58 = vld [vmem:[%s17872_s12 + $0x2da8] sm:$0xff] }
 0x9a8   : > { %14180 = vmatprep.subr.bf16.mxu0 %v16866_v17  ;;  %14221 = vmatprep.subr.bf16.mxu1 %v16868_v21  ;;  %v16897_v17 = vcombine.low %v1751_v4, %v1767_v32  ;;  %v16899_v21 = vcombine.low %v1752_v22, %v1768_v6  ;;  %v16932_v9 = vcombine.high %v1784_v54, %v1800_v58  ;;  %v1847_v4 = vld [vmem:[%s17872_s12 + $0x2f20] sm:$0xff]  ;;  %v1848_v22 = vld [vmem:[%s17872_s12 + $0x2f28] sm:$0xff] }
 0x9a9   : > { %v14028_v37 = vpop.f32.mrb[64].mxu0  ;;  %v14069_v13 = vpop.f32.mrb[64].mxu1  ;;  %v1863_v32 = vld [vmem:[%s17872_s12 + $0x2fa0] sm:$0xff]  ;;  %v1864_v6 = vld [vmem:[%s17872_s12 + $0x2fa8] sm:$0xff] }
 0x9aa   : > { %v14029_v10 = vadd.f32 %v14028_v37, %v2421_v12  ;;  %v14030_v19 = vpop.f32.mrb[65].mxu0  ;;  %v14071_v23 = vpop.f32.mrb[65].mxu1  ;;  %v1831_v12 = vld [vmem:[%s17872_s12 + $0x2ea0] sm:$0xff]  ;;  %v1832_v37 = vld [vmem:[%s17872_s12 + $0x2ea8] sm:$0xff] }
 0x9ab   : > { %v14031_v7 = vadd.f32 %v14030_v19, %v2425_v1  ;;  %v14032_v31 = vpop.f32.mrb[66].mxu0  ;;  %v14073_v43 = vpop.f32.mrb[66].mxu1  ;;  %v1816_v1 = vld [vmem:[%s17872_s12 + $0x2e28] sm:$0xff]  ;;  %v16962_v19 = vcombine.high %v1815_v8, %v1831_v12 }
 0x9ac   : > { %v19437_v18 = vadd.f32 %v14069_v13, %v14029_v10  ;;  %v14033_v46 = vpop.f32.mrb[67].mxu0  ;;  %v14074_v25 = vpop.f32.mrb[67].mxu1  ;;  %v16929_v10 = vcombine.low %v1783_v59, %v1799_v51  ;;  %v16931_v13 = vcombine.low %v1784_v54, %v1800_v58  ;;  %v16963_v31 = vcombine.low %v1816_v1, %v1832_v37  ;;  %v1401_v58 = vld [vmem:[%s17872_s12 + $0x2130] sm:$0xff] }
 0x9ad   : > { %v19439_v57 = vadd.f32 %v14071_v23, %v14031_v7  ;;  %v16964_v7 = vcombine.high %v1816_v1, %v1832_v37  ;;  %v16961_v23 = vcombine.low %v1815_v8, %v1831_v12  ;;  %v16996_v43 = vcombine.high %v1848_v22, %v1864_v6  ;;  %v1369_v46 = vld [vmem:[%s17872_s12 + $0x2030] sm:$0xff]  ;;  %v1386_v25 = vld [vmem:[%s17872_s12 + $0x20b8] sm:$0xff] }
 0x9ae   : > { %v16995_v59 = vcombine.low %v1848_v22, %v1864_v6  ;;  %v1433_v37 = vld [vmem:[%s17872_s12 + $0x2230] sm:$0xff] }
 0x9af   : > { %14181 = vmatpush1.bf16.xpose.msra.mxu0 %v16865_v0  ;;  %14222 = vmatpush1.bf16.xpose.msra.mxu1 %v16867_v45  ;;  %v16994_v0 = vcombine.high %v1847_v4, %v1863_v32  ;;  %v1385_v45 = vld [vmem:[%s17872_s12 + $0x20b0] sm:$0xff] }
 0x9b0   : > { %14182 = vmatprep.subr.bf16.mxu0 %v16898_v15  ;;  %14223 = vmatprep.subr.bf16.mxu1 %v16900_v63  ;;  %v1370_v15 = vld [vmem:[%s17872_s12 + $0x2038] sm:$0xff]  ;;  %v16993_v63 = vcombine.low %v1847_v4, %v1863_v32  ;;  %v16518_v51 = vcombine.high %v1369_v46, %v1385_v45  ;;  %v1465_v6 = vld [vmem:[%s17872_s12 + $0x2330] sm:$0xff] }
 0x9b1   : > { %v16520_v54 = vcombine.high %v1370_v15, %v1386_v25  ;;  %v16519_v8 = vcombine.low %v1370_v15, %v1386_v25  ;;  %v1497_v25 = vld [vmem:[%s17872_s12 + $0x2430] sm:$0xff] }
 0x9b7   : > { %14183 = vmatpush1.bf16.xpose.msra.mxu0 %v16897_v17  ;;  %14224 = vmatpush1.bf16.xpose.msra.mxu1 %v16899_v21  ;;  %v1417_v17 = vld [vmem:[%s17872_s12 + $0x21b0] sm:$0xff]  ;;  %v1402_v21 = vld [vmem:[%s17872_s12 + $0x2138] sm:$0xff] }
 0x9b8   : > { %14184 = vmatprep.subr.bf16.mxu0 %v16930_v55  ;;  %14225 = vmatprep.subr.bf16.mxu1 %v16932_v9  ;;  %v1418_v55 = vld [vmem:[%s17872_s12 + $0x21b8] sm:$0xff]  ;;  %v16517_v9 = vcombine.low %v1369_v46, %v1385_v45  ;;  %v16550_v12 = vcombine.high %v1401_v58, %v1417_v17 }
 0x9b9   : > { %v16552_v1 = vcombine.high %v1402_v21, %v1418_v55  ;;  %v16551_v4 = vcombine.low %v1402_v21, %v1418_v55  ;;  %v1529_v55 = vld [vmem:[%s17872_s12 + $0x2530] sm:$0xff] }
 0x9bf   : > { %14185 = vmatpush1.bf16.xpose.msra.mxu0 %v16929_v10  ;;  %14226 = vmatpush1.bf16.xpose.msra.mxu1 %v16931_v13  ;;  %v1449_v10 = vld [vmem:[%s17872_s12 + $0x22b0] sm:$0xff]  ;;  %v1434_v13 = vld [vmem:[%s17872_s12 + $0x2238] sm:$0xff] }
 0x9c0   : > { %14186 = vmatprep.subr.bf16.mxu0 %v16962_v19  ;;  %14227 = vmatprep.subr.bf16.mxu1 %v16964_v7  ;;  %v1450_v19 = vld [vmem:[%s17872_s12 + $0x22b8] sm:$0xff]  ;;  %v16549_v7 = vcombine.low %v1401_v58, %v1417_v17  ;;  %v16582_v32 = vcombine.high %v1433_v37, %v1449_v10 }
 0x9c1   : > { %v16584_v22 = vcombine.high %v1434_v13, %v1450_v19  ;;  %v16583_v46 = vcombine.low %v1434_v13, %v1450_v19  ;;  %v1561_v19 = vld [vmem:[%s17872_s12 + $0x2630] sm:$0xff] }
 0x9c7   : > { %14187 = vmatpush1.bf16.xpose.msra.mxu0 %v16961_v23  ;;  %14228 = vmatpush1.bf16.xpose.msra.mxu1 %v16963_v31  ;;  %v1481_v23 = vld [vmem:[%s17872_s12 + $0x23b0] sm:$0xff]  ;;  %v1466_v31 = vld [vmem:[%s17872_s12 + $0x2338] sm:$0xff] }
 0x9c8   : > { %14188 = vmatprep.subr.bf16.mxu0 %v16994_v0  ;;  %14229 = vmatprep.subr.bf16.mxu1 %v16996_v43  ;;  %v1482_v0 = vld [vmem:[%s17872_s12 + $0x23b8] sm:$0xff]  ;;  %v16581_v43 = vcombine.low %v1433_v37, %v1449_v10  ;;  %v16614_v45 = vcombine.high %v1465_v6, %v1481_v23 }
 0x9c9   : > { %v16616_v15 = vcombine.high %v1466_v31, %v1482_v0  ;;  %v16615_v58 = vcombine.low %v1466_v31, %v1482_v0  ;;  %v1593_v0 = vld [vmem:[%s17872_s12 + $0x2730] sm:$0xff] }
 0x9cf   : > { %14189 = vmatpush1.bf16.xpose.msra.mxu0 %v16993_v63  ;;  %14230 = vmatpush1.bf16.xpose.msra.mxu1 %v16995_v59  ;;  %v1513_v63 = vld [vmem:[%s17872_s12 + $0x24b0] sm:$0xff]  ;;  %v1498_v59 = vld [vmem:[%s17872_s12 + $0x2438] sm:$0xff] }
 0x9d0   : > { %14240 = vmatprep.subr.bf16.mxu0 %v16518_v51  ;;  %14281 = vmatprep.subr.bf16.mxu1 %v16520_v54  ;;  %v1514_v51 = vld [vmem:[%s17872_s12 + $0x24b8] sm:$0xff]  ;;  %v16613_v54 = vcombine.low %v1465_v6, %v1481_v23  ;;  %v16646_v17 = vcombine.high %v1497_v25, %v1513_v63 }
 0x9d1   : > { %v16648_v21 = vcombine.high %v1498_v59, %v1514_v51  ;;  %v16647_v37 = vcombine.low %v1498_v59, %v1514_v51  ;;  %v1625_v51 = vld [vmem:[%s17872_s12 + $0x2830] sm:$0xff] }
 0x9d6   : > { %14191 = vmatmul.mubr.bf16.vlgmr.msra.gmra.mrb[72].mxu0 %v18157_v24  ;;  %14232 = vmatmul.mubr.bf16.vlgmr.msra.gmra.mrb[72].mxu1 %v18164_v30 }
 0x9d7   : > { %14241 = vmatpush1.bf16.xpose.msra.mxu0 %v16517_v9  ;;  %14282 = vmatpush1.bf16.xpose.msra.mxu1 %v16519_v8  ;;  %v1545_v9 = vld [vmem:[%s17872_s12 + $0x25b0] sm:$0xff]  ;;  %v1530_v8 = vld [vmem:[%s17872_s12 + $0x2538] sm:$0xff] }
 0x9d8   : > { %14242 = vmatprep.subr.bf16.mxu0 %v16550_v12  ;;  %14283 = vmatprep.subr.bf16.mxu1 %v16552_v1  ;;  %v1546_v12 = vld [vmem:[%s17872_s12 + $0x25b8] sm:$0xff]  ;;  %v16645_v1 = vcombine.low %v1497_v25, %v1513_v63  ;;  %v16678_v10 = vcombine.high %v1529_v55, %v1545_v9 }
 0x9d9   : > { %14272 = vmatprep.mubr.bf16.mxu0 %v18169_v40  ;;  %14313 = vmatprep.mubr.bf16.mxu1 %v18172_v41  ;;  %v16680_v13 = vcombine.high %v1530_v8, %v1546_v12  ;;  %v16679_v6 = vcombine.low %v1530_v8, %v1546_v12  ;;  %v1657_v12 = vld [vmem:[%s17872_s12 + $0x2930] sm:$0xff] }
 0x9df   : > { %14243 = vmatpush1.bf16.xpose.msra.mxu0 %v16549_v7  ;;  %14284 = vmatpush1.bf16.xpose.msra.mxu1 %v16551_v4  ;;  %v1577_v7 = vld [vmem:[%s17872_s12 + $0x26b0] sm:$0xff]  ;;  %v1562_v4 = vld [vmem:[%s17872_s12 + $0x2638] sm:$0xff] }
 0x9e0   : > { %14244 = vmatprep.subr.bf16.mxu0 %v16582_v32  ;;  %14285 = vmatprep.subr.bf16.mxu1 %v16584_v22  ;;  %v1578_v32 = vld [vmem:[%s17872_s12 + $0x26b8] sm:$0xff]  ;;  %v16677_v22 = vcombine.low %v1529_v55, %v1545_v9  ;;  %v16710_v23 = vcombine.high %v1561_v19, %v1577_v7 }
 0x9e1   : > { %v16712_v31 = vcombine.high %v1562_v4, %v1578_v32  ;;  %v16711_v25 = vcombine.low %v1562_v4, %v1578_v32  ;;  %v1689_v32 = vld [vmem:[%s17872_s12 + $0x2a30] sm:$0xff] }
 0x9e7   : > { %14245 = vmatpush1.bf16.xpose.msra.mxu0 %v16581_v43  ;;  %14286 = vmatpush1.bf16.xpose.msra.mxu1 %v16583_v46  ;;  %v1609_v43 = vld [vmem:[%s17872_s12 + $0x27b0] sm:$0xff]  ;;  %v1594_v46 = vld [vmem:[%s17872_s12 + $0x2738] sm:$0xff] }
 0x9e8   : > { %14246 = vmatprep.subr.bf16.mxu0 %v16614_v45  ;;  %14287 = vmatprep.subr.bf16.mxu1 %v16616_v15  ;;  %v1610_v45 = vld [vmem:[%s17872_s12 + $0x27b8] sm:$0xff]  ;;  %v16709_v15 = vcombine.low %v1561_v19, %v1577_v7  ;;  %v16742_v63 = vcombine.high %v1593_v0, %v1609_v43 }
 0x9e9   : > { %v16744_v59 = vcombine.high %v1594_v46, %v1610_v45  ;;  %v16743_v55 = vcombine.low %v1594_v46, %v1610_v45  ;;  %v1721_v45 = vld [vmem:[%s17872_s12 + $0x2b30] sm:$0xff] }
 0x9ef   : > { %14247 = vmatpush1.bf16.xpose.msra.mxu0 %v16613_v54  ;;  %14288 = vmatpush1.bf16.xpose.msra.mxu1 %v16615_v58  ;;  %v1641_v54 = vld [vmem:[%s17872_s12 + $0x28b0] sm:$0xff]  ;;  %v1626_v58 = vld [vmem:[%s17872_s12 + $0x2838] sm:$0xff] }
 0x9f0   : > { %14248 = vmatprep.subr.bf16.mxu0 %v16646_v17  ;;  %14289 = vmatprep.subr.bf16.mxu1 %v16648_v21  ;;  %v1642_v17 = vld [vmem:[%s17872_s12 + $0x28b8] sm:$0xff]  ;;  %v16741_v21 = vcombine.low %v1593_v0, %v1609_v43  ;;  %v16774_v9 = vcombine.high %v1625_v51, %v1641_v54 }
 0x9f1   : > { %v16776_v8 = vcombine.high %v1626_v58, %v1642_v17  ;;  %v16775_v19 = vcombine.low %v1626_v58, %v1642_v17 }
 0x9f7   : > { %14249 = vmatpush1.bf16.xpose.msra.mxu0 %v16645_v1  ;;  %14290 = vmatpush1.bf16.xpose.msra.mxu1 %v16647_v37  ;;  %v1673_v1 = vld [vmem:[%s17872_s12 + $0x29b0] sm:$0xff]  ;;  %v1658_v37 = vld [vmem:[%s17872_s12 + $0x2938] sm:$0xff] }
 0x9f8   : > { %14250 = vmatprep.subr.bf16.mxu0 %v16678_v10  ;;  %14291 = vmatprep.subr.bf16.mxu1 %v16680_v13  ;;  %v1674_v10 = vld [vmem:[%s17872_s12 + $0x29b8] sm:$0xff]  ;;  %v16773_v13 = vcombine.low %v1625_v51, %v1641_v54  ;;  %v16806_v7 = vcombine.high %v1657_v12, %v1673_v1 }
 0x9f9   : > { %v16808_v4 = vcombine.high %v1658_v37, %v1674_v10  ;;  %v16807_v0 = vcombine.low %v1658_v37, %v1674_v10  ;;  %v1770_v37 = vld [vmem:[%s17872_s12 + $0x2cb8] sm:$0xff] }
 0x9ff   : > { %14251 = vmatpush1.bf16.xpose.msra.mxu0 %v16677_v22  ;;  %14292 = vmatpush1.bf16.xpose.msra.mxu1 %v16679_v6  ;;  %v1705_v22 = vld [vmem:[%s17872_s12 + $0x2ab0] sm:$0xff]  ;;  %v1690_v6 = vld [vmem:[%s17872_s12 + $0x2a38] sm:$0xff] }
 0xa00   : > { %14252 = vmatprep.subr.bf16.mxu0 %v16710_v23  ;;  %14293 = vmatprep.subr.bf16.mxu1 %v16712_v31  ;;  %v1706_v23 = vld [vmem:[%s17872_s12 + $0x2ab8] sm:$0xff]  ;;  %v16805_v31 = vcombine.low %v1657_v12, %v1673_v1  ;;  %v16838_v43 = vcombine.high %v1689_v32, %v1705_v22 }
 0xa01   : > { %v16840_v46 = vcombine.high %v1690_v6, %v1706_v23  ;;  %v16839_v51 = vcombine.low %v1690_v6, %v1706_v23  ;;  %v1754_v1 = vld [vmem:[%s17872_s12 + $0x2c38] sm:$0xff] }
 0xa07   : > { %14253 = vmatpush1.bf16.xpose.msra.mxu0 %v16709_v15  ;;  %14294 = vmatpush1.bf16.xpose.msra.mxu1 %v16711_v25  ;;  %v1737_v15 = vld [vmem:[%s17872_s12 + $0x2bb0] sm:$0xff]  ;;  %v1722_v25 = vld [vmem:[%s17872_s12 + $0x2b38] sm:$0xff] }
 0xa08   : > { %14254 = vmatprep.subr.bf16.mxu0 %v16742_v63  ;;  %14295 = vmatprep.subr.bf16.mxu1 %v16744_v59  ;;  %v1738_v63 = vld [vmem:[%s17872_s12 + $0x2bb8] sm:$0xff]  ;;  %v16837_v59 = vcombine.low %v1689_v32, %v1705_v22  ;;  %v16870_v54 = vcombine.high %v1721_v45, %v1737_v15 }
 0xa09   : > { %v16872_v58 = vcombine.high %v1722_v25, %v1738_v63  ;;  %v16871_v6 = vcombine.low %v1722_v25, %v1738_v63 }
 0xa0f   : > { %14255 = vmatpush1.bf16.xpose.msra.mxu0 %v16741_v21  ;;  %14296 = vmatpush1.bf16.xpose.msra.mxu1 %v16743_v55  ;;  %v1753_v21 = vld [vmem:[%s17872_s12 + $0x2c30] sm:$0xff] }
 0xa10   : > { %14256 = vmatprep.subr.bf16.mxu0 %v16774_v9  ;;  %14297 = vmatprep.subr.bf16.mxu1 %v16776_v8  ;;  %v1769_v55 = vld [vmem:[%s17872_s12 + $0x2cb0] sm:$0xff] }
 0xa11   : > { %v16902_v23 = vcombine.high %v1753_v21, %v1769_v55 }
 0xa17   : > { %14257 = vmatpush1.bf16.xpose.msra.mxu0 %v16773_v13  ;;  %14298 = vmatpush1.bf16.xpose.msra.mxu1 %v16775_v19 }
 0xa18   : > { %14258 = vmatprep.subr.bf16.mxu0 %v16806_v7  ;;  %14299 = vmatprep.subr.bf16.mxu1 %v16808_v4  ;;  %v16869_v7 = vcombine.low %v1721_v45, %v1737_v15  ;;  %v1802_v45 = vld [vmem:[%s17872_s12 + $0x2db8] sm:$0xff]  ;;  %v16901_v15 = vcombine.low %v1753_v21, %v1769_v55  ;;  %v1849_v21 = vld [vmem:[%s17872_s12 + $0x2f30] sm:$0xff] }
 0xa19   : > { %v1865_v55 = vld [vmem:[%s17872_s12 + $0x2fb0] sm:$0xff] }
 0xa1f   : > { %14259 = vmatpush1.bf16.xpose.msra.mxu0 %v16805_v31  ;;  %14300 = vmatpush1.bf16.xpose.msra.mxu1 %v16807_v0  ;;  %v16904_v0 = vcombine.high %v1754_v1, %v1770_v37 }
 0xa20   : > { %14260 = vmatprep.subr.bf16.mxu0 %v16838_v43  ;;  %14301 = vmatprep.subr.bf16.mxu1 %v16840_v46  ;;  %v1801_v43 = vld [vmem:[%s17872_s12 + $0x2db0] sm:$0xff]  ;;  %v1786_v46 = vld [vmem:[%s17872_s12 + $0x2d38] sm:$0xff] }
 0xa21   : > { %v16936_v63 = vcombine.high %v1786_v46, %v1802_v45 }
 0xa27   : > { %14261 = vmatpush1.bf16.xpose.msra.mxu0 %v16837_v59  ;;  %14302 = vmatpush1.bf16.xpose.msra.mxu1 %v16839_v51  ;;  %v16903_v59 = vcombine.low %v1754_v1, %v1770_v37  ;;  %v1817_v51 = vld [vmem:[%s17872_s12 + $0x2e30] sm:$0xff]  ;;  %v1850_v1 = vld [vmem:[%s17872_s12 + $0x2f38] sm:$0xff] }
 0xa28   : > { %14262 = vmatprep.subr.bf16.mxu0 %v16870_v54  ;;  %14303 = vmatprep.subr.bf16.mxu1 %v16872_v58  ;;  %v1833_v54 = vld [vmem:[%s17872_s12 + $0x2eb0] sm:$0xff]  ;;  %v1818_v58 = vld [vmem:[%s17872_s12 + $0x2e38] sm:$0xff] }
 0xa29   : > { %v14110_v17 = vpop.f32.mrb[68].mxu0  ;;  %v14151_v8 = vpop.f32.mrb[68].mxu1  ;;  %v1866_v37 = vld [vmem:[%s17872_s12 + $0x2fb8] sm:$0xff] }
 0xa2a   : > { %v14111_v9 = vadd.f32 %v14110_v17, %v19437_v18  ;;  %v14112_v12 = vpop.f32.mrb[69].mxu0  ;;  %v14153_v13 = vpop.f32.mrb[69].mxu1  ;;  %v1834_v17 = vld [vmem:[%s17872_s12 + $0x2eb8] sm:$0xff] }
 0xa2b   : > { %v14113_v10 = vadd.f32 %v14112_v12, %v19439_v57  ;;  %v14114_v19 = vpop.f32.mrb[70].mxu0  ;;  %v14155_v32 = vpop.f32.mrb[70].mxu1  ;;  %v1785_v57 = vld [vmem:[%s17872_s12 + $0x2d30] sm:$0xff]  ;;  %v16966_v12 = vcombine.high %v1817_v51, %v1833_v54 }
 0xa2c   : > { %v19511_v4 = vadd.f32 %v14151_v8, %v14111_v9  ;;  %v14115_v22 = vpop.f32.mrb[71].mxu0  ;;  %v14156_v31 = vpop.f32.mrb[71].mxu1  ;;  %v16934_v25 = vcombine.high %v1785_v57, %v1801_v43  ;;  %v16933_v9 = vcombine.low %v1785_v57, %v1801_v43  ;;  %v16935_v8 = vcombine.low %v1786_v46, %v1802_v45  ;;  %v1403_v45 = vld [vmem:[%s17872_s12 + $0x2140] sm:$0xff] }
 0xa2d   : > { %v19513_v18 = vadd.f32 %v14153_v13, %v14113_v10  ;;  %v16968_v10 = vcombine.high %v1818_v58, %v1834_v17  ;;  %v16965_v13 = vcombine.low %v1817_v51, %v1833_v54  ;;  %v16967_v19 = vcombine.low %v1818_v58, %v1834_v17  ;;  %v1371_v22 = vld [vmem:[%s17872_s12 + $0x2040] sm:$0xff]  ;;  %v1388_v31 = vld [vmem:[%s17872_s12 + $0x20c8] sm:$0xff] }
 0xa2e   : > { %v17000_v32 = vcombine.high %v1850_v1, %v1866_v37  ;;  %v16999_v57 = vcombine.low %v1850_v1, %v1866_v37  ;;  %v1435_v17 = vld [vmem:[%s17872_s12 + $0x2240] sm:$0xff] }
 0xa2f   : > { %14263 = vmatpush1.bf16.xpose.msra.mxu0 %v16869_v7  ;;  %14304 = vmatpush1.bf16.xpose.msra.mxu1 %v16871_v6  ;;  %v16998_v7 = vcombine.high %v1849_v21, %v1865_v55  ;;  %v1387_v6 = vld [vmem:[%s17872_s12 + $0x20c0] sm:$0xff] }
 0xa30   : > { %14264 = vmatprep.subr.bf16.mxu0 %v16902_v23  ;;  %14305 = vmatprep.subr.bf16.mxu1 %v16904_v0  ;;  %v1372_v23 = vld [vmem:[%s17872_s12 + $0x2048] sm:$0xff]  ;;  %v16997_v0 = vcombine.low %v1849_v21, %v1865_v55  ;;  %v16522_v43 = vcombine.high %v1371_v22, %v1387_v6  ;;  %v1467_v37 = vld [vmem:[%s17872_s12 + $0x2340] sm:$0xff] }
 0xa31   : > { %v16524_v46 = vcombine.high %v1372_v23, %v1388_v31  ;;  %v16523_v51 = vcombine.low %v1372_v23, %v1388_v31  ;;  %v1499_v31 = vld [vmem:[%s17872_s12 + $0x2440] sm:$0xff] }
 0xa37   : > { %14265 = vmatpush1.bf16.xpose.msra.mxu0 %v16901_v15  ;;  %14306 = vmatpush1.bf16.xpose.msra.mxu1 %v16903_v59  ;;  %v1419_v15 = vld [vmem:[%s17872_s12 + $0x21c0] sm:$0xff]  ;;  %v1404_v59 = vld [vmem:[%s17872_s12 + $0x2148] sm:$0xff] }
 0xa38   : > { %14266 = vmatprep.subr.bf16.mxu0 %v16934_v25  ;;  %14307 = vmatprep.subr.bf16.mxu1 %v16936_v63  ;;  %v1420_v25 = vld [vmem:[%s17872_s12 + $0x21c8] sm:$0xff]  ;;  %v16521_v63 = vcombine.low %v1371_v22, %v1387_v6  ;;  %v16554_v54 = vcombine.high %v1403_v45, %v1419_v15 }
 0xa39   : > { %v16556_v58 = vcombine.high %v1404_v59, %v1420_v25  ;;  %v16555_v21 = vcombine.low %v1404_v59, %v1420_v25  ;;  %v1531_v25 = vld [vmem:[%s17872_s12 + $0x2540] sm:$0xff] }
 0xa3f   : > { %14267 = vmatpush1.bf16.xpose.msra.mxu0 %v16933_v9  ;;  %14308 = vmatpush1.bf16.xpose.msra.mxu1 %v16935_v8  ;;  %v1451_v9 = vld [vmem:[%s17872_s12 + $0x22c0] sm:$0xff]  ;;  %v1436_v8 = vld [vmem:[%s17872_s12 + $0x2248] sm:$0xff] }
 0xa40   : > { %14268 = vmatprep.subr.bf16.mxu0 %v16966_v12  ;;  %14309 = vmatprep.subr.bf16.mxu1 %v16968_v10  ;;  %v1452_v12 = vld [vmem:[%s17872_s12 + $0x22c8] sm:$0xff]  ;;  %v16553_v10 = vcombine.low %v1403_v45, %v1419_v15  ;;  %v16586_v55 = vcombine.high %v1435_v17, %v1451_v9 }
 0xa41   : > { %v16588_v1 = vcombine.high %v1436_v8, %v1452_v12  ;;  %v16587_v22 = vcombine.low %v1436_v8, %v1452_v12  ;;  %v1563_v12 = vld [vmem:[%s17872_s12 + $0x2640] sm:$0xff] }
 0xa47   : > { %14269 = vmatpush1.bf16.xpose.msra.mxu0 %v16965_v13  ;;  %14310 = vmatpush1.bf16.xpose.msra.mxu1 %v16967_v19  ;;  %v1483_v13 = vld [vmem:[%s17872_s12 + $0x23c0] sm:$0xff]  ;;  %v1468_v19 = vld [vmem:[%s17872_s12 + $0x2348] sm:$0xff] }
 0xa48   : > { %14270 = vmatprep.subr.bf16.mxu0 %v16998_v7  ;;  %14311 = vmatprep.subr.bf16.mxu1 %v17000_v32  ;;  %v1484_v7 = vld [vmem:[%s17872_s12 + $0x23c8] sm:$0xff]  ;;  %v16585_v32 = vcombine.low %v1435_v17, %v1451_v9  ;;  %v16618_v6 = vcombine.high %v1467_v37, %v1483_v13 }
 0xa49   : > { %v16620_v23 = vcombine.high %v1468_v19, %v1484_v7  ;;  %v16619_v45 = vcombine.low %v1468_v19, %v1484_v7  ;;  %v1595_v7 = vld [vmem:[%s17872_s12 + $0x2740] sm:$0xff] }
 0xa4f   : > { %14271 = vmatpush1.bf16.xpose.msra.mxu0 %v16997_v0  ;;  %14312 = vmatpush1.bf16.xpose.msra.mxu1 %v16999_v57  ;;  %v1515_v0 = vld [vmem:[%s17872_s12 + $0x24c0] sm:$0xff]  ;;  %v1500_v57 = vld [vmem:[%s17872_s12 + $0x2448] sm:$0xff] }
 0xa50   : > { %14322 = vmatprep.subr.bf16.mxu0 %v16522_v43  ;;  %14363 = vmatprep.subr.bf16.mxu1 %v16524_v46  ;;  %v1516_v43 = vld [vmem:[%s17872_s12 + $0x24c8] sm:$0xff]  ;;  %v16617_v46 = vcombine.low %v1467_v37, %v1483_v13  ;;  %v16650_v15 = vcombine.high %v1499_v31, %v1515_v0 }
 0xa51   : > { %v16652_v59 = vcombine.high %v1500_v57, %v1516_v43  ;;  %v16651_v17 = vcombine.low %v1500_v57, %v1516_v43  ;;  %v1627_v43 = vld [vmem:[%s17872_s12 + $0x2840] sm:$0xff] }
 0xa56   : > { %14273 = vmatmul.mubr.bf16.vlgmr.msra.gmra.mrb[76].mxu0 %v18251_v28  ;;  %14314 = vmatmul.mubr.bf16.vlgmr.msra.gmra.mrb[76].mxu1 %v18258_v33 }
 0xa57   : > { %14323 = vmatpush1.bf16.xpose.msra.mxu0 %v16521_v63  ;;  %14364 = vmatpush1.bf16.xpose.msra.mxu1 %v16523_v51  ;;  %v1547_v63 = vld [vmem:[%s17872_s12 + $0x25c0] sm:$0xff]  ;;  %v1532_v51 = vld [vmem:[%s17872_s12 + $0x2548] sm:$0xff] }
 0xa58   : > { %14324 = vmatprep.subr.bf16.mxu0 %v16554_v54  ;;  %14365 = vmatprep.subr.bf16.mxu1 %v16556_v58  ;;  %v1548_v54 = vld [vmem:[%s17872_s12 + $0x25c8] sm:$0xff]  ;;  %v16649_v58 = vcombine.low %v1499_v31, %v1515_v0  ;;  %v16682_v9 = vcombine.high %v1531_v25, %v1547_v63 }
 0xa59   : > { %14354 = vmatprep.mubr.bf16.mxu0 %v18263_v50  ;;  %14395 = vmatprep.mubr.bf16.mxu1 %v18266_v44  ;;  %v16684_v8 = vcombine.high %v1532_v51, %v1548_v54  ;;  %v16683_v37 = vcombine.low %v1532_v51, %v1548_v54  ;;  %v1659_v54 = vld [vmem:[%s17872_s12 + $0x2940] sm:$0xff] }
 0xa5f   : > { %14325 = vmatpush1.bf16.xpose.msra.mxu0 %v16553_v10  ;;  %14366 = vmatpush1.bf16.xpose.msra.mxu1 %v16555_v21  ;;  %v1579_v10 = vld [vmem:[%s17872_s12 + $0x26c0] sm:$0xff]  ;;  %v1564_v21 = vld [vmem:[%s17872_s12 + $0x2648] sm:$0xff] }
 0xa60   : > { %14326 = vmatprep.subr.bf16.mxu0 %v16586_v55  ;;  %14367 = vmatprep.subr.bf16.mxu1 %v16588_v1  ;;  %v1580_v55 = vld [vmem:[%s17872_s12 + $0x26c8] sm:$0xff]  ;;  %v16681_v1 = vcombine.low %v1531_v25, %v1547_v63  ;;  %v16714_v13 = vcombine.high %v1563_v12, %v1579_v10 }
 0xa61   : > { %v16716_v19 = vcombine.high %v1564_v21, %v1580_v55  ;;  %v16715_v31 = vcombine.low %v1564_v21, %v1580_v55  ;;  %v1691_v55 = vld [vmem:[%s17872_s12 + $0x2a40] sm:$0xff] }
 0xa67   : > { %14327 = vmatpush1.bf16.xpose.msra.mxu0 %v16585_v32  ;;  %14368 = vmatpush1.bf16.xpose.msra.mxu1 %v16587_v22  ;;  %v1611_v32 = vld [vmem:[%s17872_s12 + $0x27c0] sm:$0xff]  ;;  %v1596_v22 = vld [vmem:[%s17872_s12 + $0x2748] sm:$0xff] }
 0xa68   : > { %14328 = vmatprep.subr.bf16.mxu0 %v16618_v6  ;;  %14369 = vmatprep.subr.bf16.mxu1 %v16620_v23  ;;  %v1612_v6 = vld [vmem:[%s17872_s12 + $0x27c8] sm:$0xff]  ;;  %v16713_v23 = vcombine.low %v1563_v12, %v1579_v10  ;;  %v16746_v0 = vcombine.high %v1595_v7, %v1611_v32 }
 0xa69   : > { %v16748_v57 = vcombine.high %v1596_v22, %v1612_v6  ;;  %v16747_v25 = vcombine.low %v1596_v22, %v1612_v6  ;;  %v1723_v6 = vld [vmem:[%s17872_s12 + $0x2b40] sm:$0xff] }
 0xa6f   : > { %14329 = vmatpush1.bf16.xpose.msra.mxu0 %v16617_v46  ;;  %14370 = vmatpush1.bf16.xpose.msra.mxu1 %v16619_v45  ;;  %v1643_v46 = vld [vmem:[%s17872_s12 + $0x28c0] sm:$0xff]  ;;  %v1628_v45 = vld [vmem:[%s17872_s12 + $0x2848] sm:$0xff] }
 0xa70   : > { %14330 = vmatprep.subr.bf16.mxu0 %v16650_v15  ;;  %14371 = vmatprep.subr.bf16.mxu1 %v16652_v59  ;;  %v1644_v15 = vld [vmem:[%s17872_s12 + $0x28c8] sm:$0xff]  ;;  %v16745_v59 = vcombine.low %v1595_v7, %v1611_v32  ;;  %v16778_v63 = vcombine.high %v1627_v43, %v1643_v46 }
 0xa71   : > { %v16780_v51 = vcombine.high %v1628_v45, %v1644_v15  ;;  %v16779_v12 = vcombine.low %v1628_v45, %v1644_v15 }
 0xa77   : > { %14331 = vmatpush1.bf16.xpose.msra.mxu0 %v16649_v58  ;;  %14372 = vmatpush1.bf16.xpose.msra.mxu1 %v16651_v17  ;;  %v1675_v58 = vld [vmem:[%s17872_s12 + $0x29c0] sm:$0xff]  ;;  %v1660_v17 = vld [vmem:[%s17872_s12 + $0x2948] sm:$0xff] }
 0xa78   : > { %14332 = vmatprep.subr.bf16.mxu0 %v16682_v9  ;;  %14373 = vmatprep.subr.bf16.mxu1 %v16684_v8  ;;  %v1676_v9 = vld [vmem:[%s17872_s12 + $0x29c8] sm:$0xff]  ;;  %v16777_v8 = vcombine.low %v1627_v43, %v1643_v46  ;;  %v16810_v10 = vcombine.high %v1659_v54, %v1675_v58 }
 0xa79   : > { %v16812_v21 = vcombine.high %v1660_v17, %v1676_v9  ;;  %v16811_v7 = vcombine.low %v1660_v17, %v1676_v9  ;;  %v1772_v17 = vld [vmem:[%s17872_s12 + $0x2cc8] sm:$0xff] }
 0xa7f   : > { %14333 = vmatpush1.bf16.xpose.msra.mxu0 %v16681_v1  ;;  %14374 = vmatpush1.bf16.xpose.msra.mxu1 %v16683_v37  ;;  %v1707_v1 = vld [vmem:[%s17872_s12 + $0x2ac0] sm:$0xff]  ;;  %v1692_v37 = vld [vmem:[%s17872_s12 + $0x2a48] sm:$0xff] }
 0xa80   : > { %14334 = vmatprep.subr.bf16.mxu0 %v16714_v13  ;;  %14375 = vmatprep.subr.bf16.mxu1 %v16716_v19  ;;  %v1708_v13 = vld [vmem:[%s17872_s12 + $0x2ac8] sm:$0xff]  ;;  %v16809_v19 = vcombine.low %v1659_v54, %v1675_v58  ;;  %v16842_v32 = vcombine.high %v1691_v55, %v1707_v1 }
 0xa81   : > { %v16844_v22 = vcombine.high %v1692_v37, %v1708_v13  ;;  %v16843_v43 = vcombine.low %v1692_v37, %v1708_v13  ;;  %v1756_v58 = vld [vmem:[%s17872_s12 + $0x2c48] sm:$0xff] }
 0xa87   : > { %14335 = vmatpush1.bf16.xpose.msra.mxu0 %v16713_v23  ;;  %14376 = vmatpush1.bf16.xpose.msra.mxu1 %v16715_v31  ;;  %v1739_v23 = vld [vmem:[%s17872_s12 + $0x2bc0] sm:$0xff]  ;;  %v1724_v31 = vld [vmem:[%s17872_s12 + $0x2b48] sm:$0xff] }
 0xa88   : > { %14336 = vmatprep.subr.bf16.mxu0 %v16746_v0  ;;  %14377 = vmatprep.subr.bf16.mxu1 %v16748_v57  ;;  %v1740_v0 = vld [vmem:[%s17872_s12 + $0x2bc8] sm:$0xff]  ;;  %v16841_v57 = vcombine.low %v1691_v55, %v1707_v1  ;;  %v16874_v46 = vcombine.high %v1723_v6, %v1739_v23 }
 0xa89   : > { %v16876_v45 = vcombine.high %v1724_v31, %v1740_v0  ;;  %v16875_v37 = vcombine.low %v1724_v31, %v1740_v0 }
 0xa8f   : > { %14337 = vmatpush1.bf16.xpose.msra.mxu0 %v16745_v59  ;;  %14378 = vmatpush1.bf16.xpose.msra.mxu1 %v16747_v25  ;;  %v1755_v59 = vld [vmem:[%s17872_s12 + $0x2c40] sm:$0xff] }
 0xa90   : > { %14338 = vmatprep.subr.bf16.mxu0 %v16778_v63  ;;  %14379 = vmatprep.subr.bf16.mxu1 %v16780_v51  ;;  %v1771_v25 = vld [vmem:[%s17872_s12 + $0x2cc0] sm:$0xff] }
 0xa91   : > { %v16906_v13 = vcombine.high %v1755_v59, %v1771_v25 }
 0xa97   : > { %14339 = vmatpush1.bf16.xpose.msra.mxu0 %v16777_v8  ;;  %14380 = vmatpush1.bf16.xpose.msra.mxu1 %v16779_v12 }
 0xa98   : > { %14340 = vmatprep.subr.bf16.mxu0 %v16810_v10  ;;  %14381 = vmatprep.subr.bf16.mxu1 %v16812_v21  ;;  %v16873_v10 = vcombine.low %v1723_v6, %v1739_v23  ;;  %v1804_v6 = vld [vmem:[%s17872_s12 + $0x2dc8] sm:$0xff]  ;;  %v16905_v23 = vcombine.low %v1755_v59, %v1771_v25  ;;  %v1851_v59 = vld [vmem:[%s17872_s12 + $0x2f40] sm:$0xff] }
 0xa99   : > { %v1867_v25 = vld [vmem:[%s17872_s12 + $0x2fc0] sm:$0xff] }
 0xa9f   : > { %14341 = vmatpush1.bf16.xpose.msra.mxu0 %v16809_v19  ;;  %14382 = vmatpush1.bf16.xpose.msra.mxu1 %v16811_v7  ;;  %v16908_v7 = vcombine.high %v1756_v58, %v1772_v17 }
 0xaa0   : > { %14342 = vmatprep.subr.bf16.mxu0 %v16842_v32  ;;  %14383 = vmatprep.subr.bf16.mxu1 %v16844_v22  ;;  %v1803_v32 = vld [vmem:[%s17872_s12 + $0x2dc0] sm:$0xff]  ;;  %v1788_v22 = vld [vmem:[%s17872_s12 + $0x2d48] sm:$0xff] }
 0xaa1   : > { %v16940_v0 = vcombine.high %v1788_v22, %v1804_v6 }
 0xaa7   : > { %14343 = vmatpush1.bf16.xpose.msra.mxu0 %v16841_v57  ;;  %14384 = vmatpush1.bf16.xpose.msra.mxu1 %v16843_v43  ;;  %v16907_v57 = vcombine.low %v1756_v58, %v1772_v17  ;;  %v1819_v43 = vld [vmem:[%s17872_s12 + $0x2e40] sm:$0xff]  ;;  %v1852_v58 = vld [vmem:[%s17872_s12 + $0x2f48] sm:$0xff] }
 0xaa8   : > { %14344 = vmatprep.subr.bf16.mxu0 %v16874_v46  ;;  %14385 = vmatprep.subr.bf16.mxu1 %v16876_v45  ;;  %v1835_v46 = vld [vmem:[%s17872_s12 + $0x2ec0] sm:$0xff]  ;;  %v1820_v45 = vld [vmem:[%s17872_s12 + $0x2e48] sm:$0xff] }
 0xaa9   : > { %v14192_v15 = vpop.f32.mrb[72].mxu0  ;;  %v14233_v51 = vpop.f32.mrb[72].mxu1  ;;  %v1868_v17 = vld [vmem:[%s17872_s12 + $0x2fc8] sm:$0xff] }
 0xaaa   : > { %v14193_v63 = vadd.f32 %v14192_v15, %v19511_v4  ;;  %v14194_v54 = vpop.f32.mrb[73].mxu0  ;;  %v14235_v8 = vpop.f32.mrb[73].mxu1  ;;  %v1836_v15 = vld [vmem:[%s17872_s12 + $0x2ec8] sm:$0xff] }
 0xaab   : > { %v14195_v9 = vadd.f32 %v14194_v54, %v19513_v18  ;;  %v14196_v12 = vpop.f32.mrb[74].mxu0  ;;  %v14237_v55 = vpop.f32.mrb[74].mxu1  ;;  %v1787_v18 = vld [vmem:[%s17872_s12 + $0x2d40] sm:$0xff]  ;;  %v16970_v54 = vcombine.high %v1819_v43, %v1835_v46 }
 0xaac   : > { %v19585_v21 = vadd.f32 %v14233_v51, %v14193_v63  ;;  %v14197_v1 = vpop.f32.mrb[75].mxu0  ;;  %v14238_v19 = vpop.f32.mrb[75].mxu1  ;;  %v16938_v31 = vcombine.high %v1787_v18, %v1803_v32  ;;  %v16937_v63 = vcombine.low %v1787_v18, %v1803_v32  ;;  %v16939_v51 = vcombine.low %v1788_v22, %v1804_v6  ;;  %v1405_v6 = vld [vmem:[%s17872_s12 + $0x2150] sm:$0xff] }
 0xaad   : > { %v19587_v4 = vadd.f32 %v14235_v8, %v14195_v9  ;;  %v16972_v9 = vcombine.high %v1820_v45, %v1836_v15  ;;  %v16969_v8 = vcombine.low %v1819_v43, %v1835_v46  ;;  %v16971_v12 = vcombine.low %v1820_v45, %v1836_v15  ;;  %v1373_v1 = vld [vmem:[%s17872_s12 + $0x2050] sm:$0xff]  ;;  %v1390_v19 = vld [vmem:[%s17872_s12 + $0x20d8] sm:$0xff] }
 0xaae   : > { %v17004_v55 = vcombine.high %v1852_v58, %v1868_v17  ;;  %v17003_v18 = vcombine.low %v1852_v58, %v1868_v17  ;;  %v1437_v15 = vld [vmem:[%s17872_s12 + $0x2250] sm:$0xff] }
 0xaaf   : > { %14345 = vmatpush1.bf16.xpose.msra.mxu0 %v16873_v10  ;;  %14386 = vmatpush1.bf16.xpose.msra.mxu1 %v16875_v37  ;;  %v17002_v10 = vcombine.high %v1851_v59, %v1867_v25  ;;  %v1389_v37 = vld [vmem:[%s17872_s12 + $0x20d0] sm:$0xff] }
 0xab0   : > { %14346 = vmatprep.subr.bf16.mxu0 %v16906_v13  ;;  %14387 = vmatprep.subr.bf16.mxu1 %v16908_v7  ;;  %v1374_v13 = vld [vmem:[%s17872_s12 + $0x2058] sm:$0xff]  ;;  %v17001_v7 = vcombine.low %v1851_v59, %v1867_v25  ;;  %v16526_v32 = vcombine.high %v1373_v1, %v1389_v37  ;;  %v1469_v17 = vld [vmem:[%s17872_s12 + $0x2350] sm:$0xff] }
 0xab1   : > { %v16528_v22 = vcombine.high %v1374_v13, %v1390_v19  ;;  %v16527_v43 = vcombine.low %v1374_v13, %v1390_v19  ;;  %v1501_v19 = vld [vmem:[%s17872_s12 + $0x2450] sm:$0xff] }
 0xab7   : > { %14347 = vmatpush1.bf16.xpose.msra.mxu0 %v16905_v23  ;;  %14388 = vmatpush1.bf16.xpose.msra.mxu1 %v16907_v57  ;;  %v1421_v23 = vld [vmem:[%s17872_s12 + $0x21d0] sm:$0xff]  ;;  %v1406_v57 = vld [vmem:[%s17872_s12 + $0x2158] sm:$0xff] }
 0xab8   : > { %14348 = vmatprep.subr.bf16.mxu0 %v16938_v31  ;;  %14389 = vmatprep.subr.bf16.mxu1 %v16940_v0  ;;  %v1422_v31 = vld [vmem:[%s17872_s12 + $0x21d8] sm:$0xff]  ;;  %v16525_v0 = vcombine.low %v1373_v1, %v1389_v37  ;;  %v16558_v46 = vcombine.high %v1405_v6, %v1421_v23 }
 0xab9   : > { %v16560_v45 = vcombine.high %v1406_v57, %v1422_v31  ;;  %v16559_v59 = vcombine.low %v1406_v57, %v1422_v31  ;;  %v1533_v31 = vld [vmem:[%s17872_s12 + $0x2550] sm:$0xff] }
 0xabf   : > { %14349 = vmatpush1.bf16.xpose.msra.mxu0 %v16937_v63  ;;  %14390 = vmatpush1.bf16.xpose.msra.mxu1 %v16939_v51  ;;  %v1453_v63 = vld [vmem:[%s17872_s12 + $0x22d0] sm:$0xff]  ;;  %v1438_v51 = vld [vmem:[%s17872_s12 + $0x2258] sm:$0xff] }
 0xac0   : > { %14350 = vmatprep.subr.bf16.mxu0 %v16970_v54  ;;  %14391 = vmatprep.subr.bf16.mxu1 %v16972_v9  ;;  %v1454_v54 = vld [vmem:[%s17872_s12 + $0x22d8] sm:$0xff]  ;;  %v16557_v9 = vcombine.low %v1405_v6, %v1421_v23  ;;  %v16590_v25 = vcombine.high %v1437_v15, %v1453_v63 }
 0xac1   : > { %v16592_v58 = vcombine.high %v1438_v51, %v1454_v54  ;;  %v16591_v1 = vcombine.low %v1438_v51, %v1454_v54  ;;  %v1565_v54 = vld [vmem:[%s17872_s12 + $0x2650] sm:$0xff] }
 0xac7   : > { %14351 = vmatpush1.bf16.xpose.msra.mxu0 %v16969_v8  ;;  %14392 = vmatpush1.bf16.xpose.msra.mxu1 %v16971_v12  ;;  %v1485_v8 = vld [vmem:[%s17872_s12 + $0x23d0] sm:$0xff]  ;;  %v1470_v12 = vld [vmem:[%s17872_s12 + $0x2358] sm:$0xff] }
 0xac8   : > { %14352 = vmatprep.subr.bf16.mxu0 %v17002_v10  ;;  %14393 = vmatprep.subr.bf16.mxu1 %v17004_v55  ;;  %v1486_v10 = vld [vmem:[%s17872_s12 + $0x23d8] sm:$0xff]  ;;  %v16589_v55 = vcombine.low %v1437_v15, %v1453_v63  ;;  %v16622_v37 = vcombine.high %v1469_v17, %v1485_v8 }
 0xac9   : > { %v16624_v13 = vcombine.high %v1470_v12, %v1486_v10  ;;  %v16623_v6 = vcombine.low %v1470_v12, %v1486_v10  ;;  %v1597_v10 = vld [vmem:[%s17872_s12 + $0x2750] sm:$0xff] }
 0xacf   : > { %14353 = vmatpush1.bf16.xpose.msra.mxu0 %v17001_v7  ;;  %14394 = vmatpush1.bf16.xpose.msra.mxu1 %v17003_v18  ;;  %v1517_v7 = vld [vmem:[%s17872_s12 + $0x24d0] sm:$0xff]  ;;  %v1502_v18 = vld [vmem:[%s17872_s12 + $0x2458] sm:$0xff] }
 0xad0   : > { %14404 = vmatprep.subr.bf16.mxu0 %v16526_v32  ;;  %14445 = vmatprep.subr.bf16.mxu1 %v16528_v22  ;;  %v1518_v32 = vld [vmem:[%s17872_s12 + $0x24d8] sm:$0xff]  ;;  %v16621_v22 = vcombine.low %v1469_v17, %v1485_v8  ;;  %v16654_v23 = vcombine.high %v1501_v19, %v1517_v7 }
 0xad1   : > { %v16656_v57 = vcombine.high %v1502_v18, %v1518_v32  ;;  %v16655_v15 = vcombine.low %v1502_v18, %v1518_v32  ;;  %v1629_v32 = vld [vmem:[%s17872_s12 + $0x2850] sm:$0xff] }
 0xad6   : > { %14355 = vmatmul.mubr.bf16.vlgmr.msra.gmra.mrb[80].mxu0 %v18345_v56  ;;  %14396 = vmatmul.mubr.bf16.vlgmr.msra.gmra.mrb[80].mxu1 %v18352_v61 }
 0xad7   : > { %14405 = vmatpush1.bf16.xpose.msra.mxu0 %v16525_v0  ;;  %14446 = vmatpush1.bf16.xpose.msra.mxu1 %v16527_v43  ;;  %v1549_v0 = vld [vmem:[%s17872_s12 + $0x25d0] sm:$0xff]  ;;  %v1534_v43 = vld [vmem:[%s17872_s12 + $0x2558] sm:$0xff] }
 0xad8   : > { %14406 = vmatprep.subr.bf16.mxu0 %v16558_v46  ;;  %14447 = vmatprep.subr.bf16.mxu1 %v16560_v45  ;;  %v1550_v46 = vld [vmem:[%s17872_s12 + $0x25d8] sm:$0xff]  ;;  %v16653_v45 = vcombine.low %v1501_v19, %v1517_v7  ;;  %v16686_v63 = vcombine.high %v1533_v31, %v1549_v0 }
 0xad9   : > { %14436 = vmatprep.mubr.bf16.mxu0 %v18357_v2  ;;  %14477 = vmatprep.mubr.bf16.mxu1 %v18360_v3  ;;  %v16688_v51 = vcombine.high %v1534_v43, %v1550_v46  ;;  %v16687_v17 = vcombine.low %v1534_v43, %v1550_v46  ;;  %v1661_v46 = vld [vmem:[%s17872_s12 + $0x2950] sm:$0xff] }
 0xadf   : > { %14407 = vmatpush1.bf16.xpose.msra.mxu0 %v16557_v9  ;;  %14448 = vmatpush1.bf16.xpose.msra.mxu1 %v16559_v59  ;;  %v1581_v9 = vld [vmem:[%s17872_s12 + $0x26d0] sm:$0xff]  ;;  %v1566_v59 = vld [vmem:[%s17872_s12 + $0x2658] sm:$0xff] }
 0xae0   : > { %14408 = vmatprep.subr.bf16.mxu0 %v16590_v25  ;;  %14449 = vmatprep.subr.bf16.mxu1 %v16592_v58  ;;  %v1582_v25 = vld [vmem:[%s17872_s12 + $0x26d8] sm:$0xff]  ;;  %v16685_v58 = vcombine.low %v1533_v31, %v1549_v0  ;;  %v16718_v8 = vcombine.high %v1565_v54, %v1581_v9 }
 0xae1   : > { %v16720_v12 = vcombine.high %v1566_v59, %v1582_v25  ;;  %v16719_v19 = vcombine.low %v1566_v59, %v1582_v25  ;;  %v1693_v25 = vld [vmem:[%s17872_s12 + $0x2a50] sm:$0xff] }
 0xae7   : > { %14409 = vmatpush1.bf16.xpose.msra.mxu0 %v16589_v55  ;;  %14450 = vmatpush1.bf16.xpose.msra.mxu1 %v16591_v1  ;;  %v1613_v55 = vld [vmem:[%s17872_s12 + $0x27d0] sm:$0xff]  ;;  %v1598_v1 = vld [vmem:[%s17872_s12 + $0x2758] sm:$0xff] }
 0xae8   : > { %14410 = vmatprep.subr.bf16.mxu0 %v16622_v37  ;;  %14451 = vmatprep.subr.bf16.mxu1 %v16624_v13  ;;  %v1614_v37 = vld [vmem:[%s17872_s12 + $0x27d8] sm:$0xff]  ;;  %v16717_v13 = vcombine.low %v1565_v54, %v1581_v9  ;;  %v16750_v7 = vcombine.high %v1597_v10, %v1613_v55 }
 0xae9   : > { %v16752_v18 = vcombine.high %v1598_v1, %v1614_v37  ;;  %v16751_v31 = vcombine.low %v1598_v1, %v1614_v37  ;;  %v1725_v37 = vld [vmem:[%s17872_s12 + $0x2b50] sm:$0xff] }
 0xaef   : > { %14411 = vmatpush1.bf16.xpose.msra.mxu0 %v16621_v22  ;;  %14452 = vmatpush1.bf16.xpose.msra.mxu1 %v16623_v6  ;;  %v1645_v22 = vld [vmem:[%s17872_s12 + $0x28d0] sm:$0xff]  ;;  %v1630_v6 = vld [vmem:[%s17872_s12 + $0x2858] sm:$0xff] }
 0xaf0   : > { %14412 = vmatprep.subr.bf16.mxu0 %v16654_v23  ;;  %14453 = vmatprep.subr.bf16.mxu1 %v16656_v57  ;;  %v1646_v23 = vld [vmem:[%s17872_s12 + $0x28d8] sm:$0xff]  ;;  %v16749_v57 = vcombine.low %v1597_v10, %v1613_v55  ;;  %v16782_v0 = vcombine.high %v1629_v32, %v1645_v22 }
 0xaf1   : > { %v16784_v43 = vcombine.high %v1630_v6, %v1646_v23  ;;  %v16783_v54 = vcombine.low %v1630_v6, %v1646_v23 }
 0xaf7   : > { %14413 = vmatpush1.bf16.xpose.msra.mxu0 %v16653_v45  ;;  %14454 = vmatpush1.bf16.xpose.msra.mxu1 %v16655_v15  ;;  %v1677_v45 = vld [vmem:[%s17872_s12 + $0x29d0] sm:$0xff]  ;;  %v1662_v15 = vld [vmem:[%s17872_s12 + $0x2958] sm:$0xff] }
 0xaf8   : > { %14414 = vmatprep.subr.bf16.mxu0 %v16686_v63  ;;  %14455 = vmatprep.subr.bf16.mxu1 %v16688_v51  ;;  %v1678_v63 = vld [vmem:[%s17872_s12 + $0x29d8] sm:$0xff]  ;;  %v16781_v51 = vcombine.low %v1629_v32, %v1645_v22  ;;  %v16814_v9 = vcombine.high %v1661_v46, %v1677_v45 }
 0xaf9   : > { %v16816_v59 = vcombine.high %v1662_v15, %v1678_v63  ;;  %v16815_v10 = vcombine.low %v1662_v15, %v1678_v63  ;;  %v1774_v15 = vld [vmem:[%s17872_s12 + $0x2cd8] sm:$0xff] }
 0xaff   : > { %14415 = vmatpush1.bf16.xpose.msra.mxu0 %v16685_v58  ;;  %14456 = vmatpush1.bf16.xpose.msra.mxu1 %v16687_v17  ;;  %v1709_v58 = vld [vmem:[%s17872_s12 + $0x2ad0] sm:$0xff]  ;;  %v1694_v17 = vld [vmem:[%s17872_s12 + $0x2a58] sm:$0xff] }
 0xb00   : > { %14416 = vmatprep.subr.bf16.mxu0 %v16718_v8  ;;  %14457 = vmatprep.subr.bf16.mxu1 %v16720_v12  ;;  %v1710_v8 = vld [vmem:[%s17872_s12 + $0x2ad8] sm:$0xff]  ;;  %v16813_v12 = vcombine.low %v1661_v46, %v1677_v45  ;;  %v16846_v55 = vcombine.high %v1693_v25, %v1709_v58 }
 0xb01   : > { %v16848_v1 = vcombine.high %v1694_v17, %v1710_v8  ;;  %v16847_v32 = vcombine.low %v1694_v17, %v1710_v8  ;;  %v1758_v45 = vld [vmem:[%s17872_s12 + $0x2c58] sm:$0xff] }
 0xb07   : > { %14417 = vmatpush1.bf16.xpose.msra.mxu0 %v16717_v13  ;;  %14458 = vmatpush1.bf16.xpose.msra.mxu1 %v16719_v19  ;;  %v1741_v13 = vld [vmem:[%s17872_s12 + $0x2bd0] sm:$0xff]  ;;  %v1726_v19 = vld [vmem:[%s17872_s12 + $0x2b58] sm:$0xff] }
 0xb08   : > { %14418 = vmatprep.subr.bf16.mxu0 %v16750_v7  ;;  %14459 = vmatprep.subr.bf16.mxu1 %v16752_v18  ;;  %v1742_v7 = vld [vmem:[%s17872_s12 + $0x2bd8] sm:$0xff]  ;;  %v16845_v18 = vcombine.low %v1693_v25, %v1709_v58  ;;  %v16878_v22 = vcombine.high %v1725_v37, %v1741_v13 }
 0xb09   : > { %v16880_v6 = vcombine.high %v1726_v19, %v1742_v7  ;;  %v16879_v17 = vcombine.low %v1726_v19, %v1742_v7 }
 0xb0f   : > { %14419 = vmatpush1.bf16.xpose.msra.mxu0 %v16749_v57  ;;  %14460 = vmatpush1.bf16.xpose.msra.mxu1 %v16751_v31  ;;  %v1757_v57 = vld [vmem:[%s17872_s12 + $0x2c50] sm:$0xff] }
 0xb10   : > { %14420 = vmatprep.subr.bf16.mxu0 %v16782_v0  ;;  %14461 = vmatprep.subr.bf16.mxu1 %v16784_v43  ;;  %v1773_v31 = vld [vmem:[%s17872_s12 + $0x2cd0] sm:$0xff] }
 0xb11   : > { %v16910_v8 = vcombine.high %v1757_v57, %v1773_v31 }
 0xb17   : > { %14421 = vmatpush1.bf16.xpose.msra.mxu0 %v16781_v51  ;;  %14462 = vmatpush1.bf16.xpose.msra.mxu1 %v16783_v54 }
 0xb18   : > { %14422 = vmatprep.subr.bf16.mxu0 %v16814_v9  ;;  %14463 = vmatprep.subr.bf16.mxu1 %v16816_v59  ;;  %v16877_v9 = vcombine.low %v1725_v37, %v1741_v13  ;;  %v1806_v37 = vld [vmem:[%s17872_s12 + $0x2dd8] sm:$0xff]  ;;  %v16909_v13 = vcombine.low %v1757_v57, %v1773_v31  ;;  %v1853_v57 = vld [vmem:[%s17872_s12 + $0x2f50] sm:$0xff] }
 0xb19   : > { %v1869_v31 = vld [vmem:[%s17872_s12 + $0x2fd0] sm:$0xff] }
 0xb1f   : > { %14423 = vmatpush1.bf16.xpose.msra.mxu0 %v16813_v12  ;;  %14464 = vmatpush1.bf16.xpose.msra.mxu1 %v16815_v10  ;;  %v16912_v10 = vcombine.high %v1758_v45, %v1774_v15 }
 0xb20   : > { %14424 = vmatprep.subr.bf16.mxu0 %v16846_v55  ;;  %14465 = vmatprep.subr.bf16.mxu1 %v16848_v1  ;;  %v1805_v55 = vld [vmem:[%s17872_s12 + $0x2dd0] sm:$0xff]  ;;  %v1790_v1 = vld [vmem:[%s17872_s12 + $0x2d58] sm:$0xff] }
 0xb21   : > { %v16944_v7 = vcombine.high %v1790_v1, %v1806_v37 }
 0xb27   : > { %14425 = vmatpush1.bf16.xpose.msra.mxu0 %v16845_v18  ;;  %14466 = vmatpush1.bf16.xpose.msra.mxu1 %v16847_v32  ;;  %v16911_v18 = vcombine.low %v1758_v45, %v1774_v15  ;;  %v1821_v32 = vld [vmem:[%s17872_s12 + $0x2e50] sm:$0xff]  ;;  %v1854_v45 = vld [vmem:[%s17872_s12 + $0x2f58] sm:$0xff] }
 0xb28   : > { %14426 = vmatprep.subr.bf16.mxu0 %v16878_v22  ;;  %14467 = vmatprep.subr.bf16.mxu1 %v16880_v6  ;;  %v1837_v22 = vld [vmem:[%s17872_s12 + $0x2ed0] sm:$0xff]  ;;  %v1822_v6 = vld [vmem:[%s17872_s12 + $0x2e58] sm:$0xff] }
 0xb29   : > { %v14274_v23 = vpop.f32.mrb[76].mxu0  ;;  %v14315_v43 = vpop.f32.mrb[76].mxu1  ;;  %v1870_v15 = vld [vmem:[%s17872_s12 + $0x2fd8] sm:$0xff] }
 0xb2a   : > { %v14275_v0 = vadd.f32 %v14274_v23, %v19585_v21  ;;  %v14276_v46 = vpop.f32.mrb[77].mxu0  ;;  %v14317_v51 = vpop.f32.mrb[77].mxu1  ;;  %v1838_v23 = vld [vmem:[%s17872_s12 + $0x2ed8] sm:$0xff] }
 0xb2b   : > { %v14277_v63 = vadd.f32 %v14276_v46, %v19587_v4  ;;  %v14278_v54 = vpop.f32.mrb[78].mxu0  ;;  %v14319_v25 = vpop.f32.mrb[78].mxu1  ;;  %v1789_v4 = vld [vmem:[%s17872_s12 + $0x2d50] sm:$0xff]  ;;  %v16974_v46 = vcombine.high %v1821_v32, %v1837_v22 }
 0xb2c   : > { %v19659_v59 = vadd.f32 %v14315_v43, %v14275_v0  ;;  %v14279_v58 = vpop.f32.mrb[79].mxu0  ;;  %v14320_v12 = vpop.f32.mrb[79].mxu1  ;;  %v16942_v19 = vcombine.high %v1789_v4, %v1805_v55  ;;  %v16941_v0 = vcombine.low %v1789_v4, %v1805_v55  ;;  %v16943_v43 = vcombine.low %v1790_v1, %v1806_v37  ;;  %v1407_v37 = vld [vmem:[%s17872_s12 + $0x2160] sm:$0xff] }
 0xb2d   : > { %v19661_v21 = vadd.f32 %v14317_v51, %v14277_v63  ;;  %v16976_v63 = vcombine.high %v1822_v6, %v1838_v23  ;;  %v16973_v51 = vcombine.low %v1821_v32, %v1837_v22  ;;  %v16975_v54 = vcombine.low %v1822_v6, %v1838_v23  ;;  %v1375_v58 = vld [vmem:[%s17872_s12 + $0x2060] sm:$0xff]  ;;  %v1392_v12 = vld [vmem:[%s17872_s12 + $0x20e8] sm:$0xff] }
 0xb2e   : > { %v17008_v25 = vcombine.high %v1854_v45, %v1870_v15  ;;  %v17007_v4 = vcombine.low %v1854_v45, %v1870_v15  ;;  %v1439_v23 = vld [vmem:[%s17872_s12 + $0x2260] sm:$0xff] }
 0xb2f   : > { %14427 = vmatpush1.bf16.xpose.msra.mxu0 %v16877_v9  ;;  %14468 = vmatpush1.bf16.xpose.msra.mxu1 %v16879_v17  ;;  %v17006_v9 = vcombine.high %v1853_v57, %v1869_v31  ;;  %v1391_v17 = vld [vmem:[%s17872_s12 + $0x20e0] sm:$0xff] }
 0xb30   : > { %14428 = vmatprep.subr.bf16.mxu0 %v16910_v8  ;;  %14469 = vmatprep.subr.bf16.mxu1 %v16912_v10  ;;  %v1376_v8 = vld [vmem:[%s17872_s12 + $0x2068] sm:$0xff]  ;;  %v17005_v10 = vcombine.low %v1853_v57, %v1869_v31  ;;  %v16530_v55 = vcombine.high %v1375_v58, %v1391_v17  ;;  %v1471_v15 = vld [vmem:[%s17872_s12 + $0x2360] sm:$0xff] }
 0xb31   : > { %v16532_v1 = vcombine.high %v1376_v8, %v1392_v12  ;;  %v16531_v32 = vcombine.low %v1376_v8, %v1392_v12  ;;  %v1503_v12 = vld [vmem:[%s17872_s12 + $0x2460] sm:$0xff] }
 0xb37   : > { %14429 = vmatpush1.bf16.xpose.msra.mxu0 %v16909_v13  ;;  %14470 = vmatpush1.bf16.xpose.msra.mxu1 %v16911_v18  ;;  %v1423_v13 = vld [vmem:[%s17872_s12 + $0x21e0] sm:$0xff]  ;;  %v1408_v18 = vld [vmem:[%s17872_s12 + $0x2168] sm:$0xff] }
 0xb38   : > { %14430 = vmatprep.subr.bf16.mxu0 %v16942_v19  ;;  %14471 = vmatprep.subr.bf16.mxu1 %v16944_v7  ;;  %v1424_v19 = vld [vmem:[%s17872_s12 + $0x21e8] sm:$0xff]  ;;  %v16529_v7 = vcombine.low %v1375_v58, %v1391_v17  ;;  %v16562_v22 = vcombine.high %v1407_v37, %v1423_v13 }
 0xb39   : > { %v16564_v6 = vcombine.high %v1408_v18, %v1424_v19  ;;  %v16563_v57 = vcombine.low %v1408_v18, %v1424_v19  ;;  %v1535_v19 = vld [vmem:[%s17872_s12 + $0x2560] sm:$0xff] }
 0xb3f   : > { %14431 = vmatpush1.bf16.xpose.msra.mxu0 %v16941_v0  ;;  %14472 = vmatpush1.bf16.xpose.msra.mxu1 %v16943_v43  ;;  %v1455_v0 = vld [vmem:[%s17872_s12 + $0x22e0] sm:$0xff]  ;;  %v1440_v43 = vld [vmem:[%s17872_s12 + $0x2268] sm:$0xff] }
 0xb40   : > { %14432 = vmatprep.subr.bf16.mxu0 %v16974_v46  ;;  %14473 = vmatprep.subr.bf16.mxu1 %v16976_v63  ;;  %v1456_v46 = vld [vmem:[%s17872_s12 + $0x22e8] sm:$0xff]  ;;  %v16561_v63 = vcombine.low %v1407_v37, %v1423_v13  ;;  %v16594_v31 = vcombine.high %v1439_v23, %v1455_v0 }
 0xb41   : > { %v16596_v45 = vcombine.high %v1440_v43, %v1456_v46  ;;  %v16595_v58 = vcombine.low %v1440_v43, %v1456_v46  ;;  %v1567_v46 = vld [vmem:[%s17872_s12 + $0x2660] sm:$0xff] }
 0xb47   : > { %14433 = vmatpush1.bf16.xpose.msra.mxu0 %v16973_v51  ;;  %14474 = vmatpush1.bf16.xpose.msra.mxu1 %v16975_v54  ;;  %v1487_v51 = vld [vmem:[%s17872_s12 + $0x23e0] sm:$0xff]  ;;  %v1472_v54 = vld [vmem:[%s17872_s12 + $0x2368] sm:$0xff] }
 0xb48   : > { %14434 = vmatprep.subr.bf16.mxu0 %v17006_v9  ;;  %14475 = vmatprep.subr.bf16.mxu1 %v17008_v25  ;;  %v1488_v9 = vld [vmem:[%s17872_s12 + $0x23e8] sm:$0xff]  ;;  %v16593_v25 = vcombine.low %v1439_v23, %v1455_v0  ;;  %v16626_v17 = vcombine.high %v1471_v15, %v1487_v51 }
 0xb49   : > { %v16628_v8 = vcombine.high %v1472_v54, %v1488_v9  ;;  %v16627_v37 = vcombine.low %v1472_v54, %v1488_v9  ;;  %v1599_v9 = vld [vmem:[%s17872_s12 + $0x2760] sm:$0xff] }
 0xb4f   : > { %14435 = vmatpush1.bf16.xpose.msra.mxu0 %v17005_v10  ;;  %14476 = vmatpush1.bf16.xpose.msra.mxu1 %v17007_v4  ;;  %v1519_v10 = vld [vmem:[%s17872_s12 + $0x24e0] sm:$0xff]  ;;  %v1504_v4 = vld [vmem:[%s17872_s12 + $0x2468] sm:$0xff] }
 0xb50   : > { %14486 = vmatprep.subr.bf16.mxu0 %v16530_v55  ;;  %14527 = vmatprep.subr.bf16.mxu1 %v16532_v1  ;;  %v1520_v55 = vld [vmem:[%s17872_s12 + $0x24e8] sm:$0xff]  ;;  %v16625_v1 = vcombine.low %v1471_v15, %v1487_v51  ;;  %v16658_v13 = vcombine.high %v1503_v12, %v1519_v10 }
 0xb51   : > { %v16660_v18 = vcombine.high %v1504_v4, %v1520_v55  ;;  %v16659_v23 = vcombine.low %v1504_v4, %v1520_v55  ;;  %v1631_v55 = vld [vmem:[%s17872_s12 + $0x2860] sm:$0xff] }
 0xb56   : > { %14437 = vmatmul.mubr.bf16.vlgmr.msra.gmra.mrb[84].mxu0 %v18439_v29  ;;  %14478 = vmatmul.mubr.bf16.vlgmr.msra.gmra.mrb[84].mxu1 %v18446_v39 }
 0xb57   : > { %14487 = vmatpush1.bf16.xpose.msra.mxu0 %v16529_v7  ;;  %14528 = vmatpush1.bf16.xpose.msra.mxu1 %v16531_v32  ;;  %v1551_v7 = vld [vmem:[%s17872_s12 + $0x25e0] sm:$0xff]  ;;  %v1536_v32 = vld [vmem:[%s17872_s12 + $0x2568] sm:$0xff] }
 0xb58   : > { %14488 = vmatprep.subr.bf16.mxu0 %v16562_v22  ;;  %14529 = vmatprep.subr.bf16.mxu1 %v16564_v6  ;;  %v1552_v22 = vld [vmem:[%s17872_s12 + $0x25e8] sm:$0xff]  ;;  %v16657_v6 = vcombine.low %v1503_v12, %v1519_v10  ;;  %v16690_v0 = vcombine.high %v1535_v19, %v1551_v7 }
 0xb59   : > { %14518 = vmatprep.mubr.bf16.mxu0 %v18451_v52  ;;  %14559 = vmatprep.mubr.bf16.mxu1 %v18454_v53  ;;  %v16692_v43 = vcombine.high %v1536_v32, %v1552_v22  ;;  %v16691_v15 = vcombine.low %v1536_v32, %v1552_v22  ;;  %v1663_v22 = vld [vmem:[%s17872_s12 + $0x2960] sm:$0xff] }
 0xb5f   : > { %14489 = vmatpush1.bf16.xpose.msra.mxu0 %v16561_v63  ;;  %14530 = vmatpush1.bf16.xpose.msra.mxu1 %v16563_v57  ;;  %v1583_v63 = vld [vmem:[%s17872_s12 + $0x26e0] sm:$0xff]  ;;  %v1568_v57 = vld [vmem:[%s17872_s12 + $0x2668] sm:$0xff] }
 0xb60   : > { %14490 = vmatprep.subr.bf16.mxu0 %v16594_v31  ;;  %14531 = vmatprep.subr.bf16.mxu1 %v16596_v45  ;;  %v1584_v31 = vld [vmem:[%s17872_s12 + $0x26e8] sm:$0xff]  ;;  %v16689_v45 = vcombine.low %v1535_v19, %v1551_v7  ;;  %v16722_v51 = vcombine.high %v1567_v46, %v1583_v63 }
 0xb61   : > { %v16724_v54 = vcombine.high %v1568_v57, %v1584_v31  ;;  %v16723_v12 = vcombine.low %v1568_v57, %v1584_v31  ;;  %v1695_v31 = vld [vmem:[%s17872_s12 + $0x2a60] sm:$0xff] }
 0xb67   : > { %14491 = vmatpush1.bf16.xpose.msra.mxu0 %v16593_v25  ;;  %14532 = vmatpush1.bf16.xpose.msra.mxu1 %v16595_v58  ;;  %v1615_v25 = vld [vmem:[%s17872_s12 + $0x27e0] sm:$0xff]  ;;  %v1600_v58 = vld [vmem:[%s17872_s12 + $0x2768] sm:$0xff] }
 0xb68   : > { %14492 = vmatprep.subr.bf16.mxu0 %v16626_v17  ;;  %14533 = vmatprep.subr.bf16.mxu1 %v16628_v8  ;;  %v1616_v17 = vld [vmem:[%s17872_s12 + $0x27e8] sm:$0xff]  ;;  %v16721_v8 = vcombine.low %v1567_v46, %v1583_v63  ;;  %v16754_v10 = vcombine.high %v1599_v9, %v1615_v25 }
 0xb69   : > { %v16756_v4 = vcombine.high %v1600_v58, %v1616_v17  ;;  %v16755_v19 = vcombine.low %v1600_v58, %v1616_v17  ;;  %v1727_v17 = vld [vmem:[%s17872_s12 + $0x2b60] sm:$0xff] }
 0xb6f   : > { %14493 = vmatpush1.bf16.xpose.msra.mxu0 %v16625_v1  ;;  %14534 = vmatpush1.bf16.xpose.msra.mxu1 %v16627_v37  ;;  %v1647_v1 = vld [vmem:[%s17872_s12 + $0x28e0] sm:$0xff]  ;;  %v1632_v37 = vld [vmem:[%s17872_s12 + $0x2868] sm:$0xff] }
 0xb70   : > { %14494 = vmatprep.subr.bf16.mxu0 %v16658_v13  ;;  %14535 = vmatprep.subr.bf16.mxu1 %v16660_v18  ;;  %v1648_v13 = vld [vmem:[%s17872_s12 + $0x28e8] sm:$0xff]  ;;  %v16753_v18 = vcombine.low %v1599_v9, %v1615_v25  ;;  %v16786_v7 = vcombine.high %v1631_v55, %v1647_v1 }
 0xb71   : > { %v16788_v32 = vcombine.high %v1632_v37, %v1648_v13  ;;  %v16787_v46 = vcombine.low %v1632_v37, %v1648_v13 }
 0xb77   : > { %14495 = vmatpush1.bf16.xpose.msra.mxu0 %v16657_v6  ;;  %14536 = vmatpush1.bf16.xpose.msra.mxu1 %v16659_v23  ;;  %v1679_v6 = vld [vmem:[%s17872_s12 + $0x29e0] sm:$0xff]  ;;  %v1664_v23 = vld [vmem:[%s17872_s12 + $0x2968] sm:$0xff] }
 0xb78   : > { %14496 = vmatprep.subr.bf16.mxu0 %v16690_v0  ;;  %14537 = vmatprep.subr.bf16.mxu1 %v16692_v43  ;;  %v1680_v0 = vld [vmem:[%s17872_s12 + $0x29e8] sm:$0xff]  ;;  %v16785_v43 = vcombine.low %v1631_v55, %v1647_v1  ;;  %v16818_v63 = vcombine.high %v1663_v22, %v1679_v6 }
 0xb79   : > { %v16820_v57 = vcombine.high %v1664_v23, %v1680_v0  ;;  %v16819_v9 = vcombine.low %v1664_v23, %v1680_v0  ;;  %v1776_v23 = vld [vmem:[%s17872_s12 + $0x2ce8] sm:$0xff] }
 0xb7f   : > { %14497 = vmatpush1.bf16.xpose.msra.mxu0 %v16689_v45  ;;  %14538 = vmatpush1.bf16.xpose.msra.mxu1 %v16691_v15  ;;  %v1711_v45 = vld [vmem:[%s17872_s12 + $0x2ae0] sm:$0xff]  ;;  %v1696_v15 = vld [vmem:[%s17872_s12 + $0x2a68] sm:$0xff] }
 0xb80   : > { %14498 = vmatprep.subr.bf16.mxu0 %v16722_v51  ;;  %14539 = vmatprep.subr.bf16.mxu1 %v16724_v54  ;;  %v1712_v51 = vld [vmem:[%s17872_s12 + $0x2ae8] sm:$0xff]  ;;  %v16817_v54 = vcombine.low %v1663_v22, %v1679_v6  ;;  %v16850_v25 = vcombine.high %v1695_v31, %v1711_v45 }
 0xb81   : > { %v16852_v58 = vcombine.high %v1696_v15, %v1712_v51  ;;  %v16851_v55 = vcombine.low %v1696_v15, %v1712_v51  ;;  %v1760_v6 = vld [vmem:[%s17872_s12 + $0x2c68] sm:$0xff] }
 0xb87   : > { %14499 = vmatpush1.bf16.xpose.msra.mxu0 %v16721_v8  ;;  %14540 = vmatpush1.bf16.xpose.msra.mxu1 %v16723_v12  ;;  %v1743_v8 = vld [vmem:[%s17872_s12 + $0x2be0] sm:$0xff]  ;;  %v1728_v12 = vld [vmem:[%s17872_s12 + $0x2b68] sm:$0xff] }
 0xb88   : > { %14500 = vmatprep.subr.bf16.mxu0 %v16754_v10  ;;  %14541 = vmatprep.subr.bf16.mxu1 %v16756_v4  ;;  %v1744_v10 = vld [vmem:[%s17872_s12 + $0x2be8] sm:$0xff]  ;;  %v16849_v4 = vcombine.low %v1695_v31, %v1711_v45  ;;  %v16882_v1 = vcombine.high %v1727_v17, %v1743_v8 }
 0xb89   : > { %v16884_v37 = vcombine.high %v1728_v12, %v1744_v10  ;;  %v16883_v15 = vcombine.low %v1728_v12, %v1744_v10 }
 0xb8f   : > { %14501 = vmatpush1.bf16.xpose.msra.mxu0 %v16753_v18  ;;  %14542 = vmatpush1.bf16.xpose.msra.mxu1 %v16755_v19  ;;  %v1759_v18 = vld [vmem:[%s17872_s12 + $0x2c60] sm:$0xff] }
 0xb90   : > { %14502 = vmatprep.subr.bf16.mxu0 %v16786_v7  ;;  %14543 = vmatprep.subr.bf16.mxu1 %v16788_v32  ;;  %v1775_v19 = vld [vmem:[%s17872_s12 + $0x2ce0] sm:$0xff] }
 0xb91   : > { %v16914_v51 = vcombine.high %v1759_v18, %v1775_v19 }
 0xb97   : > { %14503 = vmatpush1.bf16.xpose.msra.mxu0 %v16785_v43  ;;  %14544 = vmatpush1.bf16.xpose.msra.mxu1 %v16787_v46 }
 0xb98   : > { %14504 = vmatprep.subr.bf16.mxu0 %v16818_v63  ;;  %14545 = vmatprep.subr.bf16.mxu1 %v16820_v57  ;;  %v16881_v63 = vcombine.low %v1727_v17, %v1743_v8  ;;  %v1808_v17 = vld [vmem:[%s17872_s12 + $0x2de8] sm:$0xff]  ;;  %v16913_v8 = vcombine.low %v1759_v18, %v1775_v19  ;;  %v1855_v18 = vld [vmem:[%s17872_s12 + $0x2f60] sm:$0xff] }
 0xb99   : > { %v1871_v19 = vld [vmem:[%s17872_s12 + $0x2fe0] sm:$0xff] }
 0xb9f   : > { %14505 = vmatpush1.bf16.xpose.msra.mxu0 %v16817_v54  ;;  %14546 = vmatpush1.bf16.xpose.msra.mxu1 %v16819_v9  ;;  %v16916_v9 = vcombine.high %v1760_v6, %v1776_v23 }
 0xba0   : > { %14506 = vmatprep.subr.bf16.mxu0 %v16850_v25  ;;  %14547 = vmatprep.subr.bf16.mxu1 %v16852_v58  ;;  %v1807_v25 = vld [vmem:[%s17872_s12 + $0x2de0] sm:$0xff]  ;;  %v1792_v58 = vld [vmem:[%s17872_s12 + $0x2d68] sm:$0xff] }
 0xba1   : > { %v16948_v10 = vcombine.high %v1792_v58, %v1808_v17 }
 0xba7   : > { %14507 = vmatpush1.bf16.xpose.msra.mxu0 %v16849_v4  ;;  %14548 = vmatpush1.bf16.xpose.msra.mxu1 %v16851_v55  ;;  %v16915_v4 = vcombine.low %v1760_v6, %v1776_v23  ;;  %v1823_v55 = vld [vmem:[%s17872_s12 + $0x2e60] sm:$0xff]  ;;  %v1856_v6 = vld [vmem:[%s17872_s12 + $0x2f68] sm:$0xff] }
 0xba8   : > { %14508 = vmatprep.subr.bf16.mxu0 %v16882_v1  ;;  %14549 = vmatprep.subr.bf16.mxu1 %v16884_v37  ;;  %v1839_v1 = vld [vmem:[%s17872_s12 + $0x2ee0] sm:$0xff]  ;;  %v1824_v37 = vld [vmem:[%s17872_s12 + $0x2e68] sm:$0xff] }
 0xba9   : > { %v14356_v13 = vpop.f32.mrb[80].mxu0  ;;  %v14397_v32 = vpop.f32.mrb[80].mxu1  ;;  %v1872_v23 = vld [vmem:[%s17872_s12 + $0x2fe8] sm:$0xff] }
 0xbaa   : > { %v14357_v7 = vadd.f32 %v14356_v13, %v19659_v59  ;;  %v14358_v22 = vpop.f32.mrb[81].mxu0  ;;  %v14399_v43 = vpop.f32.mrb[81].mxu1  ;;  %v1840_v13 = vld [vmem:[%s17872_s12 + $0x2ee8] sm:$0xff] }
 0xbab   : > { %v14359_v0 = vadd.f32 %v14358_v22, %v19661_v21  ;;  %v14360_v46 = vpop.f32.mrb[82].mxu0  ;;  %v14401_v31 = vpop.f32.mrb[82].mxu1  ;;  %v1791_v21 = vld [vmem:[%s17872_s12 + $0x2d60] sm:$0xff]  ;;  %v16978_v22 = vcombine.high %v1823_v55, %v1839_v1 }
 0xbac   : > { %v19733_v57 = vadd.f32 %v14397_v32, %v14357_v7  ;;  %v14361_v45 = vpop.f32.mrb[83].mxu0  ;;  %v14402_v54 = vpop.f32.mrb[83].mxu1  ;;  %v16946_v12 = vcombine.high %v1791_v21, %v1807_v25  ;;  %v16945_v7 = vcombine.low %v1791_v21, %v1807_v25  ;;  %v16947_v32 = vcombine.low %v1792_v58, %v1808_v17  ;;  %v1409_v17 = vld [vmem:[%s17872_s12 + $0x2170] sm:$0xff] }
 0xbad   : > { %v19735_v59 = vadd.f32 %v14399_v43, %v14359_v0  ;;  %v16980_v0 = vcombine.high %v1824_v37, %v1840_v13  ;;  %v16977_v43 = vcombine.low %v1823_v55, %v1839_v1  ;;  %v16979_v46 = vcombine.low %v1824_v37, %v1840_v13  ;;  %v1377_v45 = vld [vmem:[%s17872_s12 + $0x2070] sm:$0xff]  ;;  %v1394_v54 = vld [vmem:[%s17872_s12 + $0x20f8] sm:$0xff] }
 0xbae   : > { %v17012_v31 = vcombine.high %v1856_v6, %v1872_v23  ;;  %v17011_v21 = vcombine.low %v1856_v6, %v1872_v23  ;;  %v1441_v13 = vld [vmem:[%s17872_s12 + $0x2270] sm:$0xff] }
 0xbaf   : > { %14509 = vmatpush1.bf16.xpose.msra.mxu0 %v16881_v63  ;;  %14550 = vmatpush1.bf16.xpose.msra.mxu1 %v16883_v15  ;;  %v17010_v63 = vcombine.high %v1855_v18, %v1871_v19  ;;  %v1393_v15 = vld [vmem:[%s17872_s12 + $0x20f0] sm:$0xff] }
 0xbb0   : > { %14510 = vmatprep.subr.bf16.mxu0 %v16914_v51  ;;  %14551 = vmatprep.subr.bf16.mxu1 %v16916_v9  ;;  %v1378_v51 = vld [vmem:[%s17872_s12 + $0x2078] sm:$0xff]  ;;  %v17009_v9 = vcombine.low %v1855_v18, %v1871_v19  ;;  %v16534_v25 = vcombine.high %v1377_v45, %v1393_v15  ;;  %v1473_v23 = vld [vmem:[%s17872_s12 + $0x2370] sm:$0xff] }
 0xbb1   : > { %v16536_v58 = vcombine.high %v1378_v51, %v1394_v54  ;;  %v16535_v55 = vcombine.low %v1378_v51, %v1394_v54  ;;  %v1505_v54 = vld [vmem:[%s17872_s12 + $0x2470] sm:$0xff] }
 0xbb7   : > { %14511 = vmatpush1.bf16.xpose.msra.mxu0 %v16913_v8  ;;  %14552 = vmatpush1.bf16.xpose.msra.mxu1 %v16915_v4  ;;  %v1425_v8 = vld [vmem:[%s17872_s12 + $0x21f0] sm:$0xff]  ;;  %v1410_v4 = vld [vmem:[%s17872_s12 + $0x2178] sm:$0xff] }
 0xbb8   : > { %14512 = vmatprep.subr.bf16.mxu0 %v16946_v12  ;;  %14553 = vmatprep.subr.bf16.mxu1 %v16948_v10  ;;  %v1426_v12 = vld [vmem:[%s17872_s12 + $0x21f8] sm:$0xff]  ;;  %v16533_v10 = vcombine.low %v1377_v45, %v1393_v15  ;;  %v16566_v1 = vcombine.high %v1409_v17, %v1425_v8 }
 0xbb9   : > { %v16568_v37 = vcombine.high %v1410_v4, %v1426_v12  ;;  %v16567_v18 = vcombine.low %v1410_v4, %v1426_v12  ;;  %v1537_v12 = vld [vmem:[%s17872_s12 + $0x2570] sm:$0xff] }
 0xbbf   : > { %14513 = vmatpush1.bf16.xpose.msra.mxu0 %v16945_v7  ;;  %14554 = vmatpush1.bf16.xpose.msra.mxu1 %v16947_v32  ;;  %v1457_v7 = vld [vmem:[%s17872_s12 + $0x22f0] sm:$0xff]  ;;  %v1442_v32 = vld [vmem:[%s17872_s12 + $0x2278] sm:$0xff] }
 0xbc0   : > { %14514 = vmatprep.subr.bf16.mxu0 %v16978_v22  ;;  %14555 = vmatprep.subr.bf16.mxu1 %v16980_v0  ;;  %v1458_v22 = vld [vmem:[%s17872_s12 + $0x22f8] sm:$0xff]  ;;  %v16565_v0 = vcombine.low %v1409_v17, %v1425_v8  ;;  %v16598_v19 = vcombine.high %v1441_v13, %v1457_v7 }
 0xbc1   : > { %v16600_v6 = vcombine.high %v1442_v32, %v1458_v22  ;;  %v16599_v45 = vcombine.low %v1442_v32, %v1458_v22  ;;  %v1569_v22 = vld [vmem:[%s17872_s12 + $0x2670] sm:$0xff] }
 0xbc7   : > { %14515 = vmatpush1.bf16.xpose.msra.mxu0 %v16977_v43  ;;  %14556 = vmatpush1.bf16.xpose.msra.mxu1 %v16979_v46  ;;  %v1489_v43 = vld [vmem:[%s17872_s12 + $0x23f0] sm:$0xff]  ;;  %v1474_v46 = vld [vmem:[%s17872_s12 + $0x2378] sm:$0xff] }
 0xbc8   : > { %14516 = vmatprep.subr.bf16.mxu0 %v17010_v63  ;;  %14557 = vmatprep.subr.bf16.mxu1 %v17012_v31  ;;  %v1490_v63 = vld [vmem:[%s17872_s12 + $0x23f8] sm:$0xff]  ;;  %v16597_v31 = vcombine.low %v1441_v13, %v1457_v7  ;;  %v16630_v15 = vcombine.high %v1473_v23, %v1489_v43 }
 0xbc9   : > { %v16632_v51 = vcombine.high %v1474_v46, %v1490_v63  ;;  %v16631_v17 = vcombine.low %v1474_v46, %v1490_v63  ;;  %v1601_v63 = vld [vmem:[%s17872_s12 + $0x2770] sm:$0xff] }
 0xbcf   : > { %14517 = vmatpush1.bf16.xpose.msra.mxu0 %v17009_v9  ;;  %14558 = vmatpush1.bf16.xpose.msra.mxu1 %v17011_v21  ;;  %v1521_v9 = vld [vmem:[%s17872_s12 + $0x24f0] sm:$0xff]  ;;  %v1506_v21 = vld [vmem:[%s17872_s12 + $0x2478] sm:$0xff] }
 0xbd0   : > { %14568 = vmatprep.subr.bf16.mxu0 %v16534_v25  ;;  %14609 = vmatprep.subr.bf16.mxu1 %v16536_v58  ;;  %v1522_v25 = vld [vmem:[%s17872_s12 + $0x24f8] sm:$0xff]  ;;  %v16629_v58 = vcombine.low %v1473_v23, %v1489_v43  ;;  %v16662_v8 = vcombine.high %v1505_v54, %v1521_v9 }
 0xbd1   : > { %v16664_v4 = vcombine.high %v1506_v21, %v1522_v25  ;;  %v16663_v13 = vcombine.low %v1506_v21, %v1522_v25  ;;  %v1633_v25 = vld [vmem:[%s17872_s12 + $0x2870] sm:$0xff] }
 0xbd6   : > { %14519 = vmatmul.mubr.bf16.vlgmr.msra.gmra.mrb[88].mxu0 %v18533_v36  ;;  %14560 = vmatmul.mubr.bf16.vlgmr.msra.gmra.mrb[88].mxu1 %v18540_v47 }
 0xbd7   : > { %14569 = vmatpush1.bf16.xpose.msra.mxu0 %v16533_v10  ;;  %14610 = vmatpush1.bf16.xpose.msra.mxu1 %v16535_v55  ;;  %v1553_v10 = vld [vmem:[%s17872_s12 + $0x25f0] sm:$0xff]  ;;  %v1538_v55 = vld [vmem:[%s17872_s12 + $0x2578] sm:$0xff] }
 0xbd8   : > { %14570 = vmatprep.subr.bf16.mxu0 %v16566_v1  ;;  %14611 = vmatprep.subr.bf16.mxu1 %v16568_v37  ;;  %v1554_v1 = vld [vmem:[%s17872_s12 + $0x25f8] sm:$0xff]  ;;  %v16661_v37 = vcombine.low %v1505_v54, %v1521_v9  ;;  %v16694_v7 = vcombine.high %v1537_v12, %v1553_v10 }
 0xbd9   : > { %14600 = vmatprep.mubr.bf16.mxu0 %v18545_v60  ;;  %14641 = vmatprep.mubr.bf16.mxu1 %v18548_v62  ;;  %v16696_v32 = vcombine.high %v1538_v55, %v1554_v1  ;;  %v16695_v23 = vcombine.low %v1538_v55, %v1554_v1  ;;  %v1665_v1 = vld [vmem:[%s17872_s12 + $0x2970] sm:$0xff] }
 0xbdf   : > { %14571 = vmatpush1.bf16.xpose.msra.mxu0 %v16565_v0  ;;  %14612 = vmatpush1.bf16.xpose.msra.mxu1 %v16567_v18  ;;  %v1585_v0 = vld [vmem:[%s17872_s12 + $0x26f0] sm:$0xff]  ;;  %v1570_v18 = vld [vmem:[%s17872_s12 + $0x2678] sm:$0xff] }
 0xbe0   : > { %14572 = vmatprep.subr.bf16.mxu0 %v16598_v19  ;;  %14613 = vmatprep.subr.bf16.mxu1 %v16600_v6  ;;  %v1586_v19 = vld [vmem:[%s17872_s12 + $0x26f8] sm:$0xff]  ;;  %v16693_v6 = vcombine.low %v1537_v12, %v1553_v10  ;;  %v16726_v43 = vcombine.high %v1569_v22, %v1585_v0 }
 0xbe1   : > { %v16728_v46 = vcombine.high %v1570_v18, %v1586_v19  ;;  %v16727_v54 = vcombine.low %v1570_v18, %v1586_v19  ;;  %v1697_v19 = vld [vmem:[%s17872_s12 + $0x2a70] sm:$0xff] }
 0xbe7   : > { %14573 = vmatpush1.bf16.xpose.msra.mxu0 %v16597_v31  ;;  %14614 = vmatpush1.bf16.xpose.msra.mxu1 %v16599_v45  ;;  %v1617_v31 = vld [vmem:[%s17872_s12 + $0x27f0] sm:$0xff]  ;;  %v1602_v45 = vld [vmem:[%s17872_s12 + $0x2778] sm:$0xff] }
 0xbe8   : > { %14574 = vmatprep.subr.bf16.mxu0 %v16630_v15  ;;  %14615 = vmatprep.subr.bf16.mxu1 %v16632_v51  ;;  %v1618_v15 = vld [vmem:[%s17872_s12 + $0x27f8] sm:$0xff]  ;;  %v16725_v51 = vcombine.low %v1569_v22, %v1585_v0  ;;  %v16758_v9 = vcombine.high %v1601_v63, %v1617_v31 }
 0xbe9   : > { %v16760_v21 = vcombine.high %v1602_v45, %v1618_v15  ;;  %v16759_v12 = vcombine.low %v1602_v45, %v1618_v15  ;;  %v1729_v15 = vld [vmem:[%s17872_s12 + $0x2b70] sm:$0xff] }
 0xbef   : > { %14575 = vmatpush1.bf16.xpose.msra.mxu0 %v16629_v58  ;;  %14616 = vmatpush1.bf16.xpose.msra.mxu1 %v16631_v17  ;;  %v1649_v58 = vld [vmem:[%s17872_s12 + $0x28f0] sm:$0xff]  ;;  %v1634_v17 = vld [vmem:[%s17872_s12 + $0x2878] sm:$0xff] }
 0xbf0   : > { %14576 = vmatprep.subr.bf16.mxu0 %v16662_v8  ;;  %14617 = vmatprep.subr.bf16.mxu1 %v16664_v4  ;;  %v1650_v8 = vld [vmem:[%s17872_s12 + $0x28f8] sm:$0xff]  ;;  %v16757_v4 = vcombine.low %v1601_v63, %v1617_v31  ;;  %v16790_v10 = vcombine.high %v1633_v25, %v1649_v58 }
 0xbf1   : > { %v16792_v55 = vcombine.high %v1634_v17, %v1650_v8  ;;  %v16791_v22 = vcombine.low %v1634_v17, %v1650_v8 }
 0xbf7   : > { %14577 = vmatpush1.bf16.xpose.msra.mxu0 %v16661_v37  ;;  %14618 = vmatpush1.bf16.xpose.msra.mxu1 %v16663_v13  ;;  %v1681_v37 = vld [vmem:[%s17872_s12 + $0x29f0] sm:$0xff]  ;;  %v1666_v13 = vld [vmem:[%s17872_s12 + $0x2978] sm:$0xff] }
 0xbf8   : > { %14578 = vmatprep.subr.bf16.mxu0 %v16694_v7  ;;  %14619 = vmatprep.subr.bf16.mxu1 %v16696_v32  ;;  %v1682_v7 = vld [vmem:[%s17872_s12 + $0x29f8] sm:$0xff]  ;;  %v16789_v32 = vcombine.low %v1633_v25, %v1649_v58  ;;  %v16822_v0 = vcombine.high %v1665_v1, %v1681_v37 }
 0xbf9   : > { %v16824_v18 = vcombine.high %v1666_v13, %v1682_v7  ;;  %v16823_v63 = vcombine.low %v1666_v13, %v1682_v7  ;;  %v1778_v13 = vld [vmem:[%s17872_s12 + $0x2cf8] sm:$0xff] }
 0xbff   : > { %14579 = vmatpush1.bf16.xpose.msra.mxu0 %v16693_v6  ;;  %14620 = vmatpush1.bf16.xpose.msra.mxu1 %v16695_v23  ;;  %v1713_v6 = vld [vmem:[%s17872_s12 + $0x2af0] sm:$0xff]  ;;  %v1698_v23 = vld [vmem:[%s17872_s12 + $0x2a78] sm:$0xff] }
 0xc00   : > { %14580 = vmatprep.subr.bf16.mxu0 %v16726_v43  ;;  %14621 = vmatprep.subr.bf16.mxu1 %v16728_v46  ;;  %v1714_v43 = vld [vmem:[%s17872_s12 + $0x2af8] sm:$0xff]  ;;  %v16821_v46 = vcombine.low %v1665_v1, %v1681_v37  ;;  %v16854_v31 = vcombine.high %v1697_v19, %v1713_v6 }
 0xc01   : > { %v16856_v45 = vcombine.high %v1698_v23, %v1714_v43  ;;  %v16855_v25 = vcombine.low %v1698_v23, %v1714_v43  ;;  %v1762_v37 = vld [vmem:[%s17872_s12 + $0x2c78] sm:$0xff] }
 0xc07   : > { %14581 = vmatpush1.bf16.xpose.msra.mxu0 %v16725_v51  ;;  %14622 = vmatpush1.bf16.xpose.msra.mxu1 %v16727_v54  ;;  %v1745_v51 = vld [vmem:[%s17872_s12 + $0x2bf0] sm:$0xff]  ;;  %v1730_v54 = vld [vmem:[%s17872_s12 + $0x2b78] sm:$0xff] }
 0xc08   : > { %14582 = vmatprep.subr.bf16.mxu0 %v16758_v9  ;;  %14623 = vmatprep.subr.bf16.mxu1 %v16760_v21  ;;  %v1746_v9 = vld [vmem:[%s17872_s12 + $0x2bf8] sm:$0xff]  ;;  %v16853_v21 = vcombine.low %v1697_v19, %v1713_v6  ;;  %v16886_v58 = vcombine.high %v1729_v15, %v1745_v51 }
 0xc09   : > { %v16888_v17 = vcombine.high %v1730_v54, %v1746_v9  ;;  %v16887_v23 = vcombine.low %v1730_v54, %v1746_v9 }
 0xc0f   : > { %14583 = vmatpush1.bf16.xpose.msra.mxu0 %v16757_v4  ;;  %14624 = vmatpush1.bf16.xpose.msra.mxu1 %v16759_v12  ;;  %v1761_v4 = vld [vmem:[%s17872_s12 + $0x2c70] sm:$0xff] }
 0xc10   : > { %14584 = vmatprep.subr.bf16.mxu0 %v16790_v10  ;;  %14625 = vmatprep.subr.bf16.mxu1 %v16792_v55  ;;  %v1777_v12 = vld [vmem:[%s17872_s12 + $0x2cf0] sm:$0xff] }
 0xc11   : > { %v16918_v43 = vcombine.high %v1761_v4, %v1777_v12 }
 0xc17   : > { %14585 = vmatpush1.bf16.xpose.msra.mxu0 %v16789_v32  ;;  %14626 = vmatpush1.bf16.xpose.msra.mxu1 %v16791_v22 }
 0xc18   : > { %14586 = vmatprep.subr.bf16.mxu0 %v16822_v0  ;;  %14627 = vmatprep.subr.bf16.mxu1 %v16824_v18  ;;  %v16885_v0 = vcombine.low %v1729_v15, %v1745_v51  ;;  %v1810_v15 = vld [vmem:[%s17872_s12 + $0x2df8] sm:$0xff]  ;;  %v16917_v51 = vcombine.low %v1761_v4, %v1777_v12  ;;  %v1857_v4 = vld [vmem:[%s17872_s12 + $0x2f70] sm:$0xff] }
 0xc19   : > { %v1873_v12 = vld [vmem:[%s17872_s12 + $0x2ff0] sm:$0xff] }
 0xc1f   : > { %14587 = vmatpush1.bf16.xpose.msra.mxu0 %v16821_v46  ;;  %14628 = vmatpush1.bf16.xpose.msra.mxu1 %v16823_v63  ;;  %v16920_v63 = vcombine.high %v1762_v37, %v1778_v13 }
 0xc20   : > { %14588 = vmatprep.subr.bf16.mxu0 %v16854_v31  ;;  %14629 = vmatprep.subr.bf16.mxu1 %v16856_v45  ;;  %v1809_v31 = vld [vmem:[%s17872_s12 + $0x2df0] sm:$0xff]  ;;  %v1794_v45 = vld [vmem:[%s17872_s12 + $0x2d78] sm:$0xff] }
 0xc21   : > { %v16952_v9 = vcombine.high %v1794_v45, %v1810_v15 }
 0xc27   : > { %14589 = vmatpush1.bf16.xpose.msra.mxu0 %v16853_v21  ;;  %14630 = vmatpush1.bf16.xpose.msra.mxu1 %v16855_v25  ;;  %v16919_v21 = vcombine.low %v1762_v37, %v1778_v13  ;;  %v1825_v25 = vld [vmem:[%s17872_s12 + $0x2e70] sm:$0xff]  ;;  %v1858_v37 = vld [vmem:[%s17872_s12 + $0x2f78] sm:$0xff] }
 0xc28   : > { %14590 = vmatprep.subr.bf16.mxu0 %v16886_v58  ;;  %14631 = vmatprep.subr.bf16.mxu1 %v16888_v17  ;;  %v1841_v58 = vld [vmem:[%s17872_s12 + $0x2ef0] sm:$0xff]  ;;  %v1826_v17 = vld [vmem:[%s17872_s12 + $0x2e78] sm:$0xff] }
 0xc29   : > { %v14438_v8 = vpop.f32.mrb[84].mxu0  ;;  %v14479_v55 = vpop.f32.mrb[84].mxu1  ;;  %v1874_v13 = vld [vmem:[%s17872_s12 + $0x2ff8] sm:$0xff] }
 0xc2a   : > { %v14439_v10 = vadd.f32 %v14438_v8, %v19733_v57  ;;  %v14440_v1 = vpop.f32.mrb[85].mxu0  ;;  %v14481_v32 = vpop.f32.mrb[85].mxu1  ;;  %v1842_v8 = vld [vmem:[%s17872_s12 + $0x2ef8] sm:$0xff] }
 0xc2b   : > { %v14441_v7 = vadd.f32 %v14440_v1, %v19735_v59  ;;  %v14442_v22 = vpop.f32.mrb[86].mxu0  ;;  %v14483_v19 = vpop.f32.mrb[86].mxu1  ;;  %v1793_v59 = vld [vmem:[%s17872_s12 + $0x2d70] sm:$0xff]  ;;  %v16982_v1 = vcombine.high %v1825_v25, %v1841_v58 }
 0xc2c   : > { %v19807_v18 = vadd.f32 %v14479_v55, %v14439_v10  ;;  %v14443_v6 = vpop.f32.mrb[87].mxu0  ;;  %v14484_v46 = vpop.f32.mrb[87].mxu1  ;;  %v16950_v54 = vcombine.high %v1793_v59, %v1809_v31  ;;  %v16949_v10 = vcombine.low %v1793_v59, %v1809_v31  ;;  %v16951_v55 = vcombine.low %v1794_v45, %v1810_v15  ;;  %v1907_v15 = vld [vmem:[%s17872_s12 + $0x3100] sm:$0xff] }
 0xc2d   : > { %v19809_v57 = vadd.f32 %v14481_v32, %v14441_v7  ;;  %v16984_v7 = vcombine.high %v1826_v17, %v1842_v8  ;;  %v16981_v32 = vcombine.low %v1825_v25, %v1841_v58  ;;  %v16983_v22 = vcombine.low %v1826_v17, %v1842_v8  ;;  %v1875_v6 = vld [vmem:[%s17872_s12 + $0x3000] sm:$0xff]  ;;  %v1892_v46 = vld [vmem:[%s17872_s12 + $0x3088] sm:$0xff] }
 0xc2e   : > { %v17016_v19 = vcombine.high %v1858_v37, %v1874_v13  ;;  %v17015_v59 = vcombine.low %v1858_v37, %v1874_v13  ;;  %v1939_v8 = vld [vmem:[%s17872_s12 + $0x3200] sm:$0xff] }
 0xc2f   : > { %14591 = vmatpush1.bf16.xpose.msra.mxu0 %v16885_v0  ;;  %14632 = vmatpush1.bf16.xpose.msra.mxu1 %v16887_v23  ;;  %v17014_v0 = vcombine.high %v1857_v4, %v1873_v12  ;;  %v1891_v23 = vld [vmem:[%s17872_s12 + $0x3080] sm:$0xff] }
 0xc30   : > { %14592 = vmatprep.subr.bf16.mxu0 %v16918_v43  ;;  %14633 = vmatprep.subr.bf16.mxu1 %v16920_v63  ;;  %v1876_v43 = vld [vmem:[%s17872_s12 + $0x3008] sm:$0xff]  ;;  %v17013_v63 = vcombine.low %v1857_v4, %v1873_v12  ;;  %v17018_v31 = vcombine.high %v1875_v6, %v1891_v23  ;;  %v1971_v13 = vld [vmem:[%s17872_s12 + $0x3300] sm:$0xff] }
 0xc31   : > { %v17020_v45 = vcombine.high %v1876_v43, %v1892_v46  ;;  %v17019_v25 = vcombine.low %v1876_v43, %v1892_v46  ;;  %v2019_v43 = vld [vmem:[%s17872_s12 + $0x3480] sm:$0xff]  ;;  %v2004_v46 = vld [vmem:[%s17872_s12 + $0x3408] sm:$0xff] }
 0xc37   : > { %14593 = vmatpush1.bf16.xpose.msra.mxu0 %v16917_v51  ;;  %14634 = vmatpush1.bf16.xpose.msra.mxu1 %v16919_v21  ;;  %v1923_v51 = vld [vmem:[%s17872_s12 + $0x3180] sm:$0xff]  ;;  %v1908_v21 = vld [vmem:[%s17872_s12 + $0x3108] sm:$0xff] }
 0xc38   : > { %14594 = vmatprep.subr.bf16.mxu0 %v16950_v54  ;;  %14635 = vmatprep.subr.bf16.mxu1 %v16952_v9  ;;  %v1924_v54 = vld [vmem:[%s17872_s12 + $0x3188] sm:$0xff]  ;;  %v17017_v9 = vcombine.low %v1875_v6, %v1891_v23  ;;  %v17050_v58 = vcombine.high %v1907_v15, %v1923_v51  ;;  %v2003_v23 = vld [vmem:[%s17872_s12 + $0x3400] sm:$0xff] }
 0xc39   : > { %v17052_v17 = vcombine.high %v1908_v21, %v1924_v54  ;;  %v17051_v4 = vcombine.low %v1908_v21, %v1924_v54  ;;  %v2051_v21 = vld [vmem:[%s17872_s12 + $0x3580] sm:$0xff]  ;;  %v2036_v54 = vld [vmem:[%s17872_s12 + $0x3508] sm:$0xff] }
 0xc3f   : > { %14595 = vmatpush1.bf16.xpose.msra.mxu0 %v16949_v10  ;;  %14636 = vmatpush1.bf16.xpose.msra.mxu1 %v16951_v55  ;;  %v1955_v10 = vld [vmem:[%s17872_s12 + $0x3280] sm:$0xff]  ;;  %v1940_v55 = vld [vmem:[%s17872_s12 + $0x3208] sm:$0xff] }
 0xc40   : > { %14596 = vmatprep.subr.bf16.mxu0 %v16982_v1  ;;  %14637 = vmatprep.subr.bf16.mxu1 %v16984_v7  ;;  %v1956_v1 = vld [vmem:[%s17872_s12 + $0x3288] sm:$0xff]  ;;  %v17049_v7 = vcombine.low %v1907_v15, %v1923_v51  ;;  %v17082_v12 = vcombine.high %v1939_v8, %v1955_v10  ;;  %v2035_v51 = vld [vmem:[%s17872_s12 + $0x3500] sm:$0xff] }
 0xc41   : > { %v17084_v37 = vcombine.high %v1940_v55, %v1956_v1 }
 0xc47   : > { %14597 = vmatpush1.bf16.xpose.msra.mxu0 %v16981_v32  ;;  %14638 = vmatpush1.bf16.xpose.msra.mxu1 %v16983_v22  ;;  %v1987_v32 = vld [vmem:[%s17872_s12 + $0x3380] sm:$0xff]  ;;  %v1972_v22 = vld [vmem:[%s17872_s12 + $0x3308] sm:$0xff] }
 0xc48   : > { %14598 = vmatprep.subr.bf16.mxu0 %v17014_v0  ;;  %14639 = vmatprep.subr.bf16.mxu1 %v17016_v19  ;;  %v17081_v0 = vcombine.low %v1939_v8, %v1955_v10  ;;  %v17083_v19 = vcombine.low %v1940_v55, %v1956_v1  ;;  %v17114_v6 = vcombine.high %v1971_v13, %v1987_v32  ;;  %v2067_v10 = vld [vmem:[%s17872_s12 + $0x3600] sm:$0xff]  ;;  %v2068_v1 = vld [vmem:[%s17872_s12 + $0x3608] sm:$0xff] }
 0xc49   : > { %v2083_v55 = vld [vmem:[%s17872_s12 + $0x3680] sm:$0xff] }
 0xc4f   : > { %14599 = vmatpush1.bf16.xpose.msra.mxu0 %v17013_v63  ;;  %14640 = vmatpush1.bf16.xpose.msra.mxu1 %v17015_v59  ;;  %v2020_v63 = vld [vmem:[%s17872_s12 + $0x3488] sm:$0xff]  ;;  %v17113_v59 = vcombine.low %v1971_v13, %v1987_v32  ;;  %v2099_v32 = vld [vmem:[%s17872_s12 + $0x3700] sm:$0xff] }
 0xc50   : > { %14650 = vmatprep.subr.bf16.mxu0 %v17018_v31  ;;  %14691 = vmatprep.subr.bf16.mxu1 %v17020_v45  ;;  %v17146_v45 = vcombine.high %v2003_v23, %v2019_v43  ;;  %v17148_v15 = vcombine.high %v2004_v46, %v2020_v63 }
 0xc56   : > { %14601 = vmatmul.mubr.bf16.vlgmr.msra.gmra.mrb[92].mxu0 %v18627_v11  ;;  %14642 = vmatmul.mubr.bf16.vlgmr.msra.gmra.mrb[92].mxu1 %v18631_v14 }
 0xc57   : > { %14651 = vmatpush1.bf16.xpose.msra.mxu0 %v17017_v9  ;;  %14692 = vmatpush1.bf16.xpose.msra.mxu1 %v17019_v25  ;;  %v2052_v9 = vld [vmem:[%s17872_s12 + $0x3588] sm:$0xff]  ;;  %v17145_v25 = vcombine.low %v2003_v23, %v2019_v43  ;;  %v2131_v43 = vld [vmem:[%s17872_s12 + $0x3800] sm:$0xff] }
 0xc58   : > { %14652 = vmatprep.subr.bf16.mxu0 %v17050_v58  ;;  %14693 = vmatprep.subr.bf16.mxu1 %v17052_v17  ;;  %v17147_v58 = vcombine.low %v2004_v46, %v2020_v63  ;;  %v17178_v17 = vcombine.high %v2035_v51, %v2051_v21  ;;  %v17180_v8 = vcombine.high %v2036_v54, %v2052_v9  ;;  %v2147_v46 = vld [vmem:[%s17872_s12 + $0x3880] sm:$0xff]  ;;  %v2132_v63 = vld [vmem:[%s17872_s12 + $0x3808] sm:$0xff] }
 0xc59   : > { %14682 = vmatprep.mubr.bf16.mxu0 %v17908_v34  ;;  %14723 = vmatprep.mubr.bf16.mxu1 %v17910_v35  ;;  %v1988_v34 = vld [vmem:[%s17872_s12 + $0x3388] sm:$0xff] }
 0xc5a   : > { %v17116_v35 = vcombine.high %v1972_v22, %v1988_v34  ;;  %v17115_v31 = vcombine.low %v1972_v22, %v1988_v34  ;;  %v2115_v22 = vld [vmem:[%s17872_s12 + $0x3780] sm:$0xff]  ;;  %v2100_v34 = vld [vmem:[%s17872_s12 + $0x3708] sm:$0xff] }
 0xc5f   : > { %14653 = vmatpush1.bf16.xpose.msra.mxu0 %v17049_v7  ;;  %14694 = vmatpush1.bf16.xpose.msra.mxu1 %v17051_v4  ;;  %v2084_v7 = vld [vmem:[%s17872_s12 + $0x3688] sm:$0xff]  ;;  %v17177_v4 = vcombine.low %v2035_v51, %v2051_v21  ;;  %v2163_v21 = vld [vmem:[%s17872_s12 + $0x3900] sm:$0xff] }
 0xc60   : > { %14654 = vmatprep.subr.bf16.mxu0 %v17082_v12  ;;  %14695 = vmatprep.subr.bf16.mxu1 %v17084_v37  ;;  %v17179_v12 = vcombine.low %v2036_v54, %v2052_v9  ;;  %v17210_v37 = vcombine.high %v2067_v10, %v2083_v55  ;;  %v17212_v13 = vcombine.high %v2068_v1, %v2084_v7  ;;  %v2179_v54 = vld [vmem:[%s17872_s12 + $0x3980] sm:$0xff]  ;;  %v2164_v9 = vld [vmem:[%s17872_s12 + $0x3908] sm:$0xff] }
 0xc67   : > { %14655 = vmatpush1.bf16.xpose.msra.mxu0 %v17081_v0  ;;  %14696 = vmatpush1.bf16.xpose.msra.mxu1 %v17083_v19  ;;  %v2116_v0 = vld [vmem:[%s17872_s12 + $0x3788] sm:$0xff]  ;;  %v17209_v19 = vcombine.low %v2067_v10, %v2083_v55  ;;  %v2195_v55 = vld [vmem:[%s17872_s12 + $0x3a00] sm:$0xff] }
 0xc68   : > { %14656 = vmatprep.subr.bf16.mxu0 %v17114_v6  ;;  %14697 = vmatprep.subr.bf16.mxu1 %v17116_v35  ;;  %v17211_v6 = vcombine.low %v2068_v1, %v2084_v7  ;;  %v17242_v35 = vcombine.high %v2099_v32, %v2115_v22  ;;  %v17244_v23 = vcombine.high %v2100_v34, %v2116_v0  ;;  %v2211_v1 = vld [vmem:[%s17872_s12 + $0x3a80] sm:$0xff]  ;;  %v2196_v7 = vld [vmem:[%s17872_s12 + $0x3a08] sm:$0xff] }
 0xc6f   : > { %14657 = vmatpush1.bf16.xpose.msra.mxu0 %v17113_v59  ;;  %14698 = vmatpush1.bf16.xpose.msra.mxu1 %v17115_v31  ;;  %v2148_v59 = vld [vmem:[%s17872_s12 + $0x3888] sm:$0xff]  ;;  %v17241_v31 = vcombine.low %v2099_v32, %v2115_v22  ;;  %v2227_v22 = vld [vmem:[%s17872_s12 + $0x3b00] sm:$0xff] }
 0xc70   : > { %14658 = vmatprep.subr.bf16.mxu0 %v17146_v45  ;;  %14699 = vmatprep.subr.bf16.mxu1 %v17148_v15  ;;  %v17243_v45 = vcombine.low %v2100_v34, %v2116_v0  ;;  %v17274_v15 = vcombine.high %v2131_v43, %v2147_v46  ;;  %v17276_v51 = vcombine.high %v2132_v63, %v2148_v59  ;;  %v2243_v34 = vld [vmem:[%s17872_s12 + $0x3b80] sm:$0xff]  ;;  %v2228_v0 = vld [vmem:[%s17872_s12 + $0x3b08] sm:$0xff] }
 0xc77   : > { %14659 = vmatpush1.bf16.xpose.msra.mxu0 %v17145_v25  ;;  %14700 = vmatpush1.bf16.xpose.msra.mxu1 %v17147_v58  ;;  %v2180_v25 = vld [vmem:[%s17872_s12 + $0x3988] sm:$0xff]  ;;  %v17273_v58 = vcombine.low %v2131_v43, %v2147_v46 }
 0xc78   : > { %14660 = vmatprep.subr.bf16.mxu0 %v17178_v17  ;;  %14701 = vmatprep.subr.bf16.mxu1 %v17180_v8  ;;  %v17275_v17 = vcombine.low %v2132_v63, %v2148_v59  ;;  %v17306_v8 = vcombine.high %v2163_v21, %v2179_v54  ;;  %v17308_v10 = vcombine.high %v2164_v9, %v2180_v25  ;;  %v2259_v63 = vld [vmem:[%s17872_s12 + $0x3c00] sm:$0xff] }
 0xc79   : > { %v2275_v59 = vld [vmem:[%s17872_s12 + $0x3c80] sm:$0xff] }
 0xc7f   : > { %14661 = vmatpush1.bf16.xpose.msra.mxu0 %v17177_v4  ;;  %14702 = vmatpush1.bf16.xpose.msra.mxu1 %v17179_v12  ;;  %v2212_v4 = vld [vmem:[%s17872_s12 + $0x3a88] sm:$0xff]  ;;  %v17305_v12 = vcombine.low %v2163_v21, %v2179_v54 }
 0xc80   : > { %14662 = vmatprep.subr.bf16.mxu0 %v17210_v37  ;;  %14703 = vmatprep.subr.bf16.mxu1 %v17212_v13  ;;  %v17307_v37 = vcombine.low %v2164_v9, %v2180_v25  ;;  %v17338_v13 = vcombine.high %v2195_v55, %v2211_v1  ;;  %v17340_v32 = vcombine.high %v2196_v7, %v2212_v4  ;;  %v2276_v21 = vld [vmem:[%s17872_s12 + $0x3c88] sm:$0xff] }
 0xc87   : > { %14663 = vmatpush1.bf16.xpose.msra.mxu0 %v17209_v19  ;;  %14704 = vmatpush1.bf16.xpose.msra.mxu1 %v17211_v6  ;;  %v2244_v19 = vld [vmem:[%s17872_s12 + $0x3b88] sm:$0xff]  ;;  %v17337_v6 = vcombine.low %v2195_v55, %v2211_v1  ;;  %v17402_v1 = vcombine.high %v2259_v63, %v2275_v59 }
 0xc88   : > { %14664 = vmatprep.subr.bf16.mxu0 %v17242_v35  ;;  %14705 = vmatprep.subr.bf16.mxu1 %v17244_v23  ;;  %v17339_v35 = vcombine.low %v2196_v7, %v2212_v4  ;;  %v17370_v23 = vcombine.high %v2227_v22, %v2243_v34  ;;  %v17372_v43 = vcombine.high %v2228_v0, %v2244_v19 }
 0xc89   : > { %v17371_v55 = vcombine.low %v2228_v0, %v2244_v19  ;;  %v2323_v19 = vld [vmem:[%s17872_s12 + $0x3e00] sm:$0xff] }
 0xc8f   : > { %14665 = vmatpush1.bf16.xpose.msra.mxu0 %v17241_v31  ;;  %14706 = vmatpush1.bf16.xpose.msra.mxu1 %v17243_v45 }
 0xc90   : > { %14666 = vmatprep.subr.bf16.mxu0 %v17274_v15  ;;  %14707 = vmatprep.subr.bf16.mxu1 %v17276_v51  ;;  %v2260_v51 = vld [vmem:[%s17872_s12 + $0x3c08] sm:$0xff] }
 0xc91   : > { %v17404_v4 = vcombine.high %v2260_v51, %v2276_v21 }
 0xc97   : > { %14667 = vmatpush1.bf16.xpose.msra.mxu0 %v17273_v58  ;;  %14708 = vmatpush1.bf16.xpose.msra.mxu1 %v17275_v17  ;;  %v17369_v58 = vcombine.low %v2227_v22, %v2243_v34  ;;  %v17403_v22 = vcombine.low %v2260_v51, %v2276_v21  ;;  %v2372_v51 = vld [vmem:[%s17872_s12 + $0x3f88] sm:$0xff] }
 0xc98   : > { %14668 = vmatprep.subr.bf16.mxu0 %v17306_v8  ;;  %14709 = vmatprep.subr.bf16.mxu1 %v17308_v10 }
 0xc9f   : > { %14669 = vmatpush1.bf16.xpose.msra.mxu0 %v17305_v12  ;;  %14710 = vmatpush1.bf16.xpose.msra.mxu1 %v17307_v37  ;;  %v2307_v12 = vld [vmem:[%s17872_s12 + $0x3d80] sm:$0xff]  ;;  %v2292_v37 = vld [vmem:[%s17872_s12 + $0x3d08] sm:$0xff] }
 0xca0   : > { %14670 = vmatprep.subr.bf16.mxu0 %v17338_v13  ;;  %14711 = vmatprep.subr.bf16.mxu1 %v17340_v32  ;;  %v2308_v13 = vld [vmem:[%s17872_s12 + $0x3d88] sm:$0xff]  ;;  %v17401_v32 = vcombine.low %v2259_v63, %v2275_v59  ;;  %v2355_v63 = vld [vmem:[%s17872_s12 + $0x3f00] sm:$0xff] }
 0xca1   : > { %v17436_v0 = vcombine.high %v2292_v37, %v2308_v13  ;;  %v2371_v59 = vld [vmem:[%s17872_s12 + $0x3f80] sm:$0xff] }
 0xca7   : > { %14671 = vmatpush1.bf16.xpose.msra.mxu0 %v17337_v6  ;;  %14712 = vmatpush1.bf16.xpose.msra.mxu1 %v17339_v35  ;;  %v2339_v6 = vld [vmem:[%s17872_s12 + $0x3e80] sm:$0xff]  ;;  %v2324_v35 = vld [vmem:[%s17872_s12 + $0x3e08] sm:$0xff] }
 0xca8   : > { %14672 = vmatprep.subr.bf16.mxu0 %v17370_v23  ;;  %14713 = vmatprep.subr.bf16.mxu1 %v17372_v43  ;;  %v2340_v23 = vld [vmem:[%s17872_s12 + $0x3e88] sm:$0xff]  ;;  %v17465_v21 = vcombine.low %v2323_v19, %v2339_v6 }
 0xca9   : > { %v14520_v46 = vpop.f32.mrb[88].mxu0  ;;  %v14561_v45 = vpop.f32.mrb[88].mxu1 }
 0xcaa   : > { %v14521_v31 = vadd.f32 %v14520_v46, %v19807_v18  ;;  %v14522_v15 = vpop.f32.mrb[89].mxu0  ;;  %v14563_v9 = vpop.f32.mrb[89].mxu1  ;;  %v17435_v46 = vcombine.low %v2292_v37, %v2308_v13  ;;  %v1925_v37 = vld [vmem:[%s17872_s12 + $0x3190] sm:$0xff]  ;;  %v1910_v13 = vld [vmem:[%s17872_s12 + $0x3118] sm:$0xff] }
 0xcab   : > { %v14523_v54 = vadd.f32 %v14522_v15, %v19809_v57  ;;  %v14524_v25 = vpop.f32.mrb[90].mxu0  ;;  %v14565_v8 = vpop.f32.mrb[90].mxu1  ;;  %v2291_v57 = vld [vmem:[%s17872_s12 + $0x3d00] sm:$0xff]  ;;  %v2356_v15 = vld [vmem:[%s17872_s12 + $0x3f08] sm:$0xff] }
 0xcac   : > { %v19881_v17 = vadd.f32 %v14561_v45, %v14521_v31  ;;  %v14525_v10 = vpop.f32.mrb[91].mxu0  ;;  %v14566_v7 = vpop.f32.mrb[91].mxu1  ;;  %v17434_v34 = vcombine.high %v2291_v57, %v2307_v12  ;;  %v17433_v43 = vcombine.low %v2291_v57, %v2307_v12  ;;  %v17466_v31 = vcombine.high %v2323_v19, %v2339_v6  ;;  %v1893_v8 = vld [vmem:[%s17872_s12 + $0x3090] sm:$0xff] }
 0xcad   : > { %v19883_v18 = vadd.f32 %v14563_v9, %v14523_v54  ;;  %v17468_v45 = vcombine.high %v2324_v35, %v2340_v23  ;;  %v17467_v54 = vcombine.low %v2324_v35, %v2340_v23  ;;  %v17498_v9 = vcombine.high %v2355_v63, %v2371_v59  ;;  %v1878_v10 = vld [vmem:[%s17872_s12 + $0x3018] sm:$0xff]  ;;  %v1909_v12 = vld [vmem:[%s17872_s12 + $0x3110] sm:$0xff] }
 0xcae   : > { %v17500_v25 = vcombine.high %v2356_v15, %v2372_v51  ;;  %v17499_v7 = vcombine.low %v2356_v15, %v2372_v51  ;;  %v1941_v6 = vld [vmem:[%s17872_s12 + $0x3210] sm:$0xff]  ;;  %v1942_v23 = vld [vmem:[%s17872_s12 + $0x3218] sm:$0xff] }
 0xcaf   : > { %14673 = vmatpush1.bf16.xpose.msra.mxu0 %v17369_v58  ;;  %14714 = vmatpush1.bf16.xpose.msra.mxu1 %v17371_v55  ;;  %v1877_v58 = vld [vmem:[%s17872_s12 + $0x3010] sm:$0xff]  ;;  %v1894_v55 = vld [vmem:[%s17872_s12 + $0x3098] sm:$0xff] }
 0xcb0   : > { %14674 = vmatprep.subr.bf16.mxu0 %v17402_v1  ;;  %14715 = vmatprep.subr.bf16.mxu1 %v17404_v4  ;;  %v17497_v1 = vcombine.low %v2355_v63, %v2371_v59  ;;  %v17022_v4 = vcombine.high %v1877_v58, %v1893_v8  ;;  %v17024_v57 = vcombine.high %v1878_v10, %v1894_v55  ;;  %v1957_v35 = vld [vmem:[%s17872_s12 + $0x3290] sm:$0xff]  ;;  %v1974_v59 = vld [vmem:[%s17872_s12 + $0x3318] sm:$0xff] }
 0xcb1   : > { %v1989_v63 = vld [vmem:[%s17872_s12 + $0x3390] sm:$0xff]  ;;  %v17085_v15 = vcombine.low %v1941_v6, %v1957_v35 }
 0xcb7   : > { %14675 = vmatpush1.bf16.xpose.msra.mxu0 %v17401_v32  ;;  %14716 = vmatpush1.bf16.xpose.msra.mxu1 %v17403_v22  ;;  %v1926_v32 = vld [vmem:[%s17872_s12 + $0x3198] sm:$0xff]  ;;  %v17021_v22 = vcombine.low %v1877_v58, %v1893_v8 }
 0xcb8   : > { %14676 = vmatprep.subr.bf16.mxu0 %v17434_v34  ;;  %14717 = vmatprep.subr.bf16.mxu1 %v17436_v0  ;;  %v17023_v34 = vcombine.low %v1878_v10, %v1894_v55  ;;  %v17054_v0 = vcombine.high %v1909_v12, %v1925_v37  ;;  %v17056_v19 = vcombine.high %v1910_v13, %v1926_v32  ;;  %v2022_v58 = vld [vmem:[%s17872_s12 + $0x3498] sm:$0xff] }
 0xcbf   : > { %14677 = vmatpush1.bf16.xpose.msra.mxu0 %v17433_v43  ;;  %14718 = vmatpush1.bf16.xpose.msra.mxu1 %v17435_v46  ;;  %v1958_v43 = vld [vmem:[%s17872_s12 + $0x3298] sm:$0xff]  ;;  %v17053_v46 = vcombine.low %v1909_v12, %v1925_v37 }
 0xcc0   : > { %14678 = vmatprep.subr.bf16.mxu0 %v17466_v31  ;;  %14719 = vmatprep.subr.bf16.mxu1 %v17468_v45  ;;  %v17086_v31 = vcombine.high %v1941_v6, %v1957_v35  ;;  %v1973_v45 = vld [vmem:[%s17872_s12 + $0x3310] sm:$0xff]  ;;  %v17087_v51 = vcombine.low %v1942_v23, %v1958_v43  ;;  %v2054_v12 = vld [vmem:[%s17872_s12 + $0x3598] sm:$0xff] }
 0xcc1   : > { %v17117_v8 = vcombine.low %v1973_v45, %v1989_v63  ;;  %v2086_v6 = vld [vmem:[%s17872_s12 + $0x3698] sm:$0xff] }
 0xcc7   : > { %14679 = vmatpush1.bf16.xpose.msra.mxu0 %v17465_v21  ;;  %14720 = vmatpush1.bf16.xpose.msra.mxu1 %v17467_v54  ;;  %v17118_v21 = vcombine.high %v1973_v45, %v1989_v63  ;;  %v2005_v54 = vld [vmem:[%s17872_s12 + $0x3410] sm:$0xff]  ;;  %v2118_v45 = vld [vmem:[%s17872_s12 + $0x3798] sm:$0xff] }
 0xcc8   : > { %14680 = vmatprep.subr.bf16.mxu0 %v17498_v9  ;;  %14721 = vmatprep.subr.bf16.mxu1 %v17500_v25  ;;  %v2021_v9 = vld [vmem:[%s17872_s12 + $0x3490] sm:$0xff]  ;;  %v2006_v25 = vld [vmem:[%s17872_s12 + $0x3418] sm:$0xff] }
 0xcc9   : > { %v17150_v55 = vcombine.high %v2005_v54, %v2021_v9  ;;  %v17149_v37 = vcombine.low %v2005_v54, %v2021_v9  ;;  %v2150_v54 = vld [vmem:[%s17872_s12 + $0x3898] sm:$0xff] }
 0xccf   : > { %14681 = vmatpush1.bf16.xpose.msra.mxu0 %v17497_v1  ;;  %14722 = vmatpush1.bf16.xpose.msra.mxu1 %v17499_v7  ;;  %v17152_v1 = vcombine.high %v2006_v25, %v2022_v58  ;;  %v2037_v7 = vld [vmem:[%s17872_s12 + $0x3510] sm:$0xff] }
 0xcd0   : > { %14732 = vmatprep.subr.bf16.mxu0 %v17022_v4  ;;  %14773 = vmatprep.subr.bf16.mxu1 %v17024_v57  ;;  %v2053_v4 = vld [vmem:[%s17872_s12 + $0x3590] sm:$0xff]  ;;  %v2038_v57 = vld [vmem:[%s17872_s12 + $0x3518] sm:$0xff] }
 0xcd1   : > { %v17181_v35 = vcombine.low %v2037_v7, %v2053_v4 }
 0xcd6   : > { %14683 = vmatmul.mubr.bf16.vlgmr.msra.gmra.mrb[96].mxu0 %v17972_v16  ;;  %14724 = vmatmul.mubr.bf16.vlgmr.msra.gmra.mrb[96].mxu1 %v17979_v20  ;;  %v17055_v16 = vcombine.low %v1910_v13, %v1926_v32  ;;  %v17088_v20 = vcombine.high %v1942_v23, %v1958_v43  ;;  %v17151_v13 = vcombine.low %v2006_v25, %v2022_v58 }
 0xcd7   : > { %14733 = vmatpush1.bf16.xpose.msra.mxu0 %v17021_v22  ;;  %14774 = vmatpush1.bf16.xpose.msra.mxu1 %v17023_v34  ;;  %v17182_v32 = vcombine.high %v2037_v7, %v2053_v4  ;;  %v17184_v22 = vcombine.high %v2038_v57, %v2054_v12  ;;  %v2069_v34 = vld [vmem:[%s17872_s12 + $0x3610] sm:$0xff]  ;;  %v17183_v23 = vcombine.low %v2038_v57, %v2054_v12  ;;  %v2182_v7 = vld [vmem:[%s17872_s12 + $0x3998] sm:$0xff] }
 0xcd8   : > { %14734 = vmatprep.subr.bf16.mxu0 %v17054_v0  ;;  %14775 = vmatprep.subr.bf16.mxu1 %v17056_v19  ;;  %v2085_v0 = vld [vmem:[%s17872_s12 + $0x3690] sm:$0xff]  ;;  %v2070_v19 = vld [vmem:[%s17872_s12 + $0x3618] sm:$0xff] }
 0xcd9   : > { %14764 = vmatprep.mubr.bf16.mxu0 %v17984_v26  ;;  %14805 = vmatprep.mubr.bf16.mxu1 %v17987_v27  ;;  %v1990_v26 = vld [vmem:[%s17872_s12 + $0x3398] sm:$0xff]  ;;  %v17214_v43 = vcombine.high %v2069_v34, %v2085_v0  ;;  %v17213_v63 = vcombine.low %v2069_v34, %v2085_v0 }
 0xcda   : > { %v17120_v27 = vcombine.high %v1974_v59, %v1990_v26  ;;  %v17119_v10 = vcombine.low %v1974_v59, %v1990_v26  ;;  %v17215_v59 = vcombine.low %v2070_v19, %v2086_v6  ;;  %v2214_v34 = vld [vmem:[%s17872_s12 + $0x3a98] sm:$0xff] }
 0xcdf   : > { %14735 = vmatpush1.bf16.xpose.msra.mxu0 %v17053_v46  ;;  %14776 = vmatpush1.bf16.xpose.msra.mxu1 %v17055_v16  ;;  %v17216_v46 = vcombine.high %v2070_v19, %v2086_v6  ;;  %v2101_v16 = vld [vmem:[%s17872_s12 + $0x3710] sm:$0xff] }
 0xce0   : > { %14736 = vmatprep.subr.bf16.mxu0 %v17086_v31  ;;  %14777 = vmatprep.subr.bf16.mxu1 %v17088_v20  ;;  %v2117_v31 = vld [vmem:[%s17872_s12 + $0x3790] sm:$0xff]  ;;  %v2102_v20 = vld [vmem:[%s17872_s12 + $0x3718] sm:$0xff] }
 0xce1   : > { %v17246_v26 = vcombine.high %v2101_v16, %v2117_v31  ;;  %v17245_v9 = vcombine.low %v2101_v16, %v2117_v31  ;;  %v17247_v25 = vcombine.low %v2102_v20, %v2118_v45  ;;  %v2246_v16 = vld [vmem:[%s17872_s12 + $0x3b98] sm:$0xff] }
 0xce7   : > { %14737 = vmatpush1.bf16.xpose.msra.mxu0 %v17085_v15  ;;  %14778 = vmatpush1.bf16.xpose.msra.mxu1 %v17087_v51  ;;  %v17248_v15 = vcombine.high %v2102_v20, %v2118_v45  ;;  %v2133_v51 = vld [vmem:[%s17872_s12 + $0x3810] sm:$0xff] }
 0xce8   : > { %14738 = vmatprep.subr.bf16.mxu0 %v17118_v21  ;;  %14779 = vmatprep.subr.bf16.mxu1 %v17120_v27  ;;  %v2149_v21 = vld [vmem:[%s17872_s12 + $0x3890] sm:$0xff]  ;;  %v2134_v27 = vld [vmem:[%s17872_s12 + $0x3818] sm:$0xff] }
 0xce9   : > { %v17278_v58 = vcombine.high %v2133_v51, %v2149_v21  ;;  %v17277_v4 = vcombine.low %v2133_v51, %v2149_v21  ;;  %v17279_v57 = vcombine.low %v2134_v27, %v2150_v54  ;;  %v2261_v51 = vld [vmem:[%s17872_s12 + $0x3c10] sm:$0xff] }
 0xcea   : > { %v2277_v21 = vld [vmem:[%s17872_s12 + $0x3c90] sm:$0xff] }
 0xcef   : > { %14739 = vmatpush1.bf16.xpose.msra.mxu0 %v17117_v8  ;;  %14780 = vmatpush1.bf16.xpose.msra.mxu1 %v17119_v10  ;;  %v17280_v8 = vcombine.high %v2134_v27, %v2150_v54  ;;  %v2165_v10 = vld [vmem:[%s17872_s12 + $0x3910] sm:$0xff] }
 0xcf0   : > { %14740 = vmatprep.subr.bf16.mxu0 %v17150_v55  ;;  %14781 = vmatprep.subr.bf16.mxu1 %v17152_v1  ;;  %v2181_v55 = vld [vmem:[%s17872_s12 + $0x3990] sm:$0xff]  ;;  %v2166_v1 = vld [vmem:[%s17872_s12 + $0x3918] sm:$0xff] }
 0xcf1   : > { %v17310_v12 = vcombine.high %v2165_v10, %v2181_v55  ;;  %v17309_v0 = vcombine.low %v2165_v10, %v2181_v55  ;;  %v17311_v19 = vcombine.low %v2166_v1, %v2182_v7 }
 0xcf7   : > { %14741 = vmatpush1.bf16.xpose.msra.mxu0 %v17149_v37  ;;  %14782 = vmatpush1.bf16.xpose.msra.mxu1 %v17151_v13  ;;  %v17312_v37 = vcombine.high %v2166_v1, %v2182_v7  ;;  %v2197_v13 = vld [vmem:[%s17872_s12 + $0x3a10] sm:$0xff] }
 0xcf8   : > { %14742 = vmatprep.subr.bf16.mxu0 %v17182_v32  ;;  %14783 = vmatprep.subr.bf16.mxu1 %v17184_v22  ;;  %v2213_v32 = vld [vmem:[%s17872_s12 + $0x3a90] sm:$0xff]  ;;  %v2198_v22 = vld [vmem:[%s17872_s12 + $0x3a18] sm:$0xff] }
 0xcf9   : > { %v17342_v6 = vcombine.high %v2197_v13, %v2213_v32  ;;  %v17341_v31 = vcombine.low %v2197_v13, %v2213_v32  ;;  %v17343_v20 = vcombine.low %v2198_v22, %v2214_v34  ;;  %v17406_v13 = vcombine.high %v2261_v51, %v2277_v21 }
 0xcff   : > { %14743 = vmatpush1.bf16.xpose.msra.mxu0 %v17181_v35  ;;  %14784 = vmatpush1.bf16.xpose.msra.mxu1 %v17183_v23  ;;  %v17344_v35 = vcombine.high %v2198_v22, %v2214_v34  ;;  %v2229_v23 = vld [vmem:[%s17872_s12 + $0x3b10] sm:$0xff] }
 0xd00   : > { %14744 = vmatprep.subr.bf16.mxu0 %v17214_v43  ;;  %14785 = vmatprep.subr.bf16.mxu1 %v17216_v46  ;;  %v2245_v43 = vld [vmem:[%s17872_s12 + $0x3b90] sm:$0xff]  ;;  %v2230_v46 = vld [vmem:[%s17872_s12 + $0x3b18] sm:$0xff] }
 0xd01   : > { %v17374_v45 = vcombine.high %v2229_v23, %v2245_v43 }
 0xd07   : > { %14745 = vmatpush1.bf16.xpose.msra.mxu0 %v17213_v63  ;;  %14786 = vmatpush1.bf16.xpose.msra.mxu1 %v17215_v59  ;;  %v17376_v63 = vcombine.high %v2230_v46, %v2246_v16  ;;  %v2396_v59 = vld [vmem:[%s18756_s5 + $0x20] sm:$0xff] }
 0xd08   : > { %14746 = vmatprep.subr.bf16.mxu0 %v17246_v26  ;;  %14787 = vmatprep.subr.bf16.mxu1 %v17248_v15  ;;  %v2397_v26 = vld [vmem:[%s18756_s5 + $0x28] sm:$0xff] }
 0xd09   : > { %v15311_v1 = vmul.f32 2.0, %v2397_v26 }
 0xd0f   : > { %14747 = vmatpush1.bf16.xpose.msra.mxu0 %v17245_v9  ;;  %14788 = vmatpush1.bf16.xpose.msra.mxu1 %v17247_v25  ;;  %v15310_v9 = vmul.f32 2.0, %v2396_v59  ;;  %v2342_v59 = vld [vmem:[%s17872_s12 + $0x3e98] sm:$0xff] }
 0xd10   : > { %14748 = vmatprep.subr.bf16.mxu0 %v17278_v58  ;;  %14789 = vmatprep.subr.bf16.mxu1 %v17280_v8  ;;  %v2262_v58 = vld [vmem:[%s17872_s12 + $0x3c18] sm:$0xff] }
 0xd11   : > { %v2278_v8 = vld [vmem:[%s17872_s12 + $0x3c98] sm:$0xff] }
 0xd12   : > { %v17408_v34 = vcombine.high %v2262_v58, %v2278_v8 }
 0xd17   : > { %14749 = vmatpush1.bf16.xpose.msra.mxu0 %v17277_v4  ;;  %14790 = vmatpush1.bf16.xpose.msra.mxu1 %v17279_v57  ;;  %v17373_v4 = vcombine.low %v2229_v23, %v2245_v43  ;;  %v2310_v23 = vld [vmem:[%s17872_s12 + $0x3d98] sm:$0xff]  ;;  %v17405_v43 = vcombine.low %v2261_v51, %v2277_v21  ;;  %v2357_v51 = vld [vmem:[%s17872_s12 + $0x3f10] sm:$0xff] }
 0xd18   : > { %14750 = vmatprep.subr.bf16.mxu0 %v17310_v12  ;;  %14791 = vmatprep.subr.bf16.mxu1 %v17312_v37  ;;  %v2373_v21 = vld [vmem:[%s17872_s12 + $0x3f90] sm:$0xff] }
 0xd1f   : > { %14751 = vmatpush1.bf16.xpose.msra.mxu0 %v17309_v0  ;;  %14792 = vmatpush1.bf16.xpose.msra.mxu1 %v17311_v19  ;;  %v2293_v19 = vld [vmem:[%s17872_s12 + $0x3d10] sm:$0xff] }
 0xd20   : > { %14752 = vmatprep.subr.bf16.mxu0 %v17342_v6  ;;  %14793 = vmatprep.subr.bf16.mxu1 %v17344_v35  ;;  %v2309_v6 = vld [vmem:[%s17872_s12 + $0x3d90] sm:$0xff]  ;;  %v2294_v35 = vld [vmem:[%s17872_s12 + $0x3d18] sm:$0xff] }
 0xd21   : > { %v17437_v26 = vcombine.low %v2293_v19, %v2309_v6 }
 0xd27   : > { %14753 = vmatpush1.bf16.xpose.msra.mxu0 %v17341_v31  ;;  %14794 = vmatpush1.bf16.xpose.msra.mxu1 %v17343_v20  ;;  %v17440_v31 = vcombine.high %v2294_v35, %v2310_v23  ;;  %v2325_v20 = vld [vmem:[%s17872_s12 + $0x3e10] sm:$0xff] }
 0xd28   : > { %14754 = vmatprep.subr.bf16.mxu0 %v17374_v45  ;;  %14795 = vmatprep.subr.bf16.mxu1 %v17376_v63  ;;  %v2341_v45 = vld [vmem:[%s17872_s12 + $0x3e90] sm:$0xff]  ;;  %v2326_v63 = vld [vmem:[%s17872_s12 + $0x3e18] sm:$0xff] }
 0xd29   : > { %v14602_v15 = vpop.f32.mrb[92].mxu0  ;;  %v14643_v54 = vpop.f32.mrb[92].mxu1 }
 0xd2a   : > { %v14603_v27 = vadd.f32 %v14602_v15, %v19881_v17  ;;  %v14604_v25 = vpop.f32.mrb[93].mxu0  ;;  %v14645_v55 = vpop.f32.mrb[93].mxu1  ;;  %v17375_v17 = vcombine.low %v2230_v46, %v2246_v16  ;;  %v17407_v46 = vcombine.low %v2262_v58, %v2278_v8  ;;  %v17438_v16 = vcombine.high %v2293_v19, %v2309_v6 }
 0xd2b   : > { %v14605_v10 = vadd.f32 %v14604_v25, %v19883_v18  ;;  %v14606_v7 = vpop.f32.mrb[94].mxu0  ;;  %v14647_v12 = vpop.f32.mrb[94].mxu1  ;;  %v17439_v15 = vcombine.low %v2294_v35, %v2310_v23  ;;  %v2374_v25 = vld [vmem:[%s17872_s12 + $0x3f98] sm:$0xff]  ;;  %v17469_v58 = vcombine.low %v2325_v20, %v2341_v45  ;;  %v17471_v8 = vcombine.low %v2326_v63, %v2342_v59  ;;  %v1943_v23 = vld [vmem:[%s17872_s12 + $0x3220] sm:$0xff] }
 0xd2c   : > { %v14644_v57 = vadd.f32 %v14643_v54, %v14603_v27  ;;  %v14607_v37 = vpop.f32.mrb[95].mxu0  ;;  %v14648_v22 = vpop.f32.mrb[95].mxu1  ;;  %v17470_v27 = vcombine.high %v2325_v20, %v2341_v45  ;;  %v17472_v54 = vcombine.high %v2326_v63, %v2342_v59  ;;  %v1895_v7 = vld [vmem:[%s17872_s12 + $0x30a0] sm:$0xff]  ;;  %v17501_v12 = vcombine.low %v2357_v51, %v2373_v21  ;;  %v1976_v59 = vld [vmem:[%s17872_s12 + $0x3328] sm:$0xff] }
 0xd2d   : > { %v14646_v32 = vadd.f32 %v14645_v55, %v14605_v10  ;;  %v17502_v10 = vcombine.high %v2357_v51, %v2373_v21  ;;  %v1927_v22 = vld [vmem:[%s17872_s12 + $0x31a0] sm:$0xff]  ;;  %v2008_v21 = vld [vmem:[%s17872_s12 + $0x3428] sm:$0xff] }
 0xd2e   : > { %v15318_v0 = vadd.f32 %v15310_v9, %v14644_v57  ;;  %v2358_v9 = vld [vmem:[%s17872_s12 + $0x3f18] sm:$0xff]  ;;  %v1896_v57 = vld [vmem:[%s17872_s12 + $0x30a8] sm:$0xff]  ;;  %v1975_v45 = vld [vmem:[%s17872_s12 + $0x3320] sm:$0xff] }
 0xd2f   : > { %v15319_v18 = vadd.f32 %v15311_v1, %v14646_v32  ;;  %14755 = vmatpush1.bf16.xpose.msra.mxu0 %v17373_v4  ;;  %14796 = vmatpush1.bf16.xpose.msra.mxu1 %v17375_v17  ;;  %v17504_v55 = vcombine.high %v2358_v9, %v2374_v25  ;;  %v1879_v1 = vld [vmem:[%s17872_s12 + $0x3020] sm:$0xff]  ;;  %v1880_v4 = vld [vmem:[%s17872_s12 + $0x3028] sm:$0xff]  ;;  %v17503_v37 = vcombine.low %v2358_v9, %v2374_v25 }
 0xd30   : > { %15326 = vst [vmem:[%s18769_s4 + $0x20] sm:$0xff] %v15318_v0  ;;  %14756 = vmatprep.subr.bf16.mxu0 %v17406_v13  ;;  %14797 = vmatprep.subr.bf16.mxu1 %v17408_v34  ;;  %v17026_v17 = vcombine.high %v1879_v1, %v1895_v7  ;;  %v17028_v13 = vcombine.high %v1880_v4, %v1896_v57  ;;  %v1911_v32 = vld [vmem:[%s17872_s12 + $0x3120] sm:$0xff]  ;;  %v1912_v34 = vld [vmem:[%s17872_s12 + $0x3128] sm:$0xff] }
 0xd31   : > { %15327 = vst [vmem:[%s18769_s4 + $0x28] sm:$0xff] %v15319_v18  ;;  %v1928_v0 = vld [vmem:[%s17872_s12 + $0x31a8] sm:$0xff]  ;;  %v17025_v18 = vcombine.low %v1879_v1, %v1895_v7  ;;  %v17027_v19 = vcombine.low %v1880_v4, %v1896_v57  ;;  %v17058_v6 = vcombine.high %v1911_v32, %v1927_v22  ;;  %v1991_v63 = vld [vmem:[%s17872_s12 + $0x33a0] sm:$0xff] }
 0xd32   : > { %v17060_v35 = vcombine.high %v1912_v34, %v1928_v0  ;;  %v2023_v51 = vld [vmem:[%s17872_s12 + $0x34a0] sm:$0xff]  ;;  %v2024_v9 = vld [vmem:[%s17872_s12 + $0x34a8] sm:$0xff]  ;;  %v17121_v25 = vcombine.low %v1975_v45, %v1991_v63 }
 0xd33   : > { %v2055_v1 = vld [vmem:[%s17872_s12 + $0x35a0] sm:$0xff]  ;;  %v2040_v7 = vld [vmem:[%s17872_s12 + $0x3528] sm:$0xff] }
 0xd34   : > { %v2056_v4 = vld [vmem:[%s17872_s12 + $0x35a8] sm:$0xff] }
 0xd37   : > { %14757 = vmatpush1.bf16.xpose.msra.mxu0 %v17405_v43  ;;  %14798 = vmatpush1.bf16.xpose.msra.mxu1 %v17407_v46  ;;  %v1959_v43 = vld [vmem:[%s17872_s12 + $0x32a0] sm:$0xff]  ;;  %v1944_v46 = vld [vmem:[%s17872_s12 + $0x3228] sm:$0xff] }
 0xd38   : > { %14758 = vmatprep.subr.bf16.mxu0 %v17438_v16  ;;  %14799 = vmatprep.subr.bf16.mxu1 %v17440_v31  ;;  %v1960_v16 = vld [vmem:[%s17872_s12 + $0x32a8] sm:$0xff]  ;;  %v17057_v31 = vcombine.low %v1911_v32, %v1927_v22  ;;  %v17090_v20 = vcombine.high %v1943_v23, %v1959_v43  ;;  %v2087_v32 = vld [vmem:[%s17872_s12 + $0x36a0] sm:$0xff] }
 0xd39   : > { %v2072_v22 = vld [vmem:[%s17872_s12 + $0x3628] sm:$0xff] }
 0xd3f   : > { %14759 = vmatpush1.bf16.xpose.msra.mxu0 %v17437_v26  ;;  %14800 = vmatpush1.bf16.xpose.msra.mxu1 %v17439_v15  ;;  %v17089_v26 = vcombine.low %v1943_v23, %v1959_v43  ;;  %v17091_v15 = vcombine.low %v1944_v46, %v1960_v16  ;;  %v2119_v23 = vld [vmem:[%s17872_s12 + $0x37a0] sm:$0xff]  ;;  %v2104_v43 = vld [vmem:[%s17872_s12 + $0x3728] sm:$0xff] }
 0xd40   : > { %14760 = vmatprep.subr.bf16.mxu0 %v17470_v27  ;;  %14801 = vmatprep.subr.bf16.mxu1 %v17472_v54  ;;  %v17122_v27 = vcombine.high %v1975_v45, %v1991_v63  ;;  %v2007_v54 = vld [vmem:[%s17872_s12 + $0x3420] sm:$0xff]  ;;  %v2136_v63 = vld [vmem:[%s17872_s12 + $0x3828] sm:$0xff] }
 0xd41   : > { %v17153_v57 = vcombine.low %v2007_v54, %v2023_v51  ;;  %v2151_v45 = vld [vmem:[%s17872_s12 + $0x38a0] sm:$0xff] }
 0xd47   : > { %14761 = vmatpush1.bf16.xpose.msra.mxu0 %v17469_v58  ;;  %14802 = vmatpush1.bf16.xpose.msra.mxu1 %v17471_v8  ;;  %v17154_v8 = vcombine.high %v2007_v54, %v2023_v51  ;;  %v2183_v54 = vld [vmem:[%s17872_s12 + $0x39a0] sm:$0xff]  ;;  %v2168_v51 = vld [vmem:[%s17872_s12 + $0x3928] sm:$0xff] }
 0xd48   : > { %14762 = vmatprep.subr.bf16.mxu0 %v17502_v10  ;;  %14803 = vmatprep.subr.bf16.mxu1 %v17504_v55  ;;  %v17156_v10 = vcombine.high %v2008_v21, %v2024_v9  ;;  %v2039_v55 = vld [vmem:[%s17872_s12 + $0x3520] sm:$0xff] }
 0xd4f   : > { %14763 = vmatpush1.bf16.xpose.msra.mxu0 %v17501_v12  ;;  %14804 = vmatpush1.bf16.xpose.msra.mxu1 %v17503_v37  ;;  %v17155_v12 = vcombine.low %v2008_v21, %v2024_v9  ;;  %v17186_v37 = vcombine.high %v2039_v55, %v2055_v1  ;;  %v2184_v21 = vld [vmem:[%s17872_s12 + $0x39a8] sm:$0xff] }
 0xd50   : > { %14814 = vmatprep.subr.bf16.mxu0 %v17026_v17  ;;  %14855 = vmatprep.subr.bf16.mxu1 %v17028_v13  ;;  %v17188_v17 = vcombine.high %v2040_v7, %v2056_v4  ;;  %v2071_v13 = vld [vmem:[%s17872_s12 + $0x3620] sm:$0xff] }
 0xd56   : > { %14765 = vmatmul.mubr.bf16.vlgmr.msra.gmra.mrb[100].mxu0 %v18060_v38  ;;  %14806 = vmatmul.mubr.bf16.vlgmr.msra.gmra.mrb[100].mxu1 %v18067_v42  ;;  %v17059_v38 = vcombine.low %v1912_v34, %v1928_v0  ;;  %v17092_v42 = vcombine.high %v1944_v46, %v1960_v16  ;;  %v2088_v34 = vld [vmem:[%s17872_s12 + $0x36a8] sm:$0xff]  ;;  %v17185_v0 = vcombine.low %v2039_v55, %v2055_v1  ;;  %v2215_v55 = vld [vmem:[%s17872_s12 + $0x3aa0] sm:$0xff] }
 0xd57   : > { %14815 = vmatpush1.bf16.xpose.msra.mxu0 %v17025_v18  ;;  %14856 = vmatpush1.bf16.xpose.msra.mxu1 %v17027_v19  ;;  %v17187_v18 = vcombine.low %v2040_v7, %v2056_v4  ;;  %v17218_v19 = vcombine.high %v2071_v13, %v2087_v32  ;;  %v2120_v46 = vld [vmem:[%s17872_s12 + $0x37a8] sm:$0xff]  ;;  %v17217_v16 = vcombine.low %v2071_v13, %v2087_v32  ;;  %v2247_v13 = vld [vmem:[%s17872_s12 + $0x3ba0] sm:$0xff]  ;;  %v2428_v32 = vsub.s32 6, %v18116_v5 }
 0xd58   : > { %14816 = vmatprep.subr.bf16.mxu0 %v17058_v6  ;;  %14857 = vmatprep.subr.bf16.mxu1 %v17060_v35  ;;  %v17220_v6 = vcombine.high %v2072_v22, %v2088_v34  ;;  %v2103_v35 = vld [vmem:[%s17872_s12 + $0x3720] sm:$0xff]  ;;  %v2200_v1 = vld [vmem:[%s17872_s12 + $0x3a28] sm:$0xff] }
 0xd59   : > { %14846 = vmatprep.mubr.bf16.mxu0 %v18072_v48  ;;  %14887 = vmatprep.mubr.bf16.mxu1 %v18075_v49  ;;  %v1992_v48 = vld [vmem:[%s17872_s12 + $0x33a8] sm:$0xff] }
 0xd5a   : > { %v17124_v49 = vcombine.high %v1976_v59, %v1992_v48  ;;  %v17123_v58 = vcombine.low %v1976_v59, %v1992_v48  ;;  %v2152_v59 = vld [vmem:[%s17872_s12 + $0x38a8] sm:$0xff]  ;;  %v17249_v48 = vcombine.low %v2103_v35, %v2119_v23 }
 0xd5b   : > { %v2216_v7 = vld [vmem:[%s17872_s12 + $0x3aa8] sm:$0xff] }
 0xd5f   : > { %14817 = vmatpush1.bf16.xpose.msra.mxu0 %v17057_v31  ;;  %14858 = vmatpush1.bf16.xpose.msra.mxu1 %v17059_v38  ;;  %v17219_v31 = vcombine.low %v2072_v22, %v2088_v34  ;;  %v17250_v38 = vcombine.high %v2103_v35, %v2119_v23  ;;  %v2232_v22 = vld [vmem:[%s17872_s12 + $0x3b28] sm:$0xff] }
 0xd60   : > { %14818 = vmatprep.subr.bf16.mxu0 %v17090_v20  ;;  %14859 = vmatprep.subr.bf16.mxu1 %v17092_v42  ;;  %v17252_v20 = vcombine.high %v2104_v43, %v2120_v46  ;;  %v2135_v42 = vld [vmem:[%s17872_s12 + $0x3820] sm:$0xff]  ;;  %v2248_v34 = vld [vmem:[%s17872_s12 + $0x3ba8] sm:$0xff] }
 0xd61   : > { %v17281_v9 = vcombine.low %v2135_v42, %v2151_v45  ;;  %v17380_v35 = vcombine.high %v2232_v22, %v2248_v34  ;;  %v17598_v23 = vld [vmem:[%s17878_s7] sm:$0xff] }
 0xd67   : > { %14819 = vmatpush1.bf16.xpose.msra.mxu0 %v17089_v26  ;;  %14860 = vmatpush1.bf16.xpose.msra.mxu1 %v17091_v15  ;;  %v17251_v26 = vcombine.low %v2104_v43, %v2120_v46  ;;  %v17282_v15 = vcombine.high %v2135_v42, %v2151_v45  ;;  %v2429_v43 = vrot.slane %v17598_v23, %v2428_v32  ;;  %v2344_v32 = vld [vmem:[%s17872_s12 + $0x3ea8] sm:$0xff] }
 0xd68   : > { %14820 = vmatprep.subr.bf16.mxu0 %v17122_v27  ;;  %14861 = vmatprep.subr.bf16.mxu1 %v17124_v49  ;;  %v17284_v27 = vcombine.high %v2136_v63, %v2152_v59  ;;  %v2167_v49 = vld [vmem:[%s17872_s12 + $0x3920] sm:$0xff] }
 0xd69   : > { %v17313_v4 = vcombine.low %v2167_v49, %v2183_v54 }
 0xd6f   : > { %14821 = vmatpush1.bf16.xpose.msra.mxu0 %v17121_v25  ;;  %14862 = vmatpush1.bf16.xpose.msra.mxu1 %v17123_v58  ;;  %v17283_v25 = vcombine.low %v2136_v63, %v2152_v59  ;;  %v17314_v58 = vcombine.high %v2167_v49, %v2183_v54  ;;  %v2264_v63 = vld [vmem:[%s17872_s12 + $0x3c28] sm:$0xff] }
 0xd70   : > { %14822 = vmatprep.subr.bf16.mxu0 %v17154_v8  ;;  %14863 = vmatprep.subr.bf16.mxu1 %v17156_v10  ;;  %v17316_v8 = vcombine.high %v2168_v51, %v2184_v21  ;;  %v2199_v10 = vld [vmem:[%s17872_s12 + $0x3a20] sm:$0xff] }
 0xd77   : > { %14823 = vmatpush1.bf16.xpose.msra.mxu0 %v17153_v57  ;;  %14864 = vmatpush1.bf16.xpose.msra.mxu1 %v17155_v12  ;;  %v17315_v57 = vcombine.low %v2168_v51, %v2184_v21  ;;  %v17346_v12 = vcombine.high %v2199_v10, %v2215_v55  ;;  %v17379_v51 = vcombine.low %v2232_v22, %v2248_v34 }
 0xd78   : > { %14824 = vmatprep.subr.bf16.mxu0 %v17186_v37  ;;  %14865 = vmatprep.subr.bf16.mxu1 %v17188_v17  ;;  %v17348_v37 = vcombine.high %v2200_v1, %v2216_v7  ;;  %v2231_v17 = vld [vmem:[%s17872_s12 + $0x3b20] sm:$0xff] }
 0xd7f   : > { %14825 = vmatpush1.bf16.xpose.msra.mxu0 %v17185_v0  ;;  %14866 = vmatpush1.bf16.xpose.msra.mxu1 %v17187_v18  ;;  %v17345_v0 = vcombine.low %v2199_v10, %v2215_v55  ;;  %v2432_v18 = vsub.s32 7, %v18116_v5  ;;  %v2280_v5 = vld [vmem:[%s17872_s12 + $0x3ca8] sm:$0xff]  ;;  %v2311_v10 = vld [vmem:[%s17872_s12 + $0x3da0] sm:$0xff] }
 0xd80   : > { %14826 = vmatprep.subr.bf16.mxu0 %v17218_v19  ;;  %14867 = vmatprep.subr.bf16.mxu1 %v17220_v6  ;;  %v17347_v19 = vcombine.low %v2200_v1, %v2216_v7  ;;  %v17378_v6 = vcombine.high %v2231_v17, %v2247_v13  ;;  %v2296_v55 = vld [vmem:[%s17872_s12 + $0x3d28] sm:$0xff] }
 0xd81   : > { %v2433_v46 = vrot.slane %v17598_v23, %v2432_v18  ;;  %v2312_v1 = vld [vmem:[%s17872_s12 + $0x3da8] sm:$0xff] }
 0xd82   : > { %v17443_v34 = vcombine.low %v2296_v55, %v2312_v1  ;;  %v2376_v23 = vld [vmem:[%s17872_s12 + $0x3fa8] sm:$0xff] }
 0xd87   : > { %14827 = vmatpush1.bf16.xpose.msra.mxu0 %v17217_v16  ;;  %14868 = vmatpush1.bf16.xpose.msra.mxu1 %v17219_v31  ;;  %v2263_v31 = vld [vmem:[%s17872_s12 + $0x3c20] sm:$0xff] }
 0xd88   : > { %14828 = vmatprep.subr.bf16.mxu0 %v17250_v38  ;;  %14869 = vmatprep.subr.bf16.mxu1 %v17252_v20  ;;  %v2279_v38 = vld [vmem:[%s17872_s12 + $0x3ca0] sm:$0xff] }
 0xd89   : > { %v17410_v21 = vcombine.high %v2263_v31, %v2279_v38  ;;  %v17409_v7 = vcombine.low %v2263_v31, %v2279_v38  ;;  %v1881_v38 = vld [vmem:[%s17872_s12 + $0x3030] sm:$0xff] }
 0xd8f   : > { %14829 = vmatpush1.bf16.xpose.msra.mxu0 %v17249_v48  ;;  %14870 = vmatpush1.bf16.xpose.msra.mxu1 %v17251_v26 }
 0xd90   : > { %14830 = vmatprep.subr.bf16.mxu0 %v17282_v15  ;;  %14871 = vmatprep.subr.bf16.mxu1 %v17284_v27  ;;  %v17377_v15 = vcombine.low %v2231_v17, %v2247_v13  ;;  %v2343_v17 = vld [vmem:[%s17872_s12 + $0x3ea0] sm:$0xff]  ;;  %v2328_v13 = vld [vmem:[%s17872_s12 + $0x3e28] sm:$0xff] }
 0xd91   : > { %v17476_v18 = vcombine.high %v2328_v13, %v2344_v32 }
 0xd97   : > { %14831 = vmatpush1.bf16.xpose.msra.mxu0 %v17281_v9  ;;  %14872 = vmatpush1.bf16.xpose.msra.mxu1 %v17283_v25 }
 0xd98   : > { %14832 = vmatprep.subr.bf16.mxu0 %v17314_v58  ;;  %14873 = vmatprep.subr.bf16.mxu1 %v17316_v8  ;;  %v17412_v58 = vcombine.high %v2264_v63, %v2280_v5  ;;  %v2295_v8 = vld [vmem:[%s17872_s12 + $0x3d20] sm:$0xff] }
 0xd99   : > { %v17441_v22 = vcombine.low %v2295_v8, %v2311_v10 }
 0xd9f   : > { %14833 = vmatpush1.bf16.xpose.msra.mxu0 %v17313_v4  ;;  %14874 = vmatpush1.bf16.xpose.msra.mxu1 %v17315_v57  ;;  %v17411_v4 = vcombine.low %v2264_v63, %v2280_v5  ;;  %v17442_v57 = vcombine.high %v2295_v8, %v2311_v10  ;;  %v1945_v8 = vld [vmem:[%s17872_s12 + $0x3230] sm:$0xff] }
 0xda0   : > { %14834 = vmatprep.subr.bf16.mxu0 %v17346_v12  ;;  %14875 = vmatprep.subr.bf16.mxu1 %v17348_v37  ;;  %v17444_v12 = vcombine.high %v2296_v55, %v2312_v1  ;;  %v2327_v37 = vld [vmem:[%s17872_s12 + $0x3e20] sm:$0xff]  ;;  %v1961_v10 = vld [vmem:[%s17872_s12 + $0x32b0] sm:$0xff]  ;;  %v1946_v55 = vld [vmem:[%s17872_s12 + $0x3238] sm:$0xff] }
 0xda1   : > { %v1962_v1 = vld [vmem:[%s17872_s12 + $0x32b8] sm:$0xff] }
 0xda7   : > { %14835 = vmatpush1.bf16.xpose.msra.mxu0 %v17345_v0  ;;  %14876 = vmatpush1.bf16.xpose.msra.mxu1 %v17347_v19  ;;  %v17474_v0 = vcombine.high %v2327_v37, %v2343_v17  ;;  %v2359_v19 = vld [vmem:[%s17872_s12 + $0x3f20] sm:$0xff] }
 0xda8   : > { %14836 = vmatprep.subr.bf16.mxu0 %v17378_v6  ;;  %14877 = vmatprep.subr.bf16.mxu1 %v17380_v35  ;;  %v2375_v6 = vld [vmem:[%s17872_s12 + $0x3fa0] sm:$0xff]  ;;  %v2360_v35 = vld [vmem:[%s17872_s12 + $0x3f28] sm:$0xff] }
 0xda9   : > { %v14684_v16 = vpop.f32.mrb[96].mxu0  ;;  %v14725_v42 = vpop.f32.mrb[96].mxu1  ;;  %v17508_v31 = vcombine.high %v2360_v35, %v2376_v23  ;;  %v17505_v63 = vcombine.low %v2359_v19, %v2375_v6  ;;  %v17507_v5 = vcombine.low %v2360_v35, %v2376_v23 }
 0xdaa   : > { %v14685_v20 = vadd.f32 %v14684_v16, %v2429_v43  ;;  %v14686_v45 = vpop.f32.mrb[97].mxu0  ;;  %v14727_v48 = vpop.f32.mrb[97].mxu1  ;;  %v17473_v43 = vcombine.low %v2327_v37, %v2343_v17  ;;  %v17506_v16 = vcombine.high %v2359_v19, %v2375_v6  ;;  %v1978_v37 = vld [vmem:[%s17872_s12 + $0x3338] sm:$0xff]  ;;  %v17093_v17 = vcombine.low %v1945_v8, %v1961_v10 }
 0xdab   : > { %v14687_v59 = vadd.f32 %v14686_v45, %v2433_v46  ;;  %v14688_v26 = vpop.f32.mrb[98].mxu0  ;;  %v14729_v49 = vpop.f32.mrb[98].mxu1  ;;  %v17475_v46 = vcombine.low %v2328_v13, %v2344_v32  ;;  %v1898_v45 = vld [vmem:[%s17872_s12 + $0x30b8] sm:$0xff]  ;;  %v17095_v13 = vcombine.low %v1946_v55, %v1962_v1 }
 0xdac   : > { %v20030_v27 = vadd.f32 %v14725_v42, %v14685_v20  ;;  %v14689_v54 = vpop.f32.mrb[99].mxu0  ;;  %v14730_v25 = vpop.f32.mrb[99].mxu1  ;;  %v1897_v20 = vld [vmem:[%s17872_s12 + $0x30b0] sm:$0xff]  ;;  %v1882_v42 = vld [vmem:[%s17872_s12 + $0x3038] sm:$0xff] }
 0xdad   : > { %v20032_v9 = vadd.f32 %v14727_v48, %v14687_v59  ;;  %v17030_v59 = vcombine.high %v1881_v38, %v1897_v20  ;;  %v17032_v48 = vcombine.high %v1882_v42, %v1898_v45  ;;  %v1913_v26 = vld [vmem:[%s17872_s12 + $0x3130] sm:$0xff]  ;;  %v1914_v49 = vld [vmem:[%s17872_s12 + $0x3138] sm:$0xff] }
 0xdae   : > { %v1930_v54 = vld [vmem:[%s17872_s12 + $0x31b8] sm:$0xff] }
 0xdaf   : > { %14837 = vmatpush1.bf16.xpose.msra.mxu0 %v17377_v15  ;;  %14878 = vmatpush1.bf16.xpose.msra.mxu1 %v17379_v51  ;;  %v1929_v15 = vld [vmem:[%s17872_s12 + $0x31b0] sm:$0xff]  ;;  %v17029_v51 = vcombine.low %v1881_v38, %v1897_v20 }
 0xdb0   : > { %14838 = vmatprep.subr.bf16.mxu0 %v17410_v21  ;;  %14879 = vmatprep.subr.bf16.mxu1 %v17412_v58  ;;  %v17031_v21 = vcombine.low %v1882_v42, %v1898_v45  ;;  %v17062_v25 = vcombine.high %v1913_v26, %v1929_v15  ;;  %v17064_v58 = vcombine.high %v1914_v49, %v1930_v54 }
 0xdb7   : > { %14839 = vmatpush1.bf16.xpose.msra.mxu0 %v17409_v7  ;;  %14880 = vmatpush1.bf16.xpose.msra.mxu1 %v17411_v4  ;;  %v17061_v7 = vcombine.low %v1913_v26, %v1929_v15  ;;  %v17094_v4 = vcombine.high %v1945_v8, %v1961_v10 }
 0xdb8   : > { %14840 = vmatprep.subr.bf16.mxu0 %v17442_v57  ;;  %14881 = vmatprep.subr.bf16.mxu1 %v17444_v12  ;;  %v1977_v57 = vld [vmem:[%s17872_s12 + $0x3330] sm:$0xff] }
 0xdb9   : > { %v1993_v12 = vld [vmem:[%s17872_s12 + $0x33b0] sm:$0xff] }
 0xdba   : > { %v17126_v32 = vcombine.high %v1977_v57, %v1993_v12  ;;  %v17125_v19 = vcombine.low %v1977_v57, %v1993_v12 }
 0xdbf   : > { %14841 = vmatpush1.bf16.xpose.msra.mxu0 %v17441_v22  ;;  %14882 = vmatpush1.bf16.xpose.msra.mxu1 %v17443_v34  ;;  %v2009_v22 = vld [vmem:[%s17872_s12 + $0x3430] sm:$0xff] }
 0xdc0   : > { %14842 = vmatprep.subr.bf16.mxu0 %v17474_v0  ;;  %14883 = vmatprep.subr.bf16.mxu1 %v17476_v18  ;;  %v2025_v34 = vld [vmem:[%s17872_s12 + $0x34b0] sm:$0xff]  ;;  %v2010_v0 = vld [vmem:[%s17872_s12 + $0x3438] sm:$0xff] }
 0xdc1   : > { %v2026_v18 = vld [vmem:[%s17872_s12 + $0x34b8] sm:$0xff]  ;;  %v17158_v35 = vcombine.high %v2009_v22, %v2025_v34  ;;  %v17157_v38 = vcombine.low %v2009_v22, %v2025_v34 }
 0xdc2   : > { %v17160_v23 = vcombine.high %v2010_v0, %v2026_v18  ;;  %v17159_v20 = vcombine.low %v2010_v0, %v2026_v18 }
 0xdc7   : > { %14843 = vmatpush1.bf16.xpose.msra.mxu0 %v17473_v43  ;;  %14884 = vmatpush1.bf16.xpose.msra.mxu1 %v17475_v46  ;;  %v2041_v43 = vld [vmem:[%s17872_s12 + $0x3530] sm:$0xff] }
 0xdc8   : > { %14844 = vmatprep.subr.bf16.mxu0 %v17506_v16  ;;  %14885 = vmatprep.subr.bf16.mxu1 %v17508_v31  ;;  %v2057_v46 = vld [vmem:[%s17872_s12 + $0x35b0] sm:$0xff]  ;;  %v2042_v16 = vld [vmem:[%s17872_s12 + $0x3538] sm:$0xff] }
 0xdc9   : > { %v2058_v31 = vld [vmem:[%s17872_s12 + $0x35b8] sm:$0xff]  ;;  %v17190_v42 = vcombine.high %v2041_v43, %v2057_v46  ;;  %v17189_v26 = vcombine.low %v2041_v43, %v2057_v46 }
 0xdca   : > { %v17192_v45 = vcombine.high %v2042_v16, %v2058_v31  ;;  %v17191_v15 = vcombine.low %v2042_v16, %v2058_v31 }
 0xdcf   : > { %14845 = vmatpush1.bf16.xpose.msra.mxu0 %v17505_v63  ;;  %14886 = vmatpush1.bf16.xpose.msra.mxu1 %v17507_v5  ;;  %v2073_v63 = vld [vmem:[%s17872_s12 + $0x3630] sm:$0xff] }
 0xdd0   : > { %14896 = vmatprep.subr.bf16.mxu0 %v17030_v59  ;;  %14937 = vmatprep.subr.bf16.mxu1 %v17032_v48  ;;  %v2089_v5 = vld [vmem:[%s17872_s12 + $0x36b0] sm:$0xff]  ;;  %v2074_v59 = vld [vmem:[%s17872_s12 + $0x3638] sm:$0xff] }
 0xdd1   : > { %v2090_v48 = vld [vmem:[%s17872_s12 + $0x36b8] sm:$0xff]  ;;  %v17221_v8 = vcombine.low %v2073_v63, %v2089_v5 }
 0xdd2   : > { %v17223_v10 = vcombine.low %v2074_v59, %v2090_v48 }
 0xdd6   : > { %14847 = vmatmul.mubr.bf16.vlgmr.msra.gmra.mrb[104].mxu0 %v18157_v24  ;;  %14888 = vmatmul.mubr.bf16.vlgmr.msra.gmra.mrb[104].mxu1 %v18164_v30  ;;  %v17063_v24 = vcombine.low %v1914_v49, %v1930_v54  ;;  %v17096_v30 = vcombine.high %v1946_v55, %v1962_v1  ;;  %v17222_v49 = vcombine.high %v2073_v63, %v2089_v5 }
 0xdd7   : > { %14897 = vmatpush1.bf16.xpose.msra.mxu0 %v17029_v51  ;;  %14938 = vmatpush1.bf16.xpose.msra.mxu1 %v17031_v21  ;;  %v17224_v54 = vcombine.high %v2074_v59, %v2090_v48  ;;  %v2105_v51 = vld [vmem:[%s17872_s12 + $0x3730] sm:$0xff] }
 0xdd8   : > { %14898 = vmatprep.subr.bf16.mxu0 %v17062_v25  ;;  %14939 = vmatprep.subr.bf16.mxu1 %v17064_v58  ;;  %v2121_v21 = vld [vmem:[%s17872_s12 + $0x37b0] sm:$0xff]  ;;  %v2106_v25 = vld [vmem:[%s17872_s12 + $0x3738] sm:$0xff] }
 0xdd9   : > { %14928 = vmatprep.mubr.bf16.mxu0 %v18169_v40  ;;  %14969 = vmatprep.mubr.bf16.mxu1 %v18172_v41  ;;  %v1994_v40 = vld [vmem:[%s17872_s12 + $0x33b8] sm:$0xff]  ;;  %v17254_v55 = vcombine.high %v2105_v51, %v2121_v21  ;;  %v17253_v57 = vcombine.low %v2105_v51, %v2121_v21 }
 0xdda   : > { %v17128_v41 = vcombine.high %v1978_v37, %v1994_v40  ;;  %v17127_v6 = vcombine.low %v1978_v37, %v1994_v40  ;;  %v2122_v58 = vld [vmem:[%s17872_s12 + $0x37b8] sm:$0xff] }
 0xddb   : > { %v17256_v1 = vcombine.high %v2106_v25, %v2122_v58  ;;  %v17255_v12 = vcombine.low %v2106_v25, %v2122_v58  ;;  %v2266_v25 = vld [vmem:[%s17872_s12 + $0x3c38] sm:$0xff] }
 0xddc   : > { %v2282_v58 = vld [vmem:[%s17872_s12 + $0x3cb8] sm:$0xff] }
 0xddf   : > { %14899 = vmatpush1.bf16.xpose.msra.mxu0 %v17061_v7  ;;  %14940 = vmatpush1.bf16.xpose.msra.mxu1 %v17063_v24  ;;  %v2137_v7 = vld [vmem:[%s17872_s12 + $0x3830] sm:$0xff] }
 0xde0   : > { %14900 = vmatprep.subr.bf16.mxu0 %v17094_v4  ;;  %14941 = vmatprep.subr.bf16.mxu1 %v17096_v30  ;;  %v2153_v24 = vld [vmem:[%s17872_s12 + $0x38b0] sm:$0xff]  ;;  %v2138_v4 = vld [vmem:[%s17872_s12 + $0x3838] sm:$0xff] }
 0xde1   : > { %v2154_v30 = vld [vmem:[%s17872_s12 + $0x38b8] sm:$0xff]  ;;  %v17286_v37 = vcombine.high %v2137_v7, %v2153_v24  ;;  %v17285_v22 = vcombine.low %v2137_v7, %v2153_v24 }
 0xde2   : > { %v17288_v40 = vcombine.high %v2138_v4, %v2154_v30  ;;  %v17287_v34 = vcombine.low %v2138_v4, %v2154_v30 }
 0xde7   : > { %14901 = vmatpush1.bf16.xpose.msra.mxu0 %v17093_v17  ;;  %14942 = vmatpush1.bf16.xpose.msra.mxu1 %v17095_v13  ;;  %v2169_v17 = vld [vmem:[%s17872_s12 + $0x3930] sm:$0xff] }
 0xde8   : > { %14902 = vmatprep.subr.bf16.mxu0 %v17126_v32  ;;  %14943 = vmatprep.subr.bf16.mxu1 %v17128_v41  ;;  %v2185_v13 = vld [vmem:[%s17872_s12 + $0x39b0] sm:$0xff]  ;;  %v2170_v32 = vld [vmem:[%s17872_s12 + $0x3938] sm:$0xff] }
 0xde9   : > { %v2186_v41 = vld [vmem:[%s17872_s12 + $0x39b8] sm:$0xff]  ;;  %v17318_v0 = vcombine.high %v2169_v17, %v2185_v13  ;;  %v17317_v43 = vcombine.low %v2169_v17, %v2185_v13 }
 0xdea   : > { %v17320_v18 = vcombine.high %v2170_v32, %v2186_v41  ;;  %v17319_v46 = vcombine.low %v2170_v32, %v2186_v41  ;;  %v2298_v17 = vld [vmem:[%s17872_s12 + $0x3d38] sm:$0xff]  ;;  %v17415_v41 = vcombine.low %v2266_v25, %v2282_v58 }
 0xdeb   : > { %v2314_v13 = vld [vmem:[%s17872_s12 + $0x3db8] sm:$0xff] }
 0xdef   : > { %14903 = vmatpush1.bf16.xpose.msra.mxu0 %v17125_v19  ;;  %14944 = vmatpush1.bf16.xpose.msra.mxu1 %v17127_v6  ;;  %v2201_v19 = vld [vmem:[%s17872_s12 + $0x3a30] sm:$0xff] }
 0xdf0   : > { %14904 = vmatprep.subr.bf16.mxu0 %v17158_v35  ;;  %14945 = vmatprep.subr.bf16.mxu1 %v17160_v23  ;;  %v2217_v6 = vld [vmem:[%s17872_s12 + $0x3ab0] sm:$0xff]  ;;  %v2202_v35 = vld [vmem:[%s17872_s12 + $0x3a38] sm:$0xff] }
 0xdf1   : > { %v2218_v23 = vld [vmem:[%s17872_s12 + $0x3ab8] sm:$0xff]  ;;  %v17350_v16 = vcombine.high %v2201_v19, %v2217_v6  ;;  %v17349_v63 = vcombine.low %v2201_v19, %v2217_v6 }
 0xdf2   : > { %v17352_v31 = vcombine.high %v2202_v35, %v2218_v23  ;;  %v17351_v5 = vcombine.low %v2202_v35, %v2218_v23  ;;  %v2330_v19 = vld [vmem:[%s17872_s12 + $0x3e38] sm:$0xff]  ;;  %v17447_v23 = vcombine.low %v2298_v17, %v2314_v13 }
 0xdf3   : > { %v2346_v6 = vld [vmem:[%s17872_s12 + $0x3eb8] sm:$0xff] }
 0xdf7   : > { %14905 = vmatpush1.bf16.xpose.msra.mxu0 %v17157_v38  ;;  %14946 = vmatpush1.bf16.xpose.msra.mxu1 %v17159_v20  ;;  %v2233_v38 = vld [vmem:[%s17872_s12 + $0x3b30] sm:$0xff] }
 0xdf8   : > { %14906 = vmatprep.subr.bf16.mxu0 %v17190_v42  ;;  %14947 = vmatprep.subr.bf16.mxu1 %v17192_v45  ;;  %v2249_v20 = vld [vmem:[%s17872_s12 + $0x3bb0] sm:$0xff]  ;;  %v2234_v42 = vld [vmem:[%s17872_s12 + $0x3b38] sm:$0xff] }
 0xdf9   : > { %v2250_v45 = vld [vmem:[%s17872_s12 + $0x3bb8] sm:$0xff]  ;;  %v17382_v59 = vcombine.high %v2233_v38, %v2249_v20 }
 0xdfa   : > { %v17384_v48 = vcombine.high %v2234_v42, %v2250_v45  ;;  %v17383_v30 = vcombine.low %v2234_v42, %v2250_v45  ;;  %v17479_v45 = vcombine.low %v2330_v19, %v2346_v6 }
 0xdff   : > { %14907 = vmatpush1.bf16.xpose.msra.mxu0 %v17189_v26  ;;  %14948 = vmatpush1.bf16.xpose.msra.mxu1 %v17191_v15  ;;  %v2265_v15 = vld [vmem:[%s17872_s12 + $0x3c30] sm:$0xff] }
 0xe00   : > { %14908 = vmatprep.subr.bf16.mxu0 %v17222_v49  ;;  %14949 = vmatprep.subr.bf16.mxu1 %v17224_v54  ;;  %v2281_v49 = vld [vmem:[%s17872_s12 + $0x3cb0] sm:$0xff] }
 0xe01   : > { %v17413_v32 = vcombine.low %v2265_v15, %v2281_v49 }
 0xe07   : > { %14909 = vmatpush1.bf16.xpose.msra.mxu0 %v17221_v8  ;;  %14950 = vmatpush1.bf16.xpose.msra.mxu1 %v17223_v10 }
 0xe08   : > { %14910 = vmatprep.subr.bf16.mxu0 %v17254_v55  ;;  %14951 = vmatprep.subr.bf16.mxu1 %v17256_v1  ;;  %v17381_v1 = vcombine.low %v2233_v38, %v2249_v20  ;;  %v2362_v38 = vld [vmem:[%s17872_s12 + $0x3f38] sm:$0xff] }
 0xe09   : > { %v2378_v20 = vld [vmem:[%s17872_s12 + $0x3fb8] sm:$0xff] }
 0xe0f   : > { %14911 = vmatpush1.bf16.xpose.msra.mxu0 %v17253_v57  ;;  %14952 = vmatpush1.bf16.xpose.msra.mxu1 %v17255_v12  ;;  %v17414_v57 = vcombine.high %v2265_v15, %v2281_v49  ;;  %v1900_v15 = vld [vmem:[%s17872_s12 + $0x30c8] sm:$0xff] }
 0xe10   : > { %14912 = vmatprep.subr.bf16.mxu0 %v17286_v37  ;;  %14953 = vmatprep.subr.bf16.mxu1 %v17288_v40  ;;  %v17416_v37 = vcombine.high %v2266_v25, %v2282_v58  ;;  %v2313_v40 = vld [vmem:[%s17872_s12 + $0x3db0] sm:$0xff]  ;;  %v1915_v25 = vld [vmem:[%s17872_s12 + $0x3140] sm:$0xff] }
 0xe11   : > { %v1931_v58 = vld [vmem:[%s17872_s12 + $0x31c0] sm:$0xff] }
 0xe17   : > { %14913 = vmatpush1.bf16.xpose.msra.mxu0 %v17285_v22  ;;  %14954 = vmatpush1.bf16.xpose.msra.mxu1 %v17287_v34  ;;  %v17448_v34 = vcombine.high %v2298_v17, %v2314_v13  ;;  %v1979_v17 = vld [vmem:[%s17872_s12 + $0x3340] sm:$0xff] }
 0xe18   : > { %14914 = vmatprep.subr.bf16.mxu0 %v17318_v0  ;;  %14955 = vmatprep.subr.bf16.mxu1 %v17320_v18  ;;  %v2329_v0 = vld [vmem:[%s17872_s12 + $0x3e30] sm:$0xff]  ;;  %v1995_v13 = vld [vmem:[%s17872_s12 + $0x33c0] sm:$0xff] }
 0xe19   : > { %v2345_v18 = vld [vmem:[%s17872_s12 + $0x3eb0] sm:$0xff] }
 0xe1a   : > { %v17477_v42 = vcombine.low %v2329_v0, %v2345_v18 }
 0xe1f   : > { %14915 = vmatpush1.bf16.xpose.msra.mxu0 %v17317_v43  ;;  %14956 = vmatpush1.bf16.xpose.msra.mxu1 %v17319_v46  ;;  %v17478_v43 = vcombine.high %v2329_v0, %v2345_v18  ;;  %v17480_v46 = vcombine.high %v2330_v19, %v2346_v6  ;;  %v2011_v0 = vld [vmem:[%s17872_s12 + $0x3440] sm:$0xff]  ;;  %v2012_v19 = vld [vmem:[%s17872_s12 + $0x3448] sm:$0xff] }
 0xe20   : > { %14916 = vmatprep.subr.bf16.mxu0 %v17350_v16  ;;  %14957 = vmatprep.subr.bf16.mxu1 %v17352_v31  ;;  %v2361_v16 = vld [vmem:[%s17872_s12 + $0x3f30] sm:$0xff]  ;;  %v2027_v18 = vld [vmem:[%s17872_s12 + $0x34c0] sm:$0xff]  ;;  %v2028_v6 = vld [vmem:[%s17872_s12 + $0x34c8] sm:$0xff] }
 0xe21   : > { %v2377_v31 = vld [vmem:[%s17872_s12 + $0x3fb0] sm:$0xff] }
 0xe22   : > { %v17509_v49 = vcombine.low %v2361_v16, %v2377_v31 }
 0xe27   : > { %14917 = vmatpush1.bf16.xpose.msra.mxu0 %v17349_v63  ;;  %14958 = vmatpush1.bf16.xpose.msra.mxu1 %v17351_v5  ;;  %v17510_v63 = vcombine.high %v2361_v16, %v2377_v31  ;;  %v17512_v5 = vcombine.high %v2362_v38, %v2378_v20  ;;  %v2043_v16 = vld [vmem:[%s17872_s12 + $0x3540] sm:$0xff] }
 0xe28   : > { %14918 = vmatprep.subr.bf16.mxu0 %v17382_v59  ;;  %14959 = vmatprep.subr.bf16.mxu1 %v17384_v48  ;;  %v1883_v59 = vld [vmem:[%s17872_s12 + $0x3040] sm:$0xff] }
 0xe29   : > { %v14766_v26 = vpop.f32.mrb[100].mxu0  ;;  %v14807_v51 = vpop.f32.mrb[100].mxu1  ;;  %v1899_v48 = vld [vmem:[%s17872_s12 + $0x30c0] sm:$0xff] }
 0xe2a   : > { %v14767_v54 = vadd.f32 %v14766_v26, %v20030_v27  ;;  %v14768_v21 = vpop.f32.mrb[101].mxu0  ;;  %v14809_v10 = vpop.f32.mrb[101].mxu1  ;;  %v1884_v26 = vld [vmem:[%s17872_s12 + $0x3048] sm:$0xff]  ;;  %v2059_v31 = vld [vmem:[%s17872_s12 + $0x35c0] sm:$0xff] }
 0xe2b   : > { %v14769_v8 = vadd.f32 %v14768_v21, %v20032_v9  ;;  %v14770_v55 = vpop.f32.mrb[102].mxu0  ;;  %v14811_v24 = vpop.f32.mrb[102].mxu1  ;;  %v2297_v9 = vld [vmem:[%s17872_s12 + $0x3d30] sm:$0xff]  ;;  %v17036_v21 = vcombine.high %v1884_v26, %v1900_v15 }
 0xe2c   : > { %v20104_v7 = vadd.f32 %v14807_v51, %v14767_v54  ;;  %v14771_v4 = vpop.f32.mrb[103].mxu0  ;;  %v14812_v12 = vpop.f32.mrb[103].mxu1  ;;  %v17446_v22 = vcombine.high %v2297_v9, %v2313_v40  ;;  %v17445_v35 = vcombine.low %v2297_v9, %v2313_v40  ;;  %v17511_v54 = vcombine.low %v2362_v38, %v2378_v20  ;;  %v2044_v38 = vld [vmem:[%s17872_s12 + $0x3548] sm:$0xff] }
 0xe2d   : > { %v20106_v27 = vadd.f32 %v14809_v10, %v14769_v8  ;;  %v17034_v51 = vcombine.high %v1883_v59, %v1899_v48  ;;  %v1916_v8 = vld [vmem:[%s17872_s12 + $0x3148] sm:$0xff]  ;;  %v17033_v55 = vcombine.low %v1883_v59, %v1899_v48  ;;  %v17066_v24 = vcombine.high %v1915_v25, %v1931_v58  ;;  %v2075_v59 = vld [vmem:[%s17872_s12 + $0x3640] sm:$0xff] }
 0xe2e   : > { %v1932_v10 = vld [vmem:[%s17872_s12 + $0x31c8] sm:$0xff]  ;;  %v17065_v9 = vcombine.low %v1915_v25, %v1931_v58  ;;  %v2091_v48 = vld [vmem:[%s17872_s12 + $0x36c0] sm:$0xff] }
 0xe2f   : > { %14919 = vmatpush1.bf16.xpose.msra.mxu0 %v17381_v1  ;;  %14960 = vmatpush1.bf16.xpose.msra.mxu1 %v17383_v30  ;;  %v17035_v1 = vcombine.low %v1884_v26, %v1900_v15  ;;  %v17068_v4 = vcombine.high %v1916_v8, %v1932_v10  ;;  %v1947_v30 = vld [vmem:[%s17872_s12 + $0x3240] sm:$0xff]  ;;  %v1948_v12 = vld [vmem:[%s17872_s12 + $0x3248] sm:$0xff] }
 0xe30   : > { %14920 = vmatprep.subr.bf16.mxu0 %v17414_v57  ;;  %14961 = vmatprep.subr.bf16.mxu1 %v17416_v37  ;;  %v1963_v57 = vld [vmem:[%s17872_s12 + $0x32c0] sm:$0xff]  ;;  %v1964_v37 = vld [vmem:[%s17872_s12 + $0x32c8] sm:$0xff] }
 0xe31   : > { %v17098_v40 = vcombine.high %v1947_v30, %v1963_v57  ;;  %v2060_v20 = vld [vmem:[%s17872_s12 + $0x35c8] sm:$0xff]  ;;  %v2107_v25 = vld [vmem:[%s17872_s12 + $0x3740] sm:$0xff] }
 0xe32   : > { %v2076_v26 = vld [vmem:[%s17872_s12 + $0x3648] sm:$0xff]  ;;  %v2123_v58 = vld [vmem:[%s17872_s12 + $0x37c0] sm:$0xff] }
 0xe33   : > { %v2092_v15 = vld [vmem:[%s17872_s12 + $0x36c8] sm:$0xff] }
 0xe37   : > { %14921 = vmatpush1.bf16.xpose.msra.mxu0 %v17413_v32  ;;  %14962 = vmatpush1.bf16.xpose.msra.mxu1 %v17415_v41  ;;  %v1980_v32 = vld [vmem:[%s17872_s12 + $0x3348] sm:$0xff]  ;;  %v17097_v41 = vcombine.low %v1947_v30, %v1963_v57  ;;  %v2139_v30 = vld [vmem:[%s17872_s12 + $0x3840] sm:$0xff] }
 0xe38   : > { %14922 = vmatprep.subr.bf16.mxu0 %v17446_v22  ;;  %14963 = vmatprep.subr.bf16.mxu1 %v17448_v34  ;;  %v17099_v22 = vcombine.low %v1948_v12, %v1964_v37  ;;  %v17130_v34 = vcombine.high %v1979_v17, %v1995_v13  ;;  %v2155_v57 = vld [vmem:[%s17872_s12 + $0x38c0] sm:$0xff] }
 0xe3f   : > { %14923 = vmatpush1.bf16.xpose.msra.mxu0 %v17445_v35  ;;  %14964 = vmatpush1.bf16.xpose.msra.mxu1 %v17447_v23  ;;  %v17129_v35 = vcombine.low %v1979_v17, %v1995_v13  ;;  %v2171_v17 = vld [vmem:[%s17872_s12 + $0x3940] sm:$0xff] }
 0xe40   : > { %14924 = vmatprep.subr.bf16.mxu0 %v17478_v43  ;;  %14965 = vmatprep.subr.bf16.mxu1 %v17480_v46  ;;  %v17162_v43 = vcombine.high %v2011_v0, %v2027_v18  ;;  %v17164_v46 = vcombine.high %v2012_v19, %v2028_v6  ;;  %v2187_v13 = vld [vmem:[%s17872_s12 + $0x39c0] sm:$0xff] }
 0xe47   : > { %14925 = vmatpush1.bf16.xpose.msra.mxu0 %v17477_v42  ;;  %14966 = vmatpush1.bf16.xpose.msra.mxu1 %v17479_v45  ;;  %v17161_v42 = vcombine.low %v2011_v0, %v2027_v18  ;;  %v17163_v45 = vcombine.low %v2012_v19, %v2028_v6  ;;  %v2203_v0 = vld [vmem:[%s17872_s12 + $0x3a40] sm:$0xff]  ;;  %v2204_v19 = vld [vmem:[%s17872_s12 + $0x3a48] sm:$0xff] }
 0xe48   : > { %14926 = vmatprep.subr.bf16.mxu0 %v17510_v63  ;;  %14967 = vmatprep.subr.bf16.mxu1 %v17512_v5  ;;  %v17194_v63 = vcombine.high %v2043_v16, %v2059_v31  ;;  %v17196_v5 = vcombine.high %v2044_v38, %v2060_v20  ;;  %v2219_v18 = vld [vmem:[%s17872_s12 + $0x3ac0] sm:$0xff]  ;;  %v2220_v6 = vld [vmem:[%s17872_s12 + $0x3ac8] sm:$0xff] }
 0xe4f   : > { %14927 = vmatpush1.bf16.xpose.msra.mxu0 %v17509_v49  ;;  %14968 = vmatpush1.bf16.xpose.msra.mxu1 %v17511_v54  ;;  %v17193_v49 = vcombine.low %v2043_v16, %v2059_v31  ;;  %v17195_v54 = vcombine.low %v2044_v38, %v2060_v20  ;;  %v2235_v16 = vld [vmem:[%s17872_s12 + $0x3b40] sm:$0xff]  ;;  %v2236_v38 = vld [vmem:[%s17872_s12 + $0x3b48] sm:$0xff] }
 0xe50   : > { %14978 = vmatprep.subr.bf16.mxu0 %v17034_v51  ;;  %15019 = vmatprep.subr.bf16.mxu1 %v17036_v21  ;;  %v17226_v51 = vcombine.high %v2075_v59, %v2091_v48  ;;  %v17228_v21 = vcombine.high %v2076_v26, %v2092_v15  ;;  %v2251_v31 = vld [vmem:[%s17872_s12 + $0x3bc0] sm:$0xff]  ;;  %v2252_v20 = vld [vmem:[%s17872_s12 + $0x3bc8] sm:$0xff] }
 0xe56   : > { %14929 = vmatmul.mubr.bf16.vlgmr.msra.gmra.mrb[108].mxu0 %v18251_v28  ;;  %14970 = vmatmul.mubr.bf16.vlgmr.msra.gmra.mrb[108].mxu1 %v18258_v33  ;;  %v17067_v28 = vcombine.low %v1916_v8, %v1932_v10  ;;  %v17100_v33 = vcombine.high %v1948_v12, %v1964_v37  ;;  %v2108_v8 = vld [vmem:[%s17872_s12 + $0x3748] sm:$0xff] }
 0xe57   : > { %14979 = vmatpush1.bf16.xpose.msra.mxu0 %v17033_v55  ;;  %15020 = vmatpush1.bf16.xpose.msra.mxu1 %v17035_v1  ;;  %v2124_v10 = vld [vmem:[%s17872_s12 + $0x37c8] sm:$0xff]  ;;  %v17225_v55 = vcombine.low %v2075_v59, %v2091_v48  ;;  %v17227_v1 = vcombine.low %v2076_v26, %v2092_v15  ;;  %v2267_v48 = vld [vmem:[%s17872_s12 + $0x3c40] sm:$0xff] }
 0xe58   : > { %14980 = vmatprep.subr.bf16.mxu0 %v17066_v24  ;;  %15021 = vmatprep.subr.bf16.mxu1 %v17068_v4  ;;  %v17258_v24 = vcombine.high %v2107_v25, %v2123_v58  ;;  %v17260_v4 = vcombine.high %v2108_v8, %v2124_v10  ;;  %v2140_v12 = vld [vmem:[%s17872_s12 + $0x3848] sm:$0xff]  ;;  %v2283_v26 = vld [vmem:[%s17872_s12 + $0x3cc0] sm:$0xff] }
 0xe59   : > { %15010 = vmatprep.mubr.bf16.mxu0 %v18263_v50  ;;  %15051 = vmatprep.mubr.bf16.mxu1 %v18266_v44  ;;  %v1996_v50 = vld [vmem:[%s17872_s12 + $0x33c8] sm:$0xff] }
 0xe5a   : > { %v17132_v44 = vcombine.high %v1980_v32, %v1996_v50  ;;  %v17131_v23 = vcombine.low %v1980_v32, %v1996_v50  ;;  %v2156_v37 = vld [vmem:[%s17872_s12 + $0x38c8] sm:$0xff] }
 0xe5b   : > { %v2172_v32 = vld [vmem:[%s17872_s12 + $0x3948] sm:$0xff] }
 0xe5c   : > { %v2188_v50 = vld [vmem:[%s17872_s12 + $0x39c8] sm:$0xff] }
 0xe5f   : > { %14981 = vmatpush1.bf16.xpose.msra.mxu0 %v17065_v9  ;;  %15022 = vmatpush1.bf16.xpose.msra.mxu1 %v17067_v28  ;;  %v17257_v9 = vcombine.low %v2107_v25, %v2123_v58  ;;  %v17259_v28 = vcombine.low %v2108_v8, %v2124_v10  ;;  %v17385_v10 = vcombine.low %v2235_v16, %v2251_v31 }
 0xe60   : > { %14982 = vmatprep.subr.bf16.mxu0 %v17098_v40  ;;  %15023 = vmatprep.subr.bf16.mxu1 %v17100_v33  ;;  %v17290_v40 = vcombine.high %v2139_v30, %v2155_v57  ;;  %v17292_v33 = vcombine.high %v2140_v12, %v2156_v37 }
 0xe67   : > { %14983 = vmatpush1.bf16.xpose.msra.mxu0 %v17097_v41  ;;  %15024 = vmatpush1.bf16.xpose.msra.mxu1 %v17099_v22  ;;  %v17289_v41 = vcombine.low %v2139_v30, %v2155_v57  ;;  %v17291_v22 = vcombine.low %v2140_v12, %v2156_v37  ;;  %v17418_v30 = vcombine.high %v2267_v48, %v2283_v26  ;;  %v2315_v37 = vld [vmem:[%s17872_s12 + $0x3dc0] sm:$0xff] }
 0xe68   : > { %14984 = vmatprep.subr.bf16.mxu0 %v17130_v34  ;;  %15025 = vmatprep.subr.bf16.mxu1 %v17132_v44  ;;  %v17322_v34 = vcombine.high %v2171_v17, %v2187_v13  ;;  %v17324_v44 = vcombine.high %v2172_v32, %v2188_v50 }
 0xe6f   : > { %14985 = vmatpush1.bf16.xpose.msra.mxu0 %v17129_v35  ;;  %15026 = vmatpush1.bf16.xpose.msra.mxu1 %v17131_v23  ;;  %v17321_v35 = vcombine.low %v2171_v17, %v2187_v13  ;;  %v17323_v23 = vcombine.low %v2172_v32, %v2188_v50  ;;  %v2331_v32 = vld [vmem:[%s17872_s12 + $0x3e40] sm:$0xff] }
 0xe70   : > { %14986 = vmatprep.subr.bf16.mxu0 %v17162_v43  ;;  %15027 = vmatprep.subr.bf16.mxu1 %v17164_v46  ;;  %v17354_v43 = vcombine.high %v2203_v0, %v2219_v18  ;;  %v17356_v46 = vcombine.high %v2204_v19, %v2220_v6  ;;  %v2347_v50 = vld [vmem:[%s17872_s12 + $0x3ec0] sm:$0xff] }
 0xe77   : > { %14987 = vmatpush1.bf16.xpose.msra.mxu0 %v17161_v42  ;;  %15028 = vmatpush1.bf16.xpose.msra.mxu1 %v17163_v45  ;;  %v17353_v42 = vcombine.low %v2203_v0, %v2219_v18  ;;  %v17355_v45 = vcombine.low %v2204_v19, %v2220_v6  ;;  %v17482_v0 = vcombine.high %v2331_v32, %v2347_v50  ;;  %v2363_v19 = vld [vmem:[%s17872_s12 + $0x3f40] sm:$0xff] }
 0xe78   : > { %14988 = vmatprep.subr.bf16.mxu0 %v17194_v63  ;;  %15029 = vmatprep.subr.bf16.mxu1 %v17196_v5  ;;  %v17386_v63 = vcombine.high %v2235_v16, %v2251_v31  ;;  %v17388_v5 = vcombine.high %v2236_v38, %v2252_v20  ;;  %v2379_v6 = vld [vmem:[%s17872_s12 + $0x3fc0] sm:$0xff] }
 0xe79   : > { %v17514_v16 = vcombine.high %v2363_v19, %v2379_v6 }
 0xe7f   : > { %14989 = vmatpush1.bf16.xpose.msra.mxu0 %v17193_v49  ;;  %15030 = vmatpush1.bf16.xpose.msra.mxu1 %v17195_v54 }
 0xe80   : > { %14990 = vmatprep.subr.bf16.mxu0 %v17226_v51  ;;  %15031 = vmatprep.subr.bf16.mxu1 %v17228_v21  ;;  %v2268_v51 = vld [vmem:[%s17872_s12 + $0x3c48] sm:$0xff] }
 0xe81   : > { %v2284_v21 = vld [vmem:[%s17872_s12 + $0x3cc8] sm:$0xff] }
 0xe82   : > { %v17420_v12 = vcombine.high %v2268_v51, %v2284_v21 }
 0xe87   : > { %14991 = vmatpush1.bf16.xpose.msra.mxu0 %v17225_v55  ;;  %15032 = vmatpush1.bf16.xpose.msra.mxu1 %v17227_v1 }
 0xe88   : > { %14992 = vmatprep.subr.bf16.mxu0 %v17258_v24  ;;  %15033 = vmatprep.subr.bf16.mxu1 %v17260_v4  ;;  %v17387_v4 = vcombine.low %v2236_v38, %v2252_v20  ;;  %v1885_v38 = vld [vmem:[%s17872_s12 + $0x3050] sm:$0xff] }
 0xe89   : > { %v1901_v20 = vld [vmem:[%s17872_s12 + $0x30d0] sm:$0xff] }
 0xe8f   : > { %14993 = vmatpush1.bf16.xpose.msra.mxu0 %v17257_v9  ;;  %15034 = vmatpush1.bf16.xpose.msra.mxu1 %v17259_v28  ;;  %v2300_v9 = vld [vmem:[%s17872_s12 + $0x3d48] sm:$0xff] }
 0xe90   : > { %14994 = vmatprep.subr.bf16.mxu0 %v17290_v40  ;;  %15035 = vmatprep.subr.bf16.mxu1 %v17292_v33  ;;  %v2316_v28 = vld [vmem:[%s17872_s12 + $0x3dc8] sm:$0xff]  ;;  %v17417_v40 = vcombine.low %v2267_v48, %v2283_v26  ;;  %v17419_v33 = vcombine.low %v2268_v51, %v2284_v21  ;;  %v1917_v26 = vld [vmem:[%s17872_s12 + $0x3150] sm:$0xff]  ;;  %v17037_v51 = vcombine.low %v1885_v38, %v1901_v20 }
 0xe91   : > { %v17452_v13 = vcombine.high %v2300_v9, %v2316_v28 }
 0xe97   : > { %14995 = vmatpush1.bf16.xpose.msra.mxu0 %v17289_v41  ;;  %15036 = vmatpush1.bf16.xpose.msra.mxu1 %v17291_v22  ;;  %v2332_v41 = vld [vmem:[%s17872_s12 + $0x3e48] sm:$0xff] }
 0xe98   : > { %14996 = vmatprep.subr.bf16.mxu0 %v17322_v34  ;;  %15037 = vmatprep.subr.bf16.mxu1 %v17324_v44  ;;  %v2348_v22 = vld [vmem:[%s17872_s12 + $0x3ec8] sm:$0xff]  ;;  %v17451_v44 = vcombine.low %v2300_v9, %v2316_v28 }
 0xe99   : > { %v17484_v18 = vcombine.high %v2332_v41, %v2348_v22 }
 0xe9f   : > { %14997 = vmatpush1.bf16.xpose.msra.mxu0 %v17321_v35  ;;  %15038 = vmatpush1.bf16.xpose.msra.mxu1 %v17323_v23  ;;  %v2364_v35 = vld [vmem:[%s17872_s12 + $0x3f48] sm:$0xff] }
 0xea0   : > { %14998 = vmatprep.subr.bf16.mxu0 %v17354_v43  ;;  %15039 = vmatprep.subr.bf16.mxu1 %v17356_v46  ;;  %v2380_v23 = vld [vmem:[%s17872_s12 + $0x3fc8] sm:$0xff]  ;;  %v17481_v43 = vcombine.low %v2331_v32, %v2347_v50  ;;  %v17483_v46 = vcombine.low %v2332_v41, %v2348_v22 }
 0xea1   : > { %v17516_v31 = vcombine.high %v2364_v35, %v2380_v23 }
 0xea7   : > { %14999 = vmatpush1.bf16.xpose.msra.mxu0 %v17353_v42  ;;  %15040 = vmatpush1.bf16.xpose.msra.mxu1 %v17355_v45  ;;  %v1886_v42 = vld [vmem:[%s17872_s12 + $0x3058] sm:$0xff] }
 0xea8   : > { %15000 = vmatprep.subr.bf16.mxu0 %v17386_v63  ;;  %15041 = vmatprep.subr.bf16.mxu1 %v17388_v5  ;;  %v1902_v45 = vld [vmem:[%s17872_s12 + $0x30d8] sm:$0xff]  ;;  %v17513_v63 = vcombine.low %v2363_v19, %v2379_v6  ;;  %v17515_v5 = vcombine.low %v2364_v35, %v2380_v23 }
 0xea9   : > { %v14848_v59 = vpop.f32.mrb[104].mxu0  ;;  %v14889_v49 = vpop.f32.mrb[104].mxu1  ;;  %v17040_v48 = vcombine.high %v1886_v42, %v1902_v45  ;;  %v17039_v21 = vcombine.low %v1886_v42, %v1902_v45 }
 0xeaa   : > { %v14849_v15 = vadd.f32 %v14848_v59, %v20104_v7  ;;  %v14850_v54 = vpop.f32.mrb[105].mxu0  ;;  %v14891_v58 = vpop.f32.mrb[105].mxu1  ;;  %v17038_v59 = vcombine.high %v1885_v38, %v1901_v20 }
 0xeab   : > { %v14851_v25 = vadd.f32 %v14850_v54, %v20106_v27  ;;  %v14852_v8 = vpop.f32.mrb[106].mxu0  ;;  %v14893_v1 = vpop.f32.mrb[106].mxu1  ;;  %v2299_v27 = vld [vmem:[%s17872_s12 + $0x3d40] sm:$0xff]  ;;  %v1934_v54 = vld [vmem:[%s17872_s12 + $0x31d8] sm:$0xff] }
 0xeac   : > { %v20178_v55 = vadd.f32 %v14889_v49, %v14849_v15  ;;  %v14853_v24 = vpop.f32.mrb[107].mxu0  ;;  %v14894_v57 = vpop.f32.mrb[107].mxu1  ;;  %v17450_v17 = vcombine.high %v2299_v27, %v2315_v37  ;;  %v17449_v34 = vcombine.low %v2299_v27, %v2315_v37  ;;  %v1933_v15 = vld [vmem:[%s17872_s12 + $0x31d0] sm:$0xff]  ;;  %v1918_v49 = vld [vmem:[%s17872_s12 + $0x3158] sm:$0xff] }
 0xead   : > { %v20180_v7 = vadd.f32 %v14891_v58, %v14851_v25  ;;  %v17070_v25 = vcombine.high %v1917_v26, %v1933_v15  ;;  %v17072_v58 = vcombine.high %v1918_v49, %v1934_v54  ;;  %v1949_v8 = vld [vmem:[%s17872_s12 + $0x3250] sm:$0xff]  ;;  %v1950_v1 = vld [vmem:[%s17872_s12 + $0x3258] sm:$0xff] }
 0xeae   : > { %v1966_v24 = vld [vmem:[%s17872_s12 + $0x32d8] sm:$0xff]  ;;  %v1981_v57 = vld [vmem:[%s17872_s12 + $0x3350] sm:$0xff] }
 0xeaf   : > { %15001 = vmatpush1.bf16.xpose.msra.mxu0 %v17385_v10  ;;  %15042 = vmatpush1.bf16.xpose.msra.mxu1 %v17387_v4  ;;  %v1965_v10 = vld [vmem:[%s17872_s12 + $0x32d0] sm:$0xff]  ;;  %v17069_v4 = vcombine.low %v1917_v26, %v1933_v15  ;;  %v1982_v27 = vld [vmem:[%s17872_s12 + $0x3358] sm:$0xff]  ;;  %v17103_v9 = vcombine.low %v1950_v1, %v1966_v24 }
 0xeb0   : > { %15002 = vmatprep.subr.bf16.mxu0 %v17418_v30  ;;  %15043 = vmatprep.subr.bf16.mxu1 %v17420_v12  ;;  %v17102_v30 = vcombine.high %v1949_v8, %v1965_v10  ;;  %v1997_v12 = vld [vmem:[%s17872_s12 + $0x33d0] sm:$0xff]  ;;  %v17101_v37 = vcombine.low %v1949_v8, %v1965_v10 }
 0xeb1   : > { %v17134_v28 = vcombine.high %v1981_v57, %v1997_v12  ;;  %v17133_v32 = vcombine.low %v1981_v57, %v1997_v12 }
 0xeb7   : > { %15003 = vmatpush1.bf16.xpose.msra.mxu0 %v17417_v40  ;;  %15044 = vmatpush1.bf16.xpose.msra.mxu1 %v17419_v33  ;;  %v2013_v40 = vld [vmem:[%s17872_s12 + $0x3450] sm:$0xff] }
 0xeb8   : > { %15004 = vmatprep.subr.bf16.mxu0 %v17450_v17  ;;  %15045 = vmatprep.subr.bf16.mxu1 %v17452_v13  ;;  %v2029_v33 = vld [vmem:[%s17872_s12 + $0x34d0] sm:$0xff]  ;;  %v2014_v17 = vld [vmem:[%s17872_s12 + $0x3458] sm:$0xff] }
 0xeb9   : > { %v2030_v13 = vld [vmem:[%s17872_s12 + $0x34d8] sm:$0xff]  ;;  %v17166_v41 = vcombine.high %v2013_v40, %v2029_v33  ;;  %v17165_v19 = vcombine.low %v2013_v40, %v2029_v33 }
 0xeba   : > { %v17168_v22 = vcombine.high %v2014_v17, %v2030_v13  ;;  %v17167_v6 = vcombine.low %v2014_v17, %v2030_v13 }
 0xebf   : > { %15005 = vmatpush1.bf16.xpose.msra.mxu0 %v17449_v34  ;;  %15046 = vmatpush1.bf16.xpose.msra.mxu1 %v17451_v44  ;;  %v2045_v34 = vld [vmem:[%s17872_s12 + $0x3550] sm:$0xff] }
 0xec0   : > { %15006 = vmatprep.subr.bf16.mxu0 %v17482_v0  ;;  %15047 = vmatprep.subr.bf16.mxu1 %v17484_v18  ;;  %v2061_v44 = vld [vmem:[%s17872_s12 + $0x35d0] sm:$0xff]  ;;  %v2046_v0 = vld [vmem:[%s17872_s12 + $0x3558] sm:$0xff] }
 0xec1   : > { %v2062_v18 = vld [vmem:[%s17872_s12 + $0x35d8] sm:$0xff]  ;;  %v17198_v35 = vcombine.high %v2045_v34, %v2061_v44  ;;  %v17197_v38 = vcombine.low %v2045_v34, %v2061_v44 }
 0xec2   : > { %v17200_v23 = vcombine.high %v2046_v0, %v2062_v18  ;;  %v17199_v20 = vcombine.low %v2046_v0, %v2062_v18 }
 0xec7   : > { %15007 = vmatpush1.bf16.xpose.msra.mxu0 %v17481_v43  ;;  %15048 = vmatpush1.bf16.xpose.msra.mxu1 %v17483_v46  ;;  %v2077_v43 = vld [vmem:[%s17872_s12 + $0x3650] sm:$0xff] }
 0xec8   : > { %15008 = vmatprep.subr.bf16.mxu0 %v17514_v16  ;;  %15049 = vmatprep.subr.bf16.mxu1 %v17516_v31  ;;  %v2093_v46 = vld [vmem:[%s17872_s12 + $0x36d0] sm:$0xff]  ;;  %v2078_v16 = vld [vmem:[%s17872_s12 + $0x3658] sm:$0xff] }
 0xec9   : > { %v2094_v31 = vld [vmem:[%s17872_s12 + $0x36d8] sm:$0xff]  ;;  %v17230_v42 = vcombine.high %v2077_v43, %v2093_v46  ;;  %v17229_v26 = vcombine.low %v2077_v43, %v2093_v46 }
 0xeca   : > { %v17232_v45 = vcombine.high %v2078_v16, %v2094_v31  ;;  %v17231_v15 = vcombine.low %v2078_v16, %v2094_v31  ;;  %v2270_v16 = vld [vmem:[%s17872_s12 + $0x3c58] sm:$0xff] }
 0xecb   : > { %v2286_v31 = vld [vmem:[%s17872_s12 + $0x3cd8] sm:$0xff] }
 0xecf   : > { %15009 = vmatpush1.bf16.xpose.msra.mxu0 %v17513_v63  ;;  %15050 = vmatpush1.bf16.xpose.msra.mxu1 %v17515_v5  ;;  %v2109_v63 = vld [vmem:[%s17872_s12 + $0x3750] sm:$0xff] }
 0xed0   : > { %15060 = vmatprep.subr.bf16.mxu0 %v17038_v59  ;;  %15101 = vmatprep.subr.bf16.mxu1 %v17040_v48  ;;  %v2125_v5 = vld [vmem:[%s17872_s12 + $0x37d0] sm:$0xff]  ;;  %v2110_v59 = vld [vmem:[%s17872_s12 + $0x3758] sm:$0xff] }
 0xed1   : > { %v2126_v48 = vld [vmem:[%s17872_s12 + $0x37d8] sm:$0xff]  ;;  %v17261_v8 = vcombine.low %v2109_v63, %v2125_v5 }
 0xed2   : > { %v17263_v10 = vcombine.low %v2110_v59, %v2126_v48 }
 0xed6   : > { %15011 = vmatmul.mubr.bf16.vlgmr.msra.gmra.mrb[112].mxu0 %v18345_v56  ;;  %15052 = vmatmul.mubr.bf16.vlgmr.msra.gmra.mrb[112].mxu1 %v18352_v61  ;;  %v17071_v56 = vcombine.low %v1918_v49, %v1934_v54  ;;  %v17104_v61 = vcombine.high %v1950_v1, %v1966_v24  ;;  %v17262_v49 = vcombine.high %v2109_v63, %v2125_v5 }
 0xed7   : > { %15061 = vmatpush1.bf16.xpose.msra.mxu0 %v17037_v51  ;;  %15102 = vmatpush1.bf16.xpose.msra.mxu1 %v17039_v21  ;;  %v17264_v54 = vcombine.high %v2110_v59, %v2126_v48  ;;  %v2141_v51 = vld [vmem:[%s17872_s12 + $0x3850] sm:$0xff] }
 0xed8   : > { %15062 = vmatprep.subr.bf16.mxu0 %v17070_v25  ;;  %15103 = vmatprep.subr.bf16.mxu1 %v17072_v58  ;;  %v2157_v21 = vld [vmem:[%s17872_s12 + $0x38d0] sm:$0xff]  ;;  %v2142_v25 = vld [vmem:[%s17872_s12 + $0x3858] sm:$0xff] }
 0xed9   : > { %15092 = vmatprep.mubr.bf16.mxu0 %v18357_v2  ;;  %15133 = vmatprep.mubr.bf16.mxu1 %v18360_v3  ;;  %v1998_v2 = vld [vmem:[%s17872_s12 + $0x33d8] sm:$0xff]  ;;  %v17294_v1 = vcombine.high %v2141_v51, %v2157_v21  ;;  %v17293_v57 = vcombine.low %v2141_v51, %v2157_v21 }
 0xeda   : > { %v17136_v3 = vcombine.high %v1982_v27, %v1998_v2  ;;  %v17135_v50 = vcombine.low %v1982_v27, %v1998_v2  ;;  %v2158_v58 = vld [vmem:[%s17872_s12 + $0x38d8] sm:$0xff] }
 0xedb   : > { %v17296_v24 = vcombine.high %v2142_v25, %v2158_v58  ;;  %v17295_v12 = vcombine.low %v2142_v25, %v2158_v58  ;;  %v2302_v51 = vld [vmem:[%s17872_s12 + $0x3d58] sm:$0xff]  ;;  %v17423_v58 = vcombine.low %v2270_v16, %v2286_v31 }
 0xedc   : > { %v2318_v21 = vld [vmem:[%s17872_s12 + $0x3dd8] sm:$0xff] }
 0xedf   : > { %15063 = vmatpush1.bf16.xpose.msra.mxu0 %v17069_v4  ;;  %15104 = vmatpush1.bf16.xpose.msra.mxu1 %v17071_v56  ;;  %v2173_v4 = vld [vmem:[%s17872_s12 + $0x3950] sm:$0xff] }
 0xee0   : > { %15064 = vmatprep.subr.bf16.mxu0 %v17102_v30  ;;  %15105 = vmatprep.subr.bf16.mxu1 %v17104_v61  ;;  %v2189_v56 = vld [vmem:[%s17872_s12 + $0x39d0] sm:$0xff]  ;;  %v2174_v30 = vld [vmem:[%s17872_s12 + $0x3958] sm:$0xff] }
 0xee1   : > { %v2190_v61 = vld [vmem:[%s17872_s12 + $0x39d8] sm:$0xff]  ;;  %v17326_v27 = vcombine.high %v2173_v4, %v2189_v56  ;;  %v17325_v40 = vcombine.low %v2173_v4, %v2189_v56 }
 0xee2   : > { %v17328_v2 = vcombine.high %v2174_v30, %v2190_v61  ;;  %v17327_v33 = vcombine.low %v2174_v30, %v2190_v61  ;;  %v2334_v4 = vld [vmem:[%s17872_s12 + $0x3e58] sm:$0xff]  ;;  %v17455_v61 = vcombine.low %v2302_v51, %v2318_v21 }
 0xee3   : > { %v2350_v56 = vld [vmem:[%s17872_s12 + $0x3ed8] sm:$0xff] }
 0xee7   : > { %15065 = vmatpush1.bf16.xpose.msra.mxu0 %v17101_v37  ;;  %15106 = vmatpush1.bf16.xpose.msra.mxu1 %v17103_v9  ;;  %v2205_v37 = vld [vmem:[%s17872_s12 + $0x3a50] sm:$0xff] }
 0xee8   : > { %15066 = vmatprep.subr.bf16.mxu0 %v17134_v28  ;;  %15107 = vmatprep.subr.bf16.mxu1 %v17136_v3  ;;  %v2221_v9 = vld [vmem:[%s17872_s12 + $0x3ad0] sm:$0xff]  ;;  %v2206_v28 = vld [vmem:[%s17872_s12 + $0x3a58] sm:$0xff] }
 0xee9   : > { %v2222_v3 = vld [vmem:[%s17872_s12 + $0x3ad8] sm:$0xff]  ;;  %v17358_v17 = vcombine.high %v2205_v37, %v2221_v9  ;;  %v17357_v34 = vcombine.low %v2205_v37, %v2221_v9 }
 0xeea   : > { %v17360_v13 = vcombine.high %v2206_v28, %v2222_v3  ;;  %v17359_v44 = vcombine.low %v2206_v28, %v2222_v3  ;;  %v2366_v37 = vld [vmem:[%s17872_s12 + $0x3f58] sm:$0xff]  ;;  %v17487_v3 = vcombine.low %v2334_v4, %v2350_v56 }
 0xeeb   : > { %v2382_v9 = vld [vmem:[%s17872_s12 + $0x3fd8] sm:$0xff] }
 0xeef   : > { %15067 = vmatpush1.bf16.xpose.msra.mxu0 %v17133_v32  ;;  %15108 = vmatpush1.bf16.xpose.msra.mxu1 %v17135_v50  ;;  %v2237_v32 = vld [vmem:[%s17872_s12 + $0x3b50] sm:$0xff] }
 0xef0   : > { %15068 = vmatprep.subr.bf16.mxu0 %v17166_v41  ;;  %15109 = vmatprep.subr.bf16.mxu1 %v17168_v22  ;;  %v2253_v50 = vld [vmem:[%s17872_s12 + $0x3bd0] sm:$0xff]  ;;  %v2238_v41 = vld [vmem:[%s17872_s12 + $0x3b58] sm:$0xff] }
 0xef1   : > { %v2254_v22 = vld [vmem:[%s17872_s12 + $0x3bd8] sm:$0xff]  ;;  %v17390_v0 = vcombine.high %v2237_v32, %v2253_v50 }
 0xef2   : > { %v17392_v18 = vcombine.high %v2238_v41, %v2254_v22  ;;  %v17391_v48 = vcombine.low %v2238_v41, %v2254_v22  ;;  %v17519_v22 = vcombine.low %v2366_v37, %v2382_v9 }
 0xef7   : > { %15069 = vmatpush1.bf16.xpose.msra.mxu0 %v17165_v19  ;;  %15110 = vmatpush1.bf16.xpose.msra.mxu1 %v17167_v6  ;;  %v2269_v6 = vld [vmem:[%s17872_s12 + $0x3c50] sm:$0xff] }
 0xef8   : > { %15070 = vmatprep.subr.bf16.mxu0 %v17198_v35  ;;  %15111 = vmatprep.subr.bf16.mxu1 %v17200_v23  ;;  %v2285_v35 = vld [vmem:[%s17872_s12 + $0x3cd0] sm:$0xff] }
 0xef9   : > { %v17421_v25 = vcombine.low %v2269_v6, %v2285_v35 }
 0xeff   : > { %15071 = vmatpush1.bf16.xpose.msra.mxu0 %v17197_v38  ;;  %15112 = vmatpush1.bf16.xpose.msra.mxu1 %v17199_v20 }
 0xf00   : > { %15072 = vmatprep.subr.bf16.mxu0 %v17230_v42  ;;  %15113 = vmatprep.subr.bf16.mxu1 %v17232_v45  ;;  %v17389_v45 = vcombine.low %v2237_v32, %v2253_v50  ;;  %v1888_v32 = vld [vmem:[%s17872_s12 + $0x3068] sm:$0xff] }
 0xf01   : > { %v1904_v50 = vld [vmem:[%s17872_s12 + $0x30e8] sm:$0xff] }
 0xf07   : > { %15073 = vmatpush1.bf16.xpose.msra.mxu0 %v17229_v26  ;;  %15114 = vmatpush1.bf16.xpose.msra.mxu1 %v17231_v15  ;;  %v17422_v26 = vcombine.high %v2269_v6, %v2285_v35  ;;  %v1936_v6 = vld [vmem:[%s17872_s12 + $0x31e8] sm:$0xff] }
 0xf08   : > { %15074 = vmatprep.subr.bf16.mxu0 %v17262_v49  ;;  %15115 = vmatprep.subr.bf16.mxu1 %v17264_v54  ;;  %v17424_v49 = vcombine.high %v2270_v16, %v2286_v31  ;;  %v2317_v54 = vld [vmem:[%s17872_s12 + $0x3dd0] sm:$0xff]  ;;  %v1951_v16 = vld [vmem:[%s17872_s12 + $0x3260] sm:$0xff] }
 0xf09   : > { %v1967_v31 = vld [vmem:[%s17872_s12 + $0x32e0] sm:$0xff] }
 0xf0f   : > { %15075 = vmatpush1.bf16.xpose.msra.mxu0 %v17261_v8  ;;  %15116 = vmatpush1.bf16.xpose.msra.mxu1 %v17263_v10  ;;  %v17456_v10 = vcombine.high %v2302_v51, %v2318_v21  ;;  %v2016_v51 = vld [vmem:[%s17872_s12 + $0x3468] sm:$0xff] }
 0xf10   : > { %15076 = vmatprep.subr.bf16.mxu0 %v17294_v1  ;;  %15117 = vmatprep.subr.bf16.mxu1 %v17296_v24  ;;  %v2333_v1 = vld [vmem:[%s17872_s12 + $0x3e50] sm:$0xff]  ;;  %v2032_v21 = vld [vmem:[%s17872_s12 + $0x34e8] sm:$0xff] }
 0xf11   : > { %v2349_v24 = vld [vmem:[%s17872_s12 + $0x3ed0] sm:$0xff] }
 0xf12   : > { %v17485_v28 = vcombine.low %v2333_v1, %v2349_v24 }
 0xf17   : > { %15077 = vmatpush1.bf16.xpose.msra.mxu0 %v17293_v57  ;;  %15118 = vmatpush1.bf16.xpose.msra.mxu1 %v17295_v12  ;;  %v17486_v57 = vcombine.high %v2333_v1, %v2349_v24  ;;  %v17488_v12 = vcombine.high %v2334_v4, %v2350_v56  ;;  %v2047_v1 = vld [vmem:[%s17872_s12 + $0x3560] sm:$0xff]  ;;  %v2048_v4 = vld [vmem:[%s17872_s12 + $0x3568] sm:$0xff] }
 0xf18   : > { %15078 = vmatprep.subr.bf16.mxu0 %v17326_v27  ;;  %15119 = vmatprep.subr.bf16.mxu1 %v17328_v2  ;;  %v2365_v27 = vld [vmem:[%s17872_s12 + $0x3f50] sm:$0xff]  ;;  %v2063_v24 = vld [vmem:[%s17872_s12 + $0x35e0] sm:$0xff]  ;;  %v2064_v56 = vld [vmem:[%s17872_s12 + $0x35e8] sm:$0xff] }
 0xf19   : > { %v2381_v2 = vld [vmem:[%s17872_s12 + $0x3fd0] sm:$0xff] }
 0xf1a   : > { %v17517_v41 = vcombine.low %v2365_v27, %v2381_v2 }
 0xf1f   : > { %15079 = vmatpush1.bf16.xpose.msra.mxu0 %v17325_v40  ;;  %15120 = vmatpush1.bf16.xpose.msra.mxu1 %v17327_v33  ;;  %v17518_v40 = vcombine.high %v2365_v27, %v2381_v2  ;;  %v17520_v33 = vcombine.high %v2366_v37, %v2382_v9  ;;  %v2079_v27 = vld [vmem:[%s17872_s12 + $0x3660] sm:$0xff]  ;;  %v2080_v37 = vld [vmem:[%s17872_s12 + $0x3668] sm:$0xff] }
 0xf20   : > { %15080 = vmatprep.subr.bf16.mxu0 %v17358_v17  ;;  %15121 = vmatprep.subr.bf16.mxu1 %v17360_v13  ;;  %v1887_v17 = vld [vmem:[%s17872_s12 + $0x3060] sm:$0xff]  ;;  %v2096_v9 = vld [vmem:[%s17872_s12 + $0x36e8] sm:$0xff] }
 0xf21   : > { %v1903_v13 = vld [vmem:[%s17872_s12 + $0x30e0] sm:$0xff] }
 0xf22   : > { %v17041_v35 = vcombine.low %v1887_v17, %v1903_v13  ;;  %v2095_v2 = vld [vmem:[%s17872_s12 + $0x36e0] sm:$0xff] }
 0xf27   : > { %15081 = vmatpush1.bf16.xpose.msra.mxu0 %v17357_v34  ;;  %15122 = vmatpush1.bf16.xpose.msra.mxu1 %v17359_v44  ;;  %v17042_v34 = vcombine.high %v1887_v17, %v1903_v13  ;;  %v17044_v44 = vcombine.high %v1888_v32, %v1904_v50  ;;  %v2111_v17 = vld [vmem:[%s17872_s12 + $0x3760] sm:$0xff] }
 0xf28   : > { %15082 = vmatprep.subr.bf16.mxu0 %v17390_v0  ;;  %15123 = vmatprep.subr.bf16.mxu1 %v17392_v18  ;;  %v1919_v0 = vld [vmem:[%s17872_s12 + $0x3160] sm:$0xff] }
 0xf29   : > { %v14930_v19 = vpop.f32.mrb[108].mxu0  ;;  %v14971_v43 = vpop.f32.mrb[108].mxu1  ;;  %v1935_v18 = vld [vmem:[%s17872_s12 + $0x31e0] sm:$0xff] }
 0xf2a   : > { %v14931_v23 = vadd.f32 %v14930_v19, %v20178_v55  ;;  %v14932_v46 = vpop.f32.mrb[109].mxu0  ;;  %v14973_v20 = vpop.f32.mrb[109].mxu1  ;;  %v1920_v19 = vld [vmem:[%s17872_s12 + $0x3168] sm:$0xff]  ;;  %v2127_v13 = vld [vmem:[%s17872_s12 + $0x37e0] sm:$0xff] }
 0xf2b   : > { %v14933_v38 = vadd.f32 %v14932_v46, %v20180_v7  ;;  %v14934_v42 = vpop.f32.mrb[110].mxu0  ;;  %v14975_v5 = vpop.f32.mrb[110].mxu1  ;;  %v2301_v7 = vld [vmem:[%s17872_s12 + $0x3d50] sm:$0xff]  ;;  %v17076_v46 = vcombine.high %v1920_v19, %v1936_v6 }
 0xf2c   : > { %v20252_v63 = vadd.f32 %v14971_v43, %v14931_v23  ;;  %v14935_v59 = vpop.f32.mrb[111].mxu0  ;;  %v14976_v15 = vpop.f32.mrb[111].mxu1  ;;  %v17454_v8 = vcombine.high %v2301_v7, %v2317_v54  ;;  %v17453_v30 = vcombine.low %v2301_v7, %v2317_v54  ;;  %v17043_v23 = vcombine.low %v1888_v32, %v1904_v50  ;;  %v1983_v5 = vld [vmem:[%s17872_s12 + $0x3360] sm:$0xff]  ;;  %v2112_v32 = vld [vmem:[%s17872_s12 + $0x3768] sm:$0xff] }
 0xf2d   : > { %v20254_v55 = vadd.f32 %v14973_v20, %v14933_v38  ;;  %v17074_v43 = vcombine.high %v1919_v0, %v1935_v18  ;;  %v1952_v38 = vld [vmem:[%s17872_s12 + $0x3268] sm:$0xff]  ;;  %v17073_v42 = vcombine.low %v1919_v0, %v1935_v18  ;;  %v1999_v59 = vld [vmem:[%s17872_s12 + $0x33e0] sm:$0xff] }
 0xf2e   : > { %v1968_v20 = vld [vmem:[%s17872_s12 + $0x32e8] sm:$0xff]  ;;  %v2015_v7 = vld [vmem:[%s17872_s12 + $0x3460] sm:$0xff] }
 0xf2f   : > { %15083 = vmatpush1.bf16.xpose.msra.mxu0 %v17389_v45  ;;  %15124 = vmatpush1.bf16.xpose.msra.mxu1 %v17391_v48  ;;  %v17106_v45 = vcombine.high %v1951_v16, %v1967_v31  ;;  %v1984_v48 = vld [vmem:[%s17872_s12 + $0x3368] sm:$0xff]  ;;  %v17107_v15 = vcombine.low %v1952_v38, %v1968_v20  ;;  %v2031_v54 = vld [vmem:[%s17872_s12 + $0x34e0] sm:$0xff] }
 0xf30   : > { %15084 = vmatprep.subr.bf16.mxu0 %v17422_v26  ;;  %15125 = vmatprep.subr.bf16.mxu1 %v17424_v49  ;;  %v17105_v26 = vcombine.low %v1951_v16, %v1967_v31  ;;  %v17138_v49 = vcombine.high %v1983_v5, %v1999_v59  ;;  %v2128_v50 = vld [vmem:[%s17872_s12 + $0x37e8] sm:$0xff]  ;;  %v2143_v0 = vld [vmem:[%s17872_s12 + $0x3860] sm:$0xff] }
 0xf31   : > { %v2159_v18 = vld [vmem:[%s17872_s12 + $0x38e0] sm:$0xff] }
 0xf32   : > { %v2175_v16 = vld [vmem:[%s17872_s12 + $0x3960] sm:$0xff] }
 0xf33   : > { %v2191_v31 = vld [vmem:[%s17872_s12 + $0x39e0] sm:$0xff] }
 0xf37   : > { %15085 = vmatpush1.bf16.xpose.msra.mxu0 %v17421_v25  ;;  %15126 = vmatpush1.bf16.xpose.msra.mxu1 %v17423_v58  ;;  %v17137_v25 = vcombine.low %v1983_v5, %v1999_v59  ;;  %v2207_v5 = vld [vmem:[%s17872_s12 + $0x3a60] sm:$0xff] }
 0xf38   : > { %15086 = vmatprep.subr.bf16.mxu0 %v17454_v8  ;;  %15127 = vmatprep.subr.bf16.mxu1 %v17456_v10  ;;  %v17170_v8 = vcombine.high %v2015_v7, %v2031_v54  ;;  %v17172_v10 = vcombine.high %v2016_v51, %v2032_v21  ;;  %v2223_v59 = vld [vmem:[%s17872_s12 + $0x3ae0] sm:$0xff] }
 0xf3f   : > { %15087 = vmatpush1.bf16.xpose.msra.mxu0 %v17453_v30  ;;  %15128 = vmatpush1.bf16.xpose.msra.mxu1 %v17455_v61  ;;  %v17169_v30 = vcombine.low %v2015_v7, %v2031_v54  ;;  %v17171_v61 = vcombine.low %v2016_v51, %v2032_v21  ;;  %v2239_v7 = vld [vmem:[%s17872_s12 + $0x3b60] sm:$0xff]  ;;  %v2240_v51 = vld [vmem:[%s17872_s12 + $0x3b68] sm:$0xff] }
 0xf40   : > { %15088 = vmatprep.subr.bf16.mxu0 %v17486_v57  ;;  %15129 = vmatprep.subr.bf16.mxu1 %v17488_v12  ;;  %v17202_v57 = vcombine.high %v2047_v1, %v2063_v24  ;;  %v17204_v12 = vcombine.high %v2048_v4, %v2064_v56  ;;  %v2255_v54 = vld [vmem:[%s17872_s12 + $0x3be0] sm:$0xff]  ;;  %v2256_v21 = vld [vmem:[%s17872_s12 + $0x3be8] sm:$0xff] }
 0xf47   : > { %15089 = vmatpush1.bf16.xpose.msra.mxu0 %v17485_v28  ;;  %15130 = vmatpush1.bf16.xpose.msra.mxu1 %v17487_v3  ;;  %v17201_v28 = vcombine.low %v2047_v1, %v2063_v24  ;;  %v17203_v3 = vcombine.low %v2048_v4, %v2064_v56  ;;  %v2271_v24 = vld [vmem:[%s17872_s12 + $0x3c60] sm:$0xff] }
 0xf48   : > { %15090 = vmatprep.subr.bf16.mxu0 %v17518_v40  ;;  %15131 = vmatprep.subr.bf16.mxu1 %v17520_v33  ;;  %v17234_v40 = vcombine.high %v2079_v27, %v2095_v2  ;;  %v17236_v33 = vcombine.high %v2080_v37, %v2096_v9  ;;  %v2287_v4 = vld [vmem:[%s17872_s12 + $0x3ce0] sm:$0xff] }
 0xf4f   : > { %15091 = vmatpush1.bf16.xpose.msra.mxu0 %v17517_v41  ;;  %15132 = vmatpush1.bf16.xpose.msra.mxu1 %v17519_v22  ;;  %v17233_v41 = vcombine.low %v2079_v27, %v2095_v2  ;;  %v17235_v22 = vcombine.low %v2080_v37, %v2096_v9  ;;  %v17393_v9 = vcombine.low %v2239_v7, %v2255_v54 }
 0xf50   : > { %15142 = vmatprep.subr.bf16.mxu0 %v17042_v34  ;;  %15183 = vmatprep.subr.bf16.mxu1 %v17044_v44  ;;  %v17266_v34 = vcombine.high %v2111_v17, %v2127_v13  ;;  %v17268_v44 = vcombine.high %v2112_v32, %v2128_v50 }
 0xf56   : > { %15093 = vmatmul.mubr.bf16.vlgmr.msra.gmra.mrb[116].mxu0 %v18439_v29  ;;  %15134 = vmatmul.mubr.bf16.vlgmr.msra.gmra.mrb[116].mxu1 %v18446_v39  ;;  %v17075_v29 = vcombine.low %v1920_v19, %v1936_v6  ;;  %v17108_v39 = vcombine.high %v1952_v38, %v1968_v20  ;;  %v2144_v19 = vld [vmem:[%s17872_s12 + $0x3868] sm:$0xff] }
 0xf57   : > { %15143 = vmatpush1.bf16.xpose.msra.mxu0 %v17041_v35  ;;  %15184 = vmatpush1.bf16.xpose.msra.mxu1 %v17043_v23  ;;  %v2160_v6 = vld [vmem:[%s17872_s12 + $0x38e8] sm:$0xff]  ;;  %v17265_v35 = vcombine.low %v2111_v17, %v2127_v13  ;;  %v17267_v23 = vcombine.low %v2112_v32, %v2128_v50  ;;  %v17426_v17 = vcombine.high %v2271_v24, %v2287_v4  ;;  %v2319_v50 = vld [vmem:[%s17872_s12 + $0x3de0] sm:$0xff] }
 0xf58   : > { %15144 = vmatprep.subr.bf16.mxu0 %v17074_v43  ;;  %15185 = vmatprep.subr.bf16.mxu1 %v17076_v46  ;;  %v17298_v43 = vcombine.high %v2143_v0, %v2159_v18  ;;  %v17300_v46 = vcombine.high %v2144_v19, %v2160_v6  ;;  %v2176_v38 = vld [vmem:[%s17872_s12 + $0x3968] sm:$0xff] }
 0xf59   : > { %15174 = vmatprep.mubr.bf16.mxu0 %v18451_v52  ;;  %15215 = vmatprep.mubr.bf16.mxu1 %v18454_v53  ;;  %v2000_v52 = vld [vmem:[%s17872_s12 + $0x33e8] sm:$0xff] }
 0xf5a   : > { %v17140_v53 = vcombine.high %v1984_v48, %v2000_v52  ;;  %v17139_v58 = vcombine.low %v1984_v48, %v2000_v52  ;;  %v2192_v20 = vld [vmem:[%s17872_s12 + $0x39e8] sm:$0xff] }
 0xf5b   : > { %v2208_v48 = vld [vmem:[%s17872_s12 + $0x3a68] sm:$0xff] }
 0xf5c   : > { %v2224_v52 = vld [vmem:[%s17872_s12 + $0x3ae8] sm:$0xff] }
 0xf5f   : > { %15145 = vmatpush1.bf16.xpose.msra.mxu0 %v17073_v42  ;;  %15186 = vmatpush1.bf16.xpose.msra.mxu1 %v17075_v29  ;;  %v17297_v42 = vcombine.low %v2143_v0, %v2159_v18  ;;  %v17299_v29 = vcombine.low %v2144_v19, %v2160_v6  ;;  %v2335_v19 = vld [vmem:[%s17872_s12 + $0x3e60] sm:$0xff] }
 0xf60   : > { %15146 = vmatprep.subr.bf16.mxu0 %v17106_v45  ;;  %15187 = vmatprep.subr.bf16.mxu1 %v17108_v39  ;;  %v17330_v45 = vcombine.high %v2175_v16, %v2191_v31  ;;  %v17332_v39 = vcombine.high %v2176_v38, %v2192_v20  ;;  %v2351_v6 = vld [vmem:[%s17872_s12 + $0x3ee0] sm:$0xff] }
 0xf67   : > { %15147 = vmatpush1.bf16.xpose.msra.mxu0 %v17105_v26  ;;  %15188 = vmatpush1.bf16.xpose.msra.mxu1 %v17107_v15  ;;  %v17329_v26 = vcombine.low %v2175_v16, %v2191_v31  ;;  %v17331_v15 = vcombine.low %v2176_v38, %v2192_v20  ;;  %v17490_v16 = vcombine.high %v2335_v19, %v2351_v6  ;;  %v2367_v38 = vld [vmem:[%s17872_s12 + $0x3f60] sm:$0xff] }
 0xf68   : > { %15148 = vmatprep.subr.bf16.mxu0 %v17138_v49  ;;  %15189 = vmatprep.subr.bf16.mxu1 %v17140_v53  ;;  %v17362_v49 = vcombine.high %v2207_v5, %v2223_v59  ;;  %v17364_v53 = vcombine.high %v2208_v48, %v2224_v52  ;;  %v2383_v20 = vld [vmem:[%s17872_s12 + $0x3fe0] sm:$0xff] }
 0xf6f   : > { %15149 = vmatpush1.bf16.xpose.msra.mxu0 %v17137_v25  ;;  %15190 = vmatpush1.bf16.xpose.msra.mxu1 %v17139_v58  ;;  %v17361_v25 = vcombine.low %v2207_v5, %v2223_v59  ;;  %v17363_v58 = vcombine.low %v2208_v48, %v2224_v52  ;;  %v17522_v5 = vcombine.high %v2367_v38, %v2383_v20  ;;  %v1889_v48 = vld [vmem:[%s17872_s12 + $0x3070] sm:$0xff] }
 0xf70   : > { %15150 = vmatprep.subr.bf16.mxu0 %v17170_v8  ;;  %15191 = vmatprep.subr.bf16.mxu1 %v17172_v10  ;;  %v17394_v8 = vcombine.high %v2239_v7, %v2255_v54  ;;  %v17396_v10 = vcombine.high %v2240_v51, %v2256_v21  ;;  %v1905_v52 = vld [vmem:[%s17872_s12 + $0x30f0] sm:$0xff] }
 0xf71   : > { %v17046_v7 = vcombine.high %v1889_v48, %v1905_v52 }
 0xf77   : > { %15151 = vmatpush1.bf16.xpose.msra.mxu0 %v17169_v30  ;;  %15192 = vmatpush1.bf16.xpose.msra.mxu1 %v17171_v61 }
 0xf78   : > { %15152 = vmatprep.subr.bf16.mxu0 %v17202_v57  ;;  %15193 = vmatprep.subr.bf16.mxu1 %v17204_v12  ;;  %v2272_v57 = vld [vmem:[%s17872_s12 + $0x3c68] sm:$0xff] }
 0xf79   : > { %v2288_v12 = vld [vmem:[%s17872_s12 + $0x3ce8] sm:$0xff] }
 0xf7a   : > { %v17428_v32 = vcombine.high %v2272_v57, %v2288_v12 }
 0xf7f   : > { %15153 = vmatpush1.bf16.xpose.msra.mxu0 %v17201_v28  ;;  %15194 = vmatpush1.bf16.xpose.msra.mxu1 %v17203_v3 }
 0xf80   : > { %15154 = vmatprep.subr.bf16.mxu0 %v17234_v40  ;;  %15195 = vmatprep.subr.bf16.mxu1 %v17236_v33  ;;  %v17395_v33 = vcombine.low %v2240_v51, %v2256_v21  ;;  %v1921_v51 = vld [vmem:[%s17872_s12 + $0x3170] sm:$0xff] }
 0xf81   : > { %v1937_v21 = vld [vmem:[%s17872_s12 + $0x31f0] sm:$0xff] }
 0xf87   : > { %15155 = vmatpush1.bf16.xpose.msra.mxu0 %v17233_v41  ;;  %15196 = vmatpush1.bf16.xpose.msra.mxu1 %v17235_v22  ;;  %v2304_v41 = vld [vmem:[%s17872_s12 + $0x3d68] sm:$0xff] }
 0xf88   : > { %15156 = vmatprep.subr.bf16.mxu0 %v17266_v34  ;;  %15197 = vmatprep.subr.bf16.mxu1 %v17268_v44  ;;  %v2320_v22 = vld [vmem:[%s17872_s12 + $0x3de8] sm:$0xff]  ;;  %v17425_v34 = vcombine.low %v2271_v24, %v2287_v4  ;;  %v17427_v44 = vcombine.low %v2272_v57, %v2288_v12  ;;  %v1953_v4 = vld [vmem:[%s17872_s12 + $0x3270] sm:$0xff]  ;;  %v17077_v57 = vcombine.low %v1921_v51, %v1937_v21 }
 0xf89   : > { %v17460_v18 = vcombine.high %v2304_v41, %v2320_v22 }
 0xf8f   : > { %15157 = vmatpush1.bf16.xpose.msra.mxu0 %v17265_v35  ;;  %15198 = vmatpush1.bf16.xpose.msra.mxu1 %v17267_v23  ;;  %v2336_v35 = vld [vmem:[%s17872_s12 + $0x3e68] sm:$0xff] }
 0xf90   : > { %15158 = vmatprep.subr.bf16.mxu0 %v17298_v43  ;;  %15199 = vmatprep.subr.bf16.mxu1 %v17300_v46  ;;  %v2352_v23 = vld [vmem:[%s17872_s12 + $0x3ee8] sm:$0xff]  ;;  %v17459_v46 = vcombine.low %v2304_v41, %v2320_v22 }
 0xf91   : > { %v17492_v31 = vcombine.high %v2336_v35, %v2352_v23 }
 0xf97   : > { %15159 = vmatpush1.bf16.xpose.msra.mxu0 %v17297_v42  ;;  %15200 = vmatpush1.bf16.xpose.msra.mxu1 %v17299_v29  ;;  %v2368_v42 = vld [vmem:[%s17872_s12 + $0x3f68] sm:$0xff] }
 0xf98   : > { %15160 = vmatprep.subr.bf16.mxu0 %v17330_v45  ;;  %15201 = vmatprep.subr.bf16.mxu1 %v17332_v39  ;;  %v2384_v29 = vld [vmem:[%s17872_s12 + $0x3fe8] sm:$0xff]  ;;  %v17489_v45 = vcombine.low %v2335_v19, %v2351_v6  ;;  %v17491_v39 = vcombine.low %v2336_v35, %v2352_v23 }
 0xf99   : > { %v17524_v59 = vcombine.high %v2368_v42, %v2384_v29 }
 0xf9f   : > { %15161 = vmatpush1.bf16.xpose.msra.mxu0 %v17329_v26  ;;  %15202 = vmatpush1.bf16.xpose.msra.mxu1 %v17331_v15  ;;  %v1890_v26 = vld [vmem:[%s17872_s12 + $0x3078] sm:$0xff] }
 0xfa0   : > { %15162 = vmatprep.subr.bf16.mxu0 %v17362_v49  ;;  %15203 = vmatprep.subr.bf16.mxu1 %v17364_v53  ;;  %v1906_v15 = vld [vmem:[%s17872_s12 + $0x30f8] sm:$0xff]  ;;  %v17521_v49 = vcombine.low %v2367_v38, %v2383_v20  ;;  %v17523_v53 = vcombine.low %v2368_v42, %v2384_v29 }
 0xfa1   : > { %v17048_v54 = vcombine.high %v1890_v26, %v1906_v15 }
 0xfa7   : > { %15163 = vmatpush1.bf16.xpose.msra.mxu0 %v17361_v25  ;;  %15204 = vmatpush1.bf16.xpose.msra.mxu1 %v17363_v58  ;;  %v1922_v25 = vld [vmem:[%s17872_s12 + $0x3178] sm:$0xff] }
 0xfa8   : > { %15164 = vmatprep.subr.bf16.mxu0 %v17394_v8  ;;  %15205 = vmatprep.subr.bf16.mxu1 %v17396_v10  ;;  %v1938_v58 = vld [vmem:[%s17872_s12 + $0x31f8] sm:$0xff]  ;;  %v17045_v8 = vcombine.low %v1889_v48, %v1905_v52  ;;  %v17047_v10 = vcombine.low %v1890_v26, %v1906_v15 }
 0xfa9   : > { %v15012_v1 = vpop.f32.mrb[112].mxu0  ;;  %v15053_v30 = vpop.f32.mrb[112].mxu1  ;;  %v17080_v24 = vcombine.high %v1922_v25, %v1938_v58 }
 0xfaa   : > { %v15013_v56 = vadd.f32 %v15012_v1, %v20252_v63  ;;  %v15014_v61 = vpop.f32.mrb[113].mxu0  ;;  %v15055_v2 = vpop.f32.mrb[113].mxu1  ;;  %v17078_v1 = vcombine.high %v1921_v51, %v1937_v21 }
 0xfab   : > { %v15015_v27 = vadd.f32 %v15014_v61, %v20254_v55  ;;  %v15016_v37 = vpop.f32.mrb[114].mxu0  ;;  %v15057_v3 = vpop.f32.mrb[114].mxu1  ;;  %v2303_v55 = vld [vmem:[%s17872_s12 + $0x3d60] sm:$0xff]  ;;  %v1970_v61 = vld [vmem:[%s17872_s12 + $0x32f8] sm:$0xff] }
 0xfac   : > { %v20326_v28 = vadd.f32 %v15053_v30, %v15013_v56  ;;  %v15017_v40 = vpop.f32.mrb[115].mxu0  ;;  %v15058_v13 = vpop.f32.mrb[115].mxu1  ;;  %v17458_v0 = vcombine.high %v2303_v55, %v2319_v50  ;;  %v17457_v43 = vcombine.low %v2303_v55, %v2319_v50  ;;  %v1969_v56 = vld [vmem:[%s17872_s12 + $0x32f0] sm:$0xff]  ;;  %v1954_v30 = vld [vmem:[%s17872_s12 + $0x3278] sm:$0xff] }
 0xfad   : > { %v20328_v63 = vadd.f32 %v15055_v2, %v15015_v27  ;;  %v17110_v12 = vcombine.high %v1953_v4, %v1969_v56  ;;  %v1985_v27 = vld [vmem:[%s17872_s12 + $0x3370] sm:$0xff]  ;;  %v1986_v37 = vld [vmem:[%s17872_s12 + $0x3378] sm:$0xff]  ;;  %v17111_v3 = vcombine.low %v1954_v30, %v1970_v61 }
 0xfae   : > { %v2001_v2 = vld [vmem:[%s17872_s12 + $0x33f0] sm:$0xff]  ;;  %v2018_v13 = vld [vmem:[%s17872_s12 + $0x3478] sm:$0xff] }
 0xfaf   : > { %15165 = vmatpush1.bf16.xpose.msra.mxu0 %v17393_v9  ;;  %15206 = vmatpush1.bf16.xpose.msra.mxu1 %v17395_v33  ;;  %v17109_v9 = vcombine.low %v1953_v4, %v1969_v56  ;;  %v17142_v40 = vcombine.high %v1985_v27, %v2001_v2  ;;  %v2017_v33 = vld [vmem:[%s17872_s12 + $0x3470] sm:$0xff]  ;;  %v17141_v55 = vcombine.low %v1985_v27, %v2001_v2 }
 0xfb0   : > { %15166 = vmatprep.subr.bf16.mxu0 %v17426_v17  ;;  %15207 = vmatprep.subr.bf16.mxu1 %v17428_v32  ;;  %v2033_v17 = vld [vmem:[%s17872_s12 + $0x34f0] sm:$0xff]  ;;  %v2034_v32 = vld [vmem:[%s17872_s12 + $0x34f8] sm:$0xff] }
 0xfb1   : > { %v17174_v41 = vcombine.high %v2017_v33, %v2033_v17  ;;  %v17176_v22 = vcombine.high %v2018_v13, %v2034_v32  ;;  %v17173_v19 = vcombine.low %v2017_v33, %v2033_v17  ;;  %v17175_v6 = vcombine.low %v2018_v13, %v2034_v32 }
 0xfb7   : > { %15167 = vmatpush1.bf16.xpose.msra.mxu0 %v17425_v34  ;;  %15208 = vmatpush1.bf16.xpose.msra.mxu1 %v17427_v44  ;;  %v2049_v34 = vld [vmem:[%s17872_s12 + $0x3570] sm:$0xff] }
 0xfb8   : > { %15168 = vmatprep.subr.bf16.mxu0 %v17458_v0  ;;  %15209 = vmatprep.subr.bf16.mxu1 %v17460_v18  ;;  %v2065_v44 = vld [vmem:[%s17872_s12 + $0x35f0] sm:$0xff]  ;;  %v2050_v0 = vld [vmem:[%s17872_s12 + $0x3578] sm:$0xff] }
 0xfb9   : > { %v2066_v18 = vld [vmem:[%s17872_s12 + $0x35f8] sm:$0xff]  ;;  %v17206_v35 = vcombine.high %v2049_v34, %v2065_v44  ;;  %v17205_v38 = vcombine.low %v2049_v34, %v2065_v44 }
 0xfba   : > { %v17208_v23 = vcombine.high %v2050_v0, %v2066_v18  ;;  %v17207_v20 = vcombine.low %v2050_v0, %v2066_v18  ;;  %v2274_v0 = vld [vmem:[%s17872_s12 + $0x3c78] sm:$0xff] }
 0xfbb   : > { %v2290_v18 = vld [vmem:[%s17872_s12 + $0x3cf8] sm:$0xff] }
 0xfbf   : > { %15169 = vmatpush1.bf16.xpose.msra.mxu0 %v17457_v43  ;;  %15210 = vmatpush1.bf16.xpose.msra.mxu1 %v17459_v46  ;;  %v2081_v43 = vld [vmem:[%s17872_s12 + $0x3670] sm:$0xff] }
 0xfc0   : > { %15170 = vmatprep.subr.bf16.mxu0 %v17490_v16  ;;  %15211 = vmatprep.subr.bf16.mxu1 %v17492_v31  ;;  %v2097_v46 = vld [vmem:[%s17872_s12 + $0x36f0] sm:$0xff]  ;;  %v2082_v16 = vld [vmem:[%s17872_s12 + $0x3678] sm:$0xff] }
 0xfc1   : > { %v2098_v31 = vld [vmem:[%s17872_s12 + $0x36f8] sm:$0xff]  ;;  %v17238_v42 = vcombine.high %v2081_v43, %v2097_v46  ;;  %v17237_v48 = vcombine.low %v2081_v43, %v2097_v46 }
 0xfc2   : > { %v17240_v29 = vcombine.high %v2082_v16, %v2098_v31  ;;  %v17239_v52 = vcombine.low %v2082_v16, %v2098_v31 }
 0xfc7   : > { %15171 = vmatpush1.bf16.xpose.msra.mxu0 %v17489_v45  ;;  %15212 = vmatpush1.bf16.xpose.msra.mxu1 %v17491_v39  ;;  %v2113_v45 = vld [vmem:[%s17872_s12 + $0x3770] sm:$0xff] }
 0xfc8   : > { %15172 = vmatprep.subr.bf16.mxu0 %v17522_v5  ;;  %15213 = vmatprep.subr.bf16.mxu1 %v17524_v59  ;;  %v2129_v39 = vld [vmem:[%s17872_s12 + $0x37f0] sm:$0xff]  ;;  %v2114_v5 = vld [vmem:[%s17872_s12 + $0x3778] sm:$0xff] }
 0xfc9   : > { %v2130_v59 = vld [vmem:[%s17872_s12 + $0x37f8] sm:$0xff]  ;;  %v17270_v26 = vcombine.high %v2113_v45, %v2129_v39  ;;  %v17269_v51 = vcombine.low %v2113_v45, %v2129_v39 }
 0xfca   : > { %v17272_v15 = vcombine.high %v2114_v5, %v2130_v59  ;;  %v17271_v21 = vcombine.low %v2114_v5, %v2130_v59  ;;  %v2306_v45 = vld [vmem:[%s17872_s12 + $0x3d78] sm:$0xff]  ;;  %v17431_v59 = vcombine.low %v2274_v0, %v2290_v18 }
 0xfcb   : > { %v2322_v39 = vld [vmem:[%s17872_s12 + $0x3df8] sm:$0xff] }
 0xfcf   : > { %15173 = vmatpush1.bf16.xpose.msra.mxu0 %v17521_v49  ;;  %15214 = vmatpush1.bf16.xpose.msra.mxu1 %v17523_v53  ;;  %v2145_v49 = vld [vmem:[%s17872_s12 + $0x3870] sm:$0xff] }
 0xfd0   : > { %15224 = vmatprep.subr.bf16.mxu0 %v17046_v7  ;;  %15265 = vmatprep.subr.bf16.mxu1 %v17048_v54  ;;  %v2161_v53 = vld [vmem:[%s17872_s12 + $0x38f0] sm:$0xff]  ;;  %v2146_v7 = vld [vmem:[%s17872_s12 + $0x3878] sm:$0xff] }
 0xfd1   : > { %v2162_v54 = vld [vmem:[%s17872_s12 + $0x38f8] sm:$0xff]  ;;  %v17301_v4 = vcombine.low %v2145_v49, %v2161_v53 }
 0xfd2   : > { %v17303_v56 = vcombine.low %v2146_v7, %v2162_v54 }
 0xfd6   : > { %15175 = vmatmul.mubr.bf16.vlgmr.msra.gmra.mrb[120].mxu0 %v18533_v36  ;;  %15216 = vmatmul.mubr.bf16.vlgmr.msra.gmra.mrb[120].mxu1 %v18540_v47  ;;  %v17079_v36 = vcombine.low %v1922_v25, %v1938_v58  ;;  %v17112_v47 = vcombine.high %v1954_v30, %v1970_v61  ;;  %v17302_v25 = vcombine.high %v2145_v49, %v2161_v53  ;;  %v2338_v49 = vld [vmem:[%s17872_s12 + $0x3e78] sm:$0xff] }
 0xfd7   : > { %15225 = vmatpush1.bf16.xpose.msra.mxu0 %v17045_v8  ;;  %15266 = vmatpush1.bf16.xpose.msra.mxu1 %v17047_v10  ;;  %v17304_v58 = vcombine.high %v2146_v7, %v2162_v54  ;;  %v2177_v8 = vld [vmem:[%s17872_s12 + $0x3970] sm:$0xff]  ;;  %v2354_v53 = vld [vmem:[%s17872_s12 + $0x3ef8] sm:$0xff]  ;;  %v17463_v54 = vcombine.low %v2306_v45, %v2322_v39 }
 0xfd8   : > { %15226 = vmatprep.subr.bf16.mxu0 %v17078_v1  ;;  %15267 = vmatprep.subr.bf16.mxu1 %v17080_v24  ;;  %v2193_v10 = vld [vmem:[%s17872_s12 + $0x39f0] sm:$0xff]  ;;  %v2178_v1 = vld [vmem:[%s17872_s12 + $0x3978] sm:$0xff] }
 0xfd9   : > { %15256 = vmatprep.mubr.bf16.mxu0 %v18545_v60  ;;  %15297 = vmatprep.mubr.bf16.mxu1 %v18548_v62  ;;  %v2002_v60 = vld [vmem:[%s17872_s12 + $0x33f8] sm:$0xff]  ;;  %v17334_v30 = vcombine.high %v2177_v8, %v2193_v10  ;;  %v17333_v27 = vcombine.low %v2177_v8, %v2193_v10 }
 0xfda   : > { %v17144_v62 = vcombine.high %v1986_v37, %v2002_v60  ;;  %v17143_v50 = vcombine.low %v1986_v37, %v2002_v60  ;;  %v2194_v24 = vld [vmem:[%s17872_s12 + $0x39f8] sm:$0xff] }
 0xfdb   : > { %v17336_v61 = vcombine.high %v2178_v1, %v2194_v24  ;;  %v17335_v2 = vcombine.low %v2178_v1, %v2194_v24  ;;  %v2370_v8 = vld [vmem:[%s17872_s12 + $0x3f78] sm:$0xff]  ;;  %v17495_v24 = vcombine.low %v2338_v49, %v2354_v53 }
 0xfdc   : > { %v2386_v10 = vld [vmem:[%s17872_s12 + $0x3ff8] sm:$0xff] }
 0xfdf   : > { %15227 = vmatpush1.bf16.xpose.msra.mxu0 %v17077_v57  ;;  %15268 = vmatpush1.bf16.xpose.msra.mxu1 %v17079_v36  ;;  %v2209_v57 = vld [vmem:[%s17872_s12 + $0x3a70] sm:$0xff] }
 0xfe0   : > { %15228 = vmatprep.subr.bf16.mxu0 %v17110_v12  ;;  %15269 = vmatprep.subr.bf16.mxu1 %v17112_v47  ;;  %v2225_v36 = vld [vmem:[%s17872_s12 + $0x3af0] sm:$0xff]  ;;  %v2210_v12 = vld [vmem:[%s17872_s12 + $0x3a78] sm:$0xff] }
 0xfe1   : > { %v2226_v47 = vld [vmem:[%s17872_s12 + $0x3af8] sm:$0xff]  ;;  %v17366_v37 = vcombine.high %v2209_v57, %v2225_v36  ;;  %v17365_v33 = vcombine.low %v2209_v57, %v2225_v36 }
 0xfe2   : > { %v17368_v60 = vcombine.high %v2210_v12, %v2226_v47  ;;  %v17367_v17 = vcombine.low %v2210_v12, %v2226_v47 }
 0xfe7   : > { %15229 = vmatpush1.bf16.xpose.msra.mxu0 %v17109_v9  ;;  %15270 = vmatpush1.bf16.xpose.msra.mxu1 %v17111_v3  ;;  %v2241_v9 = vld [vmem:[%s17872_s12 + $0x3b70] sm:$0xff] }
 0xfe8   : > { %15230 = vmatprep.subr.bf16.mxu0 %v17142_v40  ;;  %15271 = vmatprep.subr.bf16.mxu1 %v17144_v62  ;;  %v2257_v3 = vld [vmem:[%s17872_s12 + $0x3bf0] sm:$0xff]  ;;  %v2242_v40 = vld [vmem:[%s17872_s12 + $0x3b78] sm:$0xff] }
 0xfe9   : > { %v2258_v62 = vld [vmem:[%s17872_s12 + $0x3bf8] sm:$0xff]  ;;  %v17398_v13 = vcombine.high %v2241_v9, %v2257_v3 }
 0xfea   : > { %v17400_v32 = vcombine.high %v2242_v40, %v2258_v62  ;;  %v17399_v31 = vcombine.low %v2242_v40, %v2258_v62 }
 0xfef   : > { %15231 = vmatpush1.bf16.xpose.msra.mxu0 %v17141_v55  ;;  %15272 = vmatpush1.bf16.xpose.msra.mxu1 %v17143_v50  ;;  %v2273_v50 = vld [vmem:[%s17872_s12 + $0x3c70] sm:$0xff] }
 0xff0   : > { %15232 = vmatprep.subr.bf16.mxu0 %v17174_v41  ;;  %15273 = vmatprep.subr.bf16.mxu1 %v17176_v22  ;;  %v2289_v41 = vld [vmem:[%s17872_s12 + $0x3cf0] sm:$0xff] }
 0xff1   : > { %v17429_v5 = vcombine.low %v2273_v50, %v2289_v41 }
 0xff7   : > { %15233 = vmatpush1.bf16.xpose.msra.mxu0 %v17173_v19  ;;  %15274 = vmatpush1.bf16.xpose.msra.mxu1 %v17175_v6 }
 0xff8   : > { %15234 = vmatprep.subr.bf16.mxu0 %v17206_v35  ;;  %15275 = vmatprep.subr.bf16.mxu1 %v17208_v23  ;;  %v17397_v23 = vcombine.low %v2241_v9, %v2257_v3 }
 0xfff   : > { %15235 = vmatpush1.bf16.xpose.msra.mxu0 %v17205_v38  ;;  %15276 = vmatpush1.bf16.xpose.msra.mxu1 %v17207_v20  ;;  %v17430_v38 = vcombine.high %v2273_v50, %v2289_v41 }
0x1000   : > { %15236 = vmatprep.subr.bf16.mxu0 %v17238_v42  ;;  %15277 = vmatprep.subr.bf16.mxu1 %v17240_v29  ;;  %v17432_v42 = vcombine.high %v2274_v0, %v2290_v18  ;;  %v2321_v29 = vld [vmem:[%s17872_s12 + $0x3df0] sm:$0xff] }
0x1007   : > { %15237 = vmatpush1.bf16.xpose.msra.mxu0 %v17237_v48  ;;  %15278 = vmatpush1.bf16.xpose.msra.mxu1 %v17239_v52  ;;  %v17464_v52 = vcombine.high %v2306_v45, %v2322_v39 }
0x1008   : > { %15238 = vmatprep.subr.bf16.mxu0 %v17270_v26  ;;  %15279 = vmatprep.subr.bf16.mxu1 %v17272_v15  ;;  %v2337_v26 = vld [vmem:[%s17872_s12 + $0x3e70] sm:$0xff] }
0x1009   : > { %v2353_v15 = vld [vmem:[%s17872_s12 + $0x3ef0] sm:$0xff] }
0x100a   : > { %v17493_v1 = vcombine.low %v2337_v26, %v2353_v15 }
0x100f   : > { %15239 = vmatpush1.bf16.xpose.msra.mxu0 %v17269_v51  ;;  %15280 = vmatpush1.bf16.xpose.msra.mxu1 %v17271_v21  ;;  %v17494_v51 = vcombine.high %v2337_v26, %v2353_v15  ;;  %v17496_v21 = vcombine.high %v2338_v49, %v2354_v53 }
0x1010   : > { %15240 = vmatprep.subr.bf16.mxu0 %v17302_v25  ;;  %15281 = vmatprep.subr.bf16.mxu1 %v17304_v58  ;;  %v2369_v25 = vld [vmem:[%s17872_s12 + $0x3f70] sm:$0xff] }
0x1011   : > { %v2385_v58 = vld [vmem:[%s17872_s12 + $0x3ff0] sm:$0xff] }
0x1017   : > { %15241 = vmatpush1.bf16.xpose.msra.mxu0 %v17301_v4  ;;  %15282 = vmatpush1.bf16.xpose.msra.mxu1 %v17303_v56  ;;  %v17526_v4 = vcombine.high %v2369_v25, %v2385_v58  ;;  %v17528_v56 = vcombine.high %v2370_v8, %v2386_v10 }
0x1018   : > { %15242 = vmatprep.subr.bf16.mxu0 %v17334_v30  ;;  %15283 = vmatprep.subr.bf16.mxu1 %v17336_v61  ;;  %v17525_v30 = vcombine.low %v2369_v25, %v2385_v58  ;;  %v17527_v61 = vcombine.low %v2370_v8, %v2386_v10 }
0x101f   : > { %15243 = vmatpush1.bf16.xpose.msra.mxu0 %v17333_v27  ;;  %15284 = vmatpush1.bf16.xpose.msra.mxu1 %v17335_v2 }
0x1020   : > { %15244 = vmatprep.subr.bf16.mxu0 %v17366_v37  ;;  %15285 = vmatprep.subr.bf16.mxu1 %v17368_v60 }
0x1027   : > { %15245 = vmatpush1.bf16.xpose.msra.mxu0 %v17365_v33  ;;  %15286 = vmatpush1.bf16.xpose.msra.mxu1 %v17367_v17  ;;  %v2398_v33 = vld [vmem:[%s18756_s5 + $0x30] sm:$0xff]  ;;  %v2399_v17 = vld [vmem:[%s18756_s5 + $0x38] sm:$0xff] }
0x1028   : > { %15246 = vmatprep.subr.bf16.mxu0 %v17398_v13  ;;  %15287 = vmatprep.subr.bf16.mxu1 %v17400_v32 }
0x1029   : > { %v15094_v55 = vpop.f32.mrb[116].mxu0  ;;  %v15135_v34 = vpop.f32.mrb[116].mxu1 }
0x102a   : > { %v15095_v22 = vadd.f32 %v15094_v55, %v20326_v28  ;;  %v15096_v44 = vpop.f32.mrb[117].mxu0  ;;  %v15137_v6 = vpop.f32.mrb[117].mxu1 }
0x102b   : > { %v15097_v19 = vadd.f32 %v15096_v44, %v20328_v63  ;;  %v15098_v35 = vpop.f32.mrb[118].mxu0  ;;  %v15139_v46 = vpop.f32.mrb[118].mxu1  ;;  %v2305_v63 = vld [vmem:[%s17872_s12 + $0x3d70] sm:$0xff] }
0x102c   : > { %v15136_v43 = vadd.f32 %v15135_v34, %v15095_v22  ;;  %v15099_v16 = vpop.f32.mrb[119].mxu0  ;;  %v15140_v28 = vpop.f32.mrb[119].mxu1  ;;  %v17462_v48 = vcombine.high %v2305_v63, %v2321_v29  ;;  %v17461_v7 = vcombine.low %v2305_v63, %v2321_v29  ;;  %v15313_v22 = vmul.f32 2.0, %v2399_v17 }
0x102d   : > { %v15138_v20 = vadd.f32 %v15137_v6, %v15097_v19 }
0x102f   : > { %15247 = vmatpush1.bf16.xpose.msra.mxu0 %v17397_v23  ;;  %15288 = vmatpush1.bf16.xpose.msra.mxu1 %v17399_v31 }
0x1030   : > { %15248 = vmatprep.subr.bf16.mxu0 %v17430_v38  ;;  %15289 = vmatprep.subr.bf16.mxu1 %v17432_v42 }
0x1037   : > { %15249 = vmatpush1.bf16.xpose.msra.mxu0 %v17429_v5  ;;  %15290 = vmatpush1.bf16.xpose.msra.mxu1 %v17431_v59 }
0x1038   : > { %15250 = vmatprep.subr.bf16.mxu0 %v17462_v48  ;;  %15291 = vmatprep.subr.bf16.mxu1 %v17464_v52 }
0x103f   : > { %15251 = vmatpush1.bf16.xpose.msra.mxu0 %v17461_v7  ;;  %15292 = vmatpush1.bf16.xpose.msra.mxu1 %v17463_v54 }
0x1040   : > { %15252 = vmatprep.subr.bf16.mxu0 %v17494_v51  ;;  %15293 = vmatprep.subr.bf16.mxu1 %v17496_v21 }
0x1047   : > { %15253 = vmatpush1.bf16.xpose.msra.mxu0 %v17493_v1  ;;  %15294 = vmatpush1.bf16.xpose.msra.mxu1 %v17495_v24 }
0x1048   : > { %15254 = vmatprep.subr.bf16.mxu0 %v17526_v4  ;;  %15295 = vmatprep.subr.bf16.mxu1 %v17528_v56 }
0x104f   : > { %15255 = vmatpush1.bf16.xpose.msra.mxu0 %v17525_v30  ;;  %15296 = vmatpush1.bf16.xpose.msra.mxu1 %v17527_v61 }
0x1056   : > { %15257 = vmatmul.mubr.bf16.vlgmr.msra.gmra.mrb[124].mxu0 %v18627_v11  ;;  %15298 = vmatmul.mubr.bf16.vlgmr.msra.gmra.mrb[124].mxu1 %v18631_v14  ;;  %v15312_v14 = vmul.f32 2.0, %v2398_v33 }
0x10a9   : > { %v15176_v57 = vpop.f32.mrb[120].mxu0  ;;  %v15217_v12 = vpop.f32.mrb[120].mxu1 }
0x10aa   : > { %v15177_v36 = vadd.f32 %v15176_v57, %v15136_v43  ;;  %v15178_v47 = vpop.f32.mrb[121].mxu0  ;;  %v15219_v2 = vpop.f32.mrb[121].mxu1 }
0x10ab   : > { %v15179_v27 = vadd.f32 %v15178_v47, %v15138_v20  ;;  %v15180_v37 = vpop.f32.mrb[122].mxu0  ;;  %v15221_v9 = vpop.f32.mrb[122].mxu1 }
0x10ac   : > { %v15218_v60 = vadd.f32 %v15217_v12, %v15177_v36  ;;  %v15181_v3 = vpop.f32.mrb[123].mxu0  ;;  %v15222_v62 = vpop.f32.mrb[123].mxu1 }
0x10ad   : > { %v15220_v40 = vadd.f32 %v15219_v2, %v15179_v27 }
0x1129   : > { %v15258_v13 = vpop.f32.mrb[124].mxu0  ;;  %v15299_v11 = vpop.f32.mrb[124].mxu1 }
0x112a   : > { %v15259_v32 = vadd.f32 %v15258_v13, %v15218_v60  ;;  %v15260_v55 = vpop.f32.mrb[125].mxu0  ;;  %v15301_v41 = vpop.f32.mrb[125].mxu1 }
0x112b   : > { %v15261_v50 = vadd.f32 %v15260_v55, %v15220_v40  ;;  %v15262_v34 = vpop.f32.mrb[126].mxu0  ;;  %v15303_v0 = vpop.f32.mrb[126].mxu1 }
0x112c   : > { %v15300_v44 = vadd.f32 %v15299_v11, %v15259_v32  ;;  %v15263_v18 = vpop.f32.mrb[127].mxu0  ;;  %v15304_v6 = vpop.f32.mrb[127].mxu1 }
0x112d   : > { %v15302_v19 = vadd.f32 %v15301_v41, %v15261_v50 }
0x112e   : > { %v15320_v35 = vadd.f32 %v15312_v14, %v15300_v44 }
0x112f   : > { %v15321_v23 = vadd.f32 %v15313_v22, %v15302_v19 }
0x1130   : > { %15328 = vst [vmem:[%s18769_s4 + $0x30] sm:$0xff] %v15320_v35 }
0x1131   : > { %15329 = vst [vmem:[%s18769_s4 + $0x38] sm:$0xff] %v15321_v23 }
0x1132 PF: > { %s19_s17 = sadd.s32 1, %s17713_s17   ;;  %s20447_s12 = smov %s17697_s13 }
0x1133   : > { %p16_p9 = scmp.ge.s32.totalorder %s19_s17, 6   ;;  %s20448_s13 = smov %s17701_s14 }
0x1134   : > { %s20449_s14 = smov %s17788_s24  ;;  %s20450_s15 = smov %s17709_s16 }
0x1135   : > { %s20451_s16 = smov %s20453_s19  ;;  %18 = sbr.rel (!%p16_p9) target bundleno = 6 (0x6), region = 89 }
0x113c   :  { %15360 = vsyncpa [#allocation3], 1 }
0x113d   :  { %15362 = vsyncpa [#allocation3 + $0x1], 1 }
0x113e   :  { %15363 = vsyncpa [#allocation5], 1 }
0x113f   :  { %15365 = vsyncpa [#allocation5 + $0x1], 1 }

</bundles_post_ra>
